<compile_context>
chip_gen: v7x
topology: tpu7x:2x2x1
jax: 0.10.0
libtpu: 0.0.40
codegen_flags: <defaults>
</compile_context>

<pallas_src>
import jax
import jax.numpy as jnp
from jax.experimental import pallas as pl
from jax.experimental.pallas import tpu as pltpu


def _bottleneck_kernel(x_ref,
                       w1sc_ref, s1sc_ref, b1sc_ref,
                       w2_ref, s2_ref, b2_ref,
                       w3_ref, s3_ref, b3_ref,
                       wf1_ref, bf1_ref, wf2_ref, bf2_ref,
                       o_ref, pad_ref):
    NB = x_ref.shape[0]
    H = x_ref.shape[1]
    W = x_ref.shape[2]
    Cin = x_ref.shape[3]
    P = s2_ref.shape[1]
    C4 = w3_ref.shape[1]
    M = NB * H * W

    # input block is already bf16 (cast once in the wrapper -> halved HBM DMA)
    xf = x_ref[...].reshape(M, Cin)                                    # (M, Cin) bf16

    # Fused conv1 (1x1) + projection shortcut (1x1): one MXU pass over xf with
    # the column-concatenated weight; folded-BN epilogue on the full width,
    # then split (ReLU only on the conv1 half).
    h = jnp.dot(xf, w1sc_ref[...], preferred_element_type=jnp.float32)  # (M, P+C4)
    h = h * s1sc_ref[...] + b1sc_ref[...]
    h1 = jnp.maximum(h[:, :P], 0.0)                                     # (M, P)
    sc = h[:, P:]                                                       # (M, C4)

    # Padded scratch for the 3x3 conv: zero ONLY the 1-element border each step
    # (the interior is fully overwritten below, so this stays correct even when
    # the batch axis is sharded across cores).
    pad_ref[:, 0:1, :, :] = jnp.zeros((NB, 1, W + 2, P), pad_ref.dtype)
    pad_ref[:, H + 1:H + 2, :, :] = jnp.zeros((NB, 1, W + 2, P), pad_ref.dtype)
    pad_ref[:, :, 0:1, :] = jnp.zeros((NB, H + 2, 1, P), pad_ref.dtype)
    pad_ref[:, :, W + 1:W + 2, :] = jnp.zeros((NB, H + 2, 1, P), pad_ref.dtype)
    pad_ref[:, 1:H + 1, 1:W + 1, :] = h1.reshape(NB, H, W, P).astype(pad_ref.dtype)

    # conv2 (3x3, stride=1, padding=1): 9 accumulated K=P bf16 matmuls into one
    # f32 accumulator -- no (M, 9P) im2col patch / concat is materialized.
    # TODO(synk): go further per review option (a): 3 contiguous dy-band matmuls
    #             with pltpu.roll dx taps (XLU) once packed-bf16 sublane rolls
    #             are validated on all target generations.
    acc = jnp.zeros((M, P), jnp.float32)
    for dy in range(3):
        for dx in range(3):
            tap = pad_ref[:, dy:dy + H, dx:dx + W, :].reshape(M, P)     # bf16
            acc = acc + jnp.dot(tap, w2_ref[dy * 3 + dx],
                                preferred_element_type=jnp.float32)
    h2 = jnp.maximum(acc * s2_ref[...] + b2_ref[...], 0.0)              # (M, P) f32

    # Squeeze-and-Excitation gate, pooled from h2 (exact: mean commutes with the
    # 1x1 conv3 + affine BN3) -> reduction over (HW, P) instead of (HW, 4P).
    pooled = jnp.mean(h2.reshape(NB, H * W, P), axis=1)                 # (NB, P)
    pooled = jnp.dot(pooled.astype(jnp.bfloat16), w3_ref[...],
                     preferred_element_type=jnp.float32) * s3_ref[...] + b3_ref[...]
    z = jnp.maximum(
        jnp.dot(pooled, wf1_ref[...], preferred_element_type=jnp.float32)
        + bf1_ref[...], 0.0)                                            # (NB, hid)
    gate = jax.nn.sigmoid(
        jnp.dot(z, wf2_ref[...], preferred_element_type=jnp.float32) + bf2_ref[...])

    # conv3 (1x1) + BN3, SE gate, shortcut add, final ReLU.
    h3 = jnp.dot(h2.astype(jnp.bfloat16), w3_ref[...],
                 preferred_element_type=jnp.float32) * s3_ref[...] + b3_ref[...]
    out = h3.reshape(NB, H * W, C4) * gate[:, None, :] + sc.reshape(NB, H * W, C4)
    out = jnp.maximum(out, 0.0)
    o_ref[...] = out.reshape(NB, H, W, C4).astype(o_ref.dtype)


def _pick_vmem_limit():
    """Per-generation scoped-VMEM limit: ~3/4 of physical, clamped to [32, 64] MiB
    (v5e/v6e: 64 MiB; v7x with 64 MiB physical: 48 MiB). Falls back to 32 MiB."""
    mib = 1024 * 1024
    try:
        cap = int(pltpu.get_tpu_info().vmem_capacity_bytes)
    except Exception:
        return 32 * mib
    return int(min(max(cap * 3 // 4, 32 * mib), 64 * mib))


def bottleneck_pallas(x_nhwc, params, *, batch_block=2, out_dtype=jnp.bfloat16):
    """x_nhwc: (N, H, W, Cin) float32 -> (N, H, W, 4*planes) out_dtype (bf16 default)."""
    N, H, W, Cin = x_nhwc.shape
    (w1, s1, b1, w2, s2, b2, w3, s3, b3,
     wsc, ssc, bsc, wf1, bf1, wf2, bf2) = params
    P = w1.shape[1]
    C4 = w3.shape[1]
    NB = min(batch_block, N)
    assert N % NB == 0, "batch must be divisible by the batch block size"

    # One-time prep: bf16 MXU operands; conv1 and shortcut weights fused
    # column-wise; 3x3 weight laid out tap-major (9, P, P).
    x_bf = x_nhwc.astype(jnp.bfloat16)
    w1sc = jnp.concatenate([w1, wsc], axis=1).astype(jnp.bfloat16)      # (Cin, P+C4)
    s1sc = jnp.concatenate([s1, ssc], axis=1)                           # (1, P+C4)
    b1sc = jnp.concatenate([b1, bsc], axis=1)                           # (1, P+C4)
    w2b = w2.reshape(9, P, P).astype(jnp.bfloat16)
    w3b = w3.astype(jnp.bfloat16)
    ins = (w1sc, s1sc, b1sc, w2b, s2, b2, w3b, s3, b3, wf1, bf1, wf2, bf2)

    def full_spec(a):
        nd = a.ndim
        return pl.BlockSpec(a.shape, lambda n, _nd=nd: (0,) * _nd)

    grid_spec = pltpu.PrefetchScalarGridSpec(
        num_scalar_prefetch=0,
        grid=(N // NB,),
        in_specs=[pl.BlockSpec((NB, H, W, Cin), lambda n: (n, 0, 0, 0))]
                 + [full_spec(a) for a in ins],
        out_specs=pl.BlockSpec((NB, H, W, C4), lambda n: (n, 0, 0, 0)),
        scratch_shapes=[pltpu.VMEM((NB, H + 2, W + 2, P), jnp.bfloat16)],
    )

    return pl.pallas_call(
        _bottleneck_kernel,
        out_shape=jax.ShapeDtypeStruct((N, H, W, C4), out_dtype),
        grid_spec=grid_spec,
        compiler_params=pltpu.CompilerParams(
            dimension_semantics=("parallel",),          # image blocks are independent
            vmem_limit_bytes=_pick_vmem_limit()),
    )(x_bf, *ins)


def make_params(key, in_planes, planes, expansion=4):
    """Deterministic synthetic params; BatchNorm is folded into scale/shift
    (inference-mode BN with synthetic running stats)."""
    c4 = expansion * planes
    hid = max(c4 // 16, 1)
    ks = list(jax.random.split(key, 24))
    it = iter(ks)

    def conv_w(shape):
        fan_in = shape[0] if len(shape) == 2 else shape[0] * shape[1] * shape[2]
        return jax.random.normal(next(it), shape, jnp.float32) / jnp.sqrt(float(fan_in))

    def bn_fold(c):
        gamma = 1.0 + 0.1 * jax.random.normal(next(it), (c,), jnp.float32)
        beta = 0.1 * jax.random.normal(next(it), (c,), jnp.float32)
        mean = 0.1 * jax.random.normal(next(it), (c,), jnp.float32)
        var = 0.5 + jax.random.uniform(next(it), (c,), jnp.float32)
        scale = gamma * jax.lax.rsqrt(var + 1e-5)
        shift = beta - mean * scale
        return scale.reshape(1, c), shift.reshape(1, c)

    w1 = conv_w((in_planes, planes));      s1, b1 = bn_fold(planes)
    w2 = conv_w((3, 3, planes, planes));   s2, b2 = bn_fold(planes)
    w3 = conv_w((planes, c4));             s3, b3 = bn_fold(c4)
    wsc = conv_w((in_planes, c4));         ssc, bsc = bn_fold(c4)   # projection shortcut
    wf1 = conv_w((c4, hid))
    bf1 = 0.1 * jax.random.normal(next(it), (1, hid), jnp.float32)
    wf2 = conv_w((hid, c4))
    bf2 = 0.1 * jax.random.normal(next(it), (1, c4), jnp.float32)
    return (w1, s1, b1, w2, s2, b2, w3, s3, b3, wsc, ssc, bsc, wf1, bf1, wf2, bf2)


def bottleneck_ref(x, params):
    """Pure-JAX f32 reference (same NHWC layout / folded-BN semantics)."""
    w1, s1, b1, w2, s2, b2, w3, s3, b3, wsc, ssc, bsc, wf1, bf1, wf2, bf2 = params
    N, H, W, _ = x.shape
    h1 = jnp.maximum(jnp.einsum('nhwc,cp->nhwp', x, w1) * s1 + b1, 0.0)
    h1p = jnp.pad(h1, ((0, 0), (1, 1), (1, 1), (0, 0)))
    acc = 0.0
    for dy in range(3):
        for dx in range(3):
            acc = acc + jnp.einsum('nhwc,cp->nhwp',
                                   h1p[:, dy:dy + H, dx:dx + W, :], w2[dy, dx])
    h2 = jnp.maximum(acc * s2 + b2, 0.0)
    h3 = jnp.einsum('nhwc,cp->nhwp', h2, w3) * s3 + b3
    pooled = jnp.mean(h3, axis=(1, 2))                     # (N, C4)
    z = jnp.maximum(pooled @ wf1 + bf1, 0.0)
    gate = jax.nn.sigmoid(z @ wf2 + bf2)
    out = h3 * gate[:, None, None, :]
    sc = jnp.einsum('nhwc,cp->nhwp', x, wsc) * ssc + bsc
    return jnp.maximum(out + sc, 0.0)


if __name__ == "__main__":
    key = jax.random.PRNGKey(0)
    in_planes, planes = 4, 4          # expansion*planes = 16, SE hidden = 1
    # NOTE: real ResNet widths (64/256/...) are needed to exercise the MXU/lanes;
    # these small shapes are for correctness only.
    N, H, W = 4, 16, 16               # NB=2 per grid step -> grid of 2 steps

    k_x, k_p = jax.random.split(key)
    x_nchw = jax.random.normal(k_x, (N, in_planes, H, W), jnp.float32)  # PyTorch layout
    x = jnp.transpose(x_nchw, (0, 2, 3, 1))                             # NCHW -> NHWC

    params = make_params(k_p, in_planes, planes)

    out = bottleneck_pallas(x, params, batch_block=2)
    out = jax.block_until_ready(out)

    ref = bottleneck_ref(x, params)
    assert out.shape == (N, H, W, 4 * planes)
    assert out.dtype == jnp.bfloat16
    out_f32 = out.astype(jnp.float32)
    max_err = float(jnp.max(jnp.abs(out_f32 - ref)))
    # bf16 MXU operands + bf16 output (f32 accumulation) -> looser tolerance
    assert jnp.allclose(out_f32, ref, atol=7e-2, rtol=7e-2), max_err
    print("KERNEL_OK")
</pallas_src>

<mosaic_0001>
module attributes {stable_mosaic.version = 11 : i64} {
  func.func @_bottleneck_kernel(%arg0: i32, %arg1: memref<2x16x16x4xbf16, #tpu.memory_space<vmem>>, %arg2: memref<4x20xbf16, #tpu.memory_space<vmem>>, %arg3: memref<1x20xf32, #tpu.memory_space<vmem>>, %arg4: memref<1x20xf32, #tpu.memory_space<vmem>>, %arg5: memref<9x4x4xbf16, #tpu.memory_space<vmem>>, %arg6: memref<1x4xf32, #tpu.memory_space<vmem>>, %arg7: memref<1x4xf32, #tpu.memory_space<vmem>>, %arg8: memref<4x16xbf16, #tpu.memory_space<vmem>>, %arg9: memref<1x16xf32, #tpu.memory_space<vmem>>, %arg10: memref<1x16xf32, #tpu.memory_space<vmem>>, %arg11: memref<16x1xf32, #tpu.memory_space<vmem>>, %arg12: memref<1x1xf32, #tpu.memory_space<vmem>>, %arg13: memref<1x16xf32, #tpu.memory_space<vmem>>, %arg14: memref<1x16xf32, #tpu.memory_space<vmem>>, %arg15: memref<2x16x16x16xbf16, #tpu.memory_space<vmem>>, %arg16: memref<2x18x18x4xbf16, #tpu.memory_space<vmem>>) attributes {dimension_semantics = [#tpu.dimension_semantics<parallel>], iteration_bounds = array<i64: 2>, scalar_prefetch = 0 : i64, scratch_operands = 1 : i64, tpu.core_type = #tpu.core_type<tc>, window_params = [{transform_indices = @transform_0, window_bounds = array<i64: 2, 16, 16, 4>}, {pipeline_mode = #tpu.pipeline_mode<synchronous>, transform_indices = @transform_1, window_bounds = array<i64: 4, 20>}, {pipeline_mode = #tpu.pipeline_mode<synchronous>, transform_indices = @transform_2, window_bounds = array<i64: 1, 20>}, {pipeline_mode = #tpu.pipeline_mode<synchronous>, transform_indices = @transform_3, window_bounds = array<i64: 1, 20>}, {pipeline_mode = #tpu.pipeline_mode<synchronous>, transform_indices = @transform_4, window_bounds = array<i64: 9, 4, 4>}, {pipeline_mode = #tpu.pipeline_mode<synchronous>, transform_indices = @transform_5, window_bounds = array<i64: 1, 4>}, {pipeline_mode = #tpu.pipeline_mode<synchronous>, transform_indices = @transform_6, window_bounds = array<i64: 1, 4>}, {pipeline_mode = #tpu.pipeline_mode<synchronous>, transform_indices = @transform_7, window_bounds = array<i64: 4, 16>}, {pipeline_mode = #tpu.pipeline_mode<synchronous>, transform_indices = @transform_8, window_bounds = array<i64: 1, 16>}, {pipeline_mode = #tpu.pipeline_mode<synchronous>, transform_indices = @transform_9, window_bounds = array<i64: 1, 16>}, {pipeline_mode = #tpu.pipeline_mode<synchronous>, transform_indices = @transform_10, window_bounds = array<i64: 16, 1>}, {pipeline_mode = #tpu.pipeline_mode<synchronous>, transform_indices = @transform_11, window_bounds = array<i64: 1, 1>}, {pipeline_mode = #tpu.pipeline_mode<synchronous>, transform_indices = @transform_12, window_bounds = array<i64: 1, 16>}, {pipeline_mode = #tpu.pipeline_mode<synchronous>, transform_indices = @transform_13, window_bounds = array<i64: 1, 16>}, {transform_indices = @transform_14, window_bounds = array<i64: 2, 16, 16, 16>}]} {
    %c0 = arith.constant 0 : index
    %c0_0 = arith.constant 0 : index
    %c0_1 = arith.constant 0 : index
    %c0_2 = arith.constant 0 : index
    %0 = vector.load %arg1[%c0, %c0_0, %c0_1, %c0_2] : memref<2x16x16x4xbf16, #tpu.memory_space<vmem>>, vector<2x16x16x4xbf16>
    %1 = vector.shape_cast %0 : vector<2x16x16x4xbf16> to vector<512x4xbf16>
    %c0_3 = arith.constant 0 : index
    %c0_4 = arith.constant 0 : index
    %2 = vector.load %arg2[%c0_3, %c0_4] : memref<4x20xbf16, #tpu.memory_space<vmem>>, vector<4x20xbf16>
    %cst = arith.constant dense<0.000000e+00> : vector<512x20xf32>
    %3 = tpu.matmul %1, %2, %cst {dimension_numbers = #tpu.dot_dimension_numbers<[1], [0], [0], [1], [0, 0, 1, 1], [], []>} : vector<512x4xbf16>, vector<4x20xbf16>, vector<512x20xf32> -> vector<512x20xf32>
    %c0_5 = arith.constant 0 : index
    %c0_6 = arith.constant 0 : index
    %4 = vector.load %arg3[%c0_5, %c0_6] : memref<1x20xf32, #tpu.memory_space<vmem>>, vector<1x20xf32>
    %5 = vector.broadcast %4 : vector<1x20xf32> to vector<512x20xf32>
    %6 = arith.mulf %3, %5 : vector<512x20xf32>
    %c0_7 = arith.constant 0 : index
    %c0_8 = arith.constant 0 : index
    %7 = vector.load %arg4[%c0_7, %c0_8] : memref<1x20xf32, #tpu.memory_space<vmem>>, vector<1x20xf32>
    %8 = vector.broadcast %7 : vector<1x20xf32> to vector<512x20xf32>
    %9 = arith.addf %6, %8 : vector<512x20xf32>
    %10 = vector.extract_strided_slice %9 {offsets = [0, 0], sizes = [512, 4], strides = [1, 1]} : vector<512x20xf32> to vector<512x4xf32>
    %cst_9 = arith.constant 0.000000e+00 : f32
    %11 = vector.broadcast %cst_9 : f32 to vector<512x4xf32>
    %12 = arith.maximumf %10, %11 : vector<512x4xf32>
    %13 = vector.extract_strided_slice %9 {offsets = [0, 4], sizes = [512, 16], strides = [1, 1]} : vector<512x20xf32> to vector<512x16xf32>
    %cst_10 = arith.constant 0.000000e+00 : bf16
    %14 = vector.broadcast %cst_10 : bf16 to vector<2x1x18x4xbf16>
    %c0_11 = arith.constant 0 : index
    %c0_12 = arith.constant 0 : index
    %c0_13 = arith.constant 0 : index
    %c0_14 = arith.constant 0 : index
    %15 = vector.load %arg16[%c0_11, %c0_12, %c0_13, %c0_14] : memref<2x18x18x4xbf16, #tpu.memory_space<vmem>>, vector<2x1x18x4xbf16>
    tpu.vector_store %arg16[%c0_11, %c0_12, %c0_13, %c0_14], %14 {strides = array<i32>} : memref<2x18x18x4xbf16, #tpu.memory_space<vmem>>, vector<2x1x18x4xbf16>,
    %cst_15 = arith.constant 0.000000e+00 : bf16
    %16 = vector.broadcast %cst_15 : bf16 to vector<2x1x18x4xbf16>
    %c0_16 = arith.constant 0 : index
    %c17 = arith.constant 17 : index
    %c0_17 = arith.constant 0 : index
    %c0_18 = arith.constant 0 : index
    %17 = vector.load %arg16[%c0_16, %c17, %c0_17, %c0_18] : memref<2x18x18x4xbf16, #tpu.memory_space<vmem>>, vector<2x1x18x4xbf16>
    tpu.vector_store %arg16[%c0_16, %c17, %c0_17, %c0_18], %16 {strides = array<i32>} : memref<2x18x18x4xbf16, #tpu.memory_space<vmem>>, vector<2x1x18x4xbf16>,
    %cst_19 = arith.constant 0.000000e+00 : bf16
    %18 = vector.broadcast %cst_19 : bf16 to vector<2x18x1x4xbf16>
    %c0_20 = arith.constant 0 : index
    %c0_21 = arith.constant 0 : index
    %c0_22 = arith.constant 0 : index
    %c0_23 = arith.constant 0 : index
    %19 = vector.load %arg16[%c0_20, %c0_21, %c0_22, %c0_23] : memref<2x18x18x4xbf16, #tpu.memory_space<vmem>>, vector<2x18x1x4xbf16>
    tpu.vector_store %arg16[%c0_20, %c0_21, %c0_22, %c0_23], %18 {strides = array<i32>} : memref<2x18x18x4xbf16, #tpu.memory_space<vmem>>, vector<2x18x1x4xbf16>,
    %cst_24 = arith.constant 0.000000e+00 : bf16
    %20 = vector.broadcast %cst_24 : bf16 to vector<2x18x1x4xbf16>
    %c0_25 = arith.constant 0 : index
    %c0_26 = arith.constant 0 : index
    %c17_27 = arith.constant 17 : index
    %c0_28 = arith.constant 0 : index
    %21 = vector.load %arg16[%c0_25, %c0_26, %c17_27, %c0_28] : memref<2x18x18x4xbf16, #tpu.memory_space<vmem>>, vector<2x18x1x4xbf16>
    tpu.vector_store %arg16[%c0_25, %c0_26, %c17_27, %c0_28], %20 {strides = array<i32>} : memref<2x18x18x4xbf16, #tpu.memory_space<vmem>>, vector<2x18x1x4xbf16>,
    %22 = vector.shape_cast %12 : vector<512x4xf32> to vector<2x16x16x4xf32>
    %23 = arith.truncf %22 : vector<2x16x16x4xf32> to vector<2x16x16x4xbf16>
    %c0_29 = arith.constant 0 : index
    %c1 = arith.constant 1 : index
    %c1_30 = arith.constant 1 : index
    %c0_31 = arith.constant 0 : index
    %24 = vector.load %arg16[%c0_29, %c1, %c1_30, %c0_31] : memref<2x18x18x4xbf16, #tpu.memory_space<vmem>>, vector<2x16x16x4xbf16>
    tpu.vector_store %arg16[%c0_29, %c1, %c1_30, %c0_31], %23 {strides = array<i32>} : memref<2x18x18x4xbf16, #tpu.memory_space<vmem>>, vector<2x16x16x4xbf16>,
    %cst_32 = arith.constant 0.000000e+00 : f32
    %25 = vector.broadcast %cst_32 : f32 to vector<512x4xf32>
    %c0_33 = arith.constant 0 : index
    %c0_34 = arith.constant 0 : index
    %c0_35 = arith.constant 0 : index
    %c0_36 = arith.constant 0 : index
    %26 = vector.load %arg16[%c0_33, %c0_34, %c0_35, %c0_36] : memref<2x18x18x4xbf16, #tpu.memory_space<vmem>>, vector<2x16x16x4xbf16>
    %27 = vector.shape_cast %26 : vector<2x16x16x4xbf16> to vector<512x4xbf16>
    %c0_37 = arith.constant 0 : index
    %c0_38 = arith.constant 0 : index
    %c0_39 = arith.constant 0 : index
    %28 = vector.load %arg5[%c0_37, %c0_38, %c0_39] : memref<9x4x4xbf16, #tpu.memory_space<vmem>>, vector<1x4x4xbf16>
    %29 = vector.shape_cast %28 : vector<1x4x4xbf16> to vector<4x4xbf16>
    %cst_40 = arith.constant dense<0.000000e+00> : vector<512x4xf32>
    %30 = tpu.matmul %27, %29, %cst_40 {dimension_numbers = #tpu.dot_dimension_numbers<[1], [0], [0], [1], [0, 0, 1, 1], [], []>} : vector<512x4xbf16>, vector<4x4xbf16>, vector<512x4xf32> -> vector<512x4xf32>
    %31 = arith.addf %25, %30 : vector<512x4xf32>
    %c0_41 = arith.constant 0 : index
    %c0_42 = arith.constant 0 : index
    %c1_43 = arith.constant 1 : index
    %c0_44 = arith.constant 0 : index
    %32 = vector.load %arg16[%c0_41, %c0_42, %c1_43, %c0_44] : memref<2x18x18x4xbf16, #tpu.memory_space<vmem>>, vector<2x16x16x4xbf16>
    %33 = vector.shape_cast %32 : vector<2x16x16x4xbf16> to vector<512x4xbf16>
    %c1_45 = arith.constant 1 : index
    %c0_46 = arith.constant 0 : index
    %c0_47 = arith.constant 0 : index
    %34 = vector.load %arg5[%c1_45, %c0_46, %c0_47] : memref<9x4x4xbf16, #tpu.memory_space<vmem>>, vector<1x4x4xbf16>
    %35 = vector.shape_cast %34 : vector<1x4x4xbf16> to vector<4x4xbf16>
    %cst_48 = arith.constant dense<0.000000e+00> : vector<512x4xf32>
    %36 = tpu.matmul %33, %35, %cst_48 {dimension_numbers = #tpu.dot_dimension_numbers<[1], [0], [0], [1], [0, 0, 1, 1], [], []>} : vector<512x4xbf16>, vector<4x4xbf16>, vector<512x4xf32> -> vector<512x4xf32>
    %37 = arith.addf %31, %36 : vector<512x4xf32>
    %c0_49 = arith.constant 0 : index
    %c0_50 = arith.constant 0 : index
    %c2 = arith.constant 2 : index
    %c0_51 = arith.constant 0 : index
    %38 = vector.load %arg16[%c0_49, %c0_50, %c2, %c0_51] : memref<2x18x18x4xbf16, #tpu.memory_space<vmem>>, vector<2x16x16x4xbf16>
    %39 = vector.shape_cast %38 : vector<2x16x16x4xbf16> to vector<512x4xbf16>
    %c2_52 = arith.constant 2 : index
    %c0_53 = arith.constant 0 : index
    %c0_54 = arith.constant 0 : index
    %40 = vector.load %arg5[%c2_52, %c0_53, %c0_54] : memref<9x4x4xbf16, #tpu.memory_space<vmem>>, vector<1x4x4xbf16>
    %41 = vector.shape_cast %40 : vector<1x4x4xbf16> to vector<4x4xbf16>
    %cst_55 = arith.constant dense<0.000000e+00> : vector<512x4xf32>
    %42 = tpu.matmul %39, %41, %cst_55 {dimension_numbers = #tpu.dot_dimension_numbers<[1], [0], [0], [1], [0, 0, 1, 1], [], []>} : vector<512x4xbf16>, vector<4x4xbf16>, vector<512x4xf32> -> vector<512x4xf32>
    %43 = arith.addf %37, %42 : vector<512x4xf32>
    %c0_56 = arith.constant 0 : index
    %c1_57 = arith.constant 1 : index
    %c0_58 = arith.constant 0 : index
    %c0_59 = arith.constant 0 : index
    %44 = vector.load %arg16[%c0_56, %c1_57, %c0_58, %c0_59] : memref<2x18x18x4xbf16, #tpu.memory_space<vmem>>, vector<2x16x16x4xbf16>
    %45 = vector.shape_cast %44 : vector<2x16x16x4xbf16> to vector<512x4xbf16>
    %c3 = arith.constant 3 : index
    %c0_60 = arith.constant 0 : index
    %c0_61 = arith.constant 0 : index
    %46 = vector.load %arg5[%c3, %c0_60, %c0_61] : memref<9x4x4xbf16, #tpu.memory_space<vmem>>, vector<1x4x4xbf16>
    %47 = vector.shape_cast %46 : vector<1x4x4xbf16> to vector<4x4xbf16>
    %cst_62 = arith.constant dense<0.000000e+00> : vector<512x4xf32>
    %48 = tpu.matmul %45, %47, %cst_62 {dimension_numbers = #tpu.dot_dimension_numbers<[1], [0], [0], [1], [0, 0, 1, 1], [], []>} : vector<512x4xbf16>, vector<4x4xbf16>, vector<512x4xf32> -> vector<512x4xf32>
    %49 = arith.addf %43, %48 : vector<512x4xf32>
    %c0_63 = arith.constant 0 : index
    %c1_64 = arith.constant 1 : index
    %c1_65 = arith.constant 1 : index
    %c0_66 = arith.constant 0 : index
    %50 = vector.load %arg16[%c0_63, %c1_64, %c1_65, %c0_66] : memref<2x18x18x4xbf16, #tpu.memory_space<vmem>>, vector<2x16x16x4xbf16>
    %51 = vector.shape_cast %50 : vector<2x16x16x4xbf16> to vector<512x4xbf16>
    %c4 = arith.constant 4 : index
    %c0_67 = arith.constant 0 : index
    %c0_68 = arith.constant 0 : index
    %52 = vector.load %arg5[%c4, %c0_67, %c0_68] : memref<9x4x4xbf16, #tpu.memory_space<vmem>>, vector<1x4x4xbf16>
    %53 = vector.shape_cast %52 : vector<1x4x4xbf16> to vector<4x4xbf16>
    %cst_69 = arith.constant dense<0.000000e+00> : vector<512x4xf32>
    %54 = tpu.matmul %51, %53, %cst_69 {dimension_numbers = #tpu.dot_dimension_numbers<[1], [0], [0], [1], [0, 0, 1, 1], [], []>} : vector<512x4xbf16>, vector<4x4xbf16>, vector<512x4xf32> -> vector<512x4xf32>
    %55 = arith.addf %49, %54 : vector<512x4xf32>
    %c0_70 = arith.constant 0 : index
    %c1_71 = arith.constant 1 : index
    %c2_72 = arith.constant 2 : index
    %c0_73 = arith.constant 0 : index
    %56 = vector.load %arg16[%c0_70, %c1_71, %c2_72, %c0_73] : memref<2x18x18x4xbf16, #tpu.memory_space<vmem>>, vector<2x16x16x4xbf16>
    %57 = vector.shape_cast %56 : vector<2x16x16x4xbf16> to vector<512x4xbf16>
    %c5 = arith.constant 5 : index
    %c0_74 = arith.constant 0 : index
    %c0_75 = arith.constant 0 : index
    %58 = vector.load %arg5[%c5, %c0_74, %c0_75] : memref<9x4x4xbf16, #tpu.memory_space<vmem>>, vector<1x4x4xbf16>
    %59 = vector.shape_cast %58 : vector<1x4x4xbf16> to vector<4x4xbf16>
    %cst_76 = arith.constant dense<0.000000e+00> : vector<512x4xf32>
    %60 = tpu.matmul %57, %59, %cst_76 {dimension_numbers = #tpu.dot_dimension_numbers<[1], [0], [0], [1], [0, 0, 1, 1], [], []>} : vector<512x4xbf16>, vector<4x4xbf16>, vector<512x4xf32> -> vector<512x4xf32>
    %61 = arith.addf %55, %60 : vector<512x4xf32>
    %c0_77 = arith.constant 0 : index
    %c2_78 = arith.constant 2 : index
    %c0_79 = arith.constant 0 : index
    %c0_80 = arith.constant 0 : index
    %62 = vector.load %arg16[%c0_77, %c2_78, %c0_79, %c0_80] : memref<2x18x18x4xbf16, #tpu.memory_space<vmem>>, vector<2x16x16x4xbf16>
    %63 = vector.shape_cast %62 : vector<2x16x16x4xbf16> to vector<512x4xbf16>
    %c6 = arith.constant 6 : index
    %c0_81 = arith.constant 0 : index
    %c0_82 = arith.constant 0 : index
    %64 = vector.load %arg5[%c6, %c0_81, %c0_82] : memref<9x4x4xbf16, #tpu.memory_space<vmem>>, vector<1x4x4xbf16>
    %65 = vector.shape_cast %64 : vector<1x4x4xbf16> to vector<4x4xbf16>
    %cst_83 = arith.constant dense<0.000000e+00> : vector<512x4xf32>
    %66 = tpu.matmul %63, %65, %cst_83 {dimension_numbers = #tpu.dot_dimension_numbers<[1], [0], [0], [1], [0, 0, 1, 1], [], []>} : vector<512x4xbf16>, vector<4x4xbf16>, vector<512x4xf32> -> vector<512x4xf32>
    %67 = arith.addf %61, %66 : vector<512x4xf32>
    %c0_84 = arith.constant 0 : index
    %c2_85 = arith.constant 2 : index
    %c1_86 = arith.constant 1 : index
    %c0_87 = arith.constant 0 : index
    %68 = vector.load %arg16[%c0_84, %c2_85, %c1_86, %c0_87] : memref<2x18x18x4xbf16, #tpu.memory_space<vmem>>, vector<2x16x16x4xbf16>
    %69 = vector.shape_cast %68 : vector<2x16x16x4xbf16> to vector<512x4xbf16>
    %c7 = arith.constant 7 : index
    %c0_88 = arith.constant 0 : index
    %c0_89 = arith.constant 0 : index
    %70 = vector.load %arg5[%c7, %c0_88, %c0_89] : memref<9x4x4xbf16, #tpu.memory_space<vmem>>, vector<1x4x4xbf16>
    %71 = vector.shape_cast %70 : vector<1x4x4xbf16> to vector<4x4xbf16>
    %cst_90 = arith.constant dense<0.000000e+00> : vector<512x4xf32>
    %72 = tpu.matmul %69, %71, %cst_90 {dimension_numbers = #tpu.dot_dimension_numbers<[1], [0], [0], [1], [0, 0, 1, 1], [], []>} : vector<512x4xbf16>, vector<4x4xbf16>, vector<512x4xf32> -> vector<512x4xf32>
    %73 = arith.addf %67, %72 : vector<512x4xf32>
    %c0_91 = arith.constant 0 : index
    %c2_92 = arith.constant 2 : index
    %c2_93 = arith.constant 2 : index
    %c0_94 = arith.constant 0 : index
    %74 = vector.load %arg16[%c0_91, %c2_92, %c2_93, %c0_94] : memref<2x18x18x4xbf16, #tpu.memory_space<vmem>>, vector<2x16x16x4xbf16>
    %75 = vector.shape_cast %74 : vector<2x16x16x4xbf16> to vector<512x4xbf16>
    %c8 = arith.constant 8 : index
    %c0_95 = arith.constant 0 : index
    %c0_96 = arith.constant 0 : index
    %76 = vector.load %arg5[%c8, %c0_95, %c0_96] : memref<9x4x4xbf16, #tpu.memory_space<vmem>>, vector<1x4x4xbf16>
    %77 = vector.shape_cast %76 : vector<1x4x4xbf16> to vector<4x4xbf16>
    %cst_97 = arith.constant dense<0.000000e+00> : vector<512x4xf32>
    %78 = tpu.matmul %75, %77, %cst_97 {dimension_numbers = #tpu.dot_dimension_numbers<[1], [0], [0], [1], [0, 0, 1, 1], [], []>} : vector<512x4xbf16>, vector<4x4xbf16>, vector<512x4xf32> -> vector<512x4xf32>
    %79 = arith.addf %73, %78 : vector<512x4xf32>
    %c0_98 = arith.constant 0 : index
    %c0_99 = arith.constant 0 : index
    %80 = vector.load %arg6[%c0_98, %c0_99] : memref<1x4xf32, #tpu.memory_space<vmem>>, vector<1x4xf32>
    %81 = vector.broadcast %80 : vector<1x4xf32> to vector<512x4xf32>
    %82 = arith.mulf %79, %81 : vector<512x4xf32>
    %c0_100 = arith.constant 0 : index
    %c0_101 = arith.constant 0 : index
    %83 = vector.load %arg7[%c0_100, %c0_101] : memref<1x4xf32, #tpu.memory_space<vmem>>, vector<1x4xf32>
    %84 = vector.broadcast %83 : vector<1x4xf32> to vector<512x4xf32>
    %85 = arith.addf %82, %84 : vector<512x4xf32>
    %cst_102 = arith.constant 0.000000e+00 : f32
    %86 = vector.broadcast %cst_102 : f32 to vector<512x4xf32>
    %87 = arith.maximumf %85, %86 : vector<512x4xf32>
    %88 = vector.shape_cast %87 : vector<512x4xf32> to vector<2x256x4xf32>
    %cst_103 = arith.constant dense<0.000000e+00> : vector<2x4xf32>
    %89 = vector.multi_reduction <add>, %88, %cst_103 [1] : vector<2x256x4xf32> to vector<2x4xf32>
    %cst_104 = arith.constant 2.560000e+02 : f32
    %90 = vector.broadcast %cst_104 : f32 to vector<2x4xf32>
    %91 = arith.divf %89, %90 : vector<2x4xf32>
    %92 = arith.truncf %91 : vector<2x4xf32> to vector<2x4xbf16>
    %c0_105 = arith.constant 0 : index
    %c0_106 = arith.constant 0 : index
    %93 = vector.load %arg8[%c0_105, %c0_106] : memref<4x16xbf16, #tpu.memory_space<vmem>>, vector<4x16xbf16>
    %cst_107 = arith.constant dense<0.000000e+00> : vector<2x16xf32>
    %94 = tpu.matmul %92, %93, %cst_107 {dimension_numbers = #tpu.dot_dimension_numbers<[1], [0], [0], [1], [0, 0, 1, 1], [], []>} : vector<2x4xbf16>, vector<4x16xbf16>, vector<2x16xf32> -> vector<2x16xf32>
    %c0_108 = arith.constant 0 : index
    %c0_109 = arith.constant 0 : index
    %95 = vector.load %arg9[%c0_108, %c0_109] : memref<1x16xf32, #tpu.memory_space<vmem>>, vector<1x16xf32>
    %96 = vector.broadcast %95 : vector<1x16xf32> to vector<2x16xf32>
    %97 = arith.mulf %94, %96 : vector<2x16xf32>
    %c0_110 = arith.constant 0 : index
    %c0_111 = arith.constant 0 : index
    %98 = vector.load %arg10[%c0_110, %c0_111] : memref<1x16xf32, #tpu.memory_space<vmem>>, vector<1x16xf32>
    %99 = vector.broadcast %98 : vector<1x16xf32> to vector<2x16xf32>
    %100 = arith.addf %97, %99 : vector<2x16xf32>
    %c0_112 = arith.constant 0 : index
    %c0_113 = arith.constant 0 : index
    %101 = vector.load %arg11[%c0_112, %c0_113] : memref<16x1xf32, #tpu.memory_space<vmem>>, vector<16x1xf32>
    %cst_114 = arith.constant dense<0.000000e+00> : vector<2x1xf32>
    %102 = tpu.matmul %100, %101, %cst_114 {dimension_numbers = #tpu.dot_dimension_numbers<[1], [0], [0], [1], [0, 0, 1, 1], [], []>} : vector<2x16xf32>, vector<16x1xf32>, vector<2x1xf32> -> vector<2x1xf32>
    %c0_115 = arith.constant 0 : index
    %c0_116 = arith.constant 0 : index
    %103 = vector.load %arg12[%c0_115, %c0_116] : memref<1x1xf32, #tpu.memory_space<vmem>>, vector<1x1xf32>
    %104 = vector.broadcast %103 : vector<1x1xf32> to vector<2x1xf32>
    %105 = arith.addf %102, %104 : vector<2x1xf32>
    %cst_117 = arith.constant 0.000000e+00 : f32
    %106 = vector.broadcast %cst_117 : f32 to vector<2x1xf32>
    %107 = arith.maximumf %105, %106 : vector<2x1xf32>
    %c0_118 = arith.constant 0 : index
    %c0_119 = arith.constant 0 : index
    %108 = vector.load %arg13[%c0_118, %c0_119] : memref<1x16xf32, #tpu.memory_space<vmem>>, vector<1x16xf32>
    %cst_120 = arith.constant dense<0.000000e+00> : vector<2x16xf32>
    %109 = tpu.matmul %107, %108, %cst_120 {dimension_numbers = #tpu.dot_dimension_numbers<[1], [0], [0], [1], [0, 0, 1, 1], [], []>} : vector<2x1xf32>, vector<1x16xf32>, vector<2x16xf32> -> vector<2x16xf32>
    %c0_121 = arith.constant 0 : index
    %c0_122 = arith.constant 0 : index
    %110 = vector.load %arg14[%c0_121, %c0_122] : memref<1x16xf32, #tpu.memory_space<vmem>>, vector<1x16xf32>
    %111 = vector.broadcast %110 : vector<1x16xf32> to vector<2x16xf32>
    %112 = arith.addf %109, %111 : vector<2x16xf32>
    %113 = arith.negf %112 : vector<2x16xf32>
    %114 = math.exp %113 : vector<2x16xf32>
    %cst_123 = arith.constant 1.000000e+00 : f32
    %115 = vector.broadcast %cst_123 : f32 to vector<2x16xf32>
    %116 = arith.addf %115, %114 : vector<2x16xf32>
    %117 = arith.divf %115, %116 : vector<2x16xf32>
    %118 = arith.truncf %87 : vector<512x4xf32> to vector<512x4xbf16>
    %c0_124 = arith.constant 0 : index
    %c0_125 = arith.constant 0 : index
    %119 = vector.load %arg8[%c0_124, %c0_125] : memref<4x16xbf16, #tpu.memory_space<vmem>>, vector<4x16xbf16>
    %cst_126 = arith.constant dense<0.000000e+00> : vector<512x16xf32>
    %120 = tpu.matmul %118, %119, %cst_126 {dimension_numbers = #tpu.dot_dimension_numbers<[1], [0], [0], [1], [0, 0, 1, 1], [], []>} : vector<512x4xbf16>, vector<4x16xbf16>, vector<512x16xf32> -> vector<512x16xf32>
    %c0_127 = arith.constant 0 : index
    %c0_128 = arith.constant 0 : index
    %121 = vector.load %arg9[%c0_127, %c0_128] : memref<1x16xf32, #tpu.memory_space<vmem>>, vector<1x16xf32>
    %122 = vector.broadcast %121 : vector<1x16xf32> to vector<512x16xf32>
    %123 = arith.mulf %120, %122 : vector<512x16xf32>
    %c0_129 = arith.constant 0 : index
    %c0_130 = arith.constant 0 : index
    %124 = vector.load %arg10[%c0_129, %c0_130] : memref<1x16xf32, #tpu.memory_space<vmem>>, vector<1x16xf32>
    %125 = vector.broadcast %124 : vector<1x16xf32> to vector<512x16xf32>
    %126 = arith.addf %123, %125 : vector<512x16xf32>
    %127 = vector.shape_cast %126 : vector<512x16xf32> to vector<2x256x16xf32>
    %128 = vector.shape_cast %117 : vector<2x16xf32> to vector<2x1x16xf32>
    %129 = vector.broadcast %128 : vector<2x1x16xf32> to vector<2x256x16xf32>
    %130 = arith.mulf %127, %129 : vector<2x256x16xf32>
    %131 = vector.shape_cast %13 : vector<512x16xf32> to vector<2x256x16xf32>
    %132 = arith.addf %130, %131 : vector<2x256x16xf32>
    %cst_131 = arith.constant 0.000000e+00 : f32
    %133 = vector.broadcast %cst_131 : f32 to vector<2x256x16xf32>
    %134 = arith.maximumf %132, %133 : vector<2x256x16xf32>
    %135 = vector.shape_cast %134 : vector<2x256x16xf32> to vector<2x16x16x16xf32>
    %136 = arith.truncf %135 : vector<2x16x16x16xf32> to vector<2x16x16x16xbf16>
    %c0_132 = arith.constant 0 : index
    %c0_133 = arith.constant 0 : index
    %c0_134 = arith.constant 0 : index
    %c0_135 = arith.constant 0 : index
    %137 = vector.load %arg15[%c0_132, %c0_133, %c0_134, %c0_135] : memref<2x16x16x16xbf16, #tpu.memory_space<vmem>>, vector<2x16x16x16xbf16>
    tpu.vector_store %arg15[%c0_132, %c0_133, %c0_134, %c0_135], %136 {strides = array<i32>} : memref<2x16x16x16xbf16, #tpu.memory_space<vmem>>, vector<2x16x16x16xbf16>,
    return
  }
  func.func @transform_0(%arg0: i32) -> (i32, i32, i32, i32) {
    %c0_i32 = arith.constant 0 : i32
    %c0_i32_0 = arith.constant 0 : i32
    %c0_i32_1 = arith.constant 0 : i32
    %c0_i32_2 = arith.constant 0 : i32
    return %arg0, %c0_i32, %c0_i32_0, %c0_i32_1 : i32, i32, i32, i32
  }
  func.func @transform_1(%arg0: i32) -> (i32, i32) {
    %c0_i32 = arith.constant 0 : i32
    %c0_i32_0 = arith.constant 0 : i32
    %c0_i32_1 = arith.constant 0 : i32
    return %c0_i32, %c0_i32_0 : i32, i32
  }
  func.func @transform_2(%arg0: i32) -> (i32, i32) {
    %c0_i32 = arith.constant 0 : i32
    %c0_i32_0 = arith.constant 0 : i32
    %c0_i32_1 = arith.constant 0 : i32
    return %c0_i32, %c0_i32_0 : i32, i32
  }
  func.func @transform_3(%arg0: i32) -> (i32, i32) {
    %c0_i32 = arith.constant 0 : i32
    %c0_i32_0 = arith.constant 0 : i32
    %c0_i32_1 = arith.constant 0 : i32
    return %c0_i32, %c0_i32_0 : i32, i32
  }
  func.func @transform_4(%arg0: i32) -> (i32, i32, i32) {
    %c0_i32 = arith.constant 0 : i32
    %c0_i32_0 = arith.constant 0 : i32
    %c0_i32_1 = arith.constant 0 : i32
    %c0_i32_2 = arith.constant 0 : i32
    return %c0_i32, %c0_i32_0, %c0_i32_1 : i32, i32, i32
  }
  func.func @transform_5(%arg0: i32) -> (i32, i32) {
    %c0_i32 = arith.constant 0 : i32
    %c0_i32_0 = arith.constant 0 : i32
    %c0_i32_1 = arith.constant 0 : i32
    return %c0_i32, %c0_i32_0 : i32, i32
  }
  func.func @transform_6(%arg0: i32) -> (i32, i32) {
    %c0_i32 = arith.constant 0 : i32
    %c0_i32_0 = arith.constant 0 : i32
    %c0_i32_1 = arith.constant 0 : i32
    return %c0_i32, %c0_i32_0 : i32, i32
  }
  func.func @transform_7(%arg0: i32) -> (i32, i32) {
    %c0_i32 = arith.constant 0 : i32
    %c0_i32_0 = arith.constant 0 : i32
    %c0_i32_1 = arith.constant 0 : i32
    return %c0_i32, %c0_i32_0 : i32, i32
  }
  func.func @transform_8(%arg0: i32) -> (i32, i32) {
    %c0_i32 = arith.constant 0 : i32
    %c0_i32_0 = arith.constant 0 : i32
    %c0_i32_1 = arith.constant 0 : i32
    return %c0_i32, %c0_i32_0 : i32, i32
  }
  func.func @transform_9(%arg0: i32) -> (i32, i32) {
    %c0_i32 = arith.constant 0 : i32
    %c0_i32_0 = arith.constant 0 : i32
    %c0_i32_1 = arith.constant 0 : i32
    return %c0_i32, %c0_i32_0 : i32, i32
  }
  func.func @transform_10(%arg0: i32) -> (i32, i32) {
    %c0_i32 = arith.constant 0 : i32
    %c0_i32_0 = arith.constant 0 : i32
    %c0_i32_1 = arith.constant 0 : i32
    return %c0_i32, %c0_i32_0 : i32, i32
  }
  func.func @transform_11(%arg0: i32) -> (i32, i32) {
    %c0_i32 = arith.constant 0 : i32
    %c0_i32_0 = arith.constant 0 : i32
    %c0_i32_1 = arith.constant 0 : i32
    return %c0_i32, %c0_i32_0 : i32, i32
  }
  func.func @transform_12(%arg0: i32) -> (i32, i32) {
    %c0_i32 = arith.constant 0 : i32
    %c0_i32_0 = arith.constant 0 : i32
    %c0_i32_1 = arith.constant 0 : i32
    return %c0_i32, %c0_i32_0 : i32, i32
  }
  func.func @transform_13(%arg0: i32) -> (i32, i32) {
    %c0_i32 = arith.constant 0 : i32
    %c0_i32_0 = arith.constant 0 : i32
    %c0_i32_1 = arith.constant 0 : i32
    return %c0_i32, %c0_i32_0 : i32, i32
  }
  func.func @transform_14(%arg0: i32) -> (i32, i32, i32, i32) {
    %c0_i32 = arith.constant 0 : i32
    %c0_i32_0 = arith.constant 0 : i32
    %c0_i32_1 = arith.constant 0 : i32
    %c0_i32_2 = arith.constant 0 : i32
    return %arg0, %c0_i32, %c0_i32_0, %c0_i32_1 : i32, i32, i32, i32
  }
}

</mosaic_0001>

<bundles_post_ra>
// kernel: tpu_custom_call.1
= control target key start
LH: loop header
LB: loop body
LE: loop exit
PB: predicated region body
PF: predicated region fallthrough
CT: control target
= control target key end

     0   :  { %s20205_s0 = inlined_call_operand.vmem [shape: bf16[4,16,16,4], index: 0, kind: input, shape index: {}]   ;;  %s20206_s1 = inlined_call_operand.vmem [shape: bf16[4,20], index: 1, kind: input, shape index: {}]   ;;  %s20207_s2 = inlined_call_operand.vmem [shape: f32[1,20], index: 2, kind: input, shape index: {}]   ;;  %s20208_s3 = inlined_call_operand.vmem [shape: f32[1,20], index: 3, kind: input, shape index: {}]   ;;  %s20209_s4 = inlined_call_operand.vmem [shape: bf16[9,4,4], index: 4, kind: input, shape index: {}]   ;;  %s20210_s5 = inlined_call_operand.vmem [shape: f32[1,4], index: 5, kind: input, shape index: {}]   ;;  %s20211_s6 = inlined_call_operand.vmem [shape: f32[1,4], index: 6, kind: input, shape index: {}]   ;;  %s20212_s7 = inlined_call_operand.vmem [shape: bf16[4,16], index: 7, kind: input, shape index: {}]   ;;  %s20213_s8 = inlined_call_operand.vmem [shape: f32[1,16], index: 8, kind: input, shape index: {}]   ;;  %s20214_s9 = inlined_call_operand.vmem [shape: f32[1,16], index: 9, kind: input, shape index: {}]   ;;  %s20215_s10 = inlined_call_operand.vmem [shape: f32[16,1], index: 10, kind: input, shape index: {}]   ;;  %s20216_s11 = inlined_call_operand.<no memory space> [shape: f32[1,1], index: 11, kind: input, shape index: {}]   ;;  %s20217_s12 = inlined_call_operand.vmem [shape: f32[1,16], index: 12, kind: input, shape index: {}]   ;;  %s20218_s13 = inlined_call_operand.vmem [shape: f32[1,16], index: 13, kind: input, shape index: {}]   ;;  %s20219_s14 = inlined_call_operand.hbm [shape: bf16[4,16,16,16], index: 14, kind: output, shape index: {}]  }
   0x1   :  { %20222 = sst [smem:[#allocation57_spill]] %s20205_s0  ;;  %v19_v0 = vstv %s20216_s11 }
   0x2   :  { %20223 = sst [smem:[#allocation58_spill]] %s20206_s1  ;;  %20 = vst [vmem:[#allocation3] sm:$0x1] %v19_v0 }
   0x3   :  { %21 = vsyncpa [#allocation5], 0 }
   0x4   :  { %23 = vsyncpa [#allocation5 + $0x1], 0  ;;  %s16632_s15 = smov 0   ;;  %s16634_s16 = smov 0  }
   0x5   :  { %s16636_s17 = smov 0   ;;  %s16638_s18 = smov 0  }
   0x6 LB: > { %s16653_s11 = sadd.s32 4294967295, %s16543_s18   ;;  %s13376_s19 = sadd.s32 4294967294, %s16543_s18   ;;  %s16543_s18 = sphi %s16638_s18, %s20350_s18   ;;  %s16539_s17 = sphi %s16636_s17, %s20349_s17   ;;  %s16535_s16 = sphi %s16634_s16, %s20348_s16   ;;  %s16531_s15 = sphi %s16632_s15, %s20347_s15  }
   0x7   : > { %s16657_s20 = sadd.s32 1, %s16543_s18   ;;  %s335_s21 = sadd.s32 1, %s16539_s17 }
   0x8   : > { %s332_s22 = ssub.s32 %s16543_s18, %s16657_s20  ;;  %p345_p0 = scmp.ne.s32.totalorder %s16539_s17, %s16535_s16 }
   0x9   : > { %p333_p1 = scmp.eq.s32.totalorder %s332_s22, 0  ;;  %p346_p2 = scmp.eq.s32.totalorder %s16653_s11, 1 }
   0xa   : > { %p351_p3 = scmp.ne.s32.totalorder %s16535_s16, %s16531_s15  ;;  %p352_p4 = scmp.eq.s32.totalorder %s13376_s19, 1 }
   0xb   : > { %s16668_s23 = scalar_select %p333_p1, %s16539_s17, %s335_s21  }
   0xc   : > { %p16670_p5 = por %p346_p2, %p345_p0  ;;  %p16674_p6 = por %p352_p4, %p351_p3 }
   0xd   : > { %p13379_p7 = scmp.ge.s32.totalorder %s16543_s18, 1  ;;  %p419_p8 = scmp.lt.s32.totalorder %s16543_s18, 3 }
   0xf   : > { %p420_p9 = pnand %p13379_p7, %p419_p8 }
  0x11   : > { %423 = sbr.rel (%p420_p9) target bundleno = 2272 (0x8e0), region = 76 }
  0x18   : > { %s20226_s1 = sld [smem:[#allocation58_spill]]  ;;  %vm797_vm0 = vcmask 1041408   ;;  %s13381_s28 = sshll.u32 %s16653_s11, 1  ;;  %vm700_vm1 = vcmask 31744   ;;  %vm1299_vm2 = vcmask 24576   ;;  %vm1296_vm7 = vcmask 27648  }
  0x19   : > { %p467_p10 = scmp.lt.s32.totalorder %s13381_s28, 3  ;;  %s20227_s0 = sld [smem:[#allocation57_spill]]  ;;  %vm1312_vm3 = vsmask.f32 256  ;;  %v1320_v29 = vld [vmem:[#allocation2 + $0x18] sm:$0x1] }
  0x1a   : > { %vm16742_vm4 = vmand %vm1299_vm2, %vm1312_vm3  ;;  %vm1422_vm5 = vsmask.f32 7938  ;;  %v1317_v31 = vld [vmem:[#allocation2 + $0xc] sm:$0x1]  ;;  %v1430_v33 = vld [vmem:[#allocation2 + $0x20] sm:$0x1] }
  0x1b   : > { %s20352_s28 = smov (!%p467_p10, %s13381_s28), 3  ;;  %v1321_v30 = vsel %vm16742_vm4, 0, %v1320_v29  ;;  %vm16751_vm6 = vmand %vm1299_vm2, %vm1422_vm5  ;;  %v1318_v34 = vsel %vm16742_vm4, 0, %v1317_v31  ;;  %v1427_v36 = vld [vmem:[#allocation2 + $0x14] sm:$0x1]  ;;  %v16545_v46 = vmov 0  }
  0x1c   : > { %s14307_s29 = sshll.u32 %s20352_s28, 7  ;;  %1322 = vst [vmem:[#allocation2 + $0x18] sm:$0x1] %v1321_v30  ;;  %v1431_v35 = vsel %vm16751_vm6, 0, %v1430_v33  ;;  %1319 = vst [vmem:[#allocation2 + $0xc] sm:$0x1] %v1318_v34 }
  0x1d   : > { %1432 = vst [vmem:[#allocation2 + $0x20] sm:$0x1] %v1431_v35  ;;  %v1428_v38 = vsel %vm16751_vm6, 0, %v1427_v36  ;;  %v1326_v40 = vld [vmem:[#allocation2 + $0x30] sm:$0x1]  ;;  %s16546_s19 = smov 124   ;;  %vm16892_vm12 = vmand %vm1296_vm7, %vm1422_vm5 }
  0x1e   : > { %v539_v1 = vld [vmem:[%s20226_s1] sm:$0x3]  ;;  %1429 = vst [vmem:[#allocation2 + $0x14] sm:$0x1] %v1428_v38  ;;  %v1327_v41 = vsel %vm16742_vm4, 0, %v1326_v40  ;;  %vm4591_vm14 = vcmask 1042432  }
  0x1f   : > { %16069 = vmatprep.subr.msk.bf16.mxu0 %vm797_vm0, %v539_v1  ;;  %v799_v2 = vsel %vm797_vm0, %v539_v1, 0  ;;  %s16689_s21 = scalar_lea.vmem %s20227_s0, %s14307_s29  ;;  %v1323_v42 = vld [vmem:[#allocation2 + $0x24] sm:$0x1]  ;;  %1328 = vst [vmem:[#allocation2 + $0x30] sm:$0x1] %v1327_v41  ;;  %vm4592_vm15 = vcmask 1046532  }
  0x20   : > { %14809 = vmatpush3.bf16.msra.mxu0 %v799_v2  ;;  %v16128_v3 = vld [vmem:[%s16689_s21] sm:$0xff]   ;;  %v16129_v4 = vld [vmem:[%s16689_s21 + $0x8] sm:$0xff]   ;;  %v16130_v5 = vld [vmem:[%s16689_s21 + $0x10] sm:$0xff]   ;;  %v1324_v43 = vsel %vm16742_vm4, 0, %v1323_v42  ;;  %1297 = vst.msk [vmem:[#allocation2] sm:$0xf] %vm1296_vm7, %v16545_v46 }
  0x21   : > { %14810 = vmatprep.mubr.msk.bf16.mxu0 %vm700_vm1, %v16128_v3  ;;  %v16131_v6 = vld [vmem:[%s16689_s21 + $0x18] sm:$0xff]   ;;  %v16132_v7 = vld [vmem:[%s16689_s21 + $0x20] sm:$0xff]   ;;  %v16133_v8 = vld [vmem:[%s16689_s21 + $0x28] sm:$0xff]   ;;  %1325 = vst [vmem:[#allocation2 + $0x24] sm:$0x1] %v1324_v43  ;;  %vm11785_vm5 = vcmask 130048  }
  0x22   : > { %v16134_v9 = vld [vmem:[%s16689_s21 + $0x30] sm:$0xff]   ;;  %v16135_v10 = vld [vmem:[%s16689_s21 + $0x38] sm:$0xff]   ;;  %v16136_v11 = vld [vmem:[%s16689_s21 + $0x40] sm:$0xff]   ;;  %1298 = vst.msk [vmem:[#allocation2 + $0x4] sm:$0xf] %vm1296_vm7, %v16545_v46  ;;  %s14437_s27 = sshll.u32 %s16653_s11, 12 }
  0x23   : > { %14811 = vmatmul.mubr.msk.bf16.vlgmr.msra.gmra.mrb[0].mxu0 %vm700_vm1, %v16129_v4  ;;  %v16137_v12 = vld [vmem:[%s16689_s21 + $0x48] sm:$0xff]   ;;  %v16138_v13 = vld [vmem:[%s16689_s21 + $0x50] sm:$0xff]   ;;  %v16139_v14 = vld [vmem:[%s16689_s21 + $0x58] sm:$0xff]   ;;  %1300 = vst.msk [vmem:[#allocation2 + $0x8] sm:$0x1] %vm1299_vm2, %v16545_v46  ;;  %s20152_s22 = scalar_lea.hbm %s20219_s14, %s14437_s27  ;;  %s16551_s27 = smov [#allocation4]  }
  0x24   : > { %14814 = vmatprep.mubr.msk.bf16.mxu0 %vm700_vm1, %v16130_v5  ;;  %v16140_v15 = vld [vmem:[%s16689_s21 + $0x60] sm:$0xff]   ;;  %v16141_v16 = vld [vmem:[%s16689_s21 + $0x68] sm:$0xff]   ;;  %v16142_v17 = vld [vmem:[%s16689_s21 + $0x70] sm:$0xff]   ;;  %1301 = vst.msk [vmem:[#allocation2 + $0xd8] sm:$0xf] %vm1296_vm7, %v16545_v46  ;;  %s16485_s30 = sshll.u32 %s16551_s27, 4  ;;  %s16486_s30 = int_to_ptr.vmem [resolvable:$false] %s16485_s30 }
  0x25   : > { %v16143_v18 = vld [vmem:[%s16689_s21 + $0x78] sm:$0xff]   ;;  %v16144_v19 = vld [vmem:[%s16689_s21 + $0x80] sm:$0xff]   ;;  %v16145_v20 = vld [vmem:[%s16689_s21 + $0x88] sm:$0xff]   ;;  %1302 = vst.msk [vmem:[#allocation2 + $0xdc] sm:$0xf] %vm1296_vm7, %v16545_v46 }
  0x26   : > { %v16146_v21 = vld [vmem:[%s16689_s21 + $0x90] sm:$0xff]   ;;  %v16147_v22 = vld [vmem:[%s16689_s21 + $0x98] sm:$0xff]   ;;  %v16148_v23 = vld [vmem:[%s16689_s21 + $0xa0] sm:$0xff]   ;;  %1303 = vst.msk [vmem:[#allocation2 + $0xe0] sm:$0x1] %vm1299_vm2, %v16545_v46 }
  0x27   : > { %v16149_v24 = vld [vmem:[%s16689_s21 + $0xa8] sm:$0xff]   ;;  %v16150_v25 = vld [vmem:[%s16689_s21 + $0xb0] sm:$0xff]   ;;  %v16151_v26 = vld [vmem:[%s16689_s21 + $0xb8] sm:$0xff]   ;;  %1305 = vst.msk [vmem:[#allocation2 + $0xcc] sm:$0xf] %vm1296_vm7, %v16545_v46 }
  0x28   : > { %v16152_v27 = vld [vmem:[%s16689_s21 + $0xc0] sm:$0xff]   ;;  %v16153_v37 = vld [vmem:[%s16689_s21 + $0xc8] sm:$0xff]   ;;  %v16154_v39 = vld [vmem:[%s16689_s21 + $0xd0] sm:$0xff]   ;;  %1306 = vst.msk [vmem:[#allocation2 + $0xd0] sm:$0xf] %vm1296_vm7, %v16545_v46 }
  0x29   : > { %v16155_v44 = vld [vmem:[%s16689_s21 + $0xd8] sm:$0xff]   ;;  %v16156_v45 = vld [vmem:[%s16689_s21 + $0xe0] sm:$0xff]   ;;  %1307 = vst.msk [vmem:[#allocation2 + $0xd4] sm:$0x1] %vm1299_vm2, %v16545_v46  ;;  %1310 = vst.msk [vmem:[#allocation2 + $0x1ac] sm:$0x1] %vm1299_vm2, %v16545_v46 }
  0x2a   : > { %1308 = vst.msk [vmem:[#allocation2 + $0x1a4] sm:$0xf] %vm1296_vm7, %v16545_v46  ;;  %1309 = vst.msk [vmem:[#allocation2 + $0x1a8] sm:$0xf] %vm1296_vm7, %v16545_v46  ;;  %v1436_v47 = vld [vmem:[#allocation2 + $0x38] sm:$0x1] }
  0x2b   : > { %14815 = vmatmul.mubr.msk.bf16.gmra.mrb[4].mxu0 %vm700_vm1, %v16131_v6  ;;  %v1437_v48 = vsel %vm16751_vm6, 0, %v1436_v47  ;;  %v1433_v49 = vld [vmem:[#allocation2 + $0x2c] sm:$0x1]  ;;  %v16158_v52 = vld [vmem:[%s16689_s21 + $0xf0] sm:$0xff]   ;;  %v1332_v53 = vld [vmem:[#allocation2 + $0x48] sm:$0x1] }
  0x2c   : > { %14818 = vmatprep.mubr.msk.bf16.mxu0 %vm700_vm1, %v16132_v7  ;;  %v16157_v50 = vld [vmem:[%s16689_s21 + $0xe8] sm:$0xff]   ;;  %1438 = vst [vmem:[#allocation2 + $0x38] sm:$0x1] %v1437_v48  ;;  %v1434_v51 = vsel %vm16751_vm6, 0, %v1433_v49  ;;  %v1314_v54 = vld [vmem:[#allocation2] sm:$0x1]  ;;  %vm17994_vm2 = vmor %vm4591_vm14, %vm4592_vm15 }
  0x2d   : > { %1435 = vst [vmem:[#allocation2 + $0x2c] sm:$0x1] %v1434_v51  ;;  %v1333_v55 = vsel %vm16742_vm4, 0, %v1332_v53  ;;  %v1329_v56 = vld [vmem:[#allocation2 + $0x3c] sm:$0x1]  ;;  %v1315_v57 = vsel %vm16742_vm4, 0, %v1314_v54 }
  0x2e   : > { %1334 = vst [vmem:[#allocation2 + $0x48] sm:$0x1] %v1333_v55  ;;  %v1330_v58 = vsel %vm16742_vm4, 0, %v1329_v56  ;;  %v1442_v59 = vld [vmem:[#allocation2 + $0x50] sm:$0x1]  ;;  %v16159_v62 = vld [vmem:[%s16689_s21 + $0xf8] sm:$0xff]  }
  0x2f   : > { %1316 = vst [vmem:[#allocation2] sm:$0x1] %v1315_v57  ;;  %1331 = vst [vmem:[#allocation2 + $0x3c] sm:$0x1] %v1330_v58  ;;  %v1443_v60 = vsel %vm16751_vm6, 0, %v1442_v59  ;;  %s16487_s21 = scalar_lea.vmem %s16486_s30, 8192 }
  0x30   : > { %v1439_v61 = vld [vmem:[#allocation2 + $0x44] sm:$0x1]  ;;  %1444 = vst [vmem:[#allocation2 + $0x50] sm:$0x1] %v1443_v60  ;;  %v1424_v0 = vld [vmem:[#allocation2 + $0x8] sm:$0x1] }
  0x31   : > { %v1440_v63 = vsel %vm16751_vm6, 0, %v1439_v61  ;;  %v1425_v1 = vsel %vm16751_vm6, 0, %v1424_v0  ;;  %v1338_v2 = vld [vmem:[#allocation2 + $0x60] sm:$0x1]  ;;  %v1335_v4 = vld [vmem:[#allocation2 + $0x54] sm:$0x1] }
  0x32   : > { %1441 = vst [vmem:[#allocation2 + $0x44] sm:$0x1] %v1440_v63  ;;  %1426 = vst [vmem:[#allocation2 + $0x8] sm:$0x1] %v1425_v1  ;;  %v1339_v3 = vsel %vm16742_vm4, 0, %v1338_v2  ;;  %v1336_v5 = vsel %vm16742_vm4, 0, %v1335_v4 }
  0x33   : > { %14819 = vmatmul.mubr.msk.bf16.gmra.mrb[8].mxu0 %vm700_vm1, %v16133_v8  ;;  %1340 = vst [vmem:[#allocation2 + $0x60] sm:$0x1] %v1339_v3  ;;  %1337 = vst [vmem:[#allocation2 + $0x54] sm:$0x1] %v1336_v5  ;;  %v2594_v7 = vld [vmem:[#allocation2 + $0x4] sm:$0xf] }
  0x34   : > { %14822 = vmatprep.mubr.msk.bf16.mxu0 %vm700_vm1, %v16134_v9  ;;  %vm2690_vm8 = vsmask.f32 3328  ;;  %vm2691_vm9 = vsmask.f32 7440  ;;  %v1341_v31 = vld [vmem:[#allocation2 + $0x6c] sm:$0x1] }
  0x35   : > { %vm16822_vm10 = vmor %vm2690_vm8, %vm2691_vm9  ;;  %v1342_v35 = vsel %vm16742_vm4, 0, %v1341_v31  ;;  %v1451_v41 = vld [vmem:[#allocation2 + $0x74] sm:$0x1]  ;;  %v1350_v43 = vld [vmem:[#allocation2 + $0x90] sm:$0x1] }
  0x36   : > { %v2593_v6 = vld [vmem:[#allocation2] sm:$0xf]  ;;  %1343 = vst [vmem:[#allocation2 + $0x6c] sm:$0x1] %v1342_v35  ;;  %v1452_v42 = vsel %vm16751_vm6, 0, %v1451_v41 }
  0x37   : > { %v2694_v8 = vshrl.u32 %v2593_v6, 16  ;;  %v2697_v9 = vshll.u32 %v2593_v6, 16  ;;  %1453 = vst [vmem:[#allocation2 + $0x74] sm:$0x1] %v1452_v42  ;;  %v1460_v46 = vld [vmem:[#allocation2 + $0x98] sm:$0x1] }
  0x38   : > { %v1461_v48 = vsel %vm16751_vm6, 0, %v1460_v46  ;;  %v1457_v49 = vld [vmem:[#allocation2 + $0x8c] sm:$0x1]  ;;  %v1356_v51 = vld [vmem:[#allocation2 + $0xa8] sm:$0x1] }
  0x39   : > { %1462 = vst [vmem:[#allocation2 + $0x98] sm:$0x1] %v1461_v48  ;;  %v1353_v53 = vld [vmem:[#allocation2 + $0x9c] sm:$0x1]  ;;  %v1466_v55 = vld [vmem:[#allocation2 + $0xb0] sm:$0x1] }
  0x3a   : > { %v1354_v54 = vsel %vm16742_vm4, 0, %v1353_v53  ;;  %v1463_v56 = vld [vmem:[#allocation2 + $0xa4] sm:$0x1]  ;;  %v1467_v57 = vsel %vm16751_vm6, 0, %v1466_v55  ;;  %v1362_v59 = vld [vmem:[#allocation2 + $0xc0] sm:$0x1] }
  0x3b   : > { %14823 = vmatmul.mubr.msk.bf16.gmra.mrb[12].mxu0 %vm700_vm1, %v16135_v10  ;;  %v1448_v10 = vld [vmem:[#allocation2 + $0x68] sm:$0x1]  ;;  %1355 = vst [vmem:[#allocation2 + $0x9c] sm:$0x1] %v1354_v54  ;;  %v1464_v58 = vsel %vm16751_vm6, 0, %v1463_v56  ;;  %v1363_v60 = vsel %vm16742_vm4, 0, %v1362_v59 }
  0x3c   : > { %14826 = vmatprep.mubr.msk.bf16.mxu0 %vm700_vm1, %v16136_v11  ;;  %v2703_v11 = vshll.u32 %v2594_v7, 16  ;;  %1468 = vst [vmem:[#allocation2 + $0xb0] sm:$0x1] %v1467_v57  ;;  %1465 = vst [vmem:[#allocation2 + $0xa4] sm:$0x1] %v1464_v58 }
  0x3d   : > { %1364 = vst [vmem:[#allocation2 + $0xc0] sm:$0x1] %v1363_v60  ;;  %v1359_v61 = vld [vmem:[#allocation2 + $0xb4] sm:$0x1]  ;;  %v1469_v1 = vld [vmem:[#allocation2 + $0xbc] sm:$0x1] }
  0x3e   : > { %v1360_v63 = vsel %vm16742_vm4, 0, %v1359_v61  ;;  %v1470_v2 = vsel %vm16751_vm6, 0, %v1469_v1  ;;  %v16864_v3 = vld [vmem:[%s20207_s2] ss:$0 sm:$0xff]  ;;  %vm1724_vm11 = vsmask.f32 4368 }
  0x3f   : > { %1361 = vst [vmem:[#allocation2 + $0xb4] sm:$0x1] %v1360_v63  ;;  %1471 = vst [vmem:[#allocation2 + $0xbc] sm:$0x1] %v1470_v2  ;;  %v16869_v5 = vld [vmem:[%s20208_s3] ss:$0 sm:$0xff] }
  0x40   : > { %v2369_v55 = vld [vmem:[#allocation2 + $0xc] sm:$0xf]  ;;  %v2380_v57 = vld [vmem:[#allocation2 + $0x20] sm:$0x1]  ;;  %vm16899_vm13 = vmor %vm1312_vm3, %vm1724_vm11  ;;  %vm16548_vm3 = vmmov 0  }
  0x41   : > { %v2373_v1 = vld [vmem:[#allocation2 + $0x14] sm:$0x1] }
  0x43   : > { %14827 = vmatmul.mubr.msk.bf16.gmra.mrb[16].mxu0 %vm700_vm1, %v16137_v12  ;;  %v2707_v12 = vshrl.u32 %v2594_v7, 16 }
  0x44   : > { %14830 = vmatprep.mubr.msk.bf16.mxu0 %vm700_vm1, %v16138_v13  ;;  %v1449_v13 = vsel %vm16751_vm6, 0, %v1448_v10  ;;  %v1374_v10 = vld [vmem:[#allocation2 + $0xf0] sm:$0x1] }
  0x45   : > { %1450 = vst [vmem:[#allocation2 + $0x68] sm:$0x1] %v1449_v13 }
  0x4b   : > { %14831 = vmatmul.mubr.msk.bf16.gmra.mrb[20].mxu0 %vm700_vm1, %v16139_v14  ;;  %v1445_v14 = vld [vmem:[#allocation2 + $0x5c] sm:$0x1] }
  0x4c   : > { %14834 = vmatprep.mubr.msk.bf16.mxu0 %vm700_vm1, %v16140_v15  ;;  %v2658_v15 = vld [vmem:[#allocation2 + $0x8] sm:$0x1] }
  0x53   : > { %14835 = vmatmul.mubr.msk.bf16.gmra.mrb[24].mxu0 %vm700_vm1, %v16141_v16  ;;  %v2696_v16 = vrot.slane %v2694_v8, 4 }
  0x54   : > { %14838 = vmatprep.mubr.msk.bf16.mxu0 %vm700_vm1, %v16142_v17  ;;  %v1446_v17 = vsel %vm16751_vm6, 0, %v1445_v14  ;;  %v1375_v14 = vsel %vm16742_vm4, 0, %v1374_v10 }
  0x55   : > { %1447 = vst [vmem:[#allocation2 + $0x5c] sm:$0x1] %v1446_v17  ;;  %1376 = vst [vmem:[#allocation2 + $0xf0] sm:$0x1] %v1375_v14 }
  0x5b   : > { %14839 = vmatmul.mubr.msk.bf16.gmra.mrb[28].mxu0 %vm700_vm1, %v16143_v18  ;;  %v13514_v18 = vld [vmem:[%s20209_s4 + $0x2] sm:$0x3] }
  0x5c   : > { %14842 = vmatprep.mubr.msk.bf16.mxu0 %vm700_vm1, %v16144_v19  ;;  %v2699_v19 = vrot.slane %v2697_v9, 5  ;;  %16070 = vmatprep.subr.msk.bf16.mxu0 %vm797_vm0, %v13514_v18 }
  0x63   : > { %14843 = vmatmul.mubr.msk.bf16.gmra.mrb[32].mxu0 %vm700_vm1, %v16145_v20  ;;  %v2705_v20 = vrot.slane %v2703_v11, 5 }
  0x64   : > { %14846 = vmatprep.mubr.msk.bf16.mxu0 %vm700_vm1, %v16146_v21  ;;  %v2709_v21 = vrot.slane %v2707_v12, 4 }
  0x6b   : > { %14847 = vmatmul.mubr.msk.bf16.gmra.mrb[36].mxu0 %vm700_vm1, %v16147_v22  ;;  %v2713_v22 = vshll.u32 %v2658_v15, 16 }
  0x6c   : > { %14850 = vmatprep.mubr.msk.bf16.mxu0 %vm700_vm1, %v16148_v23  ;;  %v2700_v23 = vor.u32 %v2699_v19, %v2696_v16 }
  0x6e   : > { %v2701_v29 = vrot.slane %v2700_v23, 4  ;;  %v1371_v23 = vld [vmem:[#allocation2 + $0xe4] sm:$0x1] }
  0x70   : > { %v2706_v36 = vsel %vm16822_vm10, %v2701_v29, %v2705_v20 }
  0x73   : > { %14851 = vmatmul.mubr.msk.bf16.gmra.mrb[40].mxu0 %vm700_vm1, %v16149_v24  ;;  %v3656_v24 = vsel %vm797_vm0, %v13514_v18, 0 }
  0x74   : > { %14854 = vmatprep.mubr.msk.bf16.mxu0 %vm700_vm1, %v16150_v25  ;;  %v2710_v25 = vor.u32 %v2709_v21, %v2705_v20  ;;  %14875 = vmatpush3.bf16.msra.mxu0 %v3656_v24 }
  0x76   : > { %v2711_v34 = vrot.slane %v2710_v25, 4 }
  0x7b   : > { %14855 = vmatmul.mubr.msk.bf16.gmra.mrb[44].mxu0 %vm700_vm1, %v16151_v26  ;;  %v2715_v26 = vrot.slane %v2713_v22, 5 }
  0x7c   : > { %14858 = vmatprep.mubr.msk.bf16.mxu0 %vm700_vm1, %v16152_v27  ;;  %v1344_v27 = vld [vmem:[#allocation2 + $0x78] sm:$0x1] }
  0x7d   : > { %v1345_v30 = vsel %vm16742_vm4, 0, %v1344_v27  ;;  %v2716_v38 = vsel %vm16822_vm10, %v2711_v34, %v2715_v26  ;;  %v1372_v27 = vsel %vm16742_vm4, 0, %v1371_v23 }
  0x7e   : > { %1346 = vst [vmem:[#allocation2 + $0x78] sm:$0x1] %v1345_v30  ;;  %v13515_v40 = vcombine.low %v2706_v36, %v2716_v38  ;;  %1373 = vst [vmem:[#allocation2 + $0xe4] sm:$0x1] %v1372_v27 }
  0x83   : > { %14859 = vmatmul.mubr.msk.bf16.gmra.mrb[48].mxu0 %vm700_vm1, %v16153_v37  ;;  %v1454_v37 = vld [vmem:[#allocation2 + $0x80] sm:$0x1] }
  0x84   : > { %14862 = vmatprep.mubr.msk.bf16.mxu0 %vm700_vm1, %v16154_v39  ;;  %v1455_v39 = vsel %vm16751_vm6, 0, %v1454_v37 }
  0x85   : > { %1456 = vst [vmem:[#allocation2 + $0x80] sm:$0x1] %v1455_v39 }
  0x8b   : > { %14863 = vmatmul.mubr.msk.bf16.gmra.mrb[52].mxu0 %vm700_vm1, %v16155_v44  ;;  %v1351_v44 = vsel %vm16742_vm4, 0, %v1350_v43 }
  0x8c   : > { %14866 = vmatprep.mubr.msk.bf16.mxu0 %vm700_vm1, %v16156_v45  ;;  %1352 = vst [vmem:[#allocation2 + $0x90] sm:$0x1] %v1351_v44  ;;  %v1347_v45 = vld [vmem:[#allocation2 + $0x84] sm:$0x1] }
  0x8d   : > { %v1348_v47 = vsel %vm16742_vm4, 0, %v1347_v45 }
  0x8e   : > { %1349 = vst [vmem:[#allocation2 + $0x84] sm:$0x1] %v1348_v47 }
  0x93   : > { %14867 = vmatmul.mubr.msk.bf16.gmra.mrb[56].mxu0 %vm700_vm1, %v16157_v50  ;;  %v1458_v50 = vsel %vm16751_vm6, 0, %v1457_v49  ;;  %v2376_v49 = vld [vmem:[#allocation2 + $0x18] sm:$0xf] }
  0x94   : > { %14870 = vmatprep.mubr.msk.bf16.mxu0 %vm700_vm1, %v16158_v52  ;;  %1459 = vst [vmem:[#allocation2 + $0x8c] sm:$0x1] %v1458_v50  ;;  %v1357_v52 = vsel %vm16742_vm4, 0, %v1356_v51 }
  0x95   : > { %1358 = vst [vmem:[#allocation2 + $0xa8] sm:$0x1] %v1357_v52 }
  0x9b   : > { %14871 = vmatmul.mubr.msk.bf16.gmra.mrb[60].mxu0 %vm700_vm1, %v16159_v62  ;;  %v1472_v62 = vld [vmem:[#allocation2 + $0xc8] sm:$0x1] }
  0x9c   : > { %14876 = vmatprep.mubr.msk.bf16.mxu0 %vm700_vm1, %v13515_v40  ;;  %v1473_v0 = vsel %vm16751_vm6, 0, %v1472_v62 }
  0x9d   : > { %1474 = vst [vmem:[#allocation2 + $0xc8] sm:$0x1] %v1473_v0 }
  0xf6   : > { %v14812_v4 = vpop.f32.mrb[0].mxu0 }
  0xf7   : > { %v1099_v6 = vmul.f32 %v14812_v4, %v16864_v3  ;;  %v835_v7 = vpop.f32.mrb[1].mxu0 }
  0xf8   : > { %v1097_v8 = vmul.f32 %v16864_v3, %v835_v7  ;;  %v14813_v9 = vpop.f32.mrb[2].mxu0 }
  0xf9   : > { %v1100_v11 = vmul.f32 %v14813_v9, %v16864_v3  ;;  %v838_v12 = vpop.f32.mrb[3].mxu0  ;;  %v1170_v13 = vadd.f32 %v16869_v5, %v1099_v6 }
  0xfa   : > { %v1098_v15 = vmul.f32 %v16864_v3, %v838_v12  ;;  %v1168_v16 = vadd.f32 %v16869_v5, %v1097_v8 }
  0xfb   : > { %v1171_v17 = vadd.f32 %v16869_v5, %v1100_v11  ;;  %12662 = vrot.lane.b32.xlu1 %v1170_v13, %s16546_s19  ;;  %v1234_v18 = vmax.f32 %v1170_v13, 0.0 }
  0xfc   : > { %v1169_v19 = vadd.f32 %v16869_v5, %v1098_v15  ;;  %12658 = vrot.lane.b32.xlu0 %v1168_v16, %s16546_s19  ;;  %v1232_v20 = vmax.f32 %v1168_v16, 0.0 }
  0xfd   : > { %v1235_v21 = vmax.f32 %v1171_v17, 0.0  ;;  %v14310_v22 = vpack.c.bf16 %v1234_v18, %v1234_v18 }
  0xfe   : > { %v1233_v24 = vmax.f32 %v1169_v19, 0.0  ;;  %v14308_v25 = vpack.c.bf16 %v1232_v20, %v1232_v20  ;;  %v14816_v26 = vpop.f32.mrb[4].mxu0 }
  0xff   : > { %v14311_v29 = vpack.c.bf16 %v1235_v21, %v1235_v21  ;;  %v1744_v30 = vshrl.u32 %v14310_v22, 16  ;;  %v1747_v31 = vshll.u32 %v14310_v22, 16  ;;  %v1103_v34 = vmul.f32 %v14816_v26, %v16864_v3  ;;  %12664 = vrot.lane.b32.xlu1 %v1171_v17, %s16546_s19  ;;  %v851_v35 = vpop.f32.mrb[5].mxu0  ;;  %v2390_v26 = vld [vmem:[#allocation2 + $0x30] sm:$0xf] }
 0x100   : > { %v14309_v36 = vpack.c.bf16 %v1233_v24, %v1233_v24  ;;  %v1727_v37 = vshrl.u32 %v14308_v25, 16  ;;  %v1730_v38 = vshll.u32 %v14308_v25, 16  ;;  %v1101_v39 = vmul.f32 %v16864_v3, %v851_v35  ;;  %12660 = vrot.lane.b32.xlu0 %v1169_v19, %s16546_s19  ;;  %v14817_v40 = vpop.f32.mrb[6].mxu0 }
 0x101   : > { %v1752_v41 = vshrl.u32 %v14311_v29, 16  ;;  %v1755_v42 = vshll.u32 %v14311_v29, 16  ;;  %v1746_v43 = vrot.slane %v1744_v30, 7  ;;  %v1174_v44 = vadd.f32 %v16869_v5, %v1103_v34  ;;  %v854_v45 = vpop.f32.mrb[7].mxu0 }
 0x102   : > { %v1735_v46 = vshrl.u32 %v14309_v36, 16  ;;  %v1738_v47 = vshll.u32 %v14309_v36, 16  ;;  %v1729_v50 = vrot.slane %v1727_v37, 7  ;;  %v1172_v51 = vadd.f32 %v16869_v5, %v1101_v39  ;;  %v2383_v36 = vld [vmem:[#allocation2 + $0x24] sm:$0xf] }
 0x103   : > { %v1754_v52 = vrot.slane %v1752_v41, 7  ;;  %v1749_v53 = vor.u32 %v1747_v31, %v1746_v43  ;;  %v1750_v54 = vrot.slane %v1746_v43, 4  ;;  %v1238_v56 = vmax.f32 %v1174_v44, 0.0 }
 0x104   : > { %v1737_v58 = vrot.slane %v1735_v46, 7  ;;  %v1732_v60 = vor.u32 %v1730_v38, %v1729_v50  ;;  %v1733_v61 = vrot.slane %v1729_v50, 4  ;;  %v1236_v62 = vmax.f32 %v1172_v51, 0.0  ;;  %12670 = vrot.lane.b32.xlu0 %v1174_v44, %s16546_s19 }
 0x105   : > { %v1757_v63 = vor.u32 %v1755_v42, %v1754_v52  ;;  %v1759_v0 = vrot.slane %v1754_v52, 4  ;;  %v2377_v2 = vsel %vm16892_vm12, %v1749_v53, %v2376_v49  ;;  %v14314_v4 = vpack.c.bf16 %v1238_v56, %v1238_v56 }
 0x106   : > { %v1740_v6 = vor.u32 %v1738_v47, %v1737_v58  ;;  %v1742_v7 = vrot.slane %v1737_v58, 4  ;;  %2378 = vst [vmem:[#allocation2 + $0x18] sm:$0xf] %v2377_v2  ;;  %v2370_v8 = vsel %vm16892_vm12, %v1732_v60, %v2369_v55  ;;  %v14312_v9 = vpack.c.bf16 %v1236_v62, %v1236_v62  ;;  %v14820_v10 = vpop.f32.mrb[8].mxu0 }
 0x107   : > { %v2381_v11 = vsel %vm16742_vm4, %v1759_v0, %v2380_v57  ;;  %v1758_v12 = vsel %vm16899_vm13, %v1750_v54, %v1757_v63  ;;  %2371 = vst [vmem:[#allocation2 + $0xc] sm:$0xf] %v2370_v8  ;;  %v1778_v13 = vshrl.u32 %v14314_v4, 16  ;;  %v1781_v14 = vshll.u32 %v14314_v4, 16  ;;  %v867_v15 = vpop.f32.mrb[9].mxu0 }
 0x108   : > { %2382 = vst [vmem:[#allocation2 + $0x20] sm:$0x1] %v2381_v11  ;;  %v2374_v16 = vsel %vm16742_vm4, %v1742_v7, %v2373_v1  ;;  %2379 = vst.msk [vmem:[#allocation2 + $0x1c] sm:$0xf] %vm1296_vm7, %v1758_v12  ;;  %v1741_v17 = vsel %vm16899_vm13, %v1733_v61, %v1740_v6  ;;  %v1761_v18 = vshrl.u32 %v14312_v9, 16  ;;  %v1764_v19 = vshll.u32 %v14312_v9, 16  ;;  %12666 = vrot.lane.b32.xlu0 %v1172_v51, %s16546_s19 }
 0x109   : > { %v14821_v20 = vpop.f32.mrb[10].mxu0  ;;  %2375 = vst [vmem:[#allocation2 + $0x14] sm:$0x1] %v2374_v16  ;;  %2372 = vst.msk [vmem:[#allocation2 + $0x10] sm:$0xf] %vm1296_vm7, %v1741_v17  ;;  %v16919_v21 = vrot.slane %v1778_v13, 7  ;;  %v1104_v22 = vmul.f32 %v14817_v40, %v16864_v3  ;;  %v1102_v23 = vmul.f32 %v16864_v3, %v854_v45  ;;  %v1107_v24 = vmul.f32 %v14820_v10, %v16864_v3 }
 0x10a   : > { %v870_v25 = vpop.f32.mrb[11].mxu0  ;;  %v16924_v27 = vrot.slane %v1761_v18, 7  ;;  %v1105_v29 = vmul.f32 %v16864_v3, %v867_v15  ;;  %v1108_v30 = vmul.f32 %v14821_v20, %v16864_v3  ;;  %v2394_v7 = vld [vmem:[#allocation2 + $0x38] sm:$0x1]  ;;  %v2404_v18 = vld [vmem:[#allocation2 + $0x48] sm:$0xf] }
 0x10b   : > { %v1106_v31 = vmul.f32 %v16864_v3, %v870_v25  ;;  %v1783_v34 = vor.u32 %v1781_v14, %v16919_v21  ;;  %v1784_v35 = vrot.slane %v16919_v21, 4  ;;  %v1175_v37 = vadd.f32 %v16869_v5, %v1104_v22  ;;  %v2387_v14 = vld [vmem:[#allocation2 + $0x2c] sm:$0x1] }
 0x10c   : > { %v1173_v38 = vadd.f32 %v16869_v5, %v1102_v23  ;;  %v1766_v39 = vor.u32 %v1764_v19, %v16924_v27  ;;  %v1767_v40 = vrot.slane %v16924_v27, 4  ;;  %v1178_v41 = vadd.f32 %v16869_v5, %v1107_v24 }
 0x10d   : > { %v1176_v42 = vadd.f32 %v16869_v5, %v1105_v29  ;;  %v2391_v43 = vsel %vm16892_vm12, %v1783_v34, %v2390_v26  ;;  %v1239_v44 = vmax.f32 %v1175_v37, 0.0  ;;  %12672 = vrot.lane.b32.xlu1 %v1175_v37, %s16546_s19  ;;  %v1179_v46 = vadd.f32 %v16869_v5, %v1108_v30  ;;  %v2397_v29 = vld [vmem:[#allocation2 + $0x3c] sm:$0xf] }
 0x10e   : > { %v1237_v45 = vmax.f32 %v1173_v38, 0.0  ;;  %2392 = vst [vmem:[#allocation2 + $0x30] sm:$0xf] %v2391_v43  ;;  %v2384_v47 = vsel %vm16892_vm12, %v1766_v39, %v2383_v36  ;;  %v1242_v49 = vmax.f32 %v1178_v41, 0.0  ;;  %v16944_v51 = vadd.f32 %v16869_v5, %v1106_v31  ;;  %12678 = vrot.lane.b32.xlu0 %v1178_v41, %s16546_s19  ;;  %v14824_v52 = vpop.f32.mrb[12].mxu0 }
 0x10f   : > { %v1240_v50 = vmax.f32 %v1176_v42, 0.0  ;;  %2385 = vst [vmem:[#allocation2 + $0x24] sm:$0xf] %v2384_v47  ;;  %v14315_v53 = vpack.c.bf16 %v1239_v44, %v1239_v44  ;;  %v1243_v55 = vmax.f32 %v1179_v46, 0.0  ;;  %v1111_v56 = vmul.f32 %v14824_v52, %v16864_v3  ;;  %v883_v57 = vpop.f32.mrb[13].mxu0 }
 0x110   : > { %v14313_v54 = vpack.c.bf16 %v1237_v45, %v1237_v45  ;;  %v14318_v58 = vpack.c.bf16 %v1242_v49, %v1242_v49  ;;  %v1241_v61 = vmax.f32 %v16944_v51, 0.0  ;;  %v1109_v62 = vmul.f32 %v16864_v3, %v883_v57  ;;  %v14825_v63 = vpop.f32.mrb[14].mxu0 }
 0x111   : > { %v14316_v60 = vpack.c.bf16 %v1240_v50, %v1240_v50  ;;  %v1786_v0 = vshrl.u32 %v14315_v53, 16  ;;  %v1789_v1 = vshll.u32 %v14315_v53, 16  ;;  %12668 = vrot.lane.b32.xlu1 %v1173_v38, %s16546_s19  ;;  %v886_v6 = vpop.f32.mrb[15].mxu0  ;;  %v14319_v15 = vpack.c.bf16 %v1243_v55, %v1243_v55 }
 0x112   : > { %v1769_v2 = vshrl.u32 %v14313_v54, 16  ;;  %v1772_v4 = vshll.u32 %v14313_v54, 16  ;;  %v1812_v8 = vshrl.u32 %v14318_v58, 16  ;;  %v1815_v9 = vshll.u32 %v14318_v58, 16  ;;  %12674 = vrot.lane.b32.xlu0 %v1176_v42, %s16546_s19 }
 0x113   : > { %v1795_v10 = vshrl.u32 %v14316_v60, 16  ;;  %v1798_v11 = vshll.u32 %v14316_v60, 16  ;;  %v1788_v12 = vrot.slane %v1786_v0, 7  ;;  %v14317_v16 = vpack.c.bf16 %v1241_v61, %v1241_v61 }
 0x114   : > { %v1771_v13 = vrot.slane %v1769_v2, 7  ;;  %v1814_v17 = vrot.slane %v1812_v8, 7  ;;  %v1182_v20 = vadd.f32 %v16869_v5, %v1111_v56  ;;  %v1180_v22 = vadd.f32 %v16869_v5, %v1109_v62  ;;  %v2408_v56 = vld [vmem:[#allocation2 + $0x50] sm:$0x1] }
 0x115   : > { %v16952_v19 = vrot.slane %v1795_v10, 7  ;;  %v1791_v23 = vor.u32 %v1789_v1, %v1788_v12  ;;  %v1793_v24 = vrot.slane %v1788_v12, 4  ;;  %12680 = vrot.lane.b32.xlu1 %v1179_v46, %s16546_s19  ;;  %v1820_v27 = vshrl.u32 %v14319_v15, 16 }
 0x116   : > { %v1774_v25 = vor.u32 %v1772_v4, %v1771_v13  ;;  %v1776_v26 = vrot.slane %v1771_v13, 4  ;;  %v1817_v30 = vor.u32 %v1815_v9, %v1814_v17  ;;  %v1818_v31 = vrot.slane %v1814_v17, 4  ;;  %12686 = vrot.lane.b32.xlu0 %v1182_v20, %s16546_s19  ;;  %v14828_v37 = vpop.f32.mrb[16].mxu0 }
 0x117   : > { %v1800_v34 = vor.u32 %v1798_v11, %v16952_v19  ;;  %v1801_v36 = vrot.slane %v16952_v19, 4  ;;  %v1792_v38 = vsel %vm16899_vm13, %v1784_v35, %v1791_v23  ;;  %v2395_v39 = vsel %vm16742_vm4, %v1793_v24, %v2394_v7  ;;  %v899_v43 = vpop.f32.mrb[17].mxu0 }
 0x118   : > { %v1775_v41 = vsel %vm16899_vm13, %v1767_v40, %v1774_v25  ;;  %v2388_v42 = vsel %vm16742_vm4, %v1776_v26, %v2387_v14  ;;  %2393 = vst.msk [vmem:[#allocation2 + $0x34] sm:$0xf] %vm1296_vm7, %v1792_v38  ;;  %2396 = vst [vmem:[#allocation2 + $0x38] sm:$0x1] %v2395_v39  ;;  %v2405_v21 = vsel %vm16892_vm12, %v1817_v30, %v2404_v18  ;;  %v1823_v44 = vshll.u32 %v14319_v15, 16  ;;  %v14829_v45 = vpop.f32.mrb[18].mxu0 }
 0x119   : > { %2386 = vst.msk [vmem:[#allocation2 + $0x28] sm:$0xf] %vm1296_vm7, %v1775_v41  ;;  %2389 = vst [vmem:[#allocation2 + $0x2c] sm:$0x1] %v2388_v42  ;;  %v2398_v35 = vsel %vm16892_vm12, %v1800_v34, %v2397_v29  ;;  %v1803_v40 = vshrl.u32 %v14317_v16, 16  ;;  %v1806_v46 = vshll.u32 %v14317_v16, 16  ;;  %12676 = vrot.lane.b32.xlu1 %v16944_v51, %s16546_s19  ;;  %v1112_v53 = vmul.f32 %v14825_v63, %v16864_v3 }
 0x11a   : > { %2406 = vst [vmem:[#allocation2 + $0x48] sm:$0xf] %v2405_v21  ;;  %2399 = vst [vmem:[#allocation2 + $0x3c] sm:$0xf] %v2398_v35  ;;  %v1246_v47 = vmax.f32 %v1182_v20, 0.0  ;;  %v1244_v49 = vmax.f32 %v1180_v22, 0.0  ;;  %v1110_v54 = vmul.f32 %v16864_v3, %v886_v6  ;;  %v1115_v55 = vmul.f32 %v14828_v37, %v16864_v3  ;;  %12682 = vrot.lane.b32.xlu0 %v1180_v22, %s16546_s19 }
 0x11b   : > { %v16980_v50 = vpop.f32.mrb[19].mxu0  ;;  %v1822_v52 = vrot.slane %v1820_v27, 7  ;;  %v1805_v57 = vrot.slane %v1803_v40, 7  ;;  %v1113_v61 = vmul.f32 %v16864_v3, %v899_v43  ;;  %v2401_v51 = vld [vmem:[#allocation2 + $0x44] sm:$0x1]  ;;  %v1183_v1 = vadd.f32 %v16869_v5, %v1112_v53 }
 0x11c   : > { %v14322_v58 = vpack.c.bf16 %v1246_v47, %v1246_v47  ;;  %v14320_v60 = vpack.c.bf16 %v1244_v49, %v1244_v49  ;;  %v1181_v2 = vadd.f32 %v16869_v5, %v1110_v54  ;;  %v2418_v18 = vld [vmem:[#allocation2 + $0x60] sm:$0xf]  ;;  %v1186_v22 = vadd.f32 %v16869_v5, %v1115_v55  ;;  %v2411_v29 = vld [vmem:[#allocation2 + $0x54] sm:$0xf]  ;;  %v17019_v35 = vld [vmem:[#allocation2 + $0xc] sm:$0xf] }
 0x11d   : > { %v1825_v62 = vor.u32 %v1823_v44, %v1822_v52  ;;  %v1827_v0 = vrot.slane %v1822_v52, 4  ;;  %v1808_v63 = vor.u32 %v1806_v46, %v1805_v57  ;;  %v1810_v4 = vrot.slane %v1805_v57, 4  ;;  %12688 = vrot.lane.b32.xlu1 %v1183_v1, %s16546_s19  ;;  %v13740_v46 = vld [vmem:[%s20209_s4 + $0x6] sm:$0x3]  ;;  %v2422_v49 = vld [vmem:[#allocation2 + $0x68] sm:$0x1] }
 0x11e   : > { %v1846_v6 = vshrl.u32 %v14322_v58, 16  ;;  %v1849_v7 = vshll.u32 %v14322_v58, 16  ;;  %v1829_v10 = vshrl.u32 %v14320_v60, 16  ;;  %v1832_v11 = vshll.u32 %v14320_v60, 16  ;;  %v16994_v12 = vpop.f32.mrb[20].mxu0  ;;  %12694 = vrot.lane.b32.xlu0 %v1186_v22, %s16546_s19  ;;  %16074 = vmatprep.subr.msk.bf16.mxu1 %vm797_vm0, %v13740_v46 }
 0x11f   : > { %v1826_v8 = vsel %vm16899_vm13, %v1818_v31, %v1825_v62  ;;  %v2409_v9 = vsel %vm16742_vm4, %v1827_v0, %v2408_v56  ;;  %v1809_v13 = vsel %vm16899_vm13, %v1801_v36, %v1808_v63  ;;  %v2402_v14 = vsel %vm16742_vm4, %v1810_v4, %v2401_v51  ;;  %v17001_v17 = vpop.f32.mrb[21].mxu0  ;;  %v2415_v0 = vld [vmem:[#allocation2 + $0x5c] sm:$0x1] }
 0x120   : > { %2407 = vst.msk [vmem:[#allocation2 + $0x4c] sm:$0xf] %vm1296_vm7, %v1826_v8  ;;  %2410 = vst [vmem:[#allocation2 + $0x50] sm:$0x1] %v2409_v9  ;;  %v1848_v15 = vrot.slane %v1846_v6, 7  ;;  %v1247_v16 = vmax.f32 %v1183_v1, 0.0  ;;  %v1184_v23 = vadd.f32 %v16869_v5, %v1113_v61  ;;  %v1116_v31 = vmul.f32 %v14829_v45, %v16864_v3 }
 0x121   : > { %2400 = vst.msk [vmem:[#allocation2 + $0x40] sm:$0xf] %vm1296_vm7, %v1809_v13  ;;  %2403 = vst [vmem:[#allocation2 + $0x44] sm:$0x1] %v2402_v14  ;;  %v17004_v19 = vrot.slane %v1829_v10, 7  ;;  %v1245_v20 = vmax.f32 %v1181_v2, 0.0  ;;  %12684 = vrot.lane.b32.xlu1 %v1181_v2, %s16546_s19  ;;  %v1114_v54 = vmul.f32 %v16864_v3, %v16980_v50 }
 0x122   : > { %v17008_v24 = vpop.f32.mrb[22].mxu0  ;;  %v1851_v25 = vor.u32 %v1849_v7, %v1848_v15  ;;  %v1852_v26 = vrot.slane %v1848_v15, 4  ;;  %v14323_v30 = vpack.c.bf16 %v1247_v16, %v1247_v16  ;;  %v1250_v39 = vmax.f32 %v1186_v22, 0.0  ;;  %12690 = vrot.lane.b32.xlu0 %v1184_v23, %s16546_s19  ;;  %v2432_v10 = vld [vmem:[#allocation2 + $0x78] sm:$0xf] }
 0x123   : > { %v17011_v34 = vpop.f32.mrb[23].mxu0  ;;  %v1834_v36 = vor.u32 %v1832_v11, %v17004_v19  ;;  %v1835_v37 = vrot.slane %v17004_v19, 4  ;;  %v14321_v38 = vpack.c.bf16 %v1245_v20, %v1245_v20  ;;  %v1248_v21 = vmax.f32 %v1184_v23, 0.0  ;;  %v2596_v14 = vld [vmem:[#allocation2 + $0x10] sm:$0xf] }
 0x124   : > { %v2419_v41 = vsel %vm16892_vm12, %v1851_v25, %v2418_v18  ;;  %v1854_v42 = vshrl.u32 %v14323_v30, 16  ;;  %v1857_v43 = vshll.u32 %v14323_v30, 16  ;;  %v14326_v40 = vpack.c.bf16 %v1250_v39, %v1250_v39  ;;  %v2425_v22 = vld [vmem:[#allocation2 + $0x6c] sm:$0xf]  ;;  %v2659_v30 = vld [vmem:[#allocation2 + $0x14] sm:$0x1] }
 0x125   : > { %2420 = vst [vmem:[#allocation2 + $0x60] sm:$0xf] %v2419_v41  ;;  %v2412_v27 = vsel %vm16892_vm12, %v1834_v36, %v2411_v29  ;;  %v1837_v44 = vshrl.u32 %v14321_v38, 16  ;;  %v1840_v45 = vshll.u32 %v14321_v38, 16  ;;  %v14324_v52 = vpack.c.bf16 %v1248_v21, %v1248_v21  ;;  %v2597_v39 = vld [vmem:[#allocation2 + $0x18] sm:$0xf] }
 0x126   : > { %2413 = vst [vmem:[#allocation2 + $0x54] sm:$0xf] %v2412_v27  ;;  %v1856_v47 = vrot.slane %v1854_v42, 7  ;;  %v1187_v53 = vadd.f32 %v16869_v5, %v1116_v31  ;;  %v1880_v56 = vshrl.u32 %v14326_v40, 16  ;;  %v1883_v57 = vshll.u32 %v14326_v40, 16  ;;  %v17032_v60 = vpop.f32.mrb[24].mxu0 }
 0x127   : > { %v1839_v55 = vrot.slane %v1837_v44, 7  ;;  %v2718_v58 = vshrl.u32 %v17019_v35, 16  ;;  %v1863_v51 = vshrl.u32 %v14324_v52, 16  ;;  %v1866_v1 = vshll.u32 %v14324_v52, 16  ;;  %v17035_v2 = vpop.f32.mrb[25].mxu0 }
 0x128   : > { %v1859_v61 = vor.u32 %v1857_v43, %v1856_v47  ;;  %v1861_v62 = vrot.slane %v1856_v47, 4  ;;  %12696 = vrot.lane.b32.xlu1 %v1187_v53, %s16546_s19  ;;  %v17037_v4 = vrot.slane %v1880_v56, 7  ;;  %v1251_v6 = vmax.f32 %v1187_v53, 0.0  ;;  %v17039_v7 = vpop.f32.mrb[26].mxu0  ;;  %v2598_v27 = vld [vmem:[#allocation2 + $0x1c] sm:$0xf] }
 0x129   : > { %v1842_v50 = vor.u32 %v1840_v45, %v1839_v55  ;;  %v1844_v63 = vrot.slane %v1839_v55, 4  ;;  %v17045_v11 = vrot.slane %v1863_v51, 7  ;;  %v1185_v13 = vadd.f32 %v16869_v5, %v1114_v54  ;;  %v17048_v15 = vpop.f32.mrb[27].mxu0  ;;  %v2436_v44 = vld [vmem:[#allocation2 + $0x80] sm:$0x1] }
 0x12a   : > { %v1860_v8 = vsel %vm16899_vm13, %v1852_v26, %v1859_v61  ;;  %v2423_v9 = vsel %vm16742_vm4, %v1861_v62, %v2422_v49  ;;  %v1885_v19 = vor.u32 %v1883_v57, %v17037_v4  ;;  %v1886_v20 = vrot.slane %v17037_v4, 4 }
 0x12b   : > { %2421 = vst.msk [vmem:[#allocation2 + $0x64] sm:$0xf] %vm1296_vm7, %v1860_v8  ;;  %2424 = vst [vmem:[#allocation2 + $0x68] sm:$0x1] %v2423_v9  ;;  %v1843_v16 = vsel %vm16899_vm13, %v1835_v37, %v1842_v50  ;;  %v2416_v18 = vsel %vm16742_vm4, %v1844_v63, %v2415_v0  ;;  %v1868_v23 = vor.u32 %v1866_v1, %v17045_v11  ;;  %v1869_v25 = vrot.slane %v17045_v11, 4 }
 0x12c   : > { %2414 = vst.msk [vmem:[#allocation2 + $0x58] sm:$0xf] %vm1296_vm7, %v1843_v16  ;;  %2417 = vst [vmem:[#allocation2 + $0x5c] sm:$0x1] %v2416_v18  ;;  %v14327_v26 = vpack.c.bf16 %v1251_v6, %v1251_v6  ;;  %v1249_v29 = vmax.f32 %v1185_v13, 0.0  ;;  %12692 = vrot.lane.b32.xlu1 %v1185_v13, %s16546_s19  ;;  %v2433_v31 = vsel %vm16892_vm12, %v1885_v19, %v2432_v10  ;;  %v2720_v36 = vrot.slane %v2718_v58, 4 }
 0x12d   : > { %v2721_v37 = vshll.u32 %v17019_v35, 16  ;;  %v2727_v38 = vshll.u32 %v2596_v14, 16  ;;  %2434 = vst [vmem:[#allocation2 + $0x78] sm:$0xf] %v2433_v31  ;;  %v2426_v41 = vsel %vm16892_vm12, %v1868_v23, %v2425_v22  ;;  %v2731_v46 = vshrl.u32 %v2596_v14, 16 }
 0x12e   : > { %v1888_v42 = vshrl.u32 %v14327_v26, 16  ;;  %v1891_v43 = vshll.u32 %v14327_v26, 16  ;;  %v14325_v21 = vpack.c.bf16 %v1249_v29, %v1249_v29  ;;  %2427 = vst [vmem:[#allocation2 + $0x6c] sm:$0xf] %v2426_v41  ;;  %v2737_v47 = vshll.u32 %v2659_v30, 16  ;;  %v17066_v49 = vpop.f32.mrb[28].mxu0 }
 0x12f   : > { %v2723_v45 = vrot.slane %v2721_v37, 5  ;;  %v2729_v40 = vrot.slane %v2727_v38, 5  ;;  %v2742_v54 = vshrl.u32 %v2597_v39, 16  ;;  %v17068_v55 = vpop.f32.mrb[29].mxu0  ;;  %v2733_v57 = vrot.slane %v2731_v46, 4 }
 0x130   : > { %v1890_v52 = vrot.slane %v1888_v42, 7  ;;  %v1871_v35 = vshrl.u32 %v14325_v21, 16  ;;  %v1874_v53 = vshll.u32 %v14325_v21, 16  ;;  %v2739_v58 = vrot.slane %v2737_v47, 5  ;;  %v17070_v62 = vpop.f32.mrb[30].mxu0 }
 0x131   : > { %v2724_v56 = vor.u32 %v2723_v45, %v2720_v36  ;;  %v2745_v61 = vshll.u32 %v2597_v39, 16  ;;  %v2429_v50 = vld [vmem:[#allocation2 + $0x74] sm:$0x1]  ;;  %v2744_v63 = vrot.slane %v2742_v54, 4  ;;  %v17072_v4 = vpop.f32.mrb[31].mxu0  ;;  %v2734_v8 = vor.u32 %v2733_v57, %v2729_v40 }
 0x132   : > { %v1893_v0 = vor.u32 %v1891_v43, %v1890_v52  ;;  %v1895_v51 = vrot.slane %v1890_v52, 4  ;;  %v1873_v1 = vrot.slane %v1871_v35, 7  ;;  %v2660_v9 = vld [vmem:[#allocation2 + $0x20] sm:$0x1]  ;;  %v2751_v11 = vshll.u32 %v2598_v27, 16 }
 0x133   : > { %v2725_v6 = vrot.slane %v2724_v56, 4  ;;  %v2747_v10 = vrot.slane %v2745_v61, 5  ;;  %v2735_v22 = vrot.slane %v2734_v8, 4  ;;  %v2755_v30 = vshrl.u32 %v2598_v27, 16  ;;  %v2599_v41 = vld [vmem:[#allocation2 + $0x24] sm:$0xf] }
 0x134   : > { %v1894_v13 = vsel %vm16899_vm13, %v1886_v20, %v1893_v0  ;;  %v2437_v14 = vsel %vm16742_vm4, %v1895_v51, %v2436_v44  ;;  %v1876_v16 = vor.u32 %v1874_v53, %v1873_v1  ;;  %v1878_v18 = vrot.slane %v1873_v1, 4  ;;  %v2600_v44 = vld [vmem:[#allocation2 + $0x28] sm:$0xf] }
 0x135   : > { %2435 = vst.msk [vmem:[#allocation2 + $0x7c] sm:$0xf] %vm1296_vm7, %v1894_v13  ;;  %2438 = vst [vmem:[#allocation2 + $0x80] sm:$0x1] %v2437_v14  ;;  %v2730_v19 = vsel %vm16822_vm10, %v2725_v6, %v2729_v40  ;;  %v2748_v23 = vor.u32 %v2747_v10, %v2744_v63  ;;  %v2753_v26 = vrot.slane %v2751_v11, 5  ;;  %v2761_v31 = vshll.u32 %v2660_v9, 16 }
 0x136   : > { %v1877_v29 = vsel %vm16899_vm13, %v1869_v25, %v1876_v16  ;;  %v2430_v20 = vsel %vm16742_vm4, %v1878_v18, %v2429_v50  ;;  %v2740_v36 = vsel %vm16822_vm10, %v2735_v22, %v2739_v58  ;;  %v1119_v38 = vmul.f32 %v16994_v12, %v16864_v3  ;;  %v17092_v25 = vpop.f32.mrb[32].mxu0  ;;  %v2661_v22 = vld [vmem:[#allocation2 + $0x2c] sm:$0x1] }
 0x137   : > { %2428 = vst.msk [vmem:[#allocation2 + $0x70] sm:$0xf] %vm1296_vm7, %v1877_v29  ;;  %2431 = vst [vmem:[#allocation2 + $0x74] sm:$0x1] %v2430_v20  ;;  %v2749_v37 = vrot.slane %v2748_v23, 4  ;;  %v1117_v39 = vmul.f32 %v16864_v3, %v17001_v17  ;;  %v13516_v42 = vcombine.low %v2730_v19, %v2740_v36  ;;  %v2757_v43 = vrot.slane %v2755_v30, 4 }
 0x138   : > { %v2763_v21 = vrot.slane %v2761_v31, 5  ;;  %v1120_v27 = vmul.f32 %v17008_v24, %v16864_v3  ;;  %v17096_v45 = vpop.f32.mrb[33].mxu0  ;;  %v1190_v12 = vadd.f32 %v16869_v5, %v1119_v38  ;;  %v1118_v17 = vmul.f32 %v16864_v3, %v17011_v34  ;;  %v2439_v20 = vld [vmem:[#allocation2 + $0x84] sm:$0xf] }
 0x139   : > { %v2754_v40 = vsel %vm16822_vm10, %v2749_v37, %v2753_v26  ;;  %v1188_v46 = vadd.f32 %v16869_v5, %v1117_v39  ;;  %v17104_v47 = vpop.f32.mrb[34].mxu0  ;;  %14877 = vmatmul.mubr.msk.bf16.vlgmr.msra.gmra.mrb[64].mxu0 %vm700_vm1, %v13516_v42  ;;  %v2758_v52 = vor.u32 %v2757_v43, %v2753_v26  ;;  %v2766_v35 = vshrl.u32 %v2599_v41, 16  ;;  %v2446_v26 = vld [vmem:[#allocation2 + $0x90] sm:$0xf] }
 0x13a   : > { %v1191_v24 = vadd.f32 %v16869_v5, %v1120_v27  ;;  %v2769_v53 = vshll.u32 %v2599_v41, 16  ;;  %v17108_v54 = vpop.f32.mrb[35].mxu0  ;;  %v1254_v56 = vmax.f32 %v1190_v12, 0.0  ;;  %v1189_v58 = vadd.f32 %v16869_v5, %v1118_v17  ;;  %12702 = vrot.lane.b32.xlu0 %v1190_v12, %s16546_s19  ;;  %v2450_v41 = vld [vmem:[#allocation2 + $0x98] sm:$0x1] }
 0x13b   : > { %v1252_v57 = vmax.f32 %v1188_v46, 0.0  ;;  %v2775_v61 = vshll.u32 %v2600_v44, 16  ;;  %v2759_v0 = vrot.slane %v2758_v52, 4  ;;  %v2768_v51 = vrot.slane %v2766_v35, 4 }
 0x13c   : > { %v1255_v34 = vmax.f32 %v1191_v24, 0.0  ;;  %v2771_v1 = vrot.slane %v2769_v53, 5  ;;  %12704 = vrot.lane.b32.xlu1 %v1191_v24, %s16546_s19  ;;  %v14330_v50 = vpack.c.bf16 %v1254_v56, %v1254_v56  ;;  %v1253_v6 = vmax.f32 %v1189_v58, 0.0  ;;  %v2443_v56 = vld [vmem:[#allocation2 + $0x8c] sm:$0x1] }
 0x13d   : > { %v14328_v63 = vpack.c.bf16 %v1252_v57, %v1252_v57  ;;  %v17113_v8 = vrot.slane %v2775_v61, 5  ;;  %v2764_v9 = vsel %vm16822_vm10, %v2759_v0, %v2763_v21  ;;  %v2779_v13 = vshrl.u32 %v2600_v44, 16  ;;  %v2602_v57 = vld [vmem:[#allocation2 + $0x34] sm:$0xf] }
 0x13e   : > { %v14331_v10 = vpack.c.bf16 %v1255_v34, %v1255_v34  ;;  %v2772_v11 = vor.u32 %v2771_v1, %v2768_v51  ;;  %v13517_v14 = vcombine.low %v2754_v40, %v2764_v9  ;;  %v1914_v16 = vshrl.u32 %v14330_v50, 16  ;;  %12698 = vrot.lane.b32.xlu0 %v1188_v46, %s16546_s19  ;;  %v17118_v23 = vpop.f32.mrb[36].mxu0  ;;  %v2601_v46 = vld [vmem:[#allocation2 + $0x30] sm:$0xf] }
 0x13f   : > { %v1917_v18 = vshll.u32 %v14330_v50, 16  ;;  %v1897_v19 = vshrl.u32 %v14328_v63, 16  ;;  %v1900_v29 = vshll.u32 %v14328_v63, 16  ;;  %v14329_v36 = vpack.c.bf16 %v1253_v6, %v1253_v6  ;;  %v17121_v37 = vpop.f32.mrb[37].mxu0 }
 0x140   : > { %v1922_v30 = vshrl.u32 %v14331_v10, 16  ;;  %v1925_v31 = vshll.u32 %v14331_v10, 16  ;;  %12700 = vrot.lane.b32.xlu1 %v1189_v58, %s16546_s19  ;;  %14880 = vmatprep.mubr.msk.bf16.mxu0 %vm700_vm1, %v13517_v14  ;;  %v1916_v38 = vrot.slane %v1914_v16, 7  ;;  %v2773_v42 = vrot.slane %v2772_v11, 4  ;;  %v17124_v21 = vpop.f32.mrb[38].mxu0 }
 0x141   : > { %v1899_v39 = vrot.slane %v1897_v19, 7  ;;  %v2781_v43 = vrot.slane %v2779_v13, 4  ;;  %v1905_v44 = vshrl.u32 %v14329_v36, 16  ;;  %v1908_v40 = vshll.u32 %v14329_v36, 16  ;;  %v17126_v17 = vpop.f32.mrb[39].mxu0 }
 0x142   : > { %v1924_v27 = vrot.slane %v1922_v30, 7  ;;  %v2785_v12 = vshll.u32 %v2661_v22, 16  ;;  %v1919_v52 = vor.u32 %v1917_v18, %v1916_v38  ;;  %v1920_v24 = vrot.slane %v1916_v38, 4  ;;  %v2662_v58 = vld [vmem:[#allocation2 + $0x38] sm:$0x1] }
 0x143   : > { %v1902_v35 = vor.u32 %v1900_v29, %v1899_v39  ;;  %v1903_v53 = vrot.slane %v1899_v39, 4  ;;  %v1907_v34 = vrot.slane %v1905_v44, 7  ;;  %v2778_v51 = vsel %vm16822_vm10, %v2773_v42, %v17113_v8  ;;  %v2603_v30 = vld [vmem:[#allocation2 + $0x3c] sm:$0xf] }
 0x144   : > { %v1927_v61 = vor.u32 %v1925_v31, %v1924_v27  ;;  %v1929_v0 = vrot.slane %v1924_v27, 4  ;;  %v2447_v1 = vsel %vm16892_vm12, %v1919_v52, %v2446_v26  ;;  %v2782_v63 = vor.u32 %v2781_v43, %v17113_v8 }
 0x145   : > { %v2440_v50 = vsel %vm16892_vm12, %v1902_v35, %v2439_v20  ;;  %v2787_v6 = vrot.slane %v2785_v12, 5  ;;  %2448 = vst [vmem:[#allocation2 + $0x90] sm:$0xf] %v2447_v1  ;;  %v1910_v11 = vor.u32 %v1908_v40, %v1907_v34  ;;  %v1912_v13 = vrot.slane %v1907_v34, 4 }
 0x146   : > { %2441 = vst [vmem:[#allocation2 + $0x84] sm:$0xf] %v2440_v50  ;;  %v1928_v9 = vsel %vm16899_vm13, %v1920_v24, %v1927_v61  ;;  %v2451_v10 = vsel %vm16742_vm4, %v1929_v0, %v2450_v41  ;;  %v2783_v14 = vrot.slane %v2782_v63, 4  ;;  %v2790_v16 = vshrl.u32 %v2601_v46, 16  ;;  %v17141_v22 = vpop.f32.mrb[40].mxu0 }
 0x147   : > { %2449 = vst.msk [vmem:[#allocation2 + $0x94] sm:$0xf] %vm1296_vm7, %v1928_v9  ;;  %2452 = vst [vmem:[#allocation2 + $0x98] sm:$0x1] %v2451_v10  ;;  %v2793_v18 = vshll.u32 %v2601_v46, 16  ;;  %v2799_v19 = vshll.u32 %v2602_v57, 16  ;;  %v1911_v8 = vsel %vm16899_vm13, %v1903_v53, %v1910_v11  ;;  %v2444_v26 = vsel %vm16742_vm4, %v1912_v13, %v2443_v56 }
 0x148   : > { %v2803_v29 = vshrl.u32 %v2602_v57, 16  ;;  %v2809_v20 = vshll.u32 %v2662_v58, 16  ;;  %v17147_v31 = vpop.f32.mrb[41].mxu0  ;;  %2442 = vst.msk [vmem:[#allocation2 + $0x88] sm:$0xf] %vm1296_vm7, %v1911_v8  ;;  %v2788_v36 = vsel %vm16822_vm10, %v2783_v14, %v2787_v6  ;;  %v2792_v38 = vrot.slane %v2790_v16, 4 }
 0x149   : > { %2445 = vst [vmem:[#allocation2 + $0x8c] sm:$0x1] %v2444_v26  ;;  %v2795_v39 = vrot.slane %v2793_v18, 5  ;;  %v2801_v41 = vrot.slane %v2799_v19, 5  ;;  %v17152_v42 = vpop.f32.mrb[42].mxu0  ;;  %v13518_v43 = vcombine.low %v2778_v51, %v2788_v36  ;;  %v1123_v40 = vmul.f32 %v17032_v60, %v16864_v3 }
 0x14a   : > { %v2805_v27 = vrot.slane %v2803_v29, 4  ;;  %v2811_v44 = vrot.slane %v2809_v20, 5  ;;  %v17156_v12 = vpop.f32.mrb[43].mxu0  ;;  %v1121_v52 = vmul.f32 %v16864_v3, %v17035_v2  ;;  %v1124_v24 = vmul.f32 %v17039_v7, %v16864_v3  ;;  %v17171_v2 = vld [vmem:[%s20208_s3] ss:$0 sm:$0xff] }
 0x14b   : > { %v2796_v46 = vor.u32 %v2795_v39, %v2792_v38  ;;  %v1122_v35 = vmul.f32 %v16864_v3, %v17048_v15  ;;  %14881 = vmatmul.mubr.msk.bf16.gmra.mrb[68].mxu0 %vm700_vm1, %v13518_v43  ;;  %v1194_v56 = vadd.f32 %v16869_v5, %v1123_v40  ;;  %v2814_v57 = vshrl.u32 %v2603_v30, 16  ;;  %v2604_v3 = vld [vmem:[#allocation2 + $0x40] sm:$0xf]  ;;  %v2663_v29 = vld [vmem:[#allocation2 + $0x44] sm:$0x1] }
 0x14c   : > { %v2806_v53 = vor.u32 %v2805_v27, %v2801_v41  ;;  %v2817_v58 = vshll.u32 %v2603_v30, 16  ;;  %v1192_v61 = vadd.f32 %v16869_v5, %v1121_v52  ;;  %v1195_v0 = vadd.f32 %v16869_v5, %v1124_v24  ;;  %v17184_v20 = vld [vmem:[#allocation2 + $0x48] sm:$0xf] }
 0x14d   : > { %v2797_v60 = vrot.slane %v2796_v46, 4  ;;  %v1193_v7 = vadd.f32 %v17171_v2, %v1122_v35  ;;  %v1258_v34 = vmax.f32 %v1194_v56, 0.0  ;;  %v2816_v51 = vrot.slane %v2814_v57, 4  ;;  %12710 = vrot.lane.b32.xlu0 %v1194_v56, %s16546_s19  ;;  %v2460_v27 = vld [vmem:[#allocation2 + $0xa8] sm:$0xf] }
 0x14e   : > { %v2807_v15 = vrot.slane %v2806_v53, 4  ;;  %v2819_v1 = vrot.slane %v2817_v58, 5  ;;  %v1256_v63 = vmax.f32 %v1192_v61, 0.0  ;;  %v1259_v6 = vmax.f32 %v1195_v0, 0.0  ;;  %12712 = vrot.lane.b32.xlu1 %v1195_v0, %s16546_s19  ;;  %v17178_v9 = vpop.f32.mrb[44].mxu0 }
 0x14f   : > { %v2802_v50 = vsel %vm16822_vm10, %v2797_v60, %v2801_v41  ;;  %v1257_v5 = vmax.f32 %v1193_v7, 0.0  ;;  %v14334_v11 = vpack.c.bf16 %v1258_v34, %v1258_v34  ;;  %v2823_v14 = vshll.u32 %v2604_v3, 16  ;;  %v17182_v16 = vpop.f32.mrb[45].mxu0  ;;  %v2453_v35 = vld [vmem:[#allocation2 + $0x9c] sm:$0xf] }
 0x150   : > { %v2812_v10 = vsel %vm16822_vm10, %v2807_v15, %v2811_v44  ;;  %v2820_v13 = vor.u32 %v2819_v1, %v2816_v51  ;;  %v14332_v19 = vpack.c.bf16 %v1256_v63, %v1256_v63  ;;  %v14335_v8 = vpack.c.bf16 %v1259_v6, %v1259_v6  ;;  %v17186_v30 = vpop.f32.mrb[46].mxu0  ;;  %v2464_v53 = vld [vmem:[#allocation2 + $0xb0] sm:$0x1]  ;;  %v2457_v0 = vld [vmem:[#allocation2 + $0xa4] sm:$0x1] }
 0x151   : > { %v13519_v18 = vcombine.low %v2802_v50, %v2812_v10  ;;  %v14333_v26 = vpack.c.bf16 %v1257_v5, %v1257_v5  ;;  %v1948_v36 = vshrl.u32 %v14334_v11, 16  ;;  %v1951_v38 = vshll.u32 %v14334_v11, 16  ;;  %12706 = vrot.lane.b32.xlu0 %v1192_v61, %s16546_s19  ;;  %v17193_v43 = vpop.f32.mrb[47].mxu0  ;;  %v2606_v63 = vld [vmem:[#allocation2 + $0x4c] sm:$0xf] }
 0x152   : > { %v17188_v39 = vrot.slane %v2820_v13, 4  ;;  %v17190_v41 = vrot.slane %v2823_v14, 5  ;;  %v1931_v44 = vshrl.u32 %v14332_v19, 16  ;;  %v1934_v40 = vshll.u32 %v14332_v19, 16  ;;  %12708 = vrot.lane.b32.xlu1 %v1193_v7, %s16546_s19  ;;  %v2664_v7 = vld [vmem:[#allocation2 + $0x50] sm:$0x1] }
 0x153   : > { %14884 = vmatprep.mubr.msk.bf16.mxu0 %vm700_vm1, %v13519_v18  ;;  %v1956_v46 = vshrl.u32 %v14335_v8, 16  ;;  %v1959_v52 = vshll.u32 %v14335_v8, 16  ;;  %v1950_v24 = vrot.slane %v1948_v36, 7  ;;  %v1939_v56 = vshrl.u32 %v14333_v26, 16 }
 0x154   : > { %v1942_v57 = vshll.u32 %v14333_v26, 16  ;;  %v2826_v58 = vsel %vm16822_vm10, %v17188_v39, %v17190_v41  ;;  %v1933_v60 = vrot.slane %v1931_v44, 7  ;;  %v2827_v15 = vshrl.u32 %v2604_v3, 16 }
 0x155   : > { %v1958_v61 = vrot.slane %v1956_v46, 7  ;;  %v2833_v34 = vshll.u32 %v2663_v29, 16  ;;  %v1953_v51 = vor.u32 %v1951_v38, %v1950_v24  ;;  %v1954_v1 = vrot.slane %v1950_v24, 4 }
 0x156   : > { %v1941_v50 = vrot.slane %v1939_v56, 7  ;;  %v2838_v6 = vshrl.u32 %v17184_v20, 16  ;;  %v1936_v5 = vor.u32 %v1934_v40, %v1933_v60  ;;  %v1937_v10 = vrot.slane %v1933_v60, 4  ;;  %v17202_v14 = vpop.f32.mrb[48].mxu0 }
 0x157   : > { %v1961_v11 = vor.u32 %v1959_v52, %v1958_v61  ;;  %v1963_v13 = vrot.slane %v1958_v61, 4  ;;  %v2461_v18 = vsel %vm16892_vm12, %v1953_v51, %v2460_v27  ;;  %v2829_v3 = vrot.slane %v2827_v15, 4  ;;  %v17206_v26 = vpop.f32.mrb[49].mxu0  ;;  %v17229_v61 = vld [vmem:[%s20207_s2] ss:$0 sm:$0xff] }
 0x158   : > { %v1944_v19 = vor.u32 %v1942_v57, %v1941_v50  ;;  %v1946_v8 = vrot.slane %v1941_v50, 4  ;;  %2462 = vst [vmem:[#allocation2 + $0xa8] sm:$0xf] %v2461_v18  ;;  %v2454_v29 = vsel %vm16892_vm12, %v1936_v5, %v2453_v35  ;;  %v2835_v39 = vrot.slane %v2833_v34, 5  ;;  %v17214_v44 = vpop.f32.mrb[50].mxu0 }
 0x159   : > { %v1962_v36 = vsel %vm16899_vm13, %v1954_v1, %v1961_v11  ;;  %v2465_v38 = vsel %vm16742_vm4, %v1963_v13, %v2464_v53  ;;  %2455 = vst [vmem:[#allocation2 + $0x9c] sm:$0xf] %v2454_v29  ;;  %v2830_v46 = vor.u32 %v2829_v3, %v17190_v41  ;;  %v2840_v52 = vrot.slane %v2838_v6, 4  ;;  %v17222_v24 = vpop.f32.mrb[51].mxu0  ;;  %v2607_v50 = vld [vmem:[#allocation2 + $0x54] sm:$0xf] }
 0x15a   : > { %2463 = vst.msk [vmem:[#allocation2 + $0xac] sm:$0xf] %vm1296_vm7, %v1962_v36  ;;  %2466 = vst [vmem:[#allocation2 + $0xb0] sm:$0x1] %v2465_v38  ;;  %v1945_v27 = vsel %vm16899_vm13, %v1937_v10, %v1944_v19  ;;  %v2458_v40 = vsel %vm16742_vm4, %v1946_v8, %v2457_v0  ;;  %v2841_v35 = vshll.u32 %v17184_v20, 16  ;;  %v2847_v53 = vshll.u32 %v2606_v63, 16 }
 0x15b   : > { %2456 = vst.msk [vmem:[#allocation2 + $0xa0] sm:$0xf] %vm1296_vm7, %v1945_v27  ;;  %2459 = vst [vmem:[#allocation2 + $0xa4] sm:$0x1] %v2458_v40  ;;  %v2851_v56 = vshrl.u32 %v2606_v63, 16  ;;  %v2857_v57 = vshll.u32 %v2664_v7, 16  ;;  %v1127_v41 = vmul.f32 %v17229_v61, %v17066_v49  ;;  %v1125_v0 = vmul.f32 %v17229_v61, %v17068_v55 }
 0x15c   : > { %v2831_v60 = vrot.slane %v2830_v46, 4  ;;  %v1128_v15 = vmul.f32 %v17229_v61, %v17070_v62  ;;  %v2843_v34 = vrot.slane %v2841_v35, 5  ;;  %v2849_v20 = vrot.slane %v2847_v53, 5  ;;  %v2608_v53 = vld [vmem:[#allocation2 + $0x58] sm:$0xf] }
 0x15d   : > { %v2853_v51 = vrot.slane %v2851_v56, 4  ;;  %v2859_v1 = vrot.slane %v2857_v57, 5  ;;  %v1198_v7 = vadd.f32 %v17171_v2, %v1127_v41  ;;  %v1196_v6 = vadd.f32 %v17171_v2, %v1125_v0 }
 0x15e   : > { %v2836_v63 = vsel %vm16822_vm10, %v2831_v60, %v2835_v39  ;;  %v1199_v49 = vadd.f32 %v17171_v2, %v1128_v15  ;;  %v2844_v10 = vor.u32 %v2843_v34, %v2840_v52  ;;  %v1126_v62 = vmul.f32 %v17229_v61, %v17072_v4  ;;  %v17244_v11 = vpop.f32.mrb[52].mxu0  ;;  %v2474_v34 = vld [vmem:[#allocation2 + $0xc0] sm:$0xf] }
 0x15f   : > { %v13520_v5 = vcombine.low %v2826_v58, %v2836_v63  ;;  %v2854_v55 = vor.u32 %v2853_v51, %v2849_v20  ;;  %v1262_v13 = vmax.f32 %v1198_v7, 0.0  ;;  %v1260_v18 = vmax.f32 %v1196_v6, 0.0  ;;  %12718 = vrot.lane.b32.xlu0 %v1198_v7, %s16546_s19  ;;  %v17250_v40 = vpop.f32.mrb[53].mxu0 }
 0x160   : > { %v1263_v19 = vmax.f32 %v1199_v49, 0.0  ;;  %v2862_v8 = vshrl.u32 %v2607_v50, 16  ;;  %12720 = vrot.lane.b32.xlu1 %v1199_v49, %s16546_s19  ;;  %v2845_v3 = vrot.slane %v2844_v10, 4  ;;  %v1197_v58 = vadd.f32 %v17171_v2, %v1126_v62  ;;  %v17258_v15 = vpop.f32.mrb[54].mxu0  ;;  %v2478_v10 = vld [vmem:[#allocation2 + $0xc8] sm:$0x1] }
 0x161   : > { %14885 = vmatmul.mubr.msk.bf16.gmra.mrb[72].mxu0 %vm700_vm1, %v13520_v5  ;;  %v2855_v29 = vrot.slane %v2854_v55, 4  ;;  %v2865_v36 = vshll.u32 %v2607_v50, 16  ;;  %v14338_v38 = vpack.c.bf16 %v1262_v13, %v1262_v13  ;;  %v14336_v39 = vpack.c.bf16 %v1260_v18, %v1260_v18  ;;  %v2467_v50 = vld [vmem:[#allocation2 + $0xb4] sm:$0xf] }
 0x162   : > { %v14339_v4 = vpack.c.bf16 %v1263_v19, %v1263_v19  ;;  %v2864_v27 = vrot.slane %v2862_v8, 4  ;;  %v2850_v46 = vsel %vm16822_vm10, %v2845_v3, %v2849_v20  ;;  %v1261_v35 = vmax.f32 %v1197_v58, 0.0  ;;  %v2665_v19 = vld [vmem:[#allocation2 + $0x5c] sm:$0x1]  ;;  %v2609_v3 = vld [vmem:[#allocation2 + $0x60] sm:$0xf] }
 0x163   : > { %v2860_v52 = vsel %vm16822_vm10, %v2855_v29, %v2859_v1  ;;  %v2867_v56 = vrot.slane %v2865_v36, 5  ;;  %v1982_v60 = vshrl.u32 %v14338_v38, 16  ;;  %v1985_v41 = vshll.u32 %v14338_v38, 16  ;;  %12714 = vrot.lane.b32.xlu0 %v1196_v6, %s16546_s19  ;;  %v17260_v1 = vpop.f32.mrb[55].mxu0 }
 0x164   : > { %v13521_v57 = vcombine.low %v2850_v46, %v2860_v52  ;;  %v1965_v0 = vshrl.u32 %v14336_v39, 16  ;;  %12716 = vrot.lane.b32.xlu1 %v1197_v58, %s16546_s19  ;;  %v1968_v51 = vshll.u32 %v14336_v39, 16  ;;  %v1990_v20 = vshrl.u32 %v14339_v4, 16  ;;  %v2471_v39 = vld [vmem:[#allocation2 + $0xbc] sm:$0x1] }
 0x165   : > { %v1993_v63 = vshll.u32 %v14339_v4, 16  ;;  %v14337_v7 = vpack.c.bf16 %v1261_v35, %v1261_v35  ;;  %v1984_v49 = vrot.slane %v1982_v60, 7  ;;  %v2868_v55 = vor.u32 %v2867_v56, %v2864_v27  ;;  %v2610_v4 = vld [vmem:[#allocation2 + $0x64] sm:$0xf] }
 0x166   : > { %14888 = vmatprep.mubr.msk.bf16.mxu0 %vm700_vm1, %v13521_v57  ;;  %v1967_v5 = vrot.slane %v1965_v0, 7  ;;  %v2871_v62 = vshll.u32 %v2608_v53, 16  ;;  %v1992_v6 = vrot.slane %v1990_v20, 7  ;;  %v2875_v8 = vshrl.u32 %v2608_v53, 16 }
 0x167   : > { %v1973_v13 = vshrl.u32 %v14337_v7, 16  ;;  %v1976_v18 = vshll.u32 %v14337_v7, 16  ;;  %v1987_v29 = vor.u32 %v1985_v41, %v1984_v49  ;;  %v1988_v58 = vrot.slane %v1984_v49, 4  ;;  %v2666_v7 = vld [vmem:[#allocation2 + $0x68] sm:$0x1] }
 0x168   : > { %v1970_v36 = vor.u32 %v1968_v51, %v1967_v5  ;;  %v1971_v38 = vrot.slane %v1967_v5, 4  ;;  %v1995_v46 = vor.u32 %v1993_v63, %v1992_v6  ;;  %v1997_v52 = vrot.slane %v1992_v6, 4 }
 0x169   : > { %v1975_v35 = vrot.slane %v1973_v13, 7  ;;  %v2869_v57 = vrot.slane %v2868_v55, 4  ;;  %v2475_v27 = vsel %vm16892_vm12, %v1987_v29, %v2474_v34  ;;  %v2873_v60 = vrot.slane %v2871_v62, 5 }
 0x16a   : > { %v2468_v56 = vsel %vm16892_vm12, %v1970_v36, %v2467_v50  ;;  %v2877_v0 = vrot.slane %v2875_v8, 4  ;;  %2476 = vst [vmem:[#allocation2 + $0xc0] sm:$0xf] %v2475_v27  ;;  %v1996_v53 = vsel %vm16899_vm13, %v1988_v58, %v1995_v46  ;;  %v2479_v41 = vsel %vm16742_vm4, %v1997_v52, %v2478_v10  ;;  %v1484_v46 = vld [vmem:[#allocation2 + $0xf8] sm:$0x1] }
 0x16b   : > { %2469 = vst [vmem:[#allocation2 + $0xb4] sm:$0xf] %v2468_v56  ;;  %v1978_v51 = vor.u32 %v1976_v18, %v1975_v35  ;;  %v1980_v20 = vrot.slane %v1975_v35, 4  ;;  %2477 = vst.msk [vmem:[#allocation2 + $0xc4] sm:$0xf] %vm1296_vm7, %v1996_v53  ;;  %v2874_v34 = vsel %vm16822_vm10, %v2869_v57, %v2873_v60  ;;  %v2881_v50 = vshll.u32 %v2665_v19, 16 }
 0x16c   : > { %2480 = vst [vmem:[#allocation2 + $0xc8] sm:$0x1] %v2479_v41  ;;  %v2878_v63 = vor.u32 %v2877_v0, %v2873_v60  ;;  %v2886_v49 = vshrl.u32 %v2609_v3, 16  ;;  %v2889_v62 = vshll.u32 %v2609_v3, 16  ;;  %v2895_v10 = vshll.u32 %v2610_v4, 16  ;;  %v17288_v0 = vpop.f32.mrb[56].mxu0 }
 0x16d   : > { %v1979_v5 = vsel %vm16899_vm13, %v1971_v38, %v1978_v51  ;;  %v2472_v55 = vsel %vm16742_vm4, %v1980_v20, %v2471_v39  ;;  %v2883_v13 = vrot.slane %v2881_v50, 5  ;;  %v2899_v8 = vshrl.u32 %v2610_v4, 16  ;;  %v1481_v35 = vld [vmem:[#allocation2 + $0xec] sm:$0x1] }
 0x16e   : > { %2470 = vst.msk [vmem:[#allocation2 + $0xb8] sm:$0xf] %vm1296_vm7, %v1979_v5  ;;  %2473 = vst [vmem:[#allocation2 + $0xbc] sm:$0x1] %v2472_v55  ;;  %v2879_v6 = vrot.slane %v2878_v63, 4  ;;  %v2888_v18 = vrot.slane %v2886_v49, 4  ;;  %v1131_v36 = vmul.f32 %v17229_v61, %v17092_v25  ;;  %v1129_v3 = vmul.f32 %v17229_v61, %v17096_v45 }
 0x16f   : > { %v2891_v29 = vrot.slane %v2889_v62, 5  ;;  %v2897_v58 = vrot.slane %v2895_v10, 5  ;;  %v2905_v19 = vshll.u32 %v2666_v7, 16  ;;  %v2901_v39 = vrot.slane %v2899_v8, 4  ;;  %v2611_v60 = vld [vmem:[#allocation2 + $0x6c] sm:$0xf] }
 0x170   : > { %v2884_v38 = vsel %vm16822_vm10, %v2879_v6, %v2883_v13  ;;  %v1132_v52 = vmul.f32 %v17229_v61, %v17104_v47  ;;  %v1202_v56 = vadd.f32 %v17171_v2, %v1131_v36  ;;  %v1200_v53 = vadd.f32 %v17171_v2, %v1129_v3  ;;  %v2612_v8 = vld [vmem:[#allocation2 + $0x70] sm:$0xf]  ;;  %v2667_v3 = vld [vmem:[#allocation2 + $0x74] sm:$0x1] }
 0x171   : > { %v13522_v57 = vcombine.low %v2874_v34, %v2884_v38  ;;  %v2892_v4 = vor.u32 %v2891_v29, %v2888_v18  ;;  %v2907_v27 = vrot.slane %v2905_v19, 5  ;;  %v2902_v25 = vor.u32 %v2901_v39, %v2897_v58  ;;  %v17306_v19 = vpop.f32.mrb[57].mxu0 }
 0x172   : > { %v1203_v41 = vadd.f32 %v17171_v2, %v1132_v52  ;;  %v1485_v45 = vsel %vm16751_vm6, 0, %v1484_v46  ;;  %v1266_v51 = vmax.f32 %v1202_v56, 0.0  ;;  %v1130_v20 = vmul.f32 %v17229_v61, %v17108_v54  ;;  %12726 = vrot.lane.b32.xlu0 %v1202_v56, %s16546_s19  ;;  %v2488_v52 = vld [vmem:[#allocation2 + $0xf0] sm:$0xf] }
 0x173   : > { %14889 = vmatmul.mubr.msk.bf16.gmra.mrb[76].mxu0 %vm700_vm1, %v13522_v57  ;;  %v2893_v47 = vrot.slane %v2892_v4, 4  ;;  %1486 = vst [vmem:[#allocation2 + $0xf8] sm:$0x1] %v1485_v45  ;;  %v1482_v34 = vsel %vm16751_vm6, 0, %v1481_v35  ;;  %v2903_v63 = vrot.slane %v2902_v25, 4  ;;  %v1264_v50 = vmax.f32 %v1200_v53, 0.0 }
 0x174   : > { %v1267_v7 = vmax.f32 %v1203_v41, 0.0  ;;  %1483 = vst [vmem:[#allocation2 + $0xec] sm:$0x1] %v1482_v34  ;;  %v2910_v49 = vshrl.u32 %v2611_v60, 16  ;;  %12728 = vrot.lane.b32.xlu1 %v1203_v41, %s16546_s19  ;;  %v14342_v55 = vpack.c.bf16 %v1266_v51, %v1266_v51  ;;  %v1201_v62 = vadd.f32 %v17171_v2, %v1130_v20 }
 0x175   : > { %v2898_v5 = vsel %vm16822_vm10, %v2893_v47, %v2897_v58  ;;  %v2913_v10 = vshll.u32 %v2611_v60, 16  ;;  %v16160_v54 = vld [vmem:[#allocation2 + $0xb4] sm:$0xff]   ;;  %v2908_v6 = vsel %vm16822_vm10, %v2903_v63, %v2907_v27  ;;  %v14340_v13 = vpack.c.bf16 %v1264_v50, %v1264_v50  ;;  %v17310_v58 = vpop.f32.mrb[58].mxu0  ;;  %v2481_v47 = vld [vmem:[#allocation2 + $0xe4] sm:$0xf] }
 0x176   : > { %v14343_v18 = vpack.c.bf16 %v1267_v7, %v1267_v7  ;;  %v2912_v29 = vrot.slane %v2910_v49, 4  ;;  %v13523_v36 = vcombine.low %v2898_v5, %v2908_v6  ;;  %v2016_v46 = vshrl.u32 %v14342_v55, 16  ;;  %12722 = vrot.lane.b32.xlu0 %v1200_v53, %s16546_s19  ;;  %15102 = vmatprep.mubr.msk.bf16.mxu1 %vm700_vm1, %v16160_v54  ;;  %v17314_v45 = vpop.f32.mrb[59].mxu0 }
 0x177   : > { %v2019_v38 = vshll.u32 %v14342_v55, 16  ;;  %v1265_v39 = vmax.f32 %v1201_v62, 0.0  ;;  %v1999_v35 = vshrl.u32 %v14340_v13, 16  ;;  %v2002_v57 = vshll.u32 %v14340_v13, 16  ;;  %v2613_v13 = vld [vmem:[#allocation2 + $0x78] sm:$0xf] }
 0x178   : > { %v2024_v4 = vshrl.u32 %v14343_v18, 16  ;;  %v2027_v27 = vshll.u32 %v14343_v18, 16  ;;  %12724 = vrot.lane.b32.xlu1 %v1201_v62, %s16546_s19  ;;  %14892 = vmatprep.mubr.msk.bf16.mxu0 %vm700_vm1, %v13523_v36  ;;  %v2018_v56 = vrot.slane %v2016_v46, 7  ;;  %v2915_v25 = vrot.slane %v2913_v10, 5 }
 0x179   : > { %v14341_v60 = vpack.c.bf16 %v1265_v39, %v1265_v39  ;;  %v2919_v41 = vshll.u32 %v2612_v8, 16  ;;  %v2001_v53 = vrot.slane %v1999_v35, 7  ;;  %v2923_v20 = vshrl.u32 %v2612_v8, 16  ;;  %v2614_v39 = vld [vmem:[#allocation2 + $0x7c] sm:$0xf] }
 0x17a   : > { %v2026_v51 = vrot.slane %v2024_v4, 7  ;;  %v2929_v34 = vshll.u32 %v2667_v3, 16  ;;  %v2021_v63 = vor.u32 %v2019_v38, %v2018_v56  ;;  %v2022_v50 = vrot.slane %v2018_v56, 4  ;;  %v2492_v7 = vld [vmem:[#allocation2 + $0xf8] sm:$0x1] }
 0x17b   : > { %v2007_v49 = vshrl.u32 %v14341_v60, 16  ;;  %v2010_v5 = vshll.u32 %v14341_v60, 16  ;;  %v2004_v55 = vor.u32 %v2002_v57, %v2001_v53  ;;  %v2005_v62 = vrot.slane %v2001_v53, 4  ;;  %v2485_v35 = vld [vmem:[#allocation2 + $0xec] sm:$0x1] }
 0x17c   : > { %v2029_v54 = vor.u32 %v2027_v27, %v2026_v51  ;;  %v2031_v6 = vrot.slane %v2026_v51, 4  ;;  %v2489_v10 = vsel %vm16892_vm12, %v2021_v63, %v2488_v52  ;;  %v2916_v36 = vor.u32 %v2915_v25, %v2912_v29  ;;  %v1380_v56 = vld [vmem:[#allocation2 + $0x108] sm:$0x1]  ;;  %v2668_v25 = vld [vmem:[#allocation2 + $0x80] sm:$0x1] }
 0x17d   : > { %v2009_v18 = vrot.slane %v2007_v49, 7  ;;  %v2921_v46 = vrot.slane %v2919_v41, 5  ;;  %2490 = vst [vmem:[#allocation2 + $0xf0] sm:$0xf] %v2489_v10  ;;  %v2482_v8 = vsel %vm16892_vm12, %v2004_v55, %v2481_v47  ;;  %v2925_v57 = vrot.slane %v2923_v20, 4 }
 0x17e   : > { %v2030_v38 = vsel %vm16899_vm13, %v2022_v50, %v2029_v54  ;;  %v2493_v3 = vsel %vm16742_vm4, %v2031_v6, %v2492_v7  ;;  %2483 = vst [vmem:[#allocation2 + $0xe4] sm:$0xf] %v2482_v8  ;;  %v2917_v4 = vrot.slane %v2916_v36, 4  ;;  %v2931_v27 = vrot.slane %v2929_v34, 5  ;;  %v1377_v7 = vld [vmem:[#allocation2 + $0xfc] sm:$0x1] }
 0x17f   : > { %2491 = vst.msk [vmem:[#allocation2 + $0xf4] sm:$0xf] %vm1296_vm7, %v2030_v38  ;;  %2494 = vst [vmem:[#allocation2 + $0xf8] sm:$0x1] %v2493_v3  ;;  %v2012_v52 = vor.u32 %v2010_v5, %v2009_v18  ;;  %v2014_v29 = vrot.slane %v2009_v18, 4  ;;  %v2926_v60 = vor.u32 %v2925_v57, %v2921_v46  ;;  %v2934_v41 = vshrl.u32 %v2613_v13, 16 }
 0x180   : > { %v2937_v53 = vshll.u32 %v2613_v13, 16  ;;  %v2943_v47 = vshll.u32 %v2614_v39, 16  ;;  %v2922_v63 = vsel %vm16822_vm10, %v2917_v4, %v2921_v46  ;;  %v2947_v50 = vshrl.u32 %v2614_v39, 16  ;;  %v1490_v10 = vld [vmem:[#allocation2 + $0x110] sm:$0x1] }
 0x181   : > { %v2013_v51 = vsel %vm16899_vm13, %v2005_v62, %v2012_v52  ;;  %v2486_v20 = vsel %vm16742_vm4, %v2014_v29, %v2485_v35  ;;  %v2927_v34 = vrot.slane %v2926_v60, 4  ;;  %v2936_v49 = vrot.slane %v2934_v41, 4  ;;  %v1487_v8 = vld [vmem:[#allocation2 + $0x104] sm:$0x1] }
 0x182   : > { %2484 = vst.msk [vmem:[#allocation2 + $0xe8] sm:$0xf] %vm1296_vm7, %v2013_v51  ;;  %2487 = vst [vmem:[#allocation2 + $0xec] sm:$0x1] %v2486_v20  ;;  %v2939_v5 = vrot.slane %v2937_v53, 5  ;;  %v2945_v55 = vrot.slane %v2943_v47, 5  ;;  %v1135_v62 = vmul.f32 %v17229_v61, %v17118_v23  ;;  %v1133_v46 = vmul.f32 %v17229_v61, %v17121_v37 }
 0x183   : > { %v2949_v54 = vrot.slane %v2947_v50, 4  ;;  %v2953_v6 = vshll.u32 %v2668_v25, 16  ;;  %v1381_v13 = vsel %vm16742_vm4, 0, %v1380_v56  ;;  %v2932_v18 = vsel %vm16822_vm10, %v2927_v34, %v2931_v27  ;;  %v2615_v57 = vld [vmem:[#allocation2 + $0x84] sm:$0xf] }
 0x184   : > { %v2940_v36 = vor.u32 %v2939_v5, %v2936_v49  ;;  %1382 = vst [vmem:[#allocation2 + $0x108] sm:$0x1] %v1381_v13  ;;  %v1378_v39 = vsel %vm16742_vm4, 0, %v1377_v7  ;;  %v13524_v38 = vcombine.low %v2922_v63, %v2932_v18  ;;  %v1206_v23 = vadd.f32 %v17171_v2, %v1135_v62 }
 0x185   : > { %v2950_v3 = vor.u32 %v2949_v54, %v2945_v55  ;;  %v2955_v35 = vrot.slane %v2953_v6, 5  ;;  %1379 = vst [vmem:[#allocation2 + $0xfc] sm:$0x1] %v1378_v39  ;;  %v1204_v29 = vadd.f32 %v17171_v2, %v1133_v46  ;;  %v1136_v4 = vmul.f32 %v17229_v61, %v17124_v21 }
 0x186   : > { %v2941_v52 = vrot.slane %v2940_v36, 4  ;;  %v1491_v37 = vsel %vm16751_vm6, 0, %v1490_v10  ;;  %14893 = vmatmul.mubr.msk.bf16.gmra.mrb[80].mxu0 %vm700_vm1, %v13524_v38  ;;  %v1270_v56 = vmax.f32 %v1206_v23, 0.0  ;;  %v1134_v60 = vmul.f32 %v17229_v61, %v17126_v17  ;;  %12734 = vrot.lane.b32.xlu0 %v1206_v23, %s16546_s19  ;;  %v2616_v17 = vld [vmem:[#allocation2 + $0x88] sm:$0xf] }
 0x187   : > { %v2951_v27 = vrot.slane %v2950_v3, 4  ;;  %1492 = vst [vmem:[#allocation2 + $0x110] sm:$0x1] %v1491_v37  ;;  %v1488_v25 = vsel %vm16751_vm6, 0, %v1487_v8  ;;  %v1268_v21 = vmax.f32 %v1204_v29, 0.0  ;;  %v1207_v53 = vadd.f32 %v17171_v2, %v1136_v4 }
 0x188   : > { %v2946_v41 = vsel %vm16822_vm10, %v2941_v52, %v2945_v55  ;;  %1489 = vst [vmem:[#allocation2 + $0x104] sm:$0x1] %v1488_v25  ;;  %v2958_v47 = vshrl.u32 %v2615_v57, 16  ;;  %v14346_v20 = vpack.c.bf16 %v1270_v56, %v1270_v56  ;;  %v1205_v63 = vadd.f32 %v17171_v2, %v1134_v60  ;;  %v17361_v55 = vpop.f32.mrb[60].mxu0  ;;  %v2669_v3 = vld [vmem:[#allocation2 + $0x8c] sm:$0x1] }
 0x189   : > { %v2956_v51 = vsel %vm16822_vm10, %v2951_v27, %v2955_v35  ;;  %v2961_v50 = vshll.u32 %v2615_v57, 16  ;;  %v14344_v34 = vpack.c.bf16 %v1268_v21, %v1268_v21  ;;  %v1271_v49 = vmax.f32 %v1207_v53, 0.0  ;;  %12736 = vrot.lane.b32.xlu1 %v1207_v53, %s16546_s19  ;;  %v17365_v39 = vpop.f32.mrb[61].mxu0  ;;  %v2617_v21 = vld [vmem:[#allocation2 + $0x90] sm:$0xf] }
 0x18a   : > { %v13525_v7 = vcombine.low %v2946_v41, %v2956_v51  ;;  %v2960_v5 = vrot.slane %v2958_v47, 4  ;;  %v2050_v54 = vshrl.u32 %v14346_v20, 16  ;;  %v2053_v6 = vshll.u32 %v14346_v20, 16  ;;  %12730 = vrot.lane.b32.xlu0 %v1204_v29, %s16546_s19  ;;  %v17368_v53 = vpop.f32.mrb[62].mxu0 }
 0x18b   : > { %v1269_v62 = vmax.f32 %v1205_v63, 0.0  ;;  %v2963_v13 = vrot.slane %v2961_v50, 5  ;;  %v2033_v10 = vshrl.u32 %v14344_v34, 16  ;;  %v2036_v18 = vshll.u32 %v14344_v34, 16  ;;  %v2502_v57 = vld [vmem:[#allocation2 + $0x108] sm:$0xf] }
 0x18c   : > { %14896 = vmatprep.mubr.msk.bf16.mxu0 %vm700_vm1, %v13525_v7  ;;  %v14347_v36 = vpack.c.bf16 %v1271_v49, %v1271_v49  ;;  %v2967_v46 = vshll.u32 %v2616_v17, 16  ;;  %v2052_v8 = vrot.slane %v2050_v54, 7  ;;  %v2971_v23 = vshrl.u32 %v2616_v17, 16  ;;  %v2495_v60 = vld [vmem:[#allocation2 + $0xfc] sm:$0xf]  ;;  %v17370_v34 = vpop.f32.mrb[63].mxu0 }
 0x18d   : > { %v14345_v38 = vpack.c.bf16 %v1269_v62, %v1269_v62  ;;  %v2964_v35 = vor.u32 %v2963_v13, %v2960_v5  ;;  %v2035_v52 = vrot.slane %v2033_v10, 7  ;;  %12732 = vrot.lane.b32.xlu1 %v1205_v63, %s16546_s19  ;;  %v2618_v7 = vld [vmem:[#allocation2 + $0x94] sm:$0xf] }
 0x18e   : > { %v2058_v4 = vshrl.u32 %v14347_v36, 16  ;;  %v2061_v37 = vshll.u32 %v14347_v36, 16  ;;  %v2969_v27 = vrot.slane %v2967_v46, 5  ;;  %v2055_v29 = vor.u32 %v2053_v6, %v2052_v8  ;;  %v2506_v50 = vld [vmem:[#allocation2 + $0x110] sm:$0x1] }
 0x18f   : > { %v2056_v56 = vrot.slane %v2052_v8, 4  ;;  %v2041_v25 = vshrl.u32 %v14345_v38, 16  ;;  %v2044_v41 = vshll.u32 %v14345_v38, 16  ;;  %v2038_v47 = vor.u32 %v2036_v18, %v2035_v52  ;;  %v2499_v5 = vld [vmem:[#allocation2 + $0x104] sm:$0x1] }
 0x190   : > { %v2039_v51 = vrot.slane %v2035_v52, 4  ;;  %v2060_v20 = vrot.slane %v2058_v4, 7  ;;  %v2965_v17 = vrot.slane %v2964_v35, 4  ;;  %v2503_v49 = vsel %vm16892_vm12, %v2055_v29, %v2502_v57  ;;  %v2670_v35 = vld [vmem:[#allocation2 + $0x98] sm:$0x1] }
 0x191   : > { %v2043_v63 = vrot.slane %v2041_v25, 7  ;;  %v2973_v54 = vrot.slane %v2971_v23, 4  ;;  %v2977_v6 = vshll.u32 %v2669_v3, 16  ;;  %2504 = vst [vmem:[#allocation2 + $0x108] sm:$0xf] %v2503_v49  ;;  %v2496_v62 = vsel %vm16892_vm12, %v2038_v47, %v2495_v60 }
 0x192   : > { %v2063_v13 = vor.u32 %v2061_v37, %v2060_v20  ;;  %v2065_v10 = vrot.slane %v2060_v20, 4  ;;  %v2970_v18 = vsel %vm16822_vm10, %v2965_v17, %v2969_v27  ;;  %2497 = vst [vmem:[#allocation2 + $0xfc] sm:$0xf] %v2496_v62  ;;  %v2982_v23 = vshrl.u32 %v2617_v21, 16  ;;  %v1386_v4 = vld [vmem:[#allocation2 + $0x120] sm:$0x1] }
 0x193   : > { %v2046_v36 = vor.u32 %v2044_v41, %v2043_v63  ;;  %v2048_v46 = vrot.slane %v2043_v63, 4  ;;  %v2974_v8 = vor.u32 %v2973_v54, %v2969_v27  ;;  %v2979_v38 = vrot.slane %v2977_v6, 5  ;;  %v1496_v49 = vld [vmem:[#allocation2 + $0x128] sm:$0x1]  ;;  %v1493_v63 = vld [vmem:[#allocation2 + $0x11c] sm:$0x1] }
 0x194   : > { %v2064_v57 = vsel %vm16899_vm13, %v2056_v56, %v2063_v13  ;;  %v2507_v3 = vsel %vm16742_vm4, %v2065_v10, %v2506_v50  ;;  %v2985_v52 = vshll.u32 %v2617_v21, 16  ;;  %v2991_v60 = vshll.u32 %v2618_v7, 16  ;;  %v1383_v21 = vld [vmem:[#allocation2 + $0x114] sm:$0x1]  ;;  %v2619_v13 = vld [vmem:[#allocation2 + $0x9c] sm:$0xf] }
 0x195   : > { %2505 = vst.msk [vmem:[#allocation2 + $0x10c] sm:$0xf] %vm1296_vm7, %v2064_v57  ;;  %2508 = vst [vmem:[#allocation2 + $0x110] sm:$0x1] %v2507_v3  ;;  %v2047_v37 = vsel %vm16899_vm13, %v2039_v51, %v2046_v36  ;;  %v2500_v27 = vsel %vm16742_vm4, %v2048_v46, %v2499_v5  ;;  %v2975_v29 = vrot.slane %v2974_v8, 4  ;;  %v2984_v56 = vrot.slane %v2982_v23, 4 }
 0x196   : > { %2498 = vst.msk [vmem:[#allocation2 + $0x100] sm:$0xf] %vm1296_vm7, %v2047_v37  ;;  %2501 = vst [vmem:[#allocation2 + $0x104] sm:$0x1] %v2500_v27  ;;  %v2987_v25 = vrot.slane %v2985_v52, 5  ;;  %v2995_v41 = vshrl.u32 %v2618_v7, 16  ;;  %v1139_v51 = vmul.f32 %v17229_v61, %v17141_v22  ;;  %v1137_v22 = vmul.f32 %v17229_v61, %v17147_v31 }
 0x197   : > { %v3001_v47 = vshll.u32 %v2670_v35, 16  ;;  %v2980_v20 = vsel %vm16822_vm10, %v2975_v29, %v2979_v38  ;;  %v2993_v50 = vrot.slane %v2991_v60, 5  ;;  %v1387_v17 = vsel %vm16742_vm4, 0, %v1386_v4  ;;  %v17397_v7 = vld [vmem:[%s20209_s4 + $0x8] sm:$0x3]  ;;  %v16161_v3 = vld [vmem:[#allocation2 + $0xc0] sm:$0xff]  }
 0x198   : > { %v13526_v5 = vcombine.low %v2970_v18, %v2980_v20  ;;  %v2988_v54 = vor.u32 %v2987_v25, %v2984_v56  ;;  %v2997_v6 = vrot.slane %v2995_v41, 4  ;;  %1388 = vst [vmem:[#allocation2 + $0x120] sm:$0x1] %v1387_v17  ;;  %v1210_v10 = vadd.f32 %v17171_v2, %v1139_v51  ;;  %v16239_v18 = vld [vmem:[%s20209_s4 + $0x6] sm:$0x3] }
 0x199   : > { %v3003_v62 = vrot.slane %v3001_v47, 5  ;;  %v1384_v36 = vsel %vm16742_vm4, 0, %v1383_v21  ;;  %v17408_v46 = vsel %vm797_vm0, %v16239_v18, 0  ;;  %v2620_v8 = vld [vmem:[#allocation2 + $0xa0] sm:$0xf]  ;;  %v1140_v31 = vmul.f32 %v17229_v61, %v17152_v42  ;;  %v16162_v23 = vld [vmem:[#allocation2 + $0xe4] sm:$0xff]  }
 0x19a   : > { %14897 = vmatmul.mubr.msk.bf16.gmra.mrb[84].mxu0 %vm700_vm1, %v13526_v5  ;;  %v2989_v38 = vrot.slane %v2988_v54, 4  ;;  %v2998_v35 = vor.u32 %v2997_v6, %v2993_v50  ;;  %1385 = vst [vmem:[#allocation2 + $0x114] sm:$0x1] %v1384_v36  ;;  %15556 = vmatpush3.bf16.msra.mxu1 %v17408_v46  ;;  %v1497_v57 = vsel %vm16751_vm6, 0, %v1496_v49  ;;  %v1274_v52 = vmax.f32 %v1210_v10, 0.0 }
 0x19b   : > { %v1208_v4 = vadd.f32 %v17171_v2, %v1137_v22  ;;  %1498 = vst [vmem:[#allocation2 + $0x128] sm:$0x1] %v1497_v57  ;;  %v1138_v37 = vmul.f32 %v17229_v61, %v17156_v12  ;;  %v1494_v27 = vsel %vm16751_vm6, 0, %v1493_v63  ;;  %16075 = vmatprep.subr.msk.bf16.mxu1 %vm797_vm0, %v17397_v7  ;;  %12742 = vrot.lane.b32.xlu0 %v1210_v10, %s16546_s19  ;;  %v3006_v56 = vshrl.u32 %v2619_v13, 16  ;;  %v2671_v57 = vld [vmem:[#allocation2 + $0xa4] sm:$0x1] }
 0x19c   : > { %v2994_v42 = vsel %vm16822_vm10, %v2989_v38, %v2993_v50  ;;  %v2999_v29 = vrot.slane %v2998_v35, 4  ;;  %v1211_v60 = vadd.f32 %v17171_v2, %v1140_v31  ;;  %1495 = vst [vmem:[#allocation2 + $0x11c] sm:$0x1] %v1494_v27  ;;  %v14350_v25 = vpack.c.bf16 %v1274_v52, %v1274_v52 }
 0x19d   : > { %v1272_v41 = vmax.f32 %v1208_v4, 0.0  ;;  %v1209_v12 = vadd.f32 %v17171_v2, %v1138_v37  ;;  %v3009_v47 = vshll.u32 %v2619_v13, 16  ;;  %15103 = vmatmul.mubr.msk.bf16.vlgmr.msra.gmra.mrb[0].mxu1 %vm700_vm1, %v16161_v3  ;;  %v3008_v51 = vrot.slane %v3006_v56, 4 }
 0x19e   : > { %v3004_v21 = vsel %vm16822_vm10, %v2999_v29, %v3003_v62  ;;  %v1275_v20 = vmax.f32 %v1211_v60, 0.0  ;;  %v3015_v17 = vshll.u32 %v2620_v8, 16  ;;  %12744 = vrot.lane.b32.xlu1 %v1211_v60, %s16546_s19  ;;  %15106 = vmatprep.mubr.msk.bf16.mxu1 %vm700_vm1, %v16162_v23  ;;  %v2084_v49 = vshrl.u32 %v14350_v25, 16  ;;  %v16164_v23 = vld [vmem:[#allocation2 + $0xfc] sm:$0xff]   ;;  %v16163_v29 = vld [vmem:[#allocation2 + $0xf0] sm:$0xff]  }
 0x19f   : > { %v13527_v50 = vcombine.low %v2994_v42, %v3004_v21  ;;  %v2087_v63 = vshll.u32 %v14350_v25, 16  ;;  %v14348_v5 = vpack.c.bf16 %v1272_v41, %v1272_v41  ;;  %12738 = vrot.lane.b32.xlu0 %v1208_v4, %s16546_s19  ;;  %v1273_v54 = vmax.f32 %v1209_v12, 0.0  ;;  %v2516_v18 = vld [vmem:[#allocation2 + $0x120] sm:$0xf] }
 0x1a0   : > { %v14351_v2 = vpack.c.bf16 %v1275_v20, %v1275_v20  ;;  %v3011_v6 = vrot.slane %v3009_v47, 5  ;;  %v17434_v13 = vrot.slane %v3015_v17, 5  ;;  %v2086_v62 = vrot.slane %v2084_v49, 7 }
 0x1a1   : > { %14900 = vmatprep.mubr.msk.bf16.mxu0 %vm700_vm1, %v13527_v50  ;;  %v2067_v10 = vshrl.u32 %v14348_v5, 16  ;;  %v2070_v22 = vshll.u32 %v14348_v5, 16  ;;  %v3019_v36 = vshrl.u32 %v2620_v8, 16  ;;  %v14349_v31 = vpack.c.bf16 %v1273_v54, %v1273_v54  ;;  %v2509_v27 = vld [vmem:[#allocation2 + $0x114] sm:$0xf] }
 0x1a2   : > { %v2092_v38 = vshrl.u32 %v14351_v2, 16  ;;  %v2095_v35 = vshll.u32 %v14351_v2, 16  ;;  %v3012_v3 = vor.u32 %v3011_v6, %v3008_v51  ;;  %12740 = vrot.lane.b32.xlu1 %v1209_v12, %s16546_s19  ;;  %v2089_v52 = vor.u32 %v2087_v63, %v2086_v62  ;;  %v2621_v8 = vld [vmem:[#allocation2 + $0xa8] sm:$0xf]  ;;  %v2622_v5 = vld [vmem:[#allocation2 + $0xac] sm:$0xf] }
 0x1a3   : > { %v2090_v4 = vrot.slane %v2086_v62, 4  ;;  %v2069_v37 = vrot.slane %v2067_v10, 7  ;;  %v3021_v42 = vrot.slane %v3019_v36, 4  ;;  %v2075_v56 = vshrl.u32 %v14349_v31, 16  ;;  %v2520_v51 = vld [vmem:[#allocation2 + $0x128] sm:$0x1] }
 0x1a4   : > { %v2094_v60 = vrot.slane %v2092_v38, 7  ;;  %v2078_v25 = vshll.u32 %v14349_v31, 16  ;;  %v3013_v41 = vrot.slane %v3012_v3, 4  ;;  %v2517_v47 = vsel %vm16892_vm12, %v2089_v52, %v2516_v18  ;;  %v2672_v2 = vld [vmem:[#allocation2 + $0xb0] sm:$0x1] }
 0x1a5   : > { %v2072_v21 = vor.u32 %v2070_v22, %v2069_v37  ;;  %v2073_v20 = vrot.slane %v2069_v37, 4  ;;  %v3022_v12 = vor.u32 %v3021_v42, %v17434_v13  ;;  %15107 = vmatmul.mubr.msk.bf16.gmra.mrb[4].mxu1 %vm700_vm1, %v16163_v29  ;;  %2518 = vst [vmem:[#allocation2 + $0x120] sm:$0xf] %v2517_v47  ;;  %v2077_v49 = vrot.slane %v2075_v56, 7  ;;  %v2513_v6 = vld [vmem:[#allocation2 + $0x11c] sm:$0x1] }
 0x1a6   : > { %v2097_v17 = vor.u32 %v2095_v35, %v2094_v60  ;;  %v2099_v50 = vrot.slane %v2094_v60, 4  ;;  %v3018_v63 = vsel %vm16822_vm10, %v3013_v41, %v17434_v13  ;;  %15110 = vmatprep.mubr.msk.bf16.mxu1 %vm700_vm1, %v16164_v23  ;;  %v3025_v10 = vshll.u32 %v2671_v57, 16  ;;  %v1392_v37 = vld [vmem:[#allocation2 + $0x138] sm:$0x1]  ;;  %v16165_v41 = vld [vmem:[#allocation2 + $0x108] sm:$0xff]  }
 0x1a7   : > { %v2510_v54 = vsel %vm16892_vm12, %v2072_v21, %v2509_v27  ;;  %v3023_v62 = vrot.slane %v3022_v12, 4  ;;  %v7105_v22 = vsel %vm797_vm0, %v17397_v7, 0  ;;  %v2080_v18 = vor.u32 %v2078_v25, %v2077_v49  ;;  %v1389_v27 = vld [vmem:[#allocation2 + $0x12c] sm:$0x1]  ;;  %v1502_v25 = vld [vmem:[#allocation2 + $0x140] sm:$0x1] }
 0x1a8   : > { %2511 = vst [vmem:[#allocation2 + $0x114] sm:$0xf] %v2510_v54  ;;  %v2098_v36 = vsel %vm16899_vm13, %v2090_v4, %v2097_v17  ;;  %v2521_v13 = vsel %vm16742_vm4, %v2099_v50, %v2520_v51  ;;  %v2082_v38 = vrot.slane %v2077_v49, 4  ;;  %15139 = vmatpush3.bf16.msra.mxu1 %v7105_v22  ;;  %v3027_v35 = vrot.slane %v3025_v10, 5  ;;  %v1499_v51 = vld [vmem:[#allocation2 + $0x134] sm:$0x1] }
 0x1a9   : > { %2519 = vst.msk [vmem:[#allocation2 + $0x124] sm:$0xf] %vm1296_vm7, %v2098_v36  ;;  %2522 = vst [vmem:[#allocation2 + $0x128] sm:$0x1] %v2521_v13  ;;  %v3030_v31 = vshrl.u32 %v2621_v8, 16  ;;  %v3033_v3 = vshll.u32 %v2621_v8, 16  ;;  %v2081_v7 = vsel %vm16899_vm13, %v2073_v20, %v2080_v18  ;;  %v1143_v20 = vmul.f32 %v17229_v61, %v17178_v9 }
 0x1aa   : > { %v3039_v57 = vshll.u32 %v2622_v5, 16  ;;  %v2514_v23 = vsel %vm16742_vm4, %v2082_v38, %v2513_v6  ;;  %v3043_v52 = vshrl.u32 %v2622_v5, 16  ;;  %v3049_v4 = vshll.u32 %v2672_v2, 16  ;;  %2512 = vst.msk [vmem:[#allocation2 + $0x118] sm:$0xf] %vm1296_vm7, %v2081_v7 }
 0x1ab   : > { %2515 = vst [vmem:[#allocation2 + $0x11c] sm:$0x1] %v2514_v23  ;;  %v3028_v42 = vsel %vm16822_vm10, %v3023_v62, %v3027_v35  ;;  %v3032_v29 = vrot.slane %v3030_v31, 4  ;;  %v3035_v60 = vrot.slane %v3033_v3, 5  ;;  %v1393_v17 = vsel %vm16742_vm4, 0, %v1392_v37 }
 0x1ac   : > { %v3041_v56 = vrot.slane %v3039_v57, 5  ;;  %v13528_v8 = vcombine.low %v3018_v63, %v3028_v42  ;;  %v3045_v47 = vrot.slane %v3043_v52, 4  ;;  %v3051_v21 = vrot.slane %v3049_v4, 5  ;;  %v2623_v5 = vld [vmem:[#allocation2 + $0xb4] sm:$0xf] }
 0x1ad   : > { %v3036_v12 = vor.u32 %v3035_v60, %v3032_v29  ;;  %v1141_v50 = vmul.f32 %v17229_v61, %v17182_v16  ;;  %v1390_v49 = vsel %vm16742_vm4, 0, %v1389_v27  ;;  %15111 = vmatmul.mubr.msk.bf16.gmra.mrb[8].mxu1 %vm700_vm1, %v16165_v41  ;;  %v17475_v9 = vld [vmem:[%s20208_s3] ss:$0 sm:$0xff]  ;;  %1394 = vst [vmem:[#allocation2 + $0x138] sm:$0x1] %v1393_v17  ;;  %v1144_v16 = vmul.f32 %v17229_v61, %v17186_v30 }
 0x1ae   : > { %14901 = vmatmul.mubr.msk.bf16.gmra.mrb[88].mxu0 %vm700_vm1, %v13528_v8  ;;  %v3046_v63 = vor.u32 %v3045_v47, %v3041_v56  ;;  %v1214_v2 = vadd.f32 %v17475_v9, %v1143_v20  ;;  %1391 = vst [vmem:[#allocation2 + $0x12c] sm:$0x1] %v1390_v49  ;;  %v1503_v54 = vsel %vm16751_vm6, 0, %v1502_v25  ;;  %v17486_v10 = vld [vmem:[%s20207_s2] ss:$0 sm:$0xff]  ;;  %v1500_v36 = vsel %vm16751_vm6, 0, %v1499_v51 }
 0x1af   : > { %v3037_v6 = vrot.slane %v3036_v12, 4  ;;  %v1212_v62 = vadd.f32 %v17475_v9, %v1141_v50  ;;  %1504 = vst [vmem:[#allocation2 + $0x140] sm:$0x1] %v1503_v54  ;;  %v1142_v22 = vmul.f32 %v17486_v10, %v17193_v43  ;;  %v1215_v61 = vadd.f32 %v17475_v9, %v1144_v16  ;;  %1501 = vst [vmem:[#allocation2 + $0x134] sm:$0x1] %v1500_v36 }
 0x1b0   : > { %v3047_v13 = vrot.slane %v3046_v63, 4  ;;  %v1278_v30 = vmax.f32 %v1214_v2, 0.0  ;;  %v3054_v18 = vshrl.u32 %v2623_v5, 16  ;;  %12750 = vrot.lane.b32.xlu0 %v1214_v2, %s16546_s19  ;;  %v2624_v3 = vld [vmem:[#allocation2 + $0xb8] sm:$0xf]  ;;  %v3057_v57 = vshll.u32 %v2623_v5, 16 }
 0x1b1   : > { %v3042_v38 = vsel %vm16822_vm10, %v3037_v6, %v3041_v56  ;;  %v1276_v35 = vmax.f32 %v1212_v62, 0.0  ;;  %v1213_v31 = vadd.f32 %v17475_v9, %v1142_v22  ;;  %v1279_v23 = vmax.f32 %v1215_v61, 0.0  ;;  %12752 = vrot.lane.b32.xlu1 %v1215_v61, %s16546_s19  ;;  %v16166_v4 = vld [vmem:[#allocation2 + $0x114] sm:$0xff]   ;;  %v16167_v60 = vld [vmem:[#allocation2 + $0x120] sm:$0xff]   ;;  %v2673_v63 = vld [vmem:[#allocation2 + $0xbc] sm:$0x1] }
 0x1b2   : > { %v3052_v43 = vsel %vm16822_vm10, %v3047_v13, %v3051_v21  ;;  %v14354_v7 = vpack.c.bf16 %v1278_v30, %v1278_v30  ;;  %v3056_v52 = vrot.slane %v3054_v18, 4  ;;  %v3059_v29 = vrot.slane %v3057_v57, 5  ;;  %15114 = vmatprep.mubr.msk.bf16.mxu1 %vm700_vm1, %v16166_v4  ;;  %v13902_v18 = vld [vmem:[%s20209_s4 + $0xa] sm:$0x3]  ;;  %v1398_v4 = vld [vmem:[#allocation2 + $0x150] sm:$0x1] }
 0x1b3   : > { %v13529_v37 = vcombine.low %v3042_v38, %v3052_v43  ;;  %v14352_v27 = vpack.c.bf16 %v1276_v35, %v1276_v35  ;;  %v1277_v42 = vmax.f32 %v1213_v31, 0.0  ;;  %v14355_v41 = vpack.c.bf16 %v1279_v23, %v1279_v23  ;;  %16076 = vmatprep.subr.msk.bf16.mxu1 %vm797_vm0, %v13902_v18 }
 0x1b4   : > { %v2118_v56 = vshrl.u32 %v14354_v7, 16  ;;  %v2121_v25 = vshll.u32 %v14354_v7, 16  ;;  %v3063_v8 = vshll.u32 %v2624_v3, 16  ;;  %12746 = vrot.lane.b32.xlu0 %v1212_v62, %s16546_s19  ;;  %v2530_v47 = vld [vmem:[#allocation2 + $0x138] sm:$0xf]  ;;  %v3060_v12 = vor.u32 %v3059_v29, %v3056_v52 }
 0x1b5   : > { %14904 = vmatprep.mubr.msk.bf16.mxu0 %vm700_vm1, %v13529_v37  ;;  %v2101_v21 = vshrl.u32 %v14352_v27, 16  ;;  %v2104_v20 = vshll.u32 %v14352_v27, 16  ;;  %v14353_v51 = vpack.c.bf16 %v1277_v42, %v1277_v42  ;;  %15115 = vmatmul.mubr.msk.bf16.gmra.mrb[12].mxu1 %vm700_vm1, %v16167_v60  ;;  %v2523_v50 = vld [vmem:[#allocation2 + $0x12c] sm:$0xf]  ;;  %v2126_v49 = vshrl.u32 %v14355_v41, 16 }
 0x1b6   : > { %v2120_v17 = vrot.slane %v2118_v56, 7  ;;  %v2129_v5 = vshll.u32 %v14355_v41, 16  ;;  %v17504_v2 = vrot.slane %v3063_v8, 5  ;;  %12748 = vrot.lane.b32.xlu1 %v1213_v31, %s16546_s19  ;;  %v2534_v54 = vld [vmem:[#allocation2 + $0x140] sm:$0x1]  ;;  %v3061_v22 = vrot.slane %v3060_v12, 4 }
 0x1b7   : > { %v2103_v16 = vrot.slane %v2101_v21, 7  ;;  %v2109_v6 = vshrl.u32 %v14353_v51, 16  ;;  %v2112_v62 = vshll.u32 %v14353_v51, 16  ;;  %v2128_v30 = vrot.slane %v2126_v49, 7  ;;  %v2527_v52 = vld [vmem:[#allocation2 + $0x134] sm:$0x1] }
 0x1b8   : > { %v2123_v36 = vor.u32 %v2121_v25, %v2120_v17  ;;  %v2124_v13 = vrot.slane %v2120_v17, 4  ;;  %v3067_v61 = vshrl.u32 %v2624_v3, 16  ;;  %v3066_v31 = vsel %vm16822_vm10, %v3061_v22, %v17504_v2  ;;  %v1395_v60 = vld [vmem:[#allocation2 + $0x144] sm:$0x1]  ;;  %v1505_v21 = vld [vmem:[#allocation2 + $0x14c] sm:$0x1] }
 0x1b9   : > { %v2106_v38 = vor.u32 %v2104_v20, %v2103_v16  ;;  %v2107_v35 = vrot.slane %v2103_v16, 4  ;;  %v2111_v57 = vrot.slane %v2109_v6, 7  ;;  %v2131_v7 = vor.u32 %v2129_v5, %v2128_v30  ;;  %v2626_v22 = vld [vmem:[#allocation2 + $0xdc] sm:$0xf] }
 0x1ba   : > { %v2531_v43 = vsel %vm16892_vm12, %v2123_v36, %v2530_v47  ;;  %v2133_v23 = vrot.slane %v2128_v30, 4  ;;  %v3069_v3 = vrot.slane %v3067_v61, 4  ;;  %v3073_v29 = vshll.u32 %v2673_v63, 16  ;;  %v1508_v47 = vld [vmem:[#allocation2 + $0x158] sm:$0x1] }
 0x1bb   : > { %2532 = vst [vmem:[#allocation2 + $0x138] sm:$0xf] %v2531_v43  ;;  %v2524_v37 = vsel %vm16892_vm12, %v2106_v38, %v2523_v50  ;;  %v2114_v27 = vor.u32 %v2112_v62, %v2111_v57  ;;  %v2116_v42 = vrot.slane %v2111_v57, 4  ;;  %v2132_v56 = vsel %vm16899_vm13, %v2124_v13, %v2131_v7  ;;  %v1368_v50 = vld [vmem:[#allocation2 + $0xd8] sm:$0x1] }
 0x1bc   : > { %2525 = vst [vmem:[#allocation2 + $0x12c] sm:$0xf] %v2524_v37  ;;  %v2535_v25 = vsel %vm16742_vm4, %v2133_v23, %v2534_v54  ;;  %v3070_v41 = vor.u32 %v3069_v3, %v17504_v2  ;;  %v1147_v8 = vmul.f32 %v17486_v10, %v17202_v14  ;;  %2533 = vst.msk [vmem:[#allocation2 + $0x13c] sm:$0xf] %vm1296_vm7, %v2132_v56  ;;  %v3075_v12 = vrot.slane %v3073_v29, 5 }
 0x1bd   : > { %2536 = vst [vmem:[#allocation2 + $0x140] sm:$0x1] %v2535_v25  ;;  %v2115_v20 = vsel %vm16899_vm13, %v2107_v35, %v2114_v27  ;;  %v2528_v51 = vsel %vm16742_vm4, %v2116_v42, %v2527_v52  ;;  %v1399_v17 = vsel %vm16742_vm4, 0, %v1398_v4  ;;  %v1145_v5 = vmul.f32 %v17486_v10, %v17206_v26  ;;  %v1478_v2 = vld [vmem:[#allocation2 + $0xe0] sm:$0x1] }
 0x1be   : > { %2526 = vst.msk [vmem:[#allocation2 + $0x130] sm:$0xf] %vm1296_vm7, %v2115_v20  ;;  %2529 = vst [vmem:[#allocation2 + $0x134] sm:$0x1] %v2528_v51  ;;  %v3071_v14 = vrot.slane %v3070_v41, 4  ;;  %v1218_v49 = vadd.f32 %v17475_v9, %v1147_v8  ;;  %v1396_v63 = vsel %vm16742_vm4, 0, %v1395_v60  ;;  %v1148_v16 = vmul.f32 %v17486_v10, %v17214_v44 }
 0x1bf   : > { %1400 = vst [vmem:[#allocation2 + $0x150] sm:$0x1] %v1399_v17  ;;  %1397 = vst [vmem:[#allocation2 + $0x144] sm:$0x1] %v1396_v63  ;;  %v1509_v54 = vsel %vm16751_vm6, 0, %v1508_v47  ;;  %v1146_v6 = vmul.f32 %v17486_v10, %v17222_v24  ;;  %v1506_v62 = vsel %vm16751_vm6, 0, %v1505_v21  ;;  %v1216_v13 = vadd.f32 %v17475_v9, %v1145_v5 }
 0x1c0   : > { %v3076_v26 = vsel %vm16822_vm10, %v3071_v14, %v3075_v12  ;;  %v1282_v36 = vmax.f32 %v1218_v49, 0.0  ;;  %1510 = vst [vmem:[#allocation2 + $0x158] sm:$0x1] %v1509_v54  ;;  %1507 = vst [vmem:[#allocation2 + $0x14c] sm:$0x1] %v1506_v62  ;;  %v1369_v44 = vsel %vm16742_vm4, 0, %v1368_v50  ;;  %12758 = vrot.lane.b32.xlu0 %v1218_v49, %s16546_s19  ;;  %v1219_v24 = vadd.f32 %v17475_v9, %v1148_v16 }
 0x1c1   : > { %v2627_v30 = vld [vmem:[#allocation2 + $0xe4] sm:$0xf]  ;;  %v13530_v61 = vcombine.low %v3066_v31, %v3076_v26  ;;  %v1217_v18 = vadd.f32 %v17475_v9, %v1146_v6  ;;  %1370 = vst [vmem:[#allocation2 + $0xd8] sm:$0x1] %v1369_v44  ;;  %v1479_v38 = vsel %vm16751_vm6, 0, %v1478_v2  ;;  %v1280_v57 = vmax.f32 %v1216_v13, 0.0 }
 0x1c2   : > { %v14358_v35 = vpack.c.bf16 %v1282_v36, %v1282_v36  ;;  %1480 = vst [vmem:[#allocation2 + $0xe0] sm:$0x1] %v1479_v38  ;;  %v3087_v43 = vshll.u32 %v2626_v22, 16  ;;  %v3091_v7 = vshrl.u32 %v2626_v22, 16  ;;  %v1283_v23 = vmax.f32 %v1219_v24, 0.0  ;;  %12760 = vrot.lane.b32.xlu1 %v1219_v24, %s16546_s19 }
 0x1c3   : > { %14905 = vmatmul.mubr.msk.bf16.gmra.mrb[92].mxu0 %vm700_vm1, %v13530_v61  ;;  %v1281_v52 = vmax.f32 %v1217_v18, 0.0  ;;  %v3102_v3 = vshrl.u32 %v2627_v30, 16  ;;  %v3105_v4 = vshll.u32 %v2627_v30, 16  ;;  %v14356_v27 = vpack.c.bf16 %v1280_v57, %v1280_v57 }
 0x1c4   : > { %v2152_v31 = vshrl.u32 %v14358_v35, 16  ;;  %v2155_v37 = vshll.u32 %v14358_v35, 16  ;;  %v17558_v42 = vrot.slane %v3087_v43, 5  ;;  %12754 = vrot.lane.b32.xlu0 %v1216_v13, %s16546_s19  ;;  %v14359_v29 = vpack.c.bf16 %v1283_v23, %v1283_v23  ;;  %v2628_v23 = vld [vmem:[#allocation2 + $0xe8] sm:$0xf] }
 0x1c5   : > { %v14357_v60 = vpack.c.bf16 %v1281_v52, %v1281_v52  ;;  %v3093_v56 = vrot.slane %v3091_v7, 4  ;;  %v17561_v25 = vrot.slane %v3102_v3, 4  ;;  %v2135_v47 = vshrl.u32 %v14356_v27, 16  ;;  %v16168_v38 = vld [vmem:[#allocation2 + $0x12c] sm:$0xff]   ;;  %v16169_v52 = vld [vmem:[#allocation2 + $0x138] sm:$0xff]  }
 0x1c6   : > { %v2154_v41 = vrot.slane %v2152_v31, 7  ;;  %v2544_v8 = vld [vmem:[#allocation2 + $0x150] sm:$0xf]  ;;  %v2138_v21 = vshll.u32 %v14356_v27, 16  ;;  %v3107_v20 = vrot.slane %v3105_v4, 5  ;;  %v2160_v12 = vshrl.u32 %v14359_v29, 16  ;;  %12756 = vrot.lane.b32.xlu1 %v1217_v18, %s16546_s19  ;;  %15118 = vmatprep.mubr.msk.bf16.mxu1 %vm700_vm1, %v16168_v38 }
 0x1c7   : > { %v2537_v51 = vld [vmem:[#allocation2 + $0x144] sm:$0xf]  ;;  %v2163_v17 = vshll.u32 %v14359_v29, 16  ;;  %v2143_v50 = vshrl.u32 %v14357_v60, 16  ;;  %v2146_v14 = vshll.u32 %v14357_v60, 16  ;;  %v2137_v63 = vrot.slane %v2135_v47, 7  ;;  %15119 = vmatmul.mubr.msk.bf16.gmra.mrb[16].mxu1 %vm700_vm1, %v16169_v52 }
 0x1c8   : > { %v2157_v49 = vor.u32 %v2155_v37, %v2154_v41  ;;  %v2158_v5 = vrot.slane %v2154_v41, 4  ;;  %v2548_v2 = vld [vmem:[#allocation2 + $0x158] sm:$0x1]  ;;  %v3094_v54 = vor.u32 %v3093_v56, %v17558_v42  ;;  %v2162_v6 = vrot.slane %v2160_v12, 7  ;;  %v2541_v61 = vld [vmem:[#allocation2 + $0x14c] sm:$0x1] }
 0x1c9   : > { %v2625_v16 = vld [vmem:[#allocation2 + $0xd8] sm:$0xf]  ;;  %v2145_v62 = vrot.slane %v2143_v50, 7  ;;  %v2674_v22 = vld [vmem:[#allocation2 + $0xe0] sm:$0x1]  ;;  %v2140_v44 = vor.u32 %v2138_v21, %v2137_v63  ;;  %v2141_v30 = vrot.slane %v2137_v63, 4 }
 0x1ca   : > { %v3078_v26 = vshrl.u32 %v2625_v16, 16  ;;  %v3081_v36 = vshll.u32 %v2625_v16, 16  ;;  %v2545_v13 = vsel %vm16892_vm12, %v2157_v49, %v2544_v8  ;;  %v3095_v24 = vrot.slane %v3094_v54, 4  ;;  %v2629_v18 = vld [vmem:[#allocation2 + $0xf0] sm:$0xf] }
 0x1cb   : > { %2546 = vst [vmem:[#allocation2 + $0x150] sm:$0xf] %v2545_v13  ;;  %v2165_v35 = vor.u32 %v2163_v17, %v2162_v6  ;;  %v2167_v57 = vrot.slane %v2162_v6, 4  ;;  %v2148_v43 = vor.u32 %v2146_v14, %v2145_v62  ;;  %v2150_v7 = vrot.slane %v2145_v62, 4  ;;  %v2675_v27 = vld [vmem:[#allocation2 + $0xec] sm:$0x1] }
 0x1cc   : > { %v2538_v3 = vsel %vm16892_vm12, %v2140_v44, %v2537_v51  ;;  %v3080_v4 = vrot.slane %v3078_v26, 4  ;;  %v3083_v31 = vrot.slane %v3081_v36, 5  ;;  %v3097_v37 = vshll.u32 %v2674_v22, 16  ;;  %v2657_v8 = vld [vmem:[%s20209_s4] sm:$0x3] }
 0x1cd   : > { %2539 = vst [vmem:[#allocation2 + $0x144] sm:$0xf] %v2538_v3  ;;  %v2166_v29 = vsel %vm16899_vm13, %v2158_v5, %v2165_v35  ;;  %v2549_v60 = vsel %vm16742_vm4, %v2167_v57, %v2548_v2  ;;  %v2149_v56 = vsel %vm16899_vm13, %v2141_v30, %v2148_v43  ;;  %v2542_v41 = vsel %vm16742_vm4, %v2150_v7, %v2541_v61  ;;  %v2630_v14 = vld [vmem:[#allocation2 + $0xf4] sm:$0xf]  ;;  %v2676_v6 = vld [vmem:[#allocation2 + $0xf8] sm:$0x1] }
 0x1ce   : > { %2547 = vst.msk [vmem:[#allocation2 + $0x154] sm:$0xf] %vm1296_vm7, %v2166_v29  ;;  %2550 = vst [vmem:[#allocation2 + $0x158] sm:$0x1] %v2549_v60  ;;  %v3084_v47 = vor.u32 %v3083_v31, %v3080_v4  ;;  %v3099_v21 = vrot.slane %v3097_v37, 5  ;;  %v3108_v51 = vor.u32 %v3107_v20, %v17561_v25  ;;  %v3111_v12 = vshll.u32 %v2628_v23, 16  ;;  %16071 = vmatprep.subr.msk.bf16.mxu0 %vm797_vm0, %v2657_v8 }
 0x1cf   : > { %2540 = vst.msk [vmem:[#allocation2 + $0x148] sm:$0xf] %vm1296_vm7, %v2149_v56  ;;  %2543 = vst [vmem:[#allocation2 + $0x14c] sm:$0x1] %v2542_v41  ;;  %v3115_v17 = vshrl.u32 %v2628_v23, 16  ;;  %v3121_v50 = vshll.u32 %v2675_v27, 16  ;;  %v1151_v23 = vmul.f32 %v17486_v10, %v17244_v11  ;;  %v1149_v37 = vmul.f32 %v17486_v10, %v17250_v40 }
 0x1d0   : > { %v3126_v49 = vshrl.u32 %v2629_v18, 16  ;;  %v3129_v5 = vshll.u32 %v2629_v18, 16  ;;  %v3085_v63 = vrot.slane %v3084_v47, 4  ;;  %v3100_v2 = vsel %vm16822_vm10, %v3095_v24, %v3099_v21  ;;  %v1404_v25 = vld [vmem:[#allocation2 + $0x168] sm:$0x1] }
 0x1d1   : > { %v3109_v16 = vrot.slane %v3108_v51, 4  ;;  %v3113_v54 = vrot.slane %v3111_v12, 5  ;;  %v3117_v62 = vrot.slane %v3115_v17, 4  ;;  %v3123_v22 = vrot.slane %v3121_v50, 5  ;;  %v1401_v35 = vld [vmem:[#allocation2 + $0x15c] sm:$0x1] }
 0x1d2   : > { %v3128_v26 = vrot.slane %v3126_v49, 4  ;;  %v3131_v36 = vrot.slane %v3129_v5, 5  ;;  %v3090_v20 = vsel %vm16822_vm10, %v3085_v63, %v17558_v42  ;;  %v3135_v44 = vshll.u32 %v2630_v14, 16  ;;  %v1514_v57 = vld [vmem:[#allocation2 + $0x170] sm:$0x1] }
 0x1d3   : > { %v3114_v13 = vsel %vm16822_vm10, %v3109_v16, %v3113_v54  ;;  %v3139_v30 = vshrl.u32 %v2630_v14, 16  ;;  %v13531_v61 = vcombine.low %v3090_v20, %v3100_v2  ;;  %v3118_v18 = vor.u32 %v3117_v62, %v3113_v54  ;;  %v1511_v42 = vld [vmem:[#allocation2 + $0x164] sm:$0x1]  ;;  %v2631_v41 = vld [vmem:[#allocation2 + $0xfc] sm:$0xf] }
 0x1d4   : > { %v3132_v24 = vor.u32 %v3131_v36, %v3128_v26  ;;  %v3145_v38 = vshll.u32 %v2676_v6, 16  ;;  %v3137_v43 = vrot.slane %v3135_v44, 5  ;;  %v1405_v52 = vsel %vm16742_vm4, 0, %v1404_v25  ;;  %v2632_v6 = vld [vmem:[#allocation2 + $0x100] sm:$0xf] }
 0x1d5   : > { %v3141_v7 = vrot.slane %v3139_v30, 4  ;;  %14908 = vmatprep.mubr.msk.bf16.mxu0 %vm700_vm1, %v13531_v61  ;;  %v3119_v3 = vrot.slane %v3118_v18, 4  ;;  %1406 = vst [vmem:[#allocation2 + $0x168] sm:$0x1] %v1405_v52  ;;  %v1222_v60 = vadd.f32 %v17475_v9, %v1151_v23  ;;  %v1402_v11 = vsel %vm16742_vm4, 0, %v1401_v35  ;;  %v16171_v8 = vld [vmem:[#allocation2 + $0x150] sm:$0xff]  }
 0x1d6   : > { %v3133_v4 = vrot.slane %v3132_v24, 4  ;;  %v3147_v31 = vrot.slane %v3145_v38, 5  ;;  %v16170_v27 = vld [vmem:[#allocation2 + $0x144] sm:$0xff]   ;;  %v1152_v56 = vmul.f32 %v17486_v10, %v17258_v15  ;;  %v1220_v40 = vadd.f32 %v17475_v9, %v1149_v37  ;;  %1403 = vst [vmem:[#allocation2 + $0x15c] sm:$0x1] %v1402_v11 }
 0x1d7   : > { %v3142_v29 = vor.u32 %v3141_v7, %v3137_v43  ;;  %v3124_v47 = vsel %vm16822_vm10, %v3119_v3, %v3123_v22  ;;  %v1515_v51 = vsel %vm16751_vm6, 0, %v1514_v57  ;;  %15122 = vmatprep.mubr.msk.bf16.mxu1 %vm700_vm1, %v16170_v27  ;;  %v1286_v50 = vmax.f32 %v1222_v60, 0.0  ;;  %12766 = vrot.lane.b32.xlu0 %v1222_v60, %s16546_s19 }
 0x1d8   : > { %v3138_v21 = vsel %vm16822_vm10, %v3133_v4, %v3137_v43  ;;  %v13532_v12 = vcombine.low %v3114_v13, %v3124_v47  ;;  %v1223_v15 = vadd.f32 %v17475_v9, %v1152_v56  ;;  %1516 = vst [vmem:[#allocation2 + $0x170] sm:$0x1] %v1515_v51  ;;  %15123 = vmatmul.mubr.msk.bf16.gmra.mrb[20].mxu1 %vm700_vm1, %v16171_v8  ;;  %v1284_v14 = vmax.f32 %v1220_v40, 0.0  ;;  %v2677_v43 = vld [vmem:[#allocation2 + $0x104] sm:$0x1] }
 0x1d9   : > { %v3143_v17 = vrot.slane %v3142_v29, 4  ;;  %v1150_v49 = vmul.f32 %v17486_v10, %v17260_v1  ;;  %v1512_v5 = vsel %vm16751_vm6, 0, %v1511_v42  ;;  %v3150_v63 = vshrl.u32 %v2631_v41, 16 }
 0x1da   : > { %14909 = vmatmul.mubr.msk.bf16.gmra.mrb[96].mxu0 %vm700_vm1, %v13532_v12  ;;  %v14362_v16 = vpack.c.bf16 %v1286_v50, %v1286_v50  ;;  %v1287_v54 = vmax.f32 %v1223_v15, 0.0  ;;  %1513 = vst [vmem:[#allocation2 + $0x164] sm:$0x1] %v1512_v5  ;;  %v3153_v62 = vshll.u32 %v2631_v41, 16  ;;  %12768 = vrot.lane.b32.xlu1 %v1223_v15, %s16546_s19  ;;  %v14360_v26 = vpack.c.bf16 %v1284_v14, %v1284_v14  ;;  %v2634_v5 = vld [vmem:[#allocation2 + $0x10c] sm:$0xf] }
 0x1db   : > { %v3148_v2 = vsel %vm16822_vm10, %v3143_v17, %v3147_v31  ;;  %v1221_v1 = vadd.f32 %v17475_v9, %v1150_v49  ;;  %v3152_v36 = vrot.slane %v3150_v63, 4  ;;  %12762 = vrot.lane.b32.xlu0 %v1220_v40, %s16546_s19  ;;  %v3159_v24 = vshll.u32 %v2632_v6, 16  ;;  %v2633_v31 = vld [vmem:[#allocation2 + $0x108] sm:$0xf] }
 0x1dc   : > { %v13533_v22 = vcombine.low %v3138_v21, %v3148_v2  ;;  %v2186_v25 = vshrl.u32 %v14362_v16, 16  ;;  %v2189_v20 = vshll.u32 %v14362_v16, 16  ;;  %v14363_v13 = vpack.c.bf16 %v1287_v54, %v1287_v54  ;;  %v2558_v23 = vld [vmem:[#allocation2 + $0x168] sm:$0xf]  ;;  %v2678_v54 = vld [vmem:[#allocation2 + $0x110] sm:$0x1] }
 0x1dd   : > { %v3155_v44 = vrot.slane %v3153_v62, 5  ;;  %v2169_v30 = vshrl.u32 %v14360_v26, 16  ;;  %v2172_v61 = vshll.u32 %v14360_v26, 16  ;;  %v1285_v18 = vmax.f32 %v1221_v1, 0.0  ;;  %v2551_v29 = vld [vmem:[#allocation2 + $0x15c] sm:$0xf] }
 0x1de   : > { %14912 = vmatprep.mubr.msk.bf16.mxu0 %vm700_vm1, %v13533_v22  ;;  %v2188_v38 = vrot.slane %v2186_v25, 7  ;;  %v2194_v35 = vshrl.u32 %v14363_v13, 16  ;;  %v2197_v57 = vshll.u32 %v14363_v13, 16  ;;  %12764 = vrot.lane.b32.xlu1 %v1221_v1, %s16546_s19  ;;  %v3161_v3 = vrot.slane %v3159_v24, 5 }
 0x1df   : > { %v3156_v7 = vor.u32 %v3155_v44, %v3152_v36  ;;  %v2171_v52 = vrot.slane %v2169_v30, 7  ;;  %v14361_v42 = vpack.c.bf16 %v1285_v18, %v1285_v18  ;;  %v3163_v4 = vshrl.u32 %v2632_v6, 16  ;;  %v2562_v8 = vld [vmem:[#allocation2 + $0x170] sm:$0x1]  ;;  %v1410_v30 = vld [vmem:[#allocation2 + $0x180] sm:$0x1] }
 0x1e0   : > { %v2191_v37 = vor.u32 %v2189_v20, %v2188_v38  ;;  %v2192_v27 = vrot.slane %v2188_v38, 4  ;;  %v2196_v60 = vrot.slane %v2194_v35, 7  ;;  %v3169_v49 = vshll.u32 %v2677_v43, 16  ;;  %v1407_v35 = vld [vmem:[#allocation2 + $0x174] sm:$0x1] }
 0x1e1   : > { %v3157_v11 = vrot.slane %v3156_v7, 4  ;;  %v2174_v56 = vor.u32 %v2172_v61, %v2171_v52  ;;  %v2175_v41 = vrot.slane %v2171_v52, 4  ;;  %v2177_v47 = vshrl.u32 %v14361_v42, 16  ;;  %v2555_v16 = vld [vmem:[#allocation2 + $0x164] sm:$0x1] }
 0x1e2   : > { %v2180_v21 = vshll.u32 %v14361_v42, 16  ;;  %v2559_v40 = vsel %vm16892_vm12, %v2191_v37, %v2558_v23  ;;  %v2199_v51 = vor.u32 %v2197_v57, %v2196_v60  ;;  %v2201_v12 = vrot.slane %v2196_v60, 4  ;;  %v1520_v57 = vld [vmem:[#allocation2 + $0x188] sm:$0x1]  ;;  %v1517_v37 = vld [vmem:[#allocation2 + $0x17c] sm:$0x1] }
 0x1e3   : > { %v3162_v17 = vsel %vm16822_vm10, %v3157_v11, %v3161_v3  ;;  %2560 = vst [vmem:[#allocation2 + $0x168] sm:$0xf] %v2559_v40  ;;  %v2552_v50 = vsel %vm16892_vm12, %v2174_v56, %v2551_v29  ;;  %v2179_v15 = vrot.slane %v2177_v47, 7  ;;  %v3165_v14 = vrot.slane %v3163_v4, 4  ;;  %v2635_v56 = vld [vmem:[#allocation2 + $0x114] sm:$0xf] }
 0x1e4   : > { %2553 = vst [vmem:[#allocation2 + $0x15c] sm:$0xf] %v2552_v50  ;;  %v2200_v63 = vsel %vm16899_vm13, %v2192_v27, %v2199_v51  ;;  %v2563_v2 = vsel %vm16742_vm4, %v2201_v12, %v2562_v8  ;;  %v3174_v6 = vshrl.u32 %v2633_v31, 16  ;;  %v3177_v62 = vshll.u32 %v2633_v31, 16 }
 0x1e5   : > { %2561 = vst.msk [vmem:[#allocation2 + $0x16c] sm:$0xf] %vm1296_vm7, %v2200_v63  ;;  %2564 = vst [vmem:[#allocation2 + $0x170] sm:$0x1] %v2563_v2  ;;  %v2182_v22 = vor.u32 %v2180_v21, %v2179_v15  ;;  %v2184_v26 = vrot.slane %v2179_v15, 4  ;;  %v3166_v1 = vor.u32 %v3165_v14, %v3161_v3  ;;  %v3171_v36 = vrot.slane %v3169_v49, 5 }
 0x1e6   : > { %v3176_v25 = vrot.slane %v3174_v6, 4  ;;  %v3179_v20 = vrot.slane %v3177_v62, 5  ;;  %v3183_v13 = vshll.u32 %v2634_v5, 16  ;;  %v3187_v44 = vshrl.u32 %v2634_v5, 16  ;;  %v2636_v5 = vld [vmem:[#allocation2 + $0x118] sm:$0xf] }
 0x1e7   : > { %v2183_v61 = vsel %vm16899_vm13, %v2175_v41, %v2182_v22  ;;  %v2556_v18 = vsel %vm16742_vm4, %v2184_v26, %v2555_v16  ;;  %v3167_v24 = vrot.slane %v3166_v1, 4  ;;  %v3193_v38 = vshll.u32 %v2678_v54, 16 }
 0x1e8   : > { %2554 = vst.msk [vmem:[#allocation2 + $0x160] sm:$0xf] %vm1296_vm7, %v2183_v61  ;;  %2557 = vst [vmem:[#allocation2 + $0x164] sm:$0x1] %v2556_v18  ;;  %v3180_v43 = vor.u32 %v3179_v20, %v3176_v25  ;;  %v3185_v7 = vrot.slane %v3183_v13, 5  ;;  %v3189_v23 = vrot.slane %v3187_v44, 4  ;;  %v1155_v52 = vmul.f32 %v17486_v10, %v17288_v0 }
 0x1e9   : > { %v3172_v42 = vsel %vm16822_vm10, %v3167_v24, %v3171_v36  ;;  %v3195_v3 = vrot.slane %v3193_v38, 5  ;;  %v1411_v4 = vsel %vm16742_vm4, 0, %v1410_v30  ;;  %v1153_v31 = vmul.f32 %v17486_v10, %v17306_v19  ;;  %v2679_v18 = vld [vmem:[#allocation2 + $0x11c] sm:$0x1] }
 0x1ea   : > { %v13534_v27 = vcombine.low %v3162_v17, %v3172_v42  ;;  %v3181_v29 = vrot.slane %v3180_v43, 4  ;;  %v3190_v60 = vor.u32 %v3189_v23, %v3185_v7  ;;  %v1226_v11 = vadd.f32 %v17475_v9, %v1155_v52  ;;  %1412 = vst [vmem:[#allocation2 + $0x180] sm:$0x1] %v1411_v4 }
 0x1eb   : > { %v1224_v0 = vadd.f32 %v17475_v9, %v1153_v31  ;;  %v1408_v41 = vsel %vm16742_vm4, 0, %v1407_v35  ;;  %v1156_v8 = vmul.f32 %v17486_v10, %v17310_v58  ;;  %v1521_v47 = vsel %vm16751_vm6, 0, %v1520_v57 }
 0x1ec   : > { %14913 = vmatmul.mubr.msk.bf16.gmra.mrb[100].mxu0 %vm700_vm1, %v13534_v27  ;;  %v3186_v19 = vsel %vm16822_vm10, %v3181_v29, %v3185_v7  ;;  %v3191_v21 = vrot.slane %v3190_v60, 4  ;;  %v1290_v40 = vmax.f32 %v1226_v11, 0.0  ;;  %1409 = vst [vmem:[#allocation2 + $0x174] sm:$0x1] %v1408_v41  ;;  %1522 = vst [vmem:[#allocation2 + $0x188] sm:$0x1] %v1521_v47  ;;  %v1154_v51 = vmul.f32 %v17486_v10, %v17314_v45 }
 0x1ed   : > { %12774 = vrot.lane.b32.xlu0 %v1226_v11, %s16546_s19  ;;  %v1288_v12 = vmax.f32 %v1224_v0, 0.0  ;;  %v1227_v58 = vadd.f32 %v17475_v9, %v1156_v8  ;;  %v1518_v17 = vsel %vm16751_vm6, 0, %v1517_v37  ;;  %v3198_v50 = vshrl.u32 %v2635_v56, 16  ;;  %v16173_v36 = vld [vmem:[#allocation2 + $0x168] sm:$0xff]   ;;  %v2637_v11 = vld [vmem:[#allocation2 + $0x120] sm:$0xf] }
 0x1ee   : > { %v3196_v15 = vsel %vm16822_vm10, %v3191_v21, %v3195_v3  ;;  %v14366_v14 = vpack.c.bf16 %v1290_v40, %v1290_v40  ;;  %v1225_v49 = vadd.f32 %v17475_v9, %v1154_v51  ;;  %1519 = vst [vmem:[#allocation2 + $0x17c] sm:$0x1] %v1518_v17  ;;  %v3201_v63 = vshll.u32 %v2635_v56, 16 }
 0x1ef   : > { %v13535_v2 = vcombine.low %v3186_v19, %v3196_v15  ;;  %v14364_v45 = vpack.c.bf16 %v1288_v12, %v1288_v12  ;;  %v1291_v16 = vmax.f32 %v1227_v58, 0.0  ;;  %v3200_v54 = vrot.slane %v3198_v50, 4  ;;  %12776 = vrot.lane.b32.xlu1 %v1227_v58, %s16546_s19  ;;  %v16172_v6 = vld [vmem:[#allocation2 + $0x15c] sm:$0xff]   ;;  %v2638_v58 = vld [vmem:[#allocation2 + $0x124] sm:$0xf] }
 0x1f0   : > { %v2220_v62 = vshrl.u32 %v14366_v14, 16  ;;  %v2223_v22 = vshll.u32 %v14366_v14, 16  ;;  %v1289_v26 = vmax.f32 %v1225_v49, 0.0  ;;  %v3203_v1 = vrot.slane %v3201_v63, 5  ;;  %15126 = vmatprep.mubr.msk.bf16.mxu1 %vm700_vm1, %v16172_v6 }
 0x1f1   : > { %12770 = vrot.lane.b32.xlu0 %v1224_v0, %s16546_s19  ;;  %14916 = vmatprep.mubr.msk.bf16.mxu0 %vm700_vm1, %v13535_v2  ;;  %v2203_v25 = vshrl.u32 %v14364_v45, 16  ;;  %v2206_v20 = vshll.u32 %v14364_v45, 16  ;;  %v14367_v13 = vpack.c.bf16 %v1291_v16, %v1291_v16  ;;  %v3207_v44 = vshll.u32 %v2636_v5, 16  ;;  %v2572_v35 = vld [vmem:[#allocation2 + $0x180] sm:$0xf] }
 0x1f2   : > { %v2222_v30 = vrot.slane %v2220_v62, 7  ;;  %v14365_v61 = vpack.c.bf16 %v1289_v26, %v1289_v26  ;;  %v3204_v24 = vor.u32 %v3203_v1, %v3200_v54  ;;  %v3211_v38 = vshrl.u32 %v2636_v5, 16  ;;  %15127 = vmatmul.mubr.msk.bf16.gmra.mrb[24].mxu1 %vm700_vm1, %v16173_v36  ;;  %v1416_v16 = vld [vmem:[#allocation2 + $0x198] sm:$0x1]  ;;  %v1413_v26 = vld [vmem:[#allocation2 + $0x18c] sm:$0x1] }
 0x1f3   : > { %v2205_v57 = vrot.slane %v2203_v25, 7  ;;  %v2228_v43 = vshrl.u32 %v14367_v13, 16  ;;  %v2231_v7 = vshll.u32 %v14367_v13, 16  ;;  %v3209_v23 = vrot.slane %v3207_v44, 5  ;;  %12772 = vrot.lane.b32.xlu1 %v1225_v49, %s16546_s19  ;;  %v2565_v3 = vld [vmem:[#allocation2 + $0x174] sm:$0xf] }
 0x1f4   : > { %v2225_v52 = vor.u32 %v2223_v22, %v2222_v30  ;;  %v2226_v42 = vrot.slane %v2222_v30, 4  ;;  %v2211_v4 = vshrl.u32 %v14365_v61, 16  ;;  %v2214_v31 = vshll.u32 %v14365_v61, 16  ;;  %v2576_v0 = vld [vmem:[#allocation2 + $0x188] sm:$0x1] }
 0x1f5   : > { %v2208_v37 = vor.u32 %v2206_v20, %v2205_v57  ;;  %v2209_v27 = vrot.slane %v2205_v57, 4  ;;  %v2230_v29 = vrot.slane %v2228_v43, 7  ;;  %v3205_v60 = vrot.slane %v3204_v24, 4  ;;  %v2569_v51 = vld [vmem:[#allocation2 + $0x17c] sm:$0x1] }
 0x1f6   : > { %v2573_v56 = vsel %vm16892_vm12, %v2225_v52, %v2572_v35  ;;  %v2213_v41 = vrot.slane %v2211_v4, 7  ;;  %v3213_v8 = vrot.slane %v3211_v38, 4  ;;  %v3217_v47 = vshll.u32 %v2679_v18, 16  ;;  %v2680_v49 = vld [vmem:[#allocation2 + $0x128] sm:$0x1] }
 0x1f7   : > { %2574 = vst [vmem:[#allocation2 + $0x180] sm:$0xf] %v2573_v56  ;;  %v2566_v19 = vsel %vm16892_vm12, %v2208_v37, %v2565_v3  ;;  %v2233_v21 = vor.u32 %v2231_v7, %v2230_v29  ;;  %v2235_v40 = vrot.slane %v2230_v29, 4  ;;  %v3210_v12 = vsel %vm16822_vm10, %v3205_v60, %v3209_v23  ;;  %v1526_v13 = vld [vmem:[#allocation2 + $0x1a0] sm:$0x1] }
 0x1f8   : > { %2567 = vst [vmem:[#allocation2 + $0x174] sm:$0xf] %v2566_v19  ;;  %v2216_v17 = vor.u32 %v2214_v31, %v2213_v41  ;;  %v2218_v50 = vrot.slane %v2213_v41, 4  ;;  %v3214_v15 = vor.u32 %v3213_v8, %v3209_v23  ;;  %v3219_v14 = vrot.slane %v3217_v47, 5  ;;  %v1523_v24 = vld [vmem:[#allocation2 + $0x194] sm:$0x1] }
 0x1f9   : > { %v2234_v5 = vsel %vm16899_vm13, %v2226_v42, %v2233_v21  ;;  %v2577_v63 = vsel %vm16742_vm4, %v2235_v40, %v2576_v0  ;;  %v3222_v2 = vshrl.u32 %v2637_v11, 16  ;;  %v3225_v45 = vshll.u32 %v2637_v11, 16  ;;  %v2639_v42 = vld [vmem:[#allocation2 + $0x12c] sm:$0xf]  ;;  %v2640_v60 = vld [vmem:[#allocation2 + $0x130] sm:$0xf] }
 0x1fa   : > { %2575 = vst.msk [vmem:[#allocation2 + $0x184] sm:$0xf] %vm1296_vm7, %v2234_v5  ;;  %2578 = vst [vmem:[#allocation2 + $0x188] sm:$0x1] %v2577_v63  ;;  %v2217_v54 = vsel %vm16899_vm13, %v2209_v27, %v2216_v17  ;;  %v2570_v6 = vsel %vm16742_vm4, %v2218_v50, %v2569_v51  ;;  %v3215_v62 = vrot.slane %v3214_v15, 4  ;;  %v3231_v22 = vshll.u32 %v2638_v58, 16 }
 0x1fb   : > { %2568 = vst.msk [vmem:[#allocation2 + $0x178] sm:$0xf] %vm1296_vm7, %v2217_v54  ;;  %2571 = vst [vmem:[#allocation2 + $0x17c] sm:$0x1] %v2570_v6  ;;  %v3224_v1 = vrot.slane %v3222_v2, 4  ;;  %v3227_v36 = vrot.slane %v3225_v45, 5  ;;  %v1159_v61 = vmul.f32 %v17486_v10, %v17361_v55  ;;  %v1157_v23 = vmul.f32 %v17486_v10, %v17365_v39 }
 0x1fc   : > { %v3235_v25 = vshrl.u32 %v2638_v58, 16  ;;  %v3241_v20 = vshll.u32 %v2680_v49, 16  ;;  %v3220_v44 = vsel %vm16822_vm10, %v3215_v62, %v3219_v14  ;;  %v3233_v30 = vrot.slane %v3231_v22, 5  ;;  %v2681_v54 = vld [vmem:[#allocation2 + $0x134] sm:$0x1] }
 0x1fd   : > { %v1417_v18 = vsel %vm16742_vm4, 0, %v1416_v16  ;;  %v13536_v38 = vcombine.low %v3210_v12, %v3220_v44  ;;  %v3228_v35 = vor.u32 %v3227_v36, %v3224_v1  ;;  %v1230_v7 = vadd.f32 %v17475_v9, %v1159_v61 }
 0x1fe   : > { %v3237_v57 = vrot.slane %v3235_v25, 4  ;;  %v3243_v43 = vrot.slane %v3241_v20, 5  ;;  %1418 = vst [vmem:[#allocation2 + $0x198] sm:$0x1] %v1417_v18  ;;  %v1414_v52 = vsel %vm16742_vm4, 0, %v1413_v26  ;;  %v1160_v55 = vmul.f32 %v17486_v10, %v17368_v53 }
 0x1ff   : > { %14917 = vmatmul.mubr.msk.bf16.gmra.mrb[104].mxu0 %vm700_vm1, %v13536_v38  ;;  %v3229_v3 = vrot.slane %v3228_v35, 4  ;;  %1415 = vst [vmem:[#allocation2 + $0x18c] sm:$0x1] %v1414_v52  ;;  %v1527_v31 = vsel %vm16751_vm6, 0, %v1526_v13  ;;  %v1158_v37 = vmul.f32 %v17486_v10, %v17370_v34  ;;  %v1294_v27 = vmax.f32 %v1230_v7, 0.0 }
 0x200   : > { %v3238_v4 = vor.u32 %v3237_v57, %v3233_v30  ;;  %v1228_v39 = vadd.f32 %v17475_v9, %v1157_v23  ;;  %v1231_v29 = vadd.f32 %v17475_v9, %v1160_v55  ;;  %1528 = vst [vmem:[#allocation2 + $0x1a0] sm:$0x1] %v1527_v31  ;;  %v1524_v53 = vsel %vm16751_vm6, 0, %v1523_v24  ;;  %v2641_v31 = vld [vmem:[#allocation2 + $0x138] sm:$0xf] }
 0x201   : > { %v3234_v11 = vsel %vm16822_vm10, %v3229_v3, %v3233_v30  ;;  %v1229_v0 = vadd.f32 %v17475_v9, %v1158_v37  ;;  %1525 = vst [vmem:[#allocation2 + $0x194] sm:$0x1] %v1524_v53  ;;  %v3246_v41 = vshrl.u32 %v2639_v42, 16  ;;  %v14370_v8 = vpack.c.bf16 %v1294_v27, %v1294_v27  ;;  %v16175_v58 = vld [vmem:[#allocation2 + $0x180] sm:$0xff]   ;;  %v2642_v37 = vld [vmem:[#allocation2 + $0x13c] sm:$0xf] }
 0x202   : > { %v3239_v56 = vrot.slane %v3238_v4, 4  ;;  %v1292_v34 = vmax.f32 %v1228_v39, 0.0  ;;  %v1295_v10 = vmax.f32 %v1231_v29, 0.0  ;;  %v3249_v47 = vshll.u32 %v2639_v42, 16  ;;  %12778 = vrot.lane.b32.xlu0 %v1228_v39, %s16546_s19  ;;  %v16174_v19 = vld [vmem:[#allocation2 + $0x174] sm:$0xff]  }
 0x203   : > { %v1293_v40 = vmax.f32 %v1229_v0, 0.0  ;;  %v3248_v51 = vrot.slane %v3246_v41, 4  ;;  %v3255_v12 = vshll.u32 %v2640_v60, 16  ;;  %12780 = vrot.lane.b32.xlu1 %v1229_v0, %s16546_s19  ;;  %v2254_v9 = vshrl.u32 %v14370_v8, 16  ;;  %15130 = vmatprep.mubr.msk.bf16.mxu1 %vm700_vm1, %v16174_v19 }
 0x204   : > { %v3244_v21 = vsel %vm16822_vm10, %v3239_v56, %v3243_v43  ;;  %v2257_v50 = vshll.u32 %v14370_v8, 16  ;;  %v14368_v15 = vpack.c.bf16 %v1292_v34, %v1292_v34  ;;  %v14371_v14 = vpack.c.bf16 %v1295_v10, %v1295_v10  ;;  %15131 = vmatmul.mubr.msk.bf16.gmra.mrb[28].mxu1 %vm700_vm1, %v16175_v58  ;;  %v2644_v8 = vld [vmem:[#allocation2 + $0x148] sm:$0xf] }
 0x205   : > { %v13537_v17 = vcombine.low %v3234_v11, %v3244_v21  ;;  %v14369_v49 = vpack.c.bf16 %v1293_v40, %v1293_v40  ;;  %v3251_v5 = vrot.slane %v3249_v47, 5  ;;  %v17724_v63 = vrot.slane %v3255_v12, 5  ;;  %v2586_v62 = vld [vmem:[#allocation2 + $0x198] sm:$0xf]  ;;  %v2643_v11 = vld [vmem:[#allocation2 + $0x144] sm:$0xf] }
 0x206   : > { %v2256_v2 = vrot.slane %v2254_v9, 7  ;;  %v2237_v45 = vshrl.u32 %v14368_v15, 16  ;;  %v2240_v16 = vshll.u32 %v14368_v15, 16  ;;  %v3259_v6 = vshrl.u32 %v2640_v60, 16  ;;  %12782 = vrot.lane.b32.xlu0 %v1230_v7, %s16546_s19  ;;  %v2579_v30 = vld [vmem:[#allocation2 + $0x18c] sm:$0xf] }
 0x207   : > { %14920 = vmatprep.mubr.msk.bf16.mxu0 %vm700_vm1, %v13537_v17  ;;  %v2262_v22 = vshrl.u32 %v14371_v14, 16  ;;  %v2265_v26 = vshll.u32 %v14371_v14, 16  ;;  %v2245_v1 = vshrl.u32 %v14369_v49, 16  ;;  %v2248_v36 = vshll.u32 %v14369_v49, 16  ;;  %12784 = vrot.lane.b32.xlu1 %v1231_v29, %s16546_s19  ;;  %v2590_v7 = vld [vmem:[#allocation2 + $0x1a0] sm:$0x1] }
 0x208   : > { %v2259_v25 = vor.u32 %v2257_v50, %v2256_v2  ;;  %v2260_v20 = vrot.slane %v2256_v2, 4  ;;  %v2239_v13 = vrot.slane %v2237_v45, 7  ;;  %v3252_v44 = vor.u32 %v3251_v5, %v3248_v51  ;;  %v2583_v23 = vld [vmem:[#allocation2 + $0x194] sm:$0x1]  ;;  %v2682_v60 = vld [vmem:[#allocation2 + $0x140] sm:$0x1] }
 0x209   : > { %v2264_v61 = vrot.slane %v2262_v22, 7  ;;  %v2247_v18 = vrot.slane %v2245_v1, 7  ;;  %v3261_v24 = vrot.slane %v3259_v6, 4  ;;  %v3265_v38 = vshll.u32 %v2681_v54, 16  ;;  %v2645_v21 = vld [vmem:[#allocation2 + $0x150] sm:$0xf] }
 0x20a   : > { %v2587_v35 = vsel %vm16892_vm12, %v2259_v25, %v2586_v62  ;;  %v2242_v57 = vor.u32 %v2240_v16, %v2239_v13  ;;  %v2243_v43 = vrot.slane %v2239_v13, 4  ;;  %v3253_v52 = vrot.slane %v3252_v44, 4  ;;  %v2683_v15 = vld [vmem:[#allocation2 + $0x14c] sm:$0x1]  ;;  %v2646_v2 = vld [vmem:[#allocation2 + $0x154] sm:$0xf] }
 0x20b   : > { %2588 = vst [vmem:[#allocation2 + $0x198] sm:$0xf] %v2587_v35  ;;  %v2267_v55 = vor.u32 %v2265_v26, %v2264_v61  ;;  %v2269_v42 = vrot.slane %v2264_v61, 4  ;;  %v2250_v3 = vor.u32 %v2248_v36, %v2247_v18  ;;  %v2252_v4 = vrot.slane %v2247_v18, 4  ;;  %v2684_v26 = vld [vmem:[#allocation2 + $0x158] sm:$0x1] }
 0x20c   : > { %v2580_v27 = vsel %vm16892_vm12, %v2242_v57, %v2579_v30  ;;  %v3258_v39 = vsel %vm16822_vm10, %v3253_v52, %v17724_v63  ;;  %v3262_v29 = vor.u32 %v3261_v24, %v17724_v63  ;;  %v3267_v53 = vrot.slane %v3265_v38, 5  ;;  %v2647_v30 = vld [vmem:[#allocation2 + $0x15c] sm:$0xf]  ;;  %s463_s19 = sand.u32 1, %s16535_s16  }
 0x20d   : > { %2581 = vst [vmem:[#allocation2 + $0x18c] sm:$0xf] %v2580_v27  ;;  %v2268_v56 = vsel %vm16899_vm13, %v2260_v20, %v2267_v55  ;;  %v2591_v0 = vsel %vm16742_vm4, %v2269_v42, %v2590_v7  ;;  %v2251_v48 = vsel %vm16899_vm13, %v2243_v43, %v2250_v3  ;;  %v2584_v41 = vsel %vm16742_vm4, %v2252_v4, %v2583_v23  ;;  %v2648_v4 = vld [vmem:[#allocation2 + $0x160] sm:$0xf]  ;;  %s13380_s28 = sshll.u32 %s463_s19, 8  ;;  %s20164_s11 = scalar_lea.sflag [#allocation5], %s463_s19 }
 0x20e   : > { %2589 = vst.msk [vmem:[#allocation2 + $0x19c] sm:$0xf] %vm1296_vm7, %v2268_v56  ;;  %2592 = vst [vmem:[#allocation2 + $0x1a0] sm:$0x1] %v2591_v0  ;;  %v3263_v34 = vrot.slane %v3262_v29, 4  ;;  %v3270_v10 = vshrl.u32 %v2641_v31, 16 }
 0x20f   : > { %2582 = vst.msk [vmem:[#allocation2 + $0x190] sm:$0xf] %vm1296_vm7, %v2251_v48  ;;  %2585 = vst [vmem:[#allocation2 + $0x194] sm:$0x1] %v2584_v41  ;;  %v3273_v47 = vshll.u32 %v2641_v31, 16  ;;  %v3279_v19 = vshll.u32 %v2642_v37, 16 }
 0x210   : > { %v3283_v40 = vshrl.u32 %v2642_v37, 16  ;;  %v3289_v51 = vshll.u32 %v2682_v60, 16  ;;  %v3294_v12 = vshrl.u32 %v2643_v11, 16  ;;  %v3297_v59 = vshll.u32 %v2643_v11, 16  ;;  %v2685_v0 = vld [vmem:[#allocation2 + $0x164] sm:$0x1] }
 0x211   : > { %v3268_v58 = vsel %vm16822_vm10, %v3263_v34, %v3267_v53  ;;  %v3272_v17 = vrot.slane %v3270_v10, 4  ;;  %v3275_v9 = vrot.slane %v3273_v47, 5  ;;  %v3281_v50 = vrot.slane %v3279_v19, 5  ;;  %v2649_v53 = vld [vmem:[#allocation2 + $0x168] sm:$0xf]  ;;  %s19766_s29 = scalar_lea.vmem [#allocation4], %s13380_s28 }
 0x212   : > { %v13538_v14 = vcombine.low %v3258_v39, %v3268_v58  ;;  %v3285_v49 = vrot.slane %v3283_v40, 4  ;;  %v3291_v5 = vrot.slane %v3289_v51, 5  ;;  %v3296_v63 = vrot.slane %v3294_v12, 4  ;;  %v2650_v47 = vld [vmem:[#allocation2 + $0x16c] sm:$0xf]  ;;  %s13314_s28 = sshll.u32 %s19766_s29, 4  ;;  %s20154_s28 = int_to_ptr.vmem [resolvable:$true] %s13314_s28 }
 0x213   : > { %v3276_v45 = vor.u32 %v3275_v9, %v3272_v17  ;;  %v3299_v16 = vrot.slane %v3297_v59, 5  ;;  %v3303_v54 = vshll.u32 %v2644_v8, 16  ;;  %v3307_v6 = vshrl.u32 %v2644_v8, 16  ;;  %v2686_v9 = vld [vmem:[#allocation2 + $0x170] sm:$0x1]  ;;  %s16481_s26 = scalar_lea.vmem %s20154_s28, 4096  ;;  %p16488_p0 = scmp.lt.s32.totalorder %s20154_s28, %s16486_s30 }
 0x214   : > { %14921 = vmatmul.mubr.msk.bf16.gmra.mrb[108].mxu0 %vm700_vm1, %v13538_v14  ;;  %v3286_v62 = vor.u32 %v3285_v49, %v3281_v50  ;;  %v3313_v22 = vshll.u32 %v2683_v15, 16  ;;  %v3318_v1 = vshrl.u32 %v2645_v21, 16  ;;  %v3321_v36 = vshll.u32 %v2645_v21, 16  ;;  %p16482_p11 = scmp.ne.s32.totalorder %s20154_s28, %s16481_s26  ;;  %p16489_p1 = scmp.lt.s32.totalorder %s16487_s21, %s16481_s26 }
 0x215   : > { %v3277_v25 = vrot.slane %v3276_v45, 4  ;;  %v3300_v20 = vor.u32 %v3299_v16, %v3296_v63  ;;  %v3305_v13 = vrot.slane %v3303_v54, 5  ;;  %v3309_v44 = vrot.slane %v3307_v6, 4  ;;  %v16177_v31 = vld [vmem:[#allocation2 + $0x198] sm:$0xff]  }
 0x216   : > { %v3287_v61 = vrot.slane %v3286_v62, 4  ;;  %v3315_v18 = vrot.slane %v3313_v22, 5  ;;  %v3320_v24 = vrot.slane %v3318_v1, 4  ;;  %v3323_v38 = vrot.slane %v3321_v36, 5  ;;  %v16176_v23 = vld [vmem:[#allocation2 + $0x18c] sm:$0xff]   ;;  %p16483_p12 = pnand %p16482_p11, %p16670_p5  ;;  %p16490_p2 = por %p16489_p1, %p16488_p0 }
 0x217   : > { %v3282_v35 = vsel %vm16822_vm10, %v3277_v25, %v3281_v50  ;;  %v3301_v57 = vrot.slane %v3300_v20, 4  ;;  %v3310_v43 = vor.u32 %v3309_v44, %v3305_v13  ;;  %v3327_v7 = vshll.u32 %v2646_v2, 16  ;;  %15134 = vmatprep.mubr.msk.bf16.mxu1 %vm700_vm1, %v16176_v23 }
 0x218   : > { %v3292_v52 = vsel %vm16822_vm10, %v3287_v61, %v3291_v5  ;;  %v3324_v55 = vor.u32 %v3323_v38, %v3320_v24  ;;  %v3331_v42 = vshrl.u32 %v2646_v2, 16  ;;  %v3337_v3 = vshll.u32 %v2684_v26, 16  ;;  %15135 = vmatmul.mubr.msk.bf16.gmra.mrb[32].mxu1 %vm700_vm1, %v16177_v31  ;;  %v2651_v5 = vld [vmem:[#allocation2 + $0x174] sm:$0xf]  ;;  %v2652_v26 = vld [vmem:[#allocation2 + $0x178] sm:$0xf]  ;;  %p16484_p13 = pneg %p16483_p12 }
 0x219   : > { %v13539_v37 = vcombine.low %v3282_v35, %v3292_v52  ;;  %v3306_v27 = vsel %vm16822_vm10, %v3301_v57, %v3305_v13  ;;  %v3311_v39 = vrot.slane %v3310_v43, 4  ;;  %v3329_v29 = vrot.slane %v3327_v7, 5  ;;  %v2687_v35 = vld [vmem:[#allocation2 + $0x17c] sm:$0x1]  ;;  %v2653_v43 = vld [vmem:[#allocation2 + $0x180] sm:$0xf] }
 0x21a   : > { %v3325_v60 = vrot.slane %v3324_v55, 4  ;;  %v3333_v11 = vrot.slane %v3331_v42, 4  ;;  %v3339_v56 = vrot.slane %v3337_v3, 5  ;;  %v3342_v48 = vshrl.u32 %v2647_v30, 16  ;;  %v2654_v42 = vld [vmem:[#allocation2 + $0x184] sm:$0xf]  ;;  %p16491_p3 = pnand %p16490_p2, %p16484_p13 }
 0x21b   : > { %14924 = vmatprep.mubr.msk.bf16.mxu0 %vm700_vm1, %v13539_v37  ;;  %v3316_v41 = vsel %vm16822_vm10, %v3311_v39, %v3315_v18  ;;  %v3345_v8 = vshll.u32 %v2647_v30, 16  ;;  %v3351_v34 = vshll.u32 %v2648_v4, 16  ;;  %v3355_v10 = vshrl.u32 %v2648_v4, 16 }
 0x21c   : > { %v13540_v19 = vcombine.low %v3306_v27, %v3316_v41  ;;  %v3330_v21 = vsel %vm16822_vm10, %v3325_v60, %v3329_v29  ;;  %v3334_v40 = vor.u32 %v3333_v11, %v3329_v29  ;;  %v3344_v51 = vrot.slane %v3342_v48, 4  ;;  %v6046_v27 = vld [vmem:[#allocation2 + $0xc] sm:$0xf]  ;;  %v2688_v48 = vld [vmem:[#allocation2 + $0x188] sm:$0x1] }
 0x21d   : > { %v3347_v12 = vrot.slane %v3345_v8, 5  ;;  %v3353_v59 = vrot.slane %v3351_v34, 5  ;;  %v3357_v58 = vrot.slane %v3355_v10, 4  ;;  %v3361_v17 = vshll.u32 %v2685_v0, 16 }
 0x21e   : > { %14925 = vmatmul.mubr.msk.bf16.gmra.mrb[112].mxu0 %vm700_vm1, %v13540_v19  ;;  %v3335_v50 = vrot.slane %v3334_v40, 4  ;;  %v3366_v15 = vshrl.u32 %v2649_v53, 16  ;;  %v3369_v14 = vshll.u32 %v2649_v53, 16  ;;  %v3375_v49 = vshll.u32 %v2650_v47, 16  ;;  %v6047_v19 = vld [vmem:[#allocation2 + $0x10] sm:$0xf] }
 0x21f   : > { %v3348_v63 = vor.u32 %v3347_v12, %v3344_v51  ;;  %v3358_v2 = vor.u32 %v3357_v58, %v3353_v59  ;;  %v3363_v45 = vrot.slane %v3361_v17, 5  ;;  %v3379_v16 = vshrl.u32 %v2650_v47, 16 }
 0x220   : > { %v3340_v54 = vsel %vm16822_vm10, %v3335_v50, %v3339_v56  ;;  %v3368_v6 = vrot.slane %v3366_v15, 4  ;;  %v3371_v62 = vrot.slane %v3369_v14, 5  ;;  %v3377_v22 = vrot.slane %v3375_v49, 5  ;;  %v2655_v15 = vld [vmem:[#allocation2 + $0x18c] sm:$0xf] }
 0x221   : > { %v13541_v1 = vcombine.low %v3330_v21, %v3340_v54  ;;  %v3349_v36 = vrot.slane %v3348_v63, 4  ;;  %v3359_v25 = vrot.slane %v3358_v2, 4  ;;  %v3381_v20 = vrot.slane %v3379_v16, 4 }
 0x222   : > { %v3372_v13 = vor.u32 %v3371_v62, %v3368_v6  ;;  %v3385_v44 = vshll.u32 %v2686_v9, 16  ;;  %v3390_v30 = vshrl.u32 %v2651_v5, 16  ;;  %v3393_v61 = vshll.u32 %v2651_v5, 16 }
 0x223   : > { %14928 = vmatprep.mubr.msk.bf16.mxu0 %vm700_vm1, %v13541_v1  ;;  %v3354_v18 = vsel %vm16822_vm10, %v3349_v36, %v3353_v59  ;;  %v3364_v24 = vsel %vm16822_vm10, %v3359_v25, %v3363_v45  ;;  %v3382_v38 = vor.u32 %v3381_v20, %v3377_v22  ;;  %v3399_v57 = vshll.u32 %v2652_v26, 16  ;;  %v6048_v59 = vld [vmem:[#allocation2 + $0x14] sm:$0x1]  ;;  %v2656_v1 = vld [vmem:[#allocation2 + $0x190] sm:$0xf] }
 0x224   : > { %v13542_v7 = vcombine.low %v3354_v18, %v3364_v24  ;;  %v3373_v23 = vrot.slane %v3372_v13, 4  ;;  %v3387_v52 = vrot.slane %v3385_v44, 5  ;;  %v3392_v55 = vrot.slane %v3390_v30, 4  ;;  %v6049_v44 = vld [vmem:[#allocation2 + $0x18] sm:$0xf] }
 0x225   : > { %v3383_v3 = vrot.slane %v3382_v38, 4  ;;  %v3395_v4 = vrot.slane %v3393_v61, 5  ;;  %v3401_v31 = vrot.slane %v3399_v57, 5  ;;  %v3403_v37 = vshrl.u32 %v2652_v26, 16  ;;  %v2689_v57 = vld [vmem:[#allocation2 + $0x194] sm:$0x1] }
 0x226   : > { %14929 = vmatmul.mubr.msk.bf16.gmra.mrb[116].mxu0 %vm700_vm1, %v13542_v7  ;;  %v3378_v39 = vsel %vm16822_vm10, %v3373_v23, %v3377_v22  ;;  %v3409_v29 = vshll.u32 %v2687_v35, 16  ;;  %v3414_v53 = vshrl.u32 %v2653_v43, 16  ;;  %v3417_v60 = vshll.u32 %v2653_v43, 16 }
 0x227   : > { %v3388_v11 = vsel %vm16822_vm10, %v3383_v3, %v3387_v52  ;;  %v3396_v56 = vor.u32 %v3395_v4, %v3392_v55  ;;  %v3405_v0 = vrot.slane %v3403_v37, 4  ;;  %v3423_v41 = vshll.u32 %v2654_v42, 16  ;;  %v6050_v3 = vld [vmem:[#allocation2 + $0x1c] sm:$0xf] }
 0x228   : > { %v13543_v8 = vcombine.low %v3378_v39, %v3388_v11  ;;  %v3411_v34 = vrot.slane %v3409_v29, 5  ;;  %v3416_v10 = vrot.slane %v3414_v53, 4  ;;  %v3419_v47 = vrot.slane %v3417_v60, 5 }
 0x229   : > { %v3397_v21 = vrot.slane %v3396_v56, 4  ;;  %v3406_v40 = vor.u32 %v3405_v0, %v3401_v31  ;;  %v3425_v51 = vrot.slane %v3423_v41, 5  ;;  %v3427_v12 = vshrl.u32 %v2654_v42, 16  ;;  %v6051_v56 = vld [vmem:[#allocation2 + $0x20] sm:$0x1] }
 0x22a   : > { %14932 = vmatprep.mubr.msk.bf16.mxu0 %vm700_vm1, %v13543_v8  ;;  %v3420_v58 = vor.u32 %v3419_v47, %v3416_v10  ;;  %v3433_v17 = vshll.u32 %v2688_v48, 16  ;;  %v6143_v9 = vshrl.u32 %v6046_v27, 16  ;;  %v6146_v50 = vshll.u32 %v6046_v27, 16 }
 0x22b   : > { %v3402_v14 = vsel %vm16822_vm10, %v3397_v21, %v3401_v31  ;;  %v3407_v49 = vrot.slane %v3406_v40, 4  ;;  %v3429_v5 = vrot.slane %v3427_v12, 4  ;;  %v6152_v63 = vshll.u32 %v6047_v19, 16 }
 0x22c   : > { %v3421_v2 = vrot.slane %v3420_v58, 4  ;;  %v3435_v45 = vrot.slane %v3433_v17, 5  ;;  %v6145_v16 = vrot.slane %v6143_v9, 4  ;;  %v6148_v54 = vrot.slane %v6146_v50, 5  ;;  %v16242_v50 = vld [vmem:[%s20209_s4 + $0xa] sm:$0x3] }
 0x22d   : > { %v3412_v6 = vsel %vm16822_vm10, %v3407_v49, %v3411_v34  ;;  %v3430_v62 = vor.u32 %v3429_v5, %v3425_v51  ;;  %v6154_v22 = vrot.slane %v6152_v63, 5  ;;  %v6156_v26 = vshrl.u32 %v6047_v19, 16  ;;  %v6052_v19 = vld [vmem:[#allocation2 + $0x24] sm:$0xf]  ;;  %v6054_v5 = vld [vmem:[#allocation2 + $0x2c] sm:$0x1] }
 0x22e   : > { %v13544_v36 = vcombine.low %v3402_v14, %v3412_v6  ;;  %v3426_v25 = vsel %vm16822_vm10, %v3421_v2, %v3425_v51  ;;  %v6149_v20 = vor.u32 %v6148_v54, %v6145_v16  ;;  %v6162_v13 = vshll.u32 %v6048_v59, 16  ;;  %v6053_v59 = vld [vmem:[#allocation2 + $0x28] sm:$0xf] }
 0x22f   : > { %v3431_v30 = vrot.slane %v3430_v62, 4  ;;  %v6158_v61 = vrot.slane %v6156_v26, 4  ;;  %v3438_v18 = vshrl.u32 %v2655_v15, 16  ;;  %v3441_v24 = vshll.u32 %v2655_v15, 16 }
 0x230   : > { %14933 = vmatmul.mubr.msk.bf16.gmra.mrb[120].mxu0 %vm700_vm1, %v13544_v36  ;;  %v6150_v38 = vrot.slane %v6149_v20, 4  ;;  %v6164_v35 = vrot.slane %v6162_v13, 5  ;;  %v3447_v43 = vshll.u32 %v2656_v1, 16  ;;  %v3451_v7 = vshrl.u32 %v2656_v1, 16  ;;  %v6055_v36 = vld [vmem:[#allocation2 + $0x30] sm:$0xf] }
 0x231   : > { %v3436_v23 = vsel %vm16822_vm10, %v3431_v30, %v3435_v45  ;;  %v6159_v52 = vor.u32 %v6158_v61, %v6154_v22  ;;  %v3440_v55 = vrot.slane %v3438_v18, 4  ;;  %v3443_v42 = vrot.slane %v3441_v24, 5 }
 0x232   : > { %v13545_v4 = vcombine.low %v3426_v25, %v3436_v23  ;;  %v6155_v31 = vsel %vm16822_vm10, %v6150_v38, %v6154_v22  ;;  %v3449_v37 = vrot.slane %v3447_v43, 5  ;;  %v3453_v27 = vrot.slane %v3451_v7, 4  ;;  %v16244_v38 = vld [vmem:[#allocation2] sm:$0xf]  ;;  %v6056_v43 = vld [vmem:[#allocation2 + $0x34] sm:$0xf] }
 0x233   : > { %v6160_v39 = vrot.slane %v6159_v52, 4  ;;  %v3444_v29 = vor.u32 %v3443_v42, %v3440_v55  ;;  %v3457_v53 = vshll.u32 %v2689_v57, 16  ;;  %v6167_v60 = vshrl.u32 %v6049_v44, 16  ;;  %v6057_v7 = vld [vmem:[#allocation2 + $0x38] sm:$0x1] }
 0x234   : > { %14936 = vmatprep.mubr.msk.bf16.mxu0 %vm700_vm1, %v13545_v4  ;;  %v3454_v11 = vor.u32 %v3453_v27, %v3449_v37  ;;  %v6170_v0 = vshll.u32 %v6049_v44, 16  ;;  %v6176_v48 = vshll.u32 %v6050_v3, 16  ;;  %v6180_v41 = vshrl.u32 %v6050_v3, 16  ;;  %v16243_v44 = vld [vmem:[%s20209_s4] sm:$0x3] }
 0x235   : > { %v6165_v8 = vsel %vm16822_vm10, %v6160_v39, %v6164_v35  ;;  %v3445_v34 = vrot.slane %v3444_v29, 4  ;;  %v3459_v10 = vrot.slane %v3457_v53, 5  ;;  %v6169_v47 = vrot.slane %v6167_v60, 4  ;;  %v16245_v35 = vld [vmem:[#allocation2 + $0x4] sm:$0xf] }
 0x236   : > { %v13806_v21 = vcombine.low %v6155_v31, %v6165_v8  ;;  %v3455_v40 = vrot.slane %v3454_v11, 4  ;;  %v6172_v51 = vrot.slane %v6170_v0, 5  ;;  %v6178_v12 = vrot.slane %v6176_v48, 5  ;;  %v16246_v55 = vld [vmem:[#allocation2 + $0xc] sm:$0xf] }
 0x237   : > { %v3450_v58 = vsel %vm16822_vm10, %v3445_v34, %v3449_v37  ;;  %v6182_v17 = vrot.slane %v6180_v41, 4  ;;  %v6186_v9 = vshll.u32 %v6051_v56, 16  ;;  %v8007_v15 = vsel %vm797_vm0, %v16242_v50, 0  ;;  %v16247_v42 = vld [vmem:[#allocation2 + $0x10] sm:$0xf] }
 0x238   : > { %15140 = vmatprep.mubr.msk.bf16.mxu1 %vm700_vm1, %v13806_v21  ;;  %v3460_v14 = vsel %vm16822_vm10, %v3455_v40, %v3459_v10  ;;  %v6173_v49 = vor.u32 %v6172_v51, %v6169_v47  ;;  %v6191_v63 = vshrl.u32 %v6052_v19, 16  ;;  %v6194_v2 = vshll.u32 %v6052_v19, 16  ;;  %v6058_v29 = vld [vmem:[#allocation2 + $0x3c] sm:$0xf]  ;;  %v6059_v0 = vld [vmem:[#allocation2 + $0x40] sm:$0xf] }
 0x239   : > { %v13546_v45 = vcombine.low %v3450_v58, %v3460_v14  ;;  %v6183_v16 = vor.u32 %v6182_v17, %v6178_v12  ;;  %v6188_v54 = vrot.slane %v6186_v9, 5  ;;  %v6200_v6 = vshll.u32 %v6053_v59, 16  ;;  %v16248_v34 = vld [vmem:[#allocation2 + $0x18] sm:$0xf]  ;;  %v16249_v10 = vld [vmem:[#allocation2 + $0x1c] sm:$0xf] }
 0x23a   : > { %v6174_v62 = vrot.slane %v6173_v49, 4  ;;  %v6193_v22 = vrot.slane %v6191_v63, 4  ;;  %v6196_v26 = vrot.slane %v6194_v2, 5  ;;  %v6204_v1 = vshrl.u32 %v6053_v59, 16  ;;  %v6060_v51 = vld [vmem:[#allocation2 + $0x44] sm:$0x1] }
 0x23b   : > { %14937 = vmatmul.mubr.msk.bf16.gmra.mrb[124].mxu0 %vm700_vm1, %v13546_v45  ;;  %v6184_v25 = vrot.slane %v6183_v16, 4  ;;  %v6202_v20 = vrot.slane %v6200_v6, 5  ;;  %v6210_v13 = vshll.u32 %v6054_v5, 16  ;;  %v4204_v30 = vsel %vm797_vm0, %v16243_v44, 0  ;;  %v6061_v50 = vld [vmem:[#allocation2 + $0x48] sm:$0xf] }
 0x23c   : > { %v6179_v61 = vsel %vm16822_vm10, %v6174_v62, %v6178_v12  ;;  %v6197_v18 = vor.u32 %v6196_v26, %v6193_v22  ;;  %v6206_v24 = vrot.slane %v6204_v1, 4  ;;  %14941 = vmatpush3.bf16.msra.mxu0 %v4204_v30  ;;  %v13579_v57 = vcombine.low %v16244_v38, %v16245_v35  ;;  %v16250_v22 = vld [vmem:[#allocation2 + $0x24] sm:$0xf]  ;;  %v16251_v26 = vld [vmem:[#allocation2 + $0x28] sm:$0xf] }
 0x23d   : > { %v6189_v23 = vsel %vm16822_vm10, %v6184_v25, %v6188_v54  ;;  %v6212_v52 = vrot.slane %v6210_v13, 5  ;;  %v13580_v3 = vcombine.low %v16246_v55, %v16247_v42  ;;  %v6215_v4 = vshrl.u32 %v6055_v36, 16  ;;  %v6062_v54 = vld [vmem:[#allocation2 + $0x4c] sm:$0xf]  ;;  %v6063_v44 = vld [vmem:[#allocation2 + $0x50] sm:$0x1] }
 0x23e   : > { %v13807_v31 = vcombine.low %v6179_v61, %v6189_v23  ;;  %v6198_v37 = vrot.slane %v6197_v18, 4  ;;  %v6207_v27 = vor.u32 %v6206_v24, %v6202_v20  ;;  %14942 = vmatprep.mubr.msk.bf16.mxu0 %vm700_vm1, %v13579_v57  ;;  %v6218_v39 = vshll.u32 %v6055_v36, 16  ;;  %v6064_v35 = vld [vmem:[#allocation2 + $0x54] sm:$0xf]  ;;  %v6065_v57 = vld [vmem:[#allocation2 + $0x58] sm:$0xf] }
 0x23f   : > { %v6217_v53 = vrot.slane %v6215_v4, 4  ;;  %v6224_v60 = vshll.u32 %v6056_v43, 16  ;;  %v6228_v11 = vshrl.u32 %v6056_v43, 16  ;;  %v6234_v56 = vshll.u32 %v6057_v7, 16  ;;  %v13967_v55 = vld [vmem:[%s20209_s4 + $0xc] sm:$0x3] }
 0x240   : > { %15141 = vmatmul.mubr.msk.bf16.vlgmr.msra.gmra.mrb[36].mxu1 %vm700_vm1, %v13807_v31  ;;  %v6203_v48 = vsel %vm16822_vm10, %v6198_v37, %v6202_v20  ;;  %v6208_v41 = vrot.slane %v6207_v27, 4  ;;  %v6220_v8 = vrot.slane %v6218_v39, 5  ;;  %v13581_v47 = vcombine.low %v16248_v34, %v16249_v10  ;;  %v16252_v31 = vld [vmem:[#allocation2 + $0x30] sm:$0xf]  ;;  %v16253_v37 = vld [vmem:[#allocation2 + $0x34] sm:$0xf] }
 0x241   : > { %15205 = vmatpush3.bf16.msra.mxu1 %v8007_v15  ;;  %v6226_v19 = vrot.slane %v6224_v60, 5  ;;  %v6230_v21 = vrot.slane %v6228_v11, 4  ;;  %v6236_v40 = vrot.slane %v6234_v56, 5  ;;  %v6239_v12 = vshrl.u32 %v6058_v29, 16  ;;  %v6066_v60 = vld [vmem:[#allocation2 + $0x5c] sm:$0x1] }
 0x242   : > { %v6213_v59 = vsel %vm16822_vm10, %v6208_v41, %v6212_v52  ;;  %v6221_v58 = vor.u32 %v6220_v8, %v6217_v53  ;;  %v6242_v17 = vshll.u32 %v6058_v29, 16  ;;  %v6248_v9 = vshll.u32 %v6059_v0, 16  ;;  %16077 = vmatprep.subr.msk.bf16.mxu1 %vm797_vm0, %v13967_v55  ;;  %v6067_v8 = vld [vmem:[#allocation2 + $0x60] sm:$0xf]  ;;  %v6072_v55 = vld [vmem:[#allocation2 + $0x74] sm:$0x1] }
 0x243   : > { %v13808_v14 = vcombine.low %v6203_v48, %v6213_v59  ;;  %14943 = vmatmul.mubr.msk.bf16.vlgmr.msra.gmra.mrb[64].mxu0 %vm700_vm1, %v13580_v3  ;;  %v6231_v49 = vor.u32 %v6230_v21, %v6226_v19  ;;  %v6241_v5 = vrot.slane %v6239_v12, 4  ;;  %v6252_v63 = vshrl.u32 %v6059_v0, 16  ;;  %v6068_v59 = vld [vmem:[#allocation2 + $0x64] sm:$0xf] }
 0x244   : > { %v6222_v2 = vrot.slane %v6221_v58, 4  ;;  %14946 = vmatprep.mubr.msk.bf16.mxu0 %vm700_vm1, %v13581_v47  ;;  %v6244_v15 = vrot.slane %v6242_v17, 5  ;;  %v6250_v45 = vrot.slane %v6248_v9, 5  ;;  %v6258_v16 = vshll.u32 %v6060_v51, 16  ;;  %v16254_v9 = vld [vmem:[#allocation2 + $0x3c] sm:$0xf] }
 0x245   : > { %15144 = vmatprep.mubr.msk.bf16.mxu1 %vm700_vm1, %v13808_v14  ;;  %v6232_v6 = vrot.slane %v6231_v49, 4  ;;  %v6254_v62 = vrot.slane %v6252_v63, 4  ;;  %v13582_v1 = vcombine.low %v16250_v22, %v16251_v26  ;;  %v6263_v36 = vshrl.u32 %v6061_v50, 16  ;;  %v6069_v49 = vld [vmem:[#allocation2 + $0x68] sm:$0x1] }
 0x246   : > { %v6227_v25 = vsel %vm16822_vm10, %v6222_v2, %v6226_v19  ;;  %v6245_v20 = vor.u32 %v6244_v15, %v6241_v5  ;;  %v6260_v13 = vrot.slane %v6258_v16, 5  ;;  %v6266_v30 = vshll.u32 %v6061_v50, 16  ;;  %v16255_v50 = vld [vmem:[#allocation2 + $0x40] sm:$0xf]  ;;  %v6070_v16 = vld [vmem:[#allocation2 + $0x6c] sm:$0xf] }
 0x247   : > { %v6237_v61 = vsel %vm16822_vm10, %v6232_v6, %v6236_v40  ;;  %v6255_v18 = vor.u32 %v6254_v62, %v6250_v45  ;;  %v6265_v24 = vrot.slane %v6263_v36, 4  ;;  %v6272_v38 = vshll.u32 %v6062_v54, 16  ;;  %v13675_v26 = vld [vmem:[%s20209_s4 + $0x4] sm:$0x3] }
 0x248   : > { %v13809_v43 = vcombine.low %v6227_v25, %v6237_v61  ;;  %v6246_v7 = vrot.slane %v6245_v20, 4  ;;  %v6268_v23 = vrot.slane %v6266_v30, 5  ;;  %v6276_v52 = vshrl.u32 %v6062_v54, 16  ;;  %16072 = vmatprep.subr.msk.bf16.mxu0 %vm797_vm0, %v13675_v26 }
 0x249   : > { %v6256_v42 = vrot.slane %v6255_v18, 4  ;;  %v6274_v3 = vrot.slane %v6272_v38, 5  ;;  %v6282_v4 = vshll.u32 %v6063_v44, 16  ;;  %v13583_v27 = vcombine.low %v16252_v31, %v16253_v37  ;;  %v16256_v18 = vld [vmem:[#allocation2 + $0x48] sm:$0xf] }
 0x24a   : > { %15145 = vmatmul.mubr.msk.bf16.gmra.mrb[40].mxu1 %vm700_vm1, %v13809_v43  ;;  %v6251_v39 = vsel %vm16822_vm10, %v6246_v7, %v6250_v45  ;;  %v6269_v29 = vor.u32 %v6268_v23, %v6265_v24  ;;  %v6278_v53 = vrot.slane %v6276_v52, 4  ;;  %v6287_v11 = vshrl.u32 %v6064_v35, 16  ;;  %v16257_v24 = vld [vmem:[#allocation2 + $0x4c] sm:$0xf] }
 0x24b   : > { %v6261_v56 = vsel %vm16822_vm10, %v6256_v42, %v6260_v13  ;;  %14947 = vmatmul.mubr.msk.bf16.gmra.mrb[68].mxu0 %vm700_vm1, %v13582_v1  ;;  %v6284_v0 = vrot.slane %v6282_v4, 5  ;;  %v6290_v48 = vshll.u32 %v6064_v35, 16  ;;  %v6296_v41 = vshll.u32 %v6065_v57, 16  ;;  %v6071_v13 = vld [vmem:[#allocation2 + $0x70] sm:$0xf] }
 0x24c   : > { %v13810_v34 = vcombine.low %v6251_v39, %v6261_v56  ;;  %v6270_v10 = vrot.slane %v6269_v29, 4  ;;  %v6279_v47 = vor.u32 %v6278_v53, %v6274_v3  ;;  %14950 = vmatprep.mubr.msk.bf16.mxu0 %vm700_vm1, %v13583_v27  ;;  %v6289_v19 = vrot.slane %v6287_v11, 4  ;;  %v6073_v39 = vld [vmem:[#allocation2 + $0x78] sm:$0xf]  ;;  %v6074_v56 = vld [vmem:[#allocation2 + $0x7c] sm:$0xf] }
 0x24d   : > { %v6292_v21 = vrot.slane %v6290_v48, 5  ;;  %v6298_v40 = vrot.slane %v6296_v41, 5  ;;  %v6300_v51 = vshrl.u32 %v6065_v57, 16  ;;  %v6306_v12 = vshll.u32 %v6066_v60, 16 }
 0x24e   : > { %15148 = vmatprep.mubr.msk.bf16.mxu1 %vm700_vm1, %v13810_v34  ;;  %v6275_v58 = vsel %vm16822_vm10, %v6270_v10, %v6274_v3  ;;  %v6280_v17 = vrot.slane %v6279_v47, 4  ;;  %v13584_v14 = vcombine.low %v16254_v9, %v16255_v50  ;;  %v6311_v5 = vshrl.u32 %v6067_v8, 16  ;;  %v16259_v34 = vld [vmem:[#allocation2 + $0x58] sm:$0xf]  ;;  %v6076_v9 = vld [vmem:[#allocation2 + $0x84] sm:$0xf] }
 0x24f   : > { %v6293_v63 = vor.u32 %v6292_v21, %v6289_v19  ;;  %v6302_v2 = vrot.slane %v6300_v51, 4  ;;  %v6308_v15 = vrot.slane %v6306_v12, 5  ;;  %v6314_v45 = vshll.u32 %v6067_v8, 16  ;;  %v16258_v8 = vld [vmem:[#allocation2 + $0x54] sm:$0xf] }
 0x250   : > { %v6285_v54 = vsel %vm16822_vm10, %v6280_v17, %v6284_v0  ;;  %v6313_v6 = vrot.slane %v6311_v5, 4  ;;  %v6320_v62 = vshll.u32 %v6068_v59, 16  ;;  %v6324_v22 = vshrl.u32 %v6068_v59, 16  ;;  %v6075_v21 = vld [vmem:[#allocation2 + $0x80] sm:$0x1] }
 0x251   : > { %v13811_v1 = vcombine.low %v6275_v58, %v6285_v54  ;;  %v6294_v36 = vrot.slane %v6293_v63, 4  ;;  %v6303_v25 = vor.u32 %v6302_v2, %v6298_v40  ;;  %v6316_v20 = vrot.slane %v6314_v45, 5  ;;  %v6077_v63 = vld [vmem:[#allocation2 + $0x88] sm:$0xf]  ;;  %v16261_v54 = vld [vmem:[#allocation2 + $0x64] sm:$0xf] }
 0x252   : > { %v6322_v44 = vrot.slane %v6320_v62, 5  ;;  %v6326_v30 = vrot.slane %v6324_v22, 4  ;;  %v6330_v61 = vshll.u32 %v6069_v49, 16  ;;  %v13585_v38 = vcombine.low %v16256_v18, %v16257_v24 }
 0x253   : > { %15149 = vmatmul.mubr.msk.bf16.gmra.mrb[44].mxu1 %vm700_vm1, %v13811_v1  ;;  %v6299_v35 = vsel %vm16822_vm10, %v6294_v36, %v6298_v40  ;;  %v6304_v57 = vrot.slane %v6303_v25, 4  ;;  %14951 = vmatmul.mubr.msk.bf16.gmra.mrb[72].mxu0 %vm700_vm1, %v13584_v14  ;;  %v6317_v43 = vor.u32 %v6316_v20, %v6313_v6  ;;  %v6335_v7 = vshrl.u32 %v6070_v16, 16  ;;  %v6078_v1 = vld [vmem:[#allocation2 + $0x8c] sm:$0x1] }
 0x254   : > { %v6327_v23 = vor.u32 %v6326_v30, %v6322_v44  ;;  %v6332_v52 = vrot.slane %v6330_v61, 5  ;;  %14954 = vmatprep.mubr.msk.bf16.mxu0 %vm700_vm1, %v13585_v38  ;;  %v6338_v42 = vshll.u32 %v6070_v16, 16  ;;  %v6344_v3 = vshll.u32 %v6071_v13, 16  ;;  %v16260_v16 = vld [vmem:[#allocation2 + $0x60] sm:$0xf] }
 0x255   : > { %v6309_v4 = vsel %vm16822_vm10, %v6304_v57, %v6308_v15  ;;  %v6318_v31 = vrot.slane %v6317_v43, 4  ;;  %v6337_v37 = vrot.slane %v6335_v7, 4  ;;  %v6348_v27 = vshrl.u32 %v6071_v13, 16  ;;  %v6079_v30 = vld [vmem:[#allocation2 + $0x90] sm:$0xf] }
 0x256   : > { %v13812_v29 = vcombine.low %v6299_v35, %v6309_v4  ;;  %v6328_v53 = vrot.slane %v6327_v23, 4  ;;  %v6340_v60 = vrot.slane %v6338_v42, 5  ;;  %v6346_v11 = vrot.slane %v6344_v3, 5  ;;  %v6080_v23 = vld [vmem:[#allocation2 + $0x94] sm:$0xf] }
 0x257   : > { %v6323_v0 = vsel %vm16822_vm10, %v6318_v31, %v6322_v44  ;;  %v6350_v48 = vrot.slane %v6348_v27, 4  ;;  %v6354_v41 = vshll.u32 %v6072_v55, 16  ;;  %v13586_v10 = vcombine.low %v16258_v8, %v16259_v34  ;;  %v16262_v42 = vld [vmem:[#allocation2 + $0x6c] sm:$0xf]  ;;  %v16263_v3 = vld [vmem:[#allocation2 + $0x70] sm:$0xf] }
 0x258   : > { %15152 = vmatprep.mubr.msk.bf16.mxu1 %vm700_vm1, %v13812_v29  ;;  %v6333_v47 = vsel %vm16822_vm10, %v6328_v53, %v6332_v52  ;;  %v6341_v19 = vor.u32 %v6340_v60, %v6337_v37  ;;  %v6359_v40 = vshrl.u32 %v6073_v39, 16  ;;  %v6362_v51 = vshll.u32 %v6073_v39, 16  ;;  %v6081_v29 = vld [vmem:[#allocation2 + $0x98] sm:$0x1] }
 0x259   : > { %v13813_v12 = vcombine.low %v6323_v0, %v6333_v47  ;;  %v6351_v59 = vor.u32 %v6350_v48, %v6346_v11  ;;  %v6356_v58 = vrot.slane %v6354_v41, 5  ;;  %v6368_v17 = vshll.u32 %v6074_v56, 16  ;;  %v6082_v48 = vld [vmem:[#allocation2 + $0x9c] sm:$0xf]  ;;  %v6083_v47 = vld [vmem:[#allocation2 + $0xa0] sm:$0xf] }
 0x25a   : > { %v6342_v50 = vrot.slane %v6341_v19, 4  ;;  %v6361_v14 = vrot.slane %v6359_v40, 4  ;;  %v6364_v49 = vrot.slane %v6362_v51, 5  ;;  %v6372_v5 = vshrl.u32 %v6074_v56, 16  ;;  %v16264_v51 = vld [vmem:[#allocation2 + $0x78] sm:$0xf] }
 0x25b   : > { %15153 = vmatmul.mubr.msk.bf16.gmra.mrb[48].mxu1 %vm700_vm1, %v13813_v12  ;;  %v6352_v2 = vrot.slane %v6351_v59, 4  ;;  %14955 = vmatmul.mubr.msk.bf16.gmra.mrb[76].mxu0 %vm700_vm1, %v13586_v10  ;;  %v6370_v15 = vrot.slane %v6368_v17, 5  ;;  %v6378_v45 = vshll.u32 %v6075_v21, 16  ;;  %v13587_v6 = vcombine.low %v16260_v16, %v16261_v54  ;;  %v16265_v12 = vld [vmem:[#allocation2 + $0x7c] sm:$0xf] }
 0x25c   : > { %v6347_v62 = vsel %vm16822_vm10, %v6342_v50, %v6346_v11  ;;  %v6365_v22 = vor.u32 %v6364_v49, %v6361_v14  ;;  %v6374_v26 = vrot.slane %v6372_v5, 4  ;;  %v6383_v36 = vshrl.u32 %v6076_v9, 16  ;;  %v6084_v5 = vld [vmem:[#allocation2 + $0xa4] sm:$0x1] }
 0x25d   : > { %v6357_v25 = vsel %vm16822_vm10, %v6352_v2, %v6356_v58  ;;  %v6380_v20 = vrot.slane %v6378_v45, 5  ;;  %14958 = vmatprep.mubr.msk.bf16.mxu0 %vm700_vm1, %v13587_v6  ;;  %v6386_v13 = vshll.u32 %v6076_v9, 16  ;;  %v6392_v44 = vshll.u32 %v6077_v63, 16  ;;  %v6085_v6 = vld [vmem:[#allocation2 + $0xa8] sm:$0xf] }
 0x25e   : > { %v13814_v61 = vcombine.low %v6347_v62, %v6357_v25  ;;  %v6366_v18 = vrot.slane %v6365_v22, 4  ;;  %v6375_v24 = vor.u32 %v6374_v26, %v6370_v15  ;;  %v6385_v38 = vrot.slane %v6383_v36, 4  ;;  %v6086_v36 = vld [vmem:[#allocation2 + $0xac] sm:$0xf] }
 0x25f   : > { %v6388_v35 = vrot.slane %v6386_v13, 5  ;;  %v6394_v57 = vrot.slane %v6392_v44, 5  ;;  %v6396_v43 = vshrl.u32 %v6077_v63, 16  ;;  %v6402_v7 = vshll.u32 %v6078_v1, 16  ;;  %v16266_v44 = vld [vmem:[#allocation2 + $0x84] sm:$0xf] }
 0x260   : > { %15156 = vmatprep.mubr.msk.bf16.mxu1 %vm700_vm1, %v13814_v61  ;;  %v6371_v52 = vsel %vm16822_vm10, %v6366_v18, %v6370_v15  ;;  %v6376_v55 = vrot.slane %v6375_v24, 4  ;;  %v13588_v4 = vcombine.low %v16262_v42, %v16263_v3  ;;  %v6407_v31 = vshrl.u32 %v6079_v30, 16 }
 0x261   : > { %v6389_v37 = vor.u32 %v6388_v35, %v6385_v38  ;;  %v6398_v27 = vrot.slane %v6396_v43, 4  ;;  %v6404_v39 = vrot.slane %v6402_v7, 5  ;;  %v6410_v53 = vshll.u32 %v6079_v30, 16  ;;  %v16267_v30 = vld [vmem:[#allocation2 + $0x88] sm:$0xf] }
 0x262   : > { %v6381_v60 = vsel %vm16822_vm10, %v6376_v55, %v6380_v20  ;;  %v6409_v11 = vrot.slane %v6407_v31, 4  ;;  %v6416_v56 = vshll.u32 %v6080_v23, 16  ;;  %v6420_v0 = vshrl.u32 %v6080_v23, 16  ;;  %v6087_v38 = vld [vmem:[#allocation2 + $0xb0] sm:$0x1] }
 0x263   : > { %v13815_v41 = vcombine.low %v6371_v52, %v6381_v60  ;;  %v6390_v8 = vrot.slane %v6389_v37, 4  ;;  %v6399_v34 = vor.u32 %v6398_v27, %v6394_v57  ;;  %14959 = vmatmul.mubr.msk.bf16.gmra.mrb[80].mxu0 %vm700_vm1, %v13588_v4  ;;  %v6412_v10 = vrot.slane %v6410_v53, 5  ;;  %v6088_v55 = vld [vmem:[#allocation2 + $0xb4] sm:$0xf]  ;;  %v6089_v37 = vld [vmem:[#allocation2 + $0xb8] sm:$0xf] }
 0x264   : > { %v6418_v19 = vrot.slane %v6416_v56, 5  ;;  %v6422_v21 = vrot.slane %v6420_v0, 4  ;;  %v6426_v40 = vshll.u32 %v6081_v29, 16  ;;  %v13589_v59 = vcombine.low %v16264_v51, %v16265_v12  ;;  %v16268_v53 = vld [vmem:[#allocation2 + $0x90] sm:$0xf] }
 0x265   : > { %15157 = vmatmul.mubr.msk.bf16.gmra.mrb[52].mxu1 %vm700_vm1, %v13815_v41  ;;  %v6395_v58 = vsel %vm16822_vm10, %v6390_v8, %v6394_v57  ;;  %v6400_v17 = vrot.slane %v6399_v34, 4  ;;  %v6413_v9 = vor.u32 %v6412_v10, %v6409_v11  ;;  %v6431_v50 = vshrl.u32 %v6082_v48, 16  ;;  %v16269_v60 = vld [vmem:[#allocation2 + $0x94] sm:$0xf]  ;;  %v6090_v41 = vld [vmem:[#allocation2 + $0xbc] sm:$0x1] }
 0x266   : > { %v6423_v14 = vor.u32 %v6422_v21, %v6418_v19  ;;  %v6428_v49 = vrot.slane %v6426_v40, 5  ;;  %14962 = vmatprep.mubr.msk.bf16.mxu0 %vm700_vm1, %v13589_v59  ;;  %v6434_v63 = vshll.u32 %v6082_v48, 16  ;;  %v6440_v2 = vshll.u32 %v6083_v47, 16  ;;  %v6091_v21 = vld [vmem:[#allocation2 + $0xc0] sm:$0xf] }
 0x267   : > { %v6405_v15 = vsel %vm16822_vm10, %v6400_v17, %v6404_v39  ;;  %v6414_v45 = vrot.slane %v6413_v9, 4  ;;  %v6433_v16 = vrot.slane %v6431_v50, 4  ;;  %v6444_v54 = vshrl.u32 %v6083_v47, 16 }
 0x268   : > { %v13816_v62 = vcombine.low %v6395_v58, %v6405_v15  ;;  %v6424_v22 = vrot.slane %v6423_v14, 4  ;;  %v6436_v26 = vrot.slane %v6434_v63, 5  ;;  %v6442_v1 = vrot.slane %v6440_v2, 5  ;;  %v6092_v14 = vld [vmem:[#allocation2 + $0xc4] sm:$0xf] }
 0x269   : > { %v6419_v25 = vsel %vm16822_vm10, %v6414_v45, %v6418_v19  ;;  %v6446_v20 = vrot.slane %v6444_v54, 4  ;;  %v6450_v13 = vshll.u32 %v6084_v5, 16  ;;  %v13590_v61 = vcombine.low %v16266_v44, %v16267_v30  ;;  %v16270_v63 = vld [vmem:[#allocation2 + $0x9c] sm:$0xf]  ;;  %v16271_v2 = vld [vmem:[#allocation2 + $0xa0] sm:$0xf] }
 0x26a   : > { %15160 = vmatprep.mubr.msk.bf16.mxu1 %vm700_vm1, %v13816_v62  ;;  %v6429_v18 = vsel %vm16822_vm10, %v6424_v22, %v6428_v49  ;;  %v6437_v24 = vor.u32 %v6436_v26, %v6433_v16  ;;  %v6455_v35 = vshrl.u32 %v6085_v6, 16  ;;  %v6458_v57 = vshll.u32 %v6085_v6, 16  ;;  %v6093_v62 = vld [vmem:[#allocation2 + $0xc8] sm:$0x1] }
 0x26b   : > { %v13817_v43 = vcombine.low %v6419_v25, %v6429_v18  ;;  %v6447_v7 = vor.u32 %v6446_v20, %v6442_v1  ;;  %v6452_v23 = vrot.slane %v6450_v13, 5  ;;  %14963 = vmatmul.mubr.msk.bf16.gmra.mrb[84].mxu0 %vm700_vm1, %v13590_v61  ;;  %v6464_v52 = vshll.u32 %v6086_v36, 16  ;;  %v6094_v20 = vld [vmem:[#allocation2 + $0xe4] sm:$0xf]  ;;  %v6095_v18 = vld [vmem:[#allocation2 + $0xe8] sm:$0xf] }
 0x26c   : > { %v6438_v42 = vrot.slane %v6437_v24, 4  ;;  %v6457_v3 = vrot.slane %v6455_v35, 4  ;;  %v6460_v4 = vrot.slane %v6458_v57, 5  ;;  %v6468_v31 = vshrl.u32 %v6086_v36, 16  ;;  %v16272_v57 = vld [vmem:[#allocation2 + $0xa8] sm:$0xf] }
 0x26d   : > { %15161 = vmatmul.mubr.msk.bf16.gmra.mrb[56].mxu1 %vm700_vm1, %v13817_v43  ;;  %v6448_v27 = vrot.slane %v6447_v7, 4  ;;  %v6466_v39 = vrot.slane %v6464_v52, 5  ;;  %v6474_v29 = vshll.u32 %v6087_v38, 16  ;;  %v13591_v11 = vcombine.low %v16268_v53, %v16269_v60  ;;  %v16273_v43 = vld [vmem:[#allocation2 + $0xac] sm:$0xf] }
 0x26e   : > { %v6443_v56 = vsel %vm16822_vm10, %v6438_v42, %v6442_v1  ;;  %v6461_v0 = vor.u32 %v6460_v4, %v6457_v3  ;;  %v6470_v48 = vrot.slane %v6468_v31, 4  ;;  %v6479_v8 = vshrl.u32 %v6088_v55, 16  ;;  %v6096_v31 = vld [vmem:[#allocation2 + $0xec] sm:$0x1] }
 0x26f   : > { %v6453_v34 = vsel %vm16822_vm10, %v6448_v27, %v6452_v23  ;;  %v6476_v10 = vrot.slane %v6474_v29, 5  ;;  %14966 = vmatprep.mubr.msk.bf16.mxu0 %vm700_vm1, %v13591_v11  ;;  %v6482_v47 = vshll.u32 %v6088_v55, 16  ;;  %v6488_v19 = vshll.u32 %v6089_v37, 16  ;;  %v6097_v11 = vld [vmem:[#allocation2 + $0xf0] sm:$0xf] }
 0x270   : > { %v13818_v40 = vcombine.low %v6443_v56, %v6453_v34  ;;  %v6462_v51 = vrot.slane %v6461_v0, 4  ;;  %v6471_v12 = vor.u32 %v6470_v48, %v6466_v39  ;;  %v6481_v59 = vrot.slane %v6479_v8, 4  ;;  %v6098_v8 = vld [vmem:[#allocation2 + $0xf4] sm:$0xf] }
 0x271   : > { %v6484_v58 = vrot.slane %v6482_v47, 5  ;;  %v6490_v17 = vrot.slane %v6488_v19, 5  ;;  %v6492_v9 = vshrl.u32 %v6089_v37, 16  ;;  %v6498_v50 = vshll.u32 %v6090_v41, 16  ;;  %v16274_v19 = vld [vmem:[#allocation2 + $0xb4] sm:$0xf] }
 0x272   : > { %15164 = vmatprep.mubr.msk.bf16.mxu1 %vm700_vm1, %v13818_v40  ;;  %v6467_v49 = vsel %vm16822_vm10, %v6462_v51, %v6466_v39  ;;  %v6472_v5 = vrot.slane %v6471_v12, 4  ;;  %v13592_v15 = vcombine.low %v16270_v63, %v16271_v2  ;;  %v6503_v45 = vshrl.u32 %v6091_v21, 16 }
 0x273   : > { %v6485_v16 = vor.u32 %v6484_v58, %v6481_v59  ;;  %v6494_v54 = vrot.slane %v6492_v9, 4  ;;  %v6500_v6 = vrot.slane %v6498_v50, 5  ;;  %v6506_v22 = vshll.u32 %v6091_v21, 16  ;;  %v16275_v21 = vld [vmem:[#allocation2 + $0xb8] sm:$0xf] }
 0x274   : > { %v6477_v26 = vsel %vm16822_vm10, %v6472_v5, %v6476_v10  ;;  %14967 = vmatmul.mubr.msk.bf16.gmra.mrb[88].mxu0 %vm700_vm1, %v13592_v15  ;;  %v6505_v1 = vrot.slane %v6503_v45, 4  ;;  %v6512_v36 = vshll.u32 %v6092_v14, 16  ;;  %v6516_v25 = vshrl.u32 %v6092_v14, 16  ;;  %v6099_v59 = vld [vmem:[#allocation2 + $0xf8] sm:$0x1] }
 0x275   : > { %v13819_v13 = vcombine.low %v6467_v49, %v6477_v26  ;;  %v6486_v44 = vrot.slane %v6485_v16, 4  ;;  %v6495_v30 = vor.u32 %v6494_v54, %v6490_v17  ;;  %v6508_v61 = vrot.slane %v6506_v22, 5  ;;  %v6100_v9 = vld [vmem:[#allocation2 + $0xfc] sm:$0xf]  ;;  %v6101_v16 = vld [vmem:[#allocation2 + $0x100] sm:$0xf] }
 0x276   : > { %v6514_v24 = vrot.slane %v6512_v36, 5  ;;  %v6518_v38 = vrot.slane %v6516_v25, 4  ;;  %v6522_v35 = vshll.u32 %v6093_v62, 16  ;;  %v13593_v7 = vcombine.low %v16272_v57, %v16273_v43  ;;  %v6102_v25 = vld [vmem:[#allocation2 + $0x104] sm:$0x1] }
 0x277   : > { %15165 = vmatmul.mubr.msk.bf16.gmra.mrb[60].mxu1 %vm700_vm1, %v13819_v13  ;;  %v6491_v23 = vsel %vm16822_vm10, %v6486_v44, %v6490_v17  ;;  %v6496_v52 = vrot.slane %v6495_v30, 4  ;;  %v6509_v55 = vor.u32 %v6508_v61, %v6505_v1  ;;  %v6527_v42 = vshrl.u32 %v6094_v20, 16  ;;  %v6103_v57 = vld [vmem:[#allocation2 + $0x108] sm:$0xf] }
 0x278   : > { %v6519_v3 = vor.u32 %v6518_v38, %v6514_v24  ;;  %v6524_v4 = vrot.slane %v6522_v35, 5  ;;  %14970 = vmatprep.mubr.msk.bf16.mxu0 %vm700_vm1, %v13593_v7  ;;  %v6530_v37 = vshll.u32 %v6094_v20, 16  ;;  %v6536_v27 = vshll.u32 %v6095_v18, 16 }
 0x279   : > { %v6501_v39 = vsel %vm16822_vm10, %v6496_v52, %v6500_v6  ;;  %v6510_v29 = vrot.slane %v6509_v55, 4  ;;  %v6529_v53 = vrot.slane %v6527_v42, 4  ;;  %v6540_v60 = vshrl.u32 %v6095_v18, 16  ;;  %v16276_v52 = vld [vmem:[#allocation2 + $0xdc] sm:$0xf] }
 0x27a   : > { %v13820_v56 = vcombine.low %v6491_v23, %v6501_v39  ;;  %v6520_v0 = vrot.slane %v6519_v3, 4  ;;  %v6532_v48 = vrot.slane %v6530_v37, 5  ;;  %v6538_v41 = vrot.slane %v6536_v27, 5  ;;  %v16277_v55 = vld [vmem:[#allocation2 + $0xd8] sm:$0xf] }
 0x27b   : > { %v6515_v34 = vsel %vm16822_vm10, %v6510_v29, %v6514_v24  ;;  %v6542_v10 = vrot.slane %v6540_v60, 4  ;;  %v6546_v47 = vshll.u32 %v6096_v31, 16  ;;  %v13594_v40 = vcombine.low %v16274_v19, %v16275_v21  ;;  %v6104_v3 = vld [vmem:[#allocation2 + $0x10c] sm:$0xf]  ;;  %v16278_v27 = vld [vmem:[#allocation2 + $0xe4] sm:$0xf] }
 0x27c   : > { %15168 = vmatprep.mubr.msk.bf16.mxu1 %vm700_vm1, %v13820_v56  ;;  %v6525_v51 = vsel %vm16822_vm10, %v6520_v0, %v6524_v4  ;;  %v6533_v12 = vor.u32 %v6532_v48, %v6529_v53  ;;  %v6551_v58 = vshrl.u32 %v6097_v11, 16  ;;  %v6554_v17 = vshll.u32 %v6097_v11, 16  ;;  %v16279_v39 = vld [vmem:[#allocation2 + $0xe8] sm:$0xf]  ;;  %v6105_v11 = vld [vmem:[#allocation2 + $0x110] sm:$0x1] }
 0x27d   : > { %v13821_v50 = vcombine.low %v6515_v34, %v6525_v51  ;;  %v6543_v14 = vor.u32 %v6542_v10, %v6538_v41  ;;  %v6548_v49 = vrot.slane %v6546_v47, 5  ;;  %14971 = vmatmul.mubr.msk.bf16.gmra.mrb[92].mxu0 %vm700_vm1, %v13594_v40  ;;  %v6560_v5 = vshll.u32 %v6098_v8, 16  ;;  %v6106_v10 = vld [vmem:[#allocation2 + $0x114] sm:$0xf]  ;;  %v6107_v51 = vld [vmem:[#allocation2 + $0x118] sm:$0xf] }
 0x27e   : > { %v6534_v63 = vrot.slane %v6533_v12, 4  ;;  %v6553_v2 = vrot.slane %v6551_v58, 4  ;;  %v6556_v15 = vrot.slane %v6554_v17, 5  ;;  %v6564_v45 = vshrl.u32 %v6098_v8, 16 }
 0x27f   : > { %15169 = vmatmul.mubr.msk.bf16.gmra.mrb[0].mxu1 %vm700_vm1, %v13821_v50  ;;  %v6544_v54 = vrot.slane %v6543_v14, 4  ;;  %v6562_v6 = vrot.slane %v6560_v5, 5  ;;  %v6570_v62 = vshll.u32 %v6099_v59, 16  ;;  %v6575_v22 = vshrl.u32 %v6100_v9, 16  ;;  %v16280_v14 = vld [vmem:[#allocation2 + $0xf0] sm:$0xf] }
 0x280   : > { %v6539_v26 = vsel %vm16822_vm10, %v6534_v63, %v6538_v41  ;;  %v6557_v1 = vor.u32 %v6556_v15, %v6553_v2  ;;  %v6566_v36 = vrot.slane %v6564_v45, 4  ;;  %v6578_v20 = vshll.u32 %v6100_v9, 16  ;;  %v6108_v45 = vld [vmem:[#allocation2 + $0x11c] sm:$0x1] }
 0x281   : > { %v6549_v13 = vsel %vm16822_vm10, %v6544_v54, %v6548_v49  ;;  %v6572_v44 = vrot.slane %v6570_v62, 5  ;;  %v6577_v30 = vrot.slane %v6575_v22, 4  ;;  %v6584_v61 = vshll.u32 %v6101_v16, 16  ;;  %v16281_v49 = vld [vmem:[#allocation2 + $0xf4] sm:$0xf] }
 0x282   : > { %v13822_v18 = vcombine.low %v6539_v26, %v6549_v13  ;;  %v6558_v24 = vrot.slane %v6557_v1, 4  ;;  %v6567_v38 = vor.u32 %v6566_v36, %v6562_v6  ;;  %v6580_v35 = vrot.slane %v6578_v20, 5  ;;  %v6109_v1 = vld [vmem:[#allocation2 + $0x120] sm:$0xf] }
 0x283   : > { %v6586_v43 = vrot.slane %v6584_v61, 5  ;;  %v6588_v7 = vshrl.u32 %v6101_v16, 16  ;;  %v6594_v23 = vshll.u32 %v6102_v25, 16  ;;  %v13595_v42 = vcombine.low %v16277_v55, %v16276_v52 }
 0x284   : > { %15172 = vmatprep.mubr.msk.bf16.mxu1 %vm700_vm1, %v13822_v18  ;;  %v6563_v4 = vsel %vm16822_vm10, %v6558_v24, %v6562_v6  ;;  %v6568_v31 = vrot.slane %v6567_v38, 4  ;;  %v6581_v37 = vor.u32 %v6580_v35, %v6577_v30  ;;  %v13596_v29 = vcombine.low %v16278_v27, %v16279_v39  ;;  %v16282_v24 = vld [vmem:[#allocation2 + $0xfc] sm:$0xf]  ;;  %v16283_v38 = vld [vmem:[#allocation2 + $0x100] sm:$0xf] }
 0x285   : > { %v6590_v53 = vrot.slane %v6588_v7, 4  ;;  %v6596_v60 = vrot.slane %v6594_v23, 5  ;;  %14974 = vmatprep.mubr.msk.bf16.mxu0 %vm700_vm1, %v13595_v42  ;;  %v6599_v56 = vshrl.u32 %v6103_v57, 16  ;;  %v6602_v0 = vshll.u32 %v6103_v57, 16  ;;  %v6111_v7 = vld [vmem:[#allocation2 + $0x128] sm:$0x1] }
 0x286   : > { %v6573_v48 = vsel %vm16822_vm10, %v6568_v31, %v6572_v44  ;;  %v6582_v41 = vrot.slane %v6581_v37, 4  ;;  %14975 = vmatmul.mubr.msk.bf16.gmra.mrb[96].mxu0 %vm700_vm1, %v13596_v29  ;;  %v6608_v8 = vshll.u32 %v6104_v3, 16  ;;  %v6612_v34 = vshrl.u32 %v6104_v3, 16  ;;  %v6110_v44 = vld [vmem:[#allocation2 + $0x124] sm:$0xf] }
 0x287   : > { %v13823_v47 = vcombine.low %v6563_v4, %v6573_v48  ;;  %v6591_v19 = vor.u32 %v6590_v53, %v6586_v43  ;;  %v6601_v21 = vrot.slane %v6599_v56, 4  ;;  %v6604_v40 = vrot.slane %v6602_v0, 5  ;;  %v6112_v31 = vld [vmem:[#allocation2 + $0x12c] sm:$0xf]  ;;  %v6113_v53 = vld [vmem:[#allocation2 + $0x130] sm:$0xf] }
 0x288   : > { %v6587_v12 = vsel %vm16822_vm10, %v6582_v41, %v6586_v43  ;;  %v6610_v59 = vrot.slane %v6608_v8, 5  ;;  %v6614_v58 = vrot.slane %v6612_v34, 4  ;;  %v6618_v17 = vshll.u32 %v6105_v11, 16  ;;  %v16284_v0 = vld [vmem:[#allocation2 + $0x108] sm:$0xf] }
 0x289   : > { %15173 = vmatmul.mubr.msk.bf16.gmra.mrb[4].mxu1 %vm700_vm1, %v13823_v47  ;;  %v6592_v9 = vrot.slane %v6591_v19, 4  ;;  %v6605_v50 = vor.u32 %v6604_v40, %v6601_v21  ;;  %v13597_v5 = vcombine.low %v16280_v14, %v16281_v49  ;;  %v6623_v63 = vshrl.u32 %v6106_v10, 16  ;;  %v16285_v48 = vld [vmem:[#allocation2 + $0x10c] sm:$0xf]  ;;  %v6114_v47 = vld [vmem:[#allocation2 + $0x134] sm:$0x1] }
 0x28a   : > { %v6615_v2 = vor.u32 %v6614_v58, %v6610_v59  ;;  %v6620_v15 = vrot.slane %v6618_v17, 5  ;;  %v6626_v16 = vshll.u32 %v6106_v10, 16  ;;  %v6632_v54 = vshll.u32 %v6107_v51, 16 }
 0x28b   : > { %v6597_v6 = vsel %vm16822_vm10, %v6592_v9, %v6596_v60  ;;  %v6606_v62 = vrot.slane %v6605_v50, 4  ;;  %14978 = vmatprep.mubr.msk.bf16.mxu0 %vm700_vm1, %v13597_v5  ;;  %v6625_v22 = vrot.slane %v6623_v63, 4  ;;  %v6636_v26 = vshrl.u32 %v6107_v51, 16 }
 0x28c   : > { %v13824_v36 = vcombine.low %v6587_v12, %v6597_v6  ;;  %v6616_v25 = vrot.slane %v6615_v2, 4  ;;  %v6628_v20 = vrot.slane %v6626_v16, 5  ;;  %v6634_v13 = vrot.slane %v6632_v54, 5  ;;  %v6116_v2 = vld [vmem:[#allocation2 + $0x13c] sm:$0xf] }
 0x28d   : > { %v6611_v30 = vsel %vm16822_vm10, %v6606_v62, %v6610_v59  ;;  %v6638_v61 = vrot.slane %v6636_v26, 4  ;;  %v6642_v18 = vshll.u32 %v6108_v45, 16  ;;  %v13598_v35 = vcombine.low %v16282_v24, %v16283_v38  ;;  %v6115_v59 = vld [vmem:[#allocation2 + $0x138] sm:$0xf]  ;;  %v16286_v16 = vld [vmem:[#allocation2 + $0x114] sm:$0xf] }
 0x28e   : > { %15176 = vmatprep.mubr.msk.bf16.mxu1 %vm700_vm1, %v13824_v36  ;;  %v6621_v57 = vsel %vm16822_vm10, %v6616_v25, %v6620_v15  ;;  %v6629_v43 = vor.u32 %v6628_v20, %v6625_v22  ;;  %v6647_v23 = vshrl.u32 %v6109_v1, 16  ;;  %v6650_v52 = vshll.u32 %v6109_v1, 16  ;;  %v16287_v54 = vld [vmem:[#allocation2 + $0x118] sm:$0xf]  ;;  %v6117_v36 = vld [vmem:[#allocation2 + $0x140] sm:$0x1] }
 0x28f   : > { %v13825_v55 = vcombine.low %v6611_v30, %v6621_v57  ;;  %v6639_v42 = vor.u32 %v6638_v61, %v6634_v13  ;;  %v6644_v3 = vrot.slane %v6642_v18, 5  ;;  %14979 = vmatmul.mubr.msk.bf16.gmra.mrb[100].mxu0 %vm700_vm1, %v13598_v35  ;;  %v6656_v4 = vshll.u32 %v6110_v44, 16  ;;  %v6118_v61 = vld [vmem:[#allocation2 + $0x144] sm:$0xf]  ;;  %v6119_v57 = vld [vmem:[#allocation2 + $0x148] sm:$0xf] }
 0x290   : > { %v6630_v37 = vrot.slane %v6629_v43, 4  ;;  %v6649_v27 = vrot.slane %v6647_v23, 4  ;;  %v6652_v39 = vrot.slane %v6650_v52, 5  ;;  %v6660_v29 = vshrl.u32 %v6110_v44, 16  ;;  %v16288_v52 = vld [vmem:[#allocation2 + $0x120] sm:$0xf] }
 0x291   : > { %15177 = vmatmul.mubr.msk.bf16.gmra.mrb[8].mxu1 %vm700_vm1, %v13825_v55  ;;  %v6640_v60 = vrot.slane %v6639_v42, 4  ;;  %v6658_v11 = vrot.slane %v6656_v4, 5  ;;  %v6666_v56 = vshll.u32 %v6111_v7, 16  ;;  %v13599_v41 = vcombine.low %v16284_v0, %v16285_v48  ;;  %v16289_v55 = vld [vmem:[#allocation2 + $0x124] sm:$0xf] }
 0x292   : > { %v6635_v8 = vsel %vm16822_vm10, %v6630_v37, %v6634_v13  ;;  %v6653_v34 = vor.u32 %v6652_v39, %v6649_v27  ;;  %v6662_v10 = vrot.slane %v6660_v29, 4  ;;  %v6671_v19 = vshrl.u32 %v6112_v31, 16  ;;  %v6120_v29 = vld [vmem:[#allocation2 + $0x14c] sm:$0x1] }
 0x293   : > { %v6645_v21 = vsel %vm16822_vm10, %v6640_v60, %v6644_v3  ;;  %v6668_v40 = vrot.slane %v6666_v56, 5  ;;  %14982 = vmatprep.mubr.msk.bf16.mxu0 %vm700_vm1, %v13599_v41  ;;  %v6674_v51 = vshll.u32 %v6112_v31, 16  ;;  %v6680_v12 = vshll.u32 %v6113_v53, 16  ;;  %v6121_v41 = vld [vmem:[#allocation2 + $0x150] sm:$0xf] }
 0x294   : > { %v13826_v58 = vcombine.low %v6635_v8, %v6645_v21  ;;  %v6654_v17 = vrot.slane %v6653_v34, 4  ;;  %v6663_v9 = vor.u32 %v6662_v10, %v6658_v11  ;;  %v6673_v50 = vrot.slane %v6671_v19, 4  ;;  %v6122_v19 = vld [vmem:[#allocation2 + $0x154] sm:$0xf] }
 0x295   : > { %v6676_v14 = vrot.slane %v6674_v51, 5  ;;  %v6682_v49 = vrot.slane %v6680_v12, 5  ;;  %v6684_v5 = vshrl.u32 %v6113_v53, 16  ;;  %v6690_v63 = vshll.u32 %v6114_v47, 16  ;;  %v16290_v12 = vld [vmem:[#allocation2 + $0x12c] sm:$0xf] }
 0x296   : > { %15180 = vmatprep.mubr.msk.bf16.mxu1 %vm700_vm1, %v13826_v58  ;;  %v6659_v15 = vsel %vm16822_vm10, %v6654_v17, %v6658_v11  ;;  %v6664_v45 = vrot.slane %v6663_v9, 4  ;;  %v13600_v6 = vcombine.low %v16286_v16, %v16287_v54  ;;  %v6695_v62 = vshrl.u32 %v6115_v59, 16 }
 0x297   : > { %v6677_v22 = vor.u32 %v6676_v14, %v6673_v50  ;;  %v6686_v26 = vrot.slane %v6684_v5, 4  ;;  %v6692_v1 = vrot.slane %v6690_v63, 5  ;;  %v6698_v25 = vshll.u32 %v6115_v59, 16  ;;  %v16291_v59 = vld [vmem:[#allocation2 + $0x130] sm:$0xf] }
 0x298   : > { %v6669_v20 = vsel %vm16822_vm10, %v6664_v45, %v6668_v40  ;;  %14983 = vmatmul.mubr.msk.bf16.gmra.mrb[104].mxu0 %vm700_vm1, %v13600_v6  ;;  %v6697_v13 = vrot.slane %v6695_v62, 4  ;;  %v6704_v44 = vshll.u32 %v6116_v2, 16  ;;  %v6708_v30 = vshrl.u32 %v6116_v2, 16  ;;  %v6123_v50 = vld [vmem:[#allocation2 + $0x158] sm:$0x1] }
 0x299   : > { %v13827_v18 = vcombine.low %v6659_v15, %v6669_v20  ;;  %v6678_v24 = vrot.slane %v6677_v22, 4  ;;  %v6687_v38 = vor.u32 %v6686_v26, %v6682_v49  ;;  %v6700_v35 = vrot.slane %v6698_v25, 5  ;;  %v6124_v45 = vld [vmem:[#allocation2 + $0x15c] sm:$0xf]  ;;  %v6125_v22 = vld [vmem:[#allocation2 + $0x160] sm:$0xf] }
 0x29a   : > { %v6706_v43 = vrot.slane %v6704_v44, 5  ;;  %v6710_v7 = vrot.slane %v6708_v30, 4  ;;  %v6714_v23 = vshll.u32 %v6117_v36, 16  ;;  %v13601_v42 = vcombine.low %v16288_v52, %v16289_v55  ;;  %v16292_v25 = vld [vmem:[#allocation2 + $0x138] sm:$0xf] }
 0x29b   : > { %15181 = vmatmul.mubr.msk.bf16.gmra.mrb[12].mxu1 %vm700_vm1, %v13827_v18  ;;  %v6683_v3 = vsel %vm16822_vm10, %v6678_v24, %v6682_v49  ;;  %v6688_v4 = vrot.slane %v6687_v38, 4  ;;  %v6701_v31 = vor.u32 %v6700_v35, %v6697_v13  ;;  %v6719_v37 = vshrl.u32 %v6118_v61, 16  ;;  %v16293_v20 = vld [vmem:[#allocation2 + $0x13c] sm:$0xf]  ;;  %v6126_v18 = vld [vmem:[#allocation2 + $0x164] sm:$0x1] }
 0x29c   : > { %v6711_v27 = vor.u32 %v6710_v7, %v6706_v43  ;;  %v6716_v39 = vrot.slane %v6714_v23, 5  ;;  %14986 = vmatprep.mubr.msk.bf16.mxu0 %vm700_vm1, %v13601_v42  ;;  %v6722_v53 = vshll.u32 %v6118_v61, 16  ;;  %v6728_v60 = vshll.u32 %v6119_v57, 16  ;;  %v6127_v7 = vld [vmem:[#allocation2 + $0x168] sm:$0xf] }
 0x29d   : > { %v6693_v11 = vsel %vm16822_vm10, %v6688_v4, %v6692_v1  ;;  %v6702_v56 = vrot.slane %v6701_v31, 4  ;;  %v6721_v0 = vrot.slane %v6719_v37, 4  ;;  %v6732_v48 = vshrl.u32 %v6119_v57, 16 }
 0x29e   : > { %v13828_v8 = vcombine.low %v6683_v3, %v6693_v11  ;;  %v6712_v34 = vrot.slane %v6711_v27, 4  ;;  %v6724_v10 = vrot.slane %v6722_v53, 5  ;;  %v6730_v47 = vrot.slane %v6728_v60, 5  ;;  %v6128_v27 = vld [vmem:[#allocation2 + $0x16c] sm:$0xf] }
 0x29f   : > { %v6707_v21 = vsel %vm16822_vm10, %v6702_v56, %v6706_v43  ;;  %v6734_v40 = vrot.slane %v6732_v48, 4  ;;  %v6738_v51 = vshll.u32 %v6120_v29, 16  ;;  %v13602_v58 = vcombine.low %v16290_v12, %v16291_v59  ;;  %v16294_v53 = vld [vmem:[#allocation2 + $0x144] sm:$0xf]  ;;  %v16295_v60 = vld [vmem:[#allocation2 + $0x148] sm:$0xf] }
 0x2a0   : > { %15184 = vmatprep.mubr.msk.bf16.mxu1 %vm700_vm1, %v13828_v8  ;;  %v6717_v17 = vsel %vm16822_vm10, %v6712_v34, %v6716_v39  ;;  %v6725_v9 = vor.u32 %v6724_v10, %v6721_v0  ;;  %v6743_v14 = vshrl.u32 %v6121_v41, 16  ;;  %v6746_v49 = vshll.u32 %v6121_v41, 16  ;;  %v6129_v8 = vld [vmem:[#allocation2 + $0x170] sm:$0x1] }
 0x2a1   : > { %v13829_v5 = vcombine.low %v6707_v21, %v6717_v17  ;;  %v6735_v63 = vor.u32 %v6734_v40, %v6730_v47  ;;  %v6740_v2 = vrot.slane %v6738_v51, 5  ;;  %14987 = vmatmul.mubr.msk.bf16.gmra.mrb[108].mxu0 %vm700_vm1, %v13602_v58  ;;  %v6752_v15 = vshll.u32 %v6122_v19, 16  ;;  %v6130_v40 = vld [vmem:[#allocation2 + $0x174] sm:$0xf]  ;;  %v6131_v17 = vld [vmem:[#allocation2 + $0x178] sm:$0xf] }
 0x2a2   : > { %v6726_v16 = vrot.slane %v6725_v9, 4  ;;  %v6745_v54 = vrot.slane %v6743_v14, 4  ;;  %v6748_v6 = vrot.slane %v6746_v49, 5  ;;  %v6756_v62 = vshrl.u32 %v6122_v19, 16  ;;  %v16296_v49 = vld [vmem:[#allocation2 + $0x150] sm:$0xf] }
 0x2a3   : > { %15185 = vmatmul.mubr.msk.bf16.gmra.mrb[16].mxu1 %vm700_vm1, %v13829_v5  ;;  %v6736_v26 = vrot.slane %v6735_v63, 4  ;;  %v6754_v1 = vrot.slane %v6752_v15, 5  ;;  %v6762_v36 = vshll.u32 %v6123_v50, 16  ;;  %v13603_v13 = vcombine.low %v16292_v25, %v16293_v20  ;;  %v16297_v5 = vld [vmem:[#allocation2 + $0x154] sm:$0xf] }
 0x2a4   : > { %v6731_v44 = vsel %vm16822_vm10, %v6726_v16, %v6730_v47  ;;  %v6749_v30 = vor.u32 %v6748_v6, %v6745_v54  ;;  %v6758_v61 = vrot.slane %v6756_v62, 4  ;;  %v6767_v24 = vshrl.u32 %v6124_v45, 16  ;;  %v6132_v62 = vld [vmem:[#allocation2 + $0x17c] sm:$0x1] }
 0x2a5   : > { %v6741_v38 = vsel %vm16822_vm10, %v6736_v26, %v6740_v2  ;;  %v6764_v35 = vrot.slane %v6762_v36, 5  ;;  %14990 = vmatprep.mubr.msk.bf16.mxu0 %vm700_vm1, %v13603_v13  ;;  %v6770_v57 = vshll.u32 %v6124_v45, 16  ;;  %v6776_v43 = vshll.u32 %v6125_v22, 16  ;;  %v6133_v13 = vld [vmem:[#allocation2 + $0x180] sm:$0xf] }
 0x2a6   : > { %v13830_v23 = vcombine.low %v6731_v44, %v6741_v38  ;;  %v6750_v52 = vrot.slane %v6749_v30, 4  ;;  %v6759_v55 = vor.u32 %v6758_v61, %v6754_v1  ;;  %v6769_v42 = vrot.slane %v6767_v24, 4  ;;  %v6134_v24 = vld [vmem:[#allocation2 + $0x184] sm:$0xf] }
 0x2a7   : > { %v6772_v3 = vrot.slane %v6770_v57, 5  ;;  %v6778_v4 = vrot.slane %v6776_v43, 5  ;;  %v6780_v31 = vshrl.u32 %v6125_v22, 16  ;;  %v6786_v37 = vshll.u32 %v6126_v18, 16  ;;  %v16298_v43 = vld [vmem:[#allocation2 + $0x15c] sm:$0xf] }
 0x2a8   : > { %15188 = vmatprep.mubr.msk.bf16.mxu1 %vm700_vm1, %v13830_v23  ;;  %v6755_v39 = vsel %vm16822_vm10, %v6750_v52, %v6754_v1  ;;  %v6760_v29 = vrot.slane %v6759_v55, 4  ;;  %v13604_v11 = vcombine.low %v16294_v53, %v16295_v60  ;;  %v6791_v56 = vshrl.u32 %v6127_v7, 16 }
 0x2a9   : > { %v6773_v0 = vor.u32 %v6772_v3, %v6769_v42  ;;  %v6782_v48 = vrot.slane %v6780_v31, 4  ;;  %v6788_v41 = vrot.slane %v6786_v37, 5  ;;  %v6794_v34 = vshll.u32 %v6127_v7, 16  ;;  %v16299_v7 = vld [vmem:[#allocation2 + $0x160] sm:$0xf] }
 0x2aa   : > { %v6765_v10 = vsel %vm16822_vm10, %v6760_v29, %v6764_v35  ;;  %14991 = vmatmul.mubr.msk.bf16.gmra.mrb[112].mxu0 %vm700_vm1, %v13604_v11  ;;  %v6793_v47 = vrot.slane %v6791_v56, 4  ;;  %v6800_v19 = vshll.u32 %v6128_v27, 16  ;;  %v6804_v21 = vshrl.u32 %v6128_v27, 16  ;;  %v6135_v42 = vld [vmem:[#allocation2 + $0x188] sm:$0x1] }
 0x2ab   : > { %v13831_v51 = vcombine.low %v6755_v39, %v6765_v10  ;;  %v6774_v12 = vrot.slane %v6773_v0, 4  ;;  %v6783_v59 = vor.u32 %v6782_v48, %v6778_v4  ;;  %v6796_v58 = vrot.slane %v6794_v34, 5  ;;  %v6136_v29 = vld [vmem:[#allocation2 + $0x18c] sm:$0xf]  ;;  %v6137_v0 = vld [vmem:[#allocation2 + $0x190] sm:$0xf] }
 0x2ac   : > { %v6802_v9 = vrot.slane %v6800_v19, 5  ;;  %v6806_v50 = vrot.slane %v6804_v21, 4  ;;  %v6810_v14 = vshll.u32 %v6129_v8, 16  ;;  %v13605_v63 = vcombine.low %v16296_v49, %v16297_v5  ;;  %v16300_v34 = vld [vmem:[#allocation2 + $0x168] sm:$0xf] }
 0x2ad   : > { %15189 = vmatmul.mubr.msk.bf16.gmra.mrb[20].mxu1 %vm700_vm1, %v13831_v51  ;;  %v6779_v2 = vsel %vm16822_vm10, %v6774_v12, %v6778_v4  ;;  %v6784_v15 = vrot.slane %v6783_v59, 4  ;;  %v6797_v45 = vor.u32 %v6796_v58, %v6793_v47  ;;  %v6815_v16 = vshrl.u32 %v6130_v40, 16  ;;  %v16301_v10 = vld [vmem:[#allocation2 + $0x16c] sm:$0xf]  ;;  %v6138_v59 = vld [vmem:[#allocation2 + $0x194] sm:$0x1] }
 0x2ae   : > { %v6807_v54 = vor.u32 %v6806_v50, %v6802_v9  ;;  %v6812_v6 = vrot.slane %v6810_v14, 5  ;;  %14994 = vmatprep.mubr.msk.bf16.mxu0 %vm700_vm1, %v13605_v63  ;;  %v6818_v22 = vshll.u32 %v6130_v40, 16  ;;  %v6824_v26 = vshll.u32 %v6131_v17, 16 }
 0x2af   : > { %v6789_v1 = vsel %vm16822_vm10, %v6784_v15, %v6788_v41  ;;  %v6798_v36 = vrot.slane %v6797_v45, 4  ;;  %v6817_v25 = vrot.slane %v6815_v16, 4  ;;  %v6828_v20 = vshrl.u32 %v6131_v17, 16  ;;  %v6140_v16 = vld [vmem:[#allocation2 + $0x19c] sm:$0xf] }
 0x2b0   : > { %v13832_v44 = vcombine.low %v6779_v2, %v6789_v1  ;;  %v6808_v30 = vrot.slane %v6807_v54, 4  ;;  %v6820_v61 = vrot.slane %v6818_v22, 5  ;;  %v6826_v18 = vrot.slane %v6824_v26, 5  ;;  %v16303_v22 = vld [vmem:[#allocation2 + $0x178] sm:$0xf] }
 0x2b1   : > { %v6803_v38 = vsel %vm16822_vm10, %v6798_v36, %v6802_v9  ;;  %v6830_v35 = vrot.slane %v6828_v20, 4  ;;  %v6834_v57 = vshll.u32 %v6132_v62, 16  ;;  %v13606_v23 = vcombine.low %v16298_v43, %v16299_v7  ;;  %v6139_v9 = vld [vmem:[#allocation2 + $0x198] sm:$0xf]  ;;  %v16302_v62 = vld [vmem:[#allocation2 + $0x174] sm:$0xf] }
 0x2b2   : > { %15192 = vmatprep.mubr.msk.bf16.mxu1 %vm700_vm1, %v13832_v44  ;;  %v6813_v52 = vsel %vm16822_vm10, %v6808_v30, %v6812_v6  ;;  %v6821_v55 = vor.u32 %v6820_v61, %v6817_v25  ;;  %v6839_v3 = vshrl.u32 %v6133_v13, 16  ;;  %v6842_v4 = vshll.u32 %v6133_v13, 16  ;;  %v6141_v13 = vld [vmem:[#allocation2 + $0x1a0] sm:$0x1] }
 0x2b3   : > { %v13833_v31 = vcombine.low %v6803_v38, %v6813_v52  ;;  %v6831_v37 = vor.u32 %v6830_v35, %v6826_v18  ;;  %v6836_v27 = vrot.slane %v6834_v57, 5  ;;  %14995 = vmatmul.mubr.msk.bf16.gmra.mrb[116].mxu0 %vm700_vm1, %v13606_v23  ;;  %v6848_v39 = vshll.u32 %v6134_v24, 16 }
 0x2b4   : > { %v6822_v53 = vrot.slane %v6821_v55, 4  ;;  %v6841_v60 = vrot.slane %v6839_v3, 4  ;;  %v6844_v11 = vrot.slane %v6842_v4, 5  ;;  %v6852_v56 = vshrl.u32 %v6134_v24, 16  ;;  %v16304_v55 = vld [vmem:[#allocation2 + $0x180] sm:$0xf] }
 0x2b5   : > { %15193 = vmatmul.mubr.msk.bf16.gmra.mrb[24].mxu1 %vm700_vm1, %v13833_v31  ;;  %v6832_v48 = vrot.slane %v6831_v37, 4  ;;  %v6850_v41 = vrot.slane %v6848_v39, 5  ;;  %v6858_v8 = vshll.u32 %v6135_v42, 16  ;;  %v13607_v47 = vcombine.low %v16300_v34, %v16301_v10  ;;  %v16305_v42 = vld [vmem:[#allocation2 + $0x184] sm:$0xf] }
 0x2b6   : > { %v6845_v19 = vor.u32 %v6844_v11, %v6841_v60  ;;  %v6854_v21 = vrot.slane %v6852_v56, 4  ;;  %v6863_v40 = vshrl.u32 %v6136_v29, 16  ;;  %v6827_v51 = vsel %vm16822_vm10, %v6822_v53, %v6826_v18  ;;  %v7460_v39 = vld [vmem:[#allocation2 + $0xc] sm:$0xe]  ;;  %v16306_v11 = vld [vmem:[#allocation2 + $0x10] sm:$0xf] }
 0x2b7   : > { %v6837_v12 = vsel %vm16822_vm10, %v6832_v48, %v6836_v27  ;;  %14998 = vmatprep.mubr.msk.bf16.mxu0 %vm700_vm1, %v13607_v47  ;;  %v6866_v58 = vshll.u32 %v6136_v29, 16  ;;  %v6872_v17 = vshll.u32 %v6137_v0, 16  ;;  %v6860_v63 = vrot.slane %v6858_v8, 5  ;;  %v16307_v34 = vld [vmem:[#allocation2 + $0x18c] sm:$0xf] }
 0x2b8   : > { %v13834_v50 = vcombine.low %v6827_v51, %v6837_v12  ;;  %v6846_v14 = vrot.slane %v6845_v19, 4  ;;  %v6855_v49 = vor.u32 %v6854_v21, %v6850_v41  ;;  %v6865_v5 = vrot.slane %v6863_v40, 4  ;;  %v16308_v10 = vld [vmem:[#allocation2 + $0x190] sm:$0xf]  ;;  %v16309_v40 = vld [vmem:[#allocation2 + $0x14] sm:$0x1] }
 0x2b9   : > { %v6868_v2 = vrot.slane %v6866_v58, 5  ;;  %v6874_v15 = vrot.slane %v6872_v17, 5  ;;  %v6876_v45 = vshrl.u32 %v6137_v0, 16  ;;  %v6882_v6 = vshll.u32 %v6138_v59, 16  ;;  %v16310_v12 = vld [vmem:[#allocation2 + $0x1c] sm:$0xf] }
 0x2ba   : > { %15196 = vmatprep.mubr.msk.bf16.mxu1 %vm700_vm1, %v13834_v50  ;;  %v6856_v54 = vrot.slane %v6855_v49, 4  ;;  %v13608_v26 = vcombine.low %v16302_v62, %v16303_v22  ;;  %v6887_v1 = vshrl.u32 %v6139_v9, 16  ;;  %v6851_v36 = vsel %vm16822_vm10, %v6846_v14, %v6850_v41  ;;  %v16313_v22 = vld [vmem:[#allocation2 + $0x4] sm:$0xf]  ;;  %v19197_v8 = vld [vmem:[%s20210_s5] ss:$0 sm:$0xff] }
 0x2bb   : > { %v6869_v25 = vor.u32 %v6868_v2, %v6865_v5  ;;  %v6878_v20 = vrot.slane %v6876_v45, 4  ;;  %v6890_v44 = vshll.u32 %v6139_v9, 16  ;;  %v6896_v18 = vshll.u32 %v6140_v16, 16  ;;  %v4495_v9 = vld [vmem:[#allocation2] sm:$0xe] }
 0x2bc   : > { %v6861_v30 = vsel %vm16822_vm10, %v6856_v54, %v6860_v63  ;;  %14999 = vmatmul.mubr.msk.bf16.gmra.mrb[120].mxu0 %vm700_vm1, %v13608_v26  ;;  %v6889_v61 = vrot.slane %v6887_v1, 4  ;;  %v6900_v24 = vshrl.u32 %v6140_v16, 16  ;;  %v6906_v52 = vshll.u32 %v6141_v13, 16  ;;  %v7461_v5 = vld [vmem:[#allocation2 + $0x18] sm:$0xe] }
 0x2bd   : > { %v13835_v38 = vcombine.low %v6851_v36, %v6861_v30  ;;  %v6870_v35 = vrot.slane %v6869_v25, 4  ;;  %v6879_v57 = vor.u32 %v6878_v20, %v6874_v15  ;;  %v6892_v43 = vrot.slane %v6890_v44, 5  ;;  %v16312_v16 = vld [vmem:[%s20209_s4 + $0x4] sm:$0x3]  ;;  %v16314_v1 = vld [vmem:[#allocation2 + $0x8] sm:$0x1] }
 0x2be   : > { %v6898_v7 = vrot.slane %v6896_v18, 5  ;;  %v6902_v23 = vrot.slane %v6900_v24, 4  ;;  %v13609_v3 = vcombine.low %v16304_v55, %v16305_v42  ;;  %v6884_v31 = vrot.slane %v6882_v6, 5  ;;  %v7462_v6 = vld [vmem:[#allocation2 + $0x24] sm:$0xe] }
 0x2bf   : > { %15197 = vmatmul.mubr.msk.bf16.gmra.mrb[28].mxu1 %vm700_vm1, %v13835_v38  ;;  %v6880_v4 = vrot.slane %v6879_v57, 4  ;;  %v6893_v37 = vor.u32 %v6892_v43, %v6889_v61  ;;  %v6875_v29 = vsel %vm16822_vm10, %v6870_v35, %v6874_v15  ;;  %v7590_v56 = vrot.slane %v16306_v11, 5  ;;  %v16311_v15 = vld [vmem:[#allocation2 + $0x28] sm:$0xf]  ;;  %v16315_v20 = vld [vmem:[#allocation2 + $0x20] sm:$0x1] }
 0x2c0   : > { %v6903_v27 = vor.u32 %v6902_v23, %v6898_v7  ;;  %15002 = vmatprep.mubr.msk.bf16.mxu0 %vm700_vm1, %v13609_v3  ;;  %v6908_v41 = vrot.slane %v6906_v52, 5  ;;  %v13610_v47 = vcombine.low %v16307_v34, %v16308_v10  ;;  %v13870_v19 = vrot.slane %v7460_v39, 9  ;;  %v16316_v30 = vld [vmem:[%s20209_s4 + $0x6] sm:$0x3]  ;;  %v16317_v61 = vld [vmem:[#allocation2 + $0x2c] sm:$0x1] }
 0x2c1   : > { %v6885_v53 = vsel %vm16822_vm10, %v6880_v4, %v6884_v31  ;;  %v6894_v60 = vrot.slane %v6893_v37, 4  ;;  %v7592_v21 = vrot.slane %v7590_v56, 4  ;;  %v7593_v51 = vrot.slane %v16309_v40, 5  ;;  %v4496_v35 = vld [vmem:[#allocation2 + $0xc] sm:$0xe] }
 0x2c2   : > { %v13836_v0 = vcombine.low %v6875_v29, %v6885_v53  ;;  %v6904_v48 = vrot.slane %v6903_v27, 4  ;;  %v7597_v59 = vrot.slane %v16310_v12, 5  ;;  %v7591_v14 = vsel %vm17994_vm2, %v13870_v19, %v7590_v56  ;;  %v16318_v57 = vld [vmem:[#allocation2 + $0x10] sm:$0xf]  ;;  %v16319_v23 = vld [vmem:[%s20209_s4 + $0xc] sm:$0x3] }
 0x2c3   : > { %v6899_v58 = vsel %vm16822_vm10, %v6894_v60, %v6898_v7  ;;  %v7594_v49 = vsel %vm17994_vm2, %v7592_v21, %v7593_v51  ;;  %v7604_v45 = vrot.slane %v16311_v15, 5  ;;  %v5013_v54 = vsel %vm797_vm0, %v16312_v16, 0  ;;  %v16320_v42 = vld [vmem:[#allocation2 + $0x34] sm:$0xf]  ;;  %v4497_v56 = vld [vmem:[#allocation2 + $0x18] sm:$0xe] }
 0x2c4   : > { %15200 = vmatprep.mubr.msk.bf16.mxu1 %vm700_vm1, %v13836_v0  ;;  %v6909_v17 = vsel %vm16822_vm10, %v6904_v48, %v6908_v41  ;;  %15003 = vmatmul.mubr.msk.bf16.gmra.mrb[124].mxu0 %vm700_vm1, %v13610_v47  ;;  %v13903_v63 = vcombine.low %v7591_v14, %v7594_v49  ;;  %v7599_v2 = vrot.slane %v7597_v59, 4  ;;  %v13643_v62 = vrot.slane %v4495_v9, 9  ;;  %v16321_v27 = vld [vmem:[#allocation2 + $0x14] sm:$0x1]  ;;  %v7463_v34 = vld [vmem:[#allocation2 + $0x30] sm:$0xe] }
 0x2c5   : > { %v13837_v50 = vcombine.low %v6899_v58, %v6909_v17  ;;  %15007 = vmatpush3.bf16.msra.mxu0 %v5013_v54  ;;  %v4596_v26 = vrot.slane %v16313_v22, 5  ;;  %v4599_v36 = vrot.slane %v16314_v1, 5  ;;  %v13871_v25 = vrot.slane %v7461_v5, 9  ;;  %v16322_v10 = vld [vmem:[#allocation2 + $0x1c] sm:$0xf] }
 0x2c6   : > { %v7600_v13 = vrot.slane %v16315_v20, 5  ;;  %v7606_v44 = vrot.slane %v7604_v45, 4  ;;  %16073 = vmatprep.subr.msk.bf16.mxu0 %vm797_vm0, %v16316_v30  ;;  %v7607_v18 = vrot.slane %v16317_v61, 5  ;;  %v4603_v43 = vrot.slane %v16318_v57, 5  ;;  %v16323_v40 = vld [vmem:[#allocation2 + $0x38] sm:$0x1] }
 0x2c7   : > { %15201 = vmatmul.mubr.msk.bf16.gmra.mrb[32].mxu1 %vm700_vm1, %v13837_v50  ;;  %v4597_v24 = vsel %vm17994_vm2, %v13643_v62, %v4596_v26  ;;  %v4598_v38 = vrot.slane %v4596_v26, 4  ;;  %v8686_v52 = vsel %vm797_vm0, %v16319_v23, 0  ;;  %v13872_v55 = vrot.slane %v7462_v6, 9  ;;  %v16324_v12 = vld [vmem:[#allocation2 + $0x40] sm:$0xf] }
 0x2c8   : > { %15206 = vmatprep.mubr.msk.bf16.mxu1 %vm700_vm1, %v13903_v63  ;;  %v7601_v7 = vsel %vm17994_vm2, %v7599_v2, %v7600_v13  ;;  %v7611_v3 = vrot.slane %v16320_v42, 5  ;;  %v7608_v4 = vsel %vm17994_vm2, %v7606_v44, %v7607_v18  ;;  %v4605_v37 = vrot.slane %v4603_v43, 4  ;;  %v14032_v58 = vld [vmem:[%s20209_s4 + $0xe] sm:$0x3]  ;;  %v16325_v14 = vld [vmem:[#allocation2 + $0x20] sm:$0x1] }
 0x2c9   : > { %v4600_v31 = vsel %vm17994_vm2, %v4598_v38, %v4599_v36  ;;  %v4606_v39 = vrot.slane %v16321_v27, 5  ;;  %v7598_v29 = vsel %vm17994_vm2, %v13871_v25, %v7597_v59  ;;  %v13644_v60 = vrot.slane %v4496_v35, 9  ;;  %v4498_v5 = vld [vmem:[#allocation2 + $0x24] sm:$0xe]  ;;  %v7464_v15 = vld [vmem:[#allocation2 + $0x3c] sm:$0xe] }
 0x2ca   : > { %v13676_v53 = vcombine.low %v4597_v24, %v4600_v31  ;;  %v7613_v11 = vrot.slane %v7611_v3, 4  ;;  %v13904_v0 = vcombine.low %v7598_v29, %v7601_v7  ;;  %v7605_v48 = vsel %vm17994_vm2, %v13872_v55, %v7604_v45  ;;  %v16326_v16 = vld [vmem:[#allocation2 + $0x28] sm:$0xf]  ;;  %v16327_v22 = vld [vmem:[#allocation2 + $0x44] sm:$0x1] }
 0x2cb   : > { %v4607_v41 = vsel %vm17994_vm2, %v4605_v37, %v4606_v39  ;;  %v4610_v47 = vrot.slane %v16322_v10, 5  ;;  %v13905_v19 = vcombine.low %v7605_v48, %v7608_v4  ;;  %v4604_v21 = vsel %vm17994_vm2, %v13644_v60, %v4603_v43  ;;  %v16328_v1 = vld [vmem:[#allocation2 + $0x4c] sm:$0xf]  ;;  %v4499_v38 = vld [vmem:[#allocation2 + $0x30] sm:$0xe] }
 0x2cc   : > { %15008 = vmatprep.mubr.msk.bf16.mxu0 %vm700_vm1, %v13676_v53  ;;  %v7614_v51 = vrot.slane %v16323_v40, 5  ;;  %v7618_v59 = vrot.slane %v16324_v12, 5  ;;  %v13677_v17 = vcombine.low %v4604_v21, %v4607_v41  ;;  %v13645_v9 = vrot.slane %v4497_v56, 9  ;;  %v16329_v13 = vld [vmem:[#allocation2 + $0x2c] sm:$0x1] }
 0x2cd   : > { %v4612_v50 = vrot.slane %v4610_v47, 4  ;;  %v4613_v49 = vrot.slane %v16325_v14, 5  ;;  %v13873_v63 = vrot.slane %v7463_v34, 9  ;;  %v4617_v54 = vrot.slane %v16326_v16, 5  ;;  %v7465_v43 = vld [vmem:[#allocation2 + $0x48] sm:$0xe] }
 0x2ce   : > { %v7615_v2 = vsel %vm17994_vm2, %v7613_v11, %v7614_v51  ;;  %v7620_v45 = vrot.slane %v7618_v59, 4  ;;  %15009 = vmatmul.mubr.msk.bf16.vlgmr.msra.gmra.mrb[64].mxu0 %vm700_vm1, %v13677_v17  ;;  %v4611_v6 = vsel %vm17994_vm2, %v13645_v9, %v4610_v47  ;;  %v7621_v26 = vrot.slane %v16327_v22, 5  ;;  %v16330_v23 = vld [vmem:[#allocation2 + $0x34] sm:$0xf]  ;;  %v16331_v42 = vld [vmem:[#allocation2 + $0x50] sm:$0x1] }
 0x2cf   : > { %15207 = vmatmul.mubr.msk.bf16.vlgmr.msra.gmra.mrb[36].mxu1 %vm700_vm1, %v13904_v0  ;;  %v4614_v62 = vsel %vm17994_vm2, %v4612_v50, %v4613_v49  ;;  %v7625_v36 = vrot.slane %v16328_v1, 5  ;;  %v4619_v20 = vrot.slane %v4617_v54, 4  ;;  %v4620_v44 = vrot.slane %v16329_v13, 5  ;;  %15073 = vmatpush3.bf16.msra.mxu0 %v17408_v46  ;;  %v16332_v4 = vld [vmem:[#allocation2 + $0x58] sm:$0xf] }
 0x2d0   : > { %15271 = vmatpush3.bf16.msra.mxu1 %v8686_v52  ;;  %15210 = vmatprep.mubr.msk.bf16.mxu1 %vm700_vm1, %v13905_v19  ;;  %v13678_v25 = vcombine.low %v4611_v6, %v4614_v62  ;;  %v7612_v30 = vsel %vm17994_vm2, %v13873_v63, %v7611_v3  ;;  %v13874_v61 = vrot.slane %v7464_v15, 9  ;;  %v7622_v18 = vsel %vm17994_vm2, %v7620_v45, %v7621_v26  ;;  %v16333_v29 = vld [vmem:[#allocation2 + $0x38] sm:$0x1]  ;;  %v16334_v0 = vld [vmem:[#allocation2 + $0x40] sm:$0xf] }
 0x2d1   : > { %16078 = vmatprep.subr.msk.bf16.mxu1 %vm797_vm0, %v14032_v58  ;;  %v13646_v24 = vrot.slane %v4498_v5, 9  ;;  %v13906_v35 = vcombine.low %v7612_v30, %v7615_v2  ;;  %v4621_v57 = vsel %vm17994_vm2, %v4619_v20, %v4620_v44  ;;  %v7627_v7 = vrot.slane %v7625_v36, 4  ;;  %v7466_v47 = vld [vmem:[#allocation2 + $0x54] sm:$0xe]  ;;  %v16335_v19 = vld [vmem:[#allocation2 + $0x64] sm:$0xf] }
 0x2d2   : > { %15012 = vmatprep.mubr.msk.bf16.mxu0 %vm700_vm1, %v13678_v25  ;;  %v4624_v52 = vrot.slane %v16330_v23, 5  ;;  %v7619_v46 = vsel %vm17994_vm2, %v13874_v61, %v7618_v59  ;;  %v7628_v3 = vrot.slane %v16331_v42, 5  ;;  %v7632_v31 = vrot.slane %v16332_v4, 5  ;;  %v16336_v51 = vld [vmem:[#allocation2 + $0x5c] sm:$0x1] }
 0x2d3   : > { %v4618_v55 = vsel %vm17994_vm2, %v13646_v24, %v4617_v54  ;;  %v13907_v37 = vcombine.low %v7619_v46, %v7622_v18  ;;  %v13647_v27 = vrot.slane %v4499_v38, 9  ;;  %v4627_v53 = vrot.slane %v16333_v29, 5  ;;  %v4500_v59 = vld [vmem:[#allocation2 + $0x3c] sm:$0xe]  ;;  %v16337_v9 = vld [vmem:[#allocation2 + $0x44] sm:$0x1] }
 0x2d4   : > { %v4626_v39 = vrot.slane %v4624_v52, 4  ;;  %v13679_v60 = vcombine.low %v4618_v55, %v4621_v57  ;;  %v13875_v11 = vrot.slane %v7465_v43, 9  ;;  %v7634_v56 = vrot.slane %v7632_v31, 4  ;;  %v4501_v14 = vld [vmem:[#allocation2 + $0x48] sm:$0xe] }
 0x2d5   : > { %v4631_v48 = vrot.slane %v16334_v0, 5  ;;  %v7629_v41 = vsel %vm17994_vm2, %v7627_v7, %v7628_v3  ;;  %v4625_v34 = vsel %vm17994_vm2, %v13647_v27, %v4624_v52  ;;  %v7639_v21 = vrot.slane %v16335_v19, 5  ;;  %v16338_v2 = vld [vmem:[#allocation2 + $0x4c] sm:$0xf]  ;;  %v16339_v6 = vld [vmem:[#allocation2 + $0x70] sm:$0xf] }
 0x2d6   : > { %v4628_v10 = vsel %vm17994_vm2, %v4626_v39, %v4627_v53  ;;  %15013 = vmatmul.mubr.msk.bf16.gmra.mrb[68].mxu0 %vm700_vm1, %v13679_v60  ;;  %v7635_v12 = vrot.slane %v16336_v51, 5  ;;  %v7626_v17 = vsel %vm17994_vm2, %v13875_v11, %v7625_v36  ;;  %v4634_v50 = vrot.slane %v16337_v9, 5  ;;  %v7467_v26 = vld [vmem:[#allocation2 + $0x60] sm:$0xe]  ;;  %v16340_v25 = vld [vmem:[#allocation2 + $0x50] sm:$0x1] }
 0x2d7   : > { %15211 = vmatmul.mubr.msk.bf16.gmra.mrb[40].mxu1 %vm700_vm1, %v13906_v35  ;;  %v13680_v40 = vcombine.low %v4625_v34, %v4628_v10  ;;  %v4633_v58 = vrot.slane %v4631_v48, 4  ;;  %v13908_v49 = vcombine.low %v7626_v17, %v7629_v41  ;;  %v13876_v5 = vrot.slane %v7466_v47, 9  ;;  %v16341_v30 = vld [vmem:[#allocation2 + $0x68] sm:$0x1]  ;;  %v16342_v18 = vld [vmem:[#allocation2 + $0x58] sm:$0xf] }
 0x2d8   : > { %15214 = vmatprep.mubr.msk.bf16.mxu1 %vm700_vm1, %v13907_v37  ;;  %v7636_v63 = vsel %vm17994_vm2, %v7634_v56, %v7635_v12  ;;  %v4638_v15 = vrot.slane %v16338_v2, 5  ;;  %v13648_v45 = vrot.slane %v4500_v59, 9  ;;  %v7641_v54 = vrot.slane %v7639_v21, 4  ;;  %v7468_v46 = vld [vmem:[#allocation2 + $0x6c] sm:$0xe] }
 0x2d9   : > { %15016 = vmatprep.mubr.msk.bf16.mxu0 %vm700_vm1, %v13680_v40  ;;  %v4635_v16 = vsel %vm17994_vm2, %v4633_v58, %v4634_v50  ;;  %v7646_v62 = vrot.slane %v16339_v6, 5  ;;  %v7633_v22 = vsel %vm17994_vm2, %v13876_v5, %v7632_v31  ;;  %v13649_v1 = vrot.slane %v4501_v14, 9  ;;  %v16343_v42 = vld [vmem:[#allocation2 + $0x74] sm:$0x1]  ;;  %v4502_v4 = vld [vmem:[#allocation2 + $0x54] sm:$0xe] }
 0x2da   : > { %v4640_v36 = vrot.slane %v4638_v15, 4  ;;  %v4641_v20 = vrot.slane %v16340_v25, 5  ;;  %v13909_v13 = vcombine.low %v7633_v22, %v7636_v63  ;;  %v4632_v44 = vsel %vm17994_vm2, %v13648_v45, %v4631_v48  ;;  %v16344_v31 = vld [vmem:[#allocation2 + $0x7c] sm:$0xf]  ;;  %v4503_v53 = vld [vmem:[#allocation2 + $0x60] sm:$0xe] }
 0x2db   : > { %v7642_v61 = vrot.slane %v16341_v30, 5  ;;  %v4645_v24 = vrot.slane %v16342_v18, 5  ;;  %v13681_v38 = vcombine.low %v4632_v44, %v4635_v16  ;;  %v4639_v35 = vsel %vm17994_vm2, %v13649_v1, %v4638_v15  ;;  %v16345_v39 = vld [vmem:[#allocation2 + $0x5c] sm:$0x1]  ;;  %v16346_v60 = vld [vmem:[#allocation2 + $0x64] sm:$0xf] }
 0x2dc   : > { %v4642_v57 = vsel %vm17994_vm2, %v4640_v36, %v4641_v20  ;;  %v7648_v43 = vrot.slane %v7646_v62, 4  ;;  %v13877_v7 = vrot.slane %v7467_v26, 9  ;;  %v7649_v3 = vrot.slane %v16343_v42, 5  ;;  %v16347_v41 = vld [vmem:[#allocation2 + $0x88] sm:$0xf] }
 0x2dd   : > { %v7643_v23 = vsel %vm17994_vm2, %v7641_v54, %v7642_v61  ;;  %v13682_v52 = vcombine.low %v4639_v35, %v4642_v57  ;;  %v4647_v55 = vrot.slane %v4645_v24, 4  ;;  %v7653_v37 = vrot.slane %v16344_v31, 5  ;;  %v7469_v12 = vld [vmem:[#allocation2 + $0x78] sm:$0xe]  ;;  %v16349_v17 = vld [vmem:[#allocation2 + $0x70] sm:$0xf] }
 0x2de   : > { %15017 = vmatmul.mubr.msk.bf16.gmra.mrb[72].mxu0 %vm700_vm1, %v13681_v38  ;;  %v7640_v27 = vsel %vm17994_vm2, %v13877_v7, %v7639_v21  ;;  %v4648_v29 = vrot.slane %v16345_v39, 5  ;;  %v4652_v11 = vrot.slane %v16346_v60, 5  ;;  %v13878_v0 = vrot.slane %v7468_v46, 9  ;;  %v16348_v21 = vld [vmem:[#allocation2 + $0x68] sm:$0x1] }
 0x2df   : > { %15215 = vmatmul.mubr.msk.bf16.gmra.mrb[44].mxu1 %vm700_vm1, %v13908_v49  ;;  %15020 = vmatprep.mubr.msk.bf16.mxu0 %vm700_vm1, %v13682_v52  ;;  %v13910_v56 = vcombine.low %v7640_v27, %v7643_v23  ;;  %v7650_v48 = vsel %vm17994_vm2, %v7648_v43, %v7649_v3  ;;  %v7660_v34 = vrot.slane %v16347_v41, 5  ;;  %v13650_v10 = vrot.slane %v4502_v4, 9  ;;  %v16350_v63 = vld [vmem:[#allocation2 + $0x80] sm:$0x1]  ;;  %v7470_v6 = vld [vmem:[#allocation2 + $0x84] sm:$0xe] }
 0x2e0   : > { %15218 = vmatprep.mubr.msk.bf16.mxu1 %vm700_vm1, %v13909_v13  ;;  %v4649_v47 = vsel %vm17994_vm2, %v4647_v55, %v4648_v29  ;;  %v4654_v19 = vrot.slane %v4652_v11, 4  ;;  %v4655_v40 = vrot.slane %v16348_v21, 5  ;;  %v7647_v51 = vsel %vm17994_vm2, %v13878_v0, %v7646_v62  ;;  %v16351_v26 = vld [vmem:[#allocation2 + $0x8c] sm:$0x1]  ;;  %v4504_v36 = vld [vmem:[#allocation2 + $0x6c] sm:$0xe] }
 0x2e1   : > { %v7655_v59 = vrot.slane %v7653_v37, 4  ;;  %v13651_v58 = vrot.slane %v4503_v53, 9  ;;  %v4659_v9 = vrot.slane %v16349_v17, 5  ;;  %v13911_v50 = vcombine.low %v7647_v51, %v7650_v48  ;;  %v16352_v25 = vld [vmem:[#allocation2 + $0x94] sm:$0xf] }
 0x2e2   : > { %v4646_v14 = vsel %vm17994_vm2, %v13650_v10, %v4645_v24  ;;  %v4656_v49 = vsel %vm17994_vm2, %v4654_v19, %v4655_v40  ;;  %v7656_v2 = vrot.slane %v16350_v63, 5  ;;  %v7662_v45 = vrot.slane %v7660_v34, 4  ;;  %v16353_v13 = vld [vmem:[#allocation2 + $0x7c] sm:$0xf]  ;;  %v16354_v61 = vld [vmem:[#allocation2 + $0x74] sm:$0x1] }
 0x2e3   : > { %v13683_v5 = vcombine.low %v4646_v14, %v4649_v47  ;;  %v4653_v15 = vsel %vm17994_vm2, %v13651_v58, %v4652_v11  ;;  %v13879_v16 = vrot.slane %v7469_v12, 9  ;;  %v4661_v62 = vrot.slane %v4659_v9, 4  ;;  %v4505_v24 = vld [vmem:[#allocation2 + $0x78] sm:$0xe]  ;;  %v16355_v38 = vld [vmem:[#allocation2 + $0xa0] sm:$0xf] }
 0x2e4   : > { %v13684_v54 = vcombine.low %v4653_v15, %v4656_v49  ;;  %v7657_v22 = vsel %vm17994_vm2, %v7655_v59, %v7656_v2  ;;  %v7663_v1 = vrot.slane %v16351_v26, 5  ;;  %v7667_v20 = vrot.slane %v16352_v25, 5  ;;  %v7471_v7 = vld [vmem:[#allocation2 + $0x90] sm:$0xe]  ;;  %v16356_v52 = vld [vmem:[#allocation2 + $0x80] sm:$0x1] }
 0x2e5   : > { %v4666_v44 = vrot.slane %v16353_v13, 5  ;;  %v7654_v30 = vsel %vm17994_vm2, %v13879_v16, %v7653_v37  ;;  %v4662_v18 = vrot.slane %v16354_v61, 5  ;;  %v7674_v35 = vrot.slane %v16355_v38, 5  ;;  %v16357_v4 = vld [vmem:[#allocation2 + $0x88] sm:$0xf] }
 0x2e6   : > { %15021 = vmatmul.mubr.msk.bf16.gmra.mrb[76].mxu0 %vm700_vm1, %v13683_v5  ;;  %v13880_v57 = vrot.slane %v7470_v6, 9  ;;  %v7664_v43 = vsel %vm17994_vm2, %v7662_v45, %v7663_v1  ;;  %v4669_v46 = vrot.slane %v16356_v52, 5  ;;  %v13912_v55 = vcombine.low %v7654_v30, %v7657_v22  ;;  %v16358_v48 = vld [vmem:[#allocation2 + $0x98] sm:$0x1]  ;;  %v4506_v47 = vld [vmem:[#allocation2 + $0x84] sm:$0xe] }
 0x2e7   : > { %15219 = vmatmul.mubr.msk.bf16.gmra.mrb[48].mxu1 %vm700_vm1, %v13910_v56  ;;  %15024 = vmatprep.mubr.msk.bf16.mxu0 %vm700_vm1, %v13684_v54  ;;  %v4668_v23 = vrot.slane %v4666_v44, 4  ;;  %v13652_v42 = vrot.slane %v4504_v36, 9  ;;  %v4663_v3 = vsel %vm17994_vm2, %v4661_v62, %v4662_v18  ;;  %v4673_v31 = vrot.slane %v16357_v4, 5  ;;  %v16359_v40 = vld [vmem:[#allocation2 + $0xa4] sm:$0x1] }
 0x2e8   : > { %15222 = vmatprep.mubr.msk.bf16.mxu1 %vm700_vm1, %v13911_v50  ;;  %v7661_v37 = vsel %vm17994_vm2, %v13880_v57, %v7660_v34  ;;  %v7669_v27 = vrot.slane %v7667_v20, 4  ;;  %v13653_v39 = vrot.slane %v4505_v24, 9  ;;  %v13881_v11 = vrot.slane %v7471_v7, 9  ;;  %v7472_v34 = vld [vmem:[#allocation2 + $0x9c] sm:$0xe] }
 0x2e9   : > { %v4670_v29 = vsel %vm17994_vm2, %v4668_v23, %v4669_v46  ;;  %v13913_v53 = vcombine.low %v7661_v37, %v7664_v43  ;;  %v4660_v60 = vsel %vm17994_vm2, %v13652_v42, %v4659_v9  ;;  %v7676_v56 = vrot.slane %v7674_v35, 4  ;;  %v16360_v12 = vld [vmem:[#allocation2 + $0x94] sm:$0xf]  ;;  %v16361_v9 = vld [vmem:[#allocation2 + $0x8c] sm:$0x1] }
 0x2ea   : > { %v13685_v0 = vcombine.low %v4660_v60, %v4663_v3  ;;  %v7670_v41 = vrot.slane %v16358_v48, 5  ;;  %v4667_v10 = vsel %vm17994_vm2, %v13653_v39, %v4666_v44  ;;  %v4675_v19 = vrot.slane %v4673_v31, 4  ;;  %v16362_v14 = vld [vmem:[#allocation2 + $0xac] sm:$0xf]  ;;  %v4507_v15 = vld [vmem:[#allocation2 + $0x90] sm:$0xe] }
 0x2eb   : > { %v13686_v21 = vcombine.low %v4667_v10, %v4670_v29  ;;  %v7677_v51 = vrot.slane %v16359_v40, 5  ;;  %v4680_v59 = vrot.slane %v16360_v12, 5  ;;  %v7668_v58 = vsel %vm17994_vm2, %v13881_v11, %v7667_v20  ;;  %v16363_v54 = vld [vmem:[#allocation2 + $0x98] sm:$0x1]  ;;  %v16365_v26 = vld [vmem:[#allocation2 + $0xa0] sm:$0xf] }
 0x2ec   : > { %v7671_v17 = vsel %vm17994_vm2, %v7669_v27, %v7670_v41  ;;  %v4676_v50 = vrot.slane %v16361_v9, 5  ;;  %v7681_v49 = vrot.slane %v16362_v14, 5  ;;  %v13882_v5 = vrot.slane %v7472_v34, 9  ;;  %v16364_v62 = vld [vmem:[#allocation2 + $0xb8] sm:$0xf] }
 0x2ed   : > { %v7678_v63 = vsel %vm17994_vm2, %v7676_v56, %v7677_v51  ;;  %v13654_v2 = vrot.slane %v4506_v47, 9  ;;  %v4682_v45 = vrot.slane %v4680_v59, 4  ;;  %v4683_v6 = vrot.slane %v16363_v54, 5  ;;  %v7473_v13 = vld [vmem:[#allocation2 + $0xa8] sm:$0xe] }
 0x2ee   : > { %15025 = vmatmul.mubr.msk.bf16.gmra.mrb[80].mxu0 %vm700_vm1, %v13685_v0  ;;  %v4677_v16 = vsel %vm17994_vm2, %v4675_v19, %v4676_v50  ;;  %v7688_v22 = vrot.slane %v16364_v62, 5  ;;  %v4687_v1 = vrot.slane %v16365_v26, 5  ;;  %v13914_v36 = vcombine.low %v7668_v58, %v7671_v17  ;;  %v16366_v38 = vld [vmem:[#allocation2 + $0xb0] sm:$0x1]  ;;  %v4508_v43 = vld [vmem:[#allocation2 + $0x9c] sm:$0xe] }
 0x2ef   : > { %15223 = vmatmul.mubr.msk.bf16.gmra.mrb[52].mxu1 %vm700_vm1, %v13912_v55  ;;  %15028 = vmatprep.mubr.msk.bf16.mxu0 %vm700_vm1, %v13686_v21  ;;  %v7675_v25 = vsel %vm17994_vm2, %v13882_v5, %v7674_v35  ;;  %v4674_v20 = vsel %vm17994_vm2, %v13654_v2, %v4673_v31  ;;  %v7683_v44 = vrot.slane %v7681_v49, 4  ;;  %v13655_v30 = vrot.slane %v4507_v15, 9  ;;  %v7474_v35 = vld [vmem:[#allocation2 + $0xb4] sm:$0xe]  ;;  %v16367_v46 = vld [vmem:[#allocation2 + $0xac] sm:$0xf] }
 0x2f0   : > { %15226 = vmatprep.mubr.msk.bf16.mxu1 %vm700_vm1, %v13913_v53  ;;  %v4684_v61 = vsel %vm17994_vm2, %v4682_v45, %v4683_v6  ;;  %v13915_v18 = vcombine.low %v7675_v25, %v7678_v63  ;;  %v13687_v24 = vcombine.low %v4674_v20, %v4677_v16  ;;  %v7684_v57 = vrot.slane %v16366_v38, 5  ;;  %v16368_v31 = vld [vmem:[#allocation2 + $0xbc] sm:$0x1]  ;;  %v16369_v27 = vld [vmem:[#allocation2 + $0xa4] sm:$0x1] }
 0x2f1   : > { %v4681_v7 = vsel %vm17994_vm2, %v13655_v30, %v4680_v59  ;;  %v7690_v23 = vrot.slane %v7688_v22, 4  ;;  %v4689_v52 = vrot.slane %v4687_v1, 4  ;;  %v4694_v55 = vrot.slane %v16367_v46, 5  ;;  %v4509_v29 = vld [vmem:[#allocation2 + $0xa8] sm:$0xe] }
 0x2f2   : > { %v13883_v42 = vrot.slane %v7473_v13, 9  ;;  %v13688_v3 = vcombine.low %v4681_v7, %v4684_v61  ;;  %v7685_v4 = vsel %vm17994_vm2, %v7683_v44, %v7684_v57  ;;  %v7691_v37 = vrot.slane %v16368_v31, 5  ;;  %v7475_v0 = vld [vmem:[#allocation2 + $0xc0] sm:$0xe]  ;;  %v16370_v48 = vld [vmem:[#allocation2 + $0xc4] sm:$0xf] }
 0x2f3   : > { %v4690_v39 = vrot.slane %v16369_v27, 5  ;;  %v4696_v53 = vrot.slane %v4694_v55, 4  ;;  %v13884_v11 = vrot.slane %v7474_v35, 9  ;;  %v13656_v56 = vrot.slane %v4508_v43, 9  ;;  %v16371_v47 = vld [vmem:[#allocation2 + $0xb0] sm:$0x1] }
 0x2f4   : > { %v7682_v60 = vsel %vm17994_vm2, %v13883_v42, %v7681_v49  ;;  %v7695_v41 = vrot.slane %v16370_v48, 5  ;;  %v7692_v10 = vsel %vm17994_vm2, %v7690_v23, %v7691_v37  ;;  %v4697_v19 = vrot.slane %v16371_v47, 5  ;;  %v16372_v21 = vld [vmem:[#allocation2 + $0xe8] sm:$0xf]  ;;  %v16373_v59 = vld [vmem:[#allocation2 + $0xb8] sm:$0xf] }
 0x2f5   : > { %v4691_v34 = vsel %vm17994_vm2, %v4689_v52, %v4690_v39  ;;  %v7702_v40 = vrot.slane %v16372_v21, 5  ;;  %v13916_v51 = vcombine.low %v7682_v60, %v7685_v4  ;;  %v13657_v12 = vrot.slane %v4509_v29, 9  ;;  %v4511_v17 = vld [vmem:[#allocation2 + $0xd8] sm:$0xe]  ;;  %v7476_v45 = vld [vmem:[#allocation2 + $0xe4] sm:$0xe] }
 0x2f6   : > { %15029 = vmatmul.mubr.msk.bf16.gmra.mrb[84].mxu0 %vm700_vm1, %v13687_v24  ;;  %v4701_v58 = vrot.slane %v16373_v59, 5  ;;  %v7689_v9 = vsel %vm17994_vm2, %v13884_v11, %v7688_v22  ;;  %v4688_v50 = vsel %vm17994_vm2, %v13656_v56, %v4687_v1  ;;  %v13885_v14 = vrot.slane %v7475_v0, 9  ;;  %v16374_v6 = vld [vmem:[#allocation2 + $0xdc] sm:$0xf]  ;;  %v16375_v22 = vld [vmem:[#allocation2 + $0xe0] sm:$0x1] }
 0x2f7   : > { %15227 = vmatmul.mubr.msk.bf16.gmra.mrb[56].mxu1 %vm700_vm1, %v13914_v36  ;;  %15032 = vmatprep.mubr.msk.bf16.mxu0 %vm700_vm1, %v13688_v3  ;;  %v4698_v49 = vsel %vm17994_vm2, %v4696_v53, %v4697_v19  ;;  %v13917_v5 = vcombine.low %v7689_v9, %v7692_v10  ;;  %v13689_v63 = vcombine.low %v4688_v50, %v4691_v34  ;;  %v7697_v2 = vrot.slane %v7695_v41, 4  ;;  %v16376_v1 = vld [vmem:[#allocation2 + $0xc8] sm:$0x1]  ;;  %v16377_v13 = vld [vmem:[#allocation2 + $0xf4] sm:$0xf] }
 0x2f8   : > { %15230 = vmatprep.mubr.msk.bf16.mxu1 %vm700_vm1, %v13915_v18  ;;  %v4695_v15 = vsel %vm17994_vm2, %v13657_v12, %v4694_v55  ;;  %v7704_v16 = vrot.slane %v7702_v40, 4  ;;  %v13659_v54 = vrot.slane %v4511_v17, 9  ;;  %v4708_v62 = vrot.slane %v16374_v6, 5  ;;  %v16378_v30 = vld [vmem:[#allocation2 + $0xec] sm:$0x1] }
 0x2f9   : > { %v4711_v26 = vrot.slane %v16375_v22, 5  ;;  %v7698_v36 = vrot.slane %v16376_v1, 5  ;;  %v13690_v25 = vcombine.low %v4695_v15, %v4698_v49  ;;  %v4703_v20 = vrot.slane %v4701_v58, 4  ;;  %v4510_v18 = vld [vmem:[#allocation2 + $0xb4] sm:$0xe] }
 0x2fa   : > { %v7709_v44 = vrot.slane %v16377_v13, 5  ;;  %v7705_v61 = vrot.slane %v16378_v30, 5  ;;  %v4710_v24 = vrot.slane %v4708_v62, 4  ;;  %v7696_v38 = vsel %vm17994_vm2, %v13885_v14, %v7695_v41  ;;  %v16379_v7 = vld [vmem:[#allocation2 + $0xbc] sm:$0x1] }
 0x2fb   : > { %v7699_v57 = vsel %vm17994_vm2, %v7697_v2, %v7698_v36  ;;  %v13886_v43 = vrot.slane %v7476_v45, 9  ;;  %v4704_v35 = vrot.slane %v16379_v7, 5  ;;  %v16380_v52 = vld [vmem:[#allocation2 + $0x100] sm:$0xf]  ;;  %v4709_v55 = vsel %vm17994_vm2, %v13659_v54, %v4708_v62  ;;  %v16381_v37 = vld [vmem:[#allocation2 + $0xe8] sm:$0xf] }
 0x2fc   : > { %v7706_v23 = vsel %vm17994_vm2, %v7704_v16, %v7705_v61  ;;  %v7716_v46 = vrot.slane %v16380_v52, 5  ;;  %v4712_v42 = vsel %vm17994_vm2, %v4710_v24, %v4711_v26  ;;  %v13658_v3 = vrot.slane %v4510_v18, 9  ;;  %v7477_v53 = vld [vmem:[#allocation2 + $0xf0] sm:$0xe]  ;;  %v16382_v60 = vld [vmem:[#allocation2 + $0xf4] sm:$0xf] }
 0x2fd   : > { %v4705_v4 = vsel %vm17994_vm2, %v4703_v20, %v4704_v35  ;;  %v7711_v31 = vrot.slane %v7709_v44, 4  ;;  %v4715_v27 = vrot.slane %v16381_v37, 5  ;;  %v13918_v39 = vcombine.low %v7696_v38, %v7699_v57  ;;  %v16383_v48 = vld [vmem:[#allocation2 + $0xf8] sm:$0x1]  ;;  %v7478_v47 = vld [vmem:[#allocation2 + $0xfc] sm:$0xe] }
 0x2fe   : > { %15033 = vmatmul.mubr.msk.bf16.gmra.mrb[88].mxu0 %vm700_vm1, %v13689_v63  ;;  %v7703_v29 = vsel %vm17994_vm2, %v13886_v43, %v7702_v40  ;;  %v4722_v11 = vrot.slane %v16382_v60, 5  ;;  %v4702_v0 = vsel %vm17994_vm2, %v13658_v3, %v4701_v58  ;;  %v7712_v41 = vrot.slane %v16383_v48, 5  ;;  %v16384_v12 = vld [vmem:[#allocation2 + $0x10c] sm:$0xf]  ;;  %v16385_v58 = vld [vmem:[#allocation2 + $0x104] sm:$0x1] }
 0x2ff   : > { %15231 = vmatmul.mubr.msk.bf16.gmra.mrb[60].mxu1 %vm700_vm1, %v13916_v51  ;;  %15036 = vmatprep.mubr.msk.bf16.mxu0 %vm700_vm1, %v13690_v25  ;;  %v13919_v56 = vcombine.low %v7703_v29, %v7706_v23  ;;  %v13692_v10 = vcombine.low %v4709_v55, %v4712_v42  ;;  %v13691_v34 = vcombine.low %v4702_v0, %v4705_v4  ;;  %v7718_v19 = vrot.slane %v7716_v46, 4  ;;  %v4512_v9 = vld [vmem:[#allocation2 + $0xe4] sm:$0xe]  ;;  %v4513_v2 = vld [vmem:[#allocation2 + $0xf0] sm:$0xe] }
 0x300   : > { %15234 = vmatprep.mubr.msk.bf16.mxu1 %vm700_vm1, %v13917_v5  ;;  %v13887_v21 = vrot.slane %v7477_v53, 9  ;;  %v7713_v40 = vsel %vm17994_vm2, %v7711_v31, %v7712_v41  ;;  %v4717_v51 = vrot.slane %v4715_v27, 4  ;;  %v7723_v59 = vrot.slane %v16384_v12, 5  ;;  %v16386_v5 = vld [vmem:[#allocation2 + $0xec] sm:$0x1] }
 0x301   : > { %v7719_v17 = vrot.slane %v16385_v58, 5  ;;  %v4724_v50 = vrot.slane %v4722_v11, 4  ;;  %v13888_v49 = vrot.slane %v7478_v47, 9  ;;  %v4718_v63 = vrot.slane %v16386_v5, 5  ;;  %v16387_v16 = vld [vmem:[#allocation2 + $0xf8] sm:$0x1] }
 0x302   : > { %v7710_v14 = vsel %vm17994_vm2, %v13887_v21, %v7709_v44  ;;  %v4725_v54 = vrot.slane %v16387_v16, 5  ;;  %v16388_v6 = vld [vmem:[#allocation2 + $0x118] sm:$0xf]  ;;  %v13660_v22 = vrot.slane %v4512_v9, 9  ;;  %v7479_v1 = vld [vmem:[#allocation2 + $0x108] sm:$0xe] }
 0x303   : > { %v13920_v15 = vcombine.low %v7710_v14, %v7713_v40  ;;  %v7720_v45 = vsel %vm17994_vm2, %v7718_v19, %v7719_v17  ;;  %v7730_v62 = vrot.slane %v16388_v6, 5  ;;  %v4719_v26 = vsel %vm17994_vm2, %v4717_v51, %v4718_v63  ;;  %v16389_v25 = vld [vmem:[#allocation2 + $0x100] sm:$0xf]  ;;  %v16390_v61 = vld [vmem:[#allocation2 + $0x10c] sm:$0xf] }
 0x304   : > { %v7725_v36 = vrot.slane %v7723_v59, 4  ;;  %v4729_v20 = vrot.slane %v16389_v25, 5  ;;  %v7717_v13 = vsel %vm17994_vm2, %v13888_v49, %v7716_v46  ;;  %v13661_v44 = vrot.slane %v4513_v2, 9  ;;  %v16391_v57 = vld [vmem:[#allocation2 + $0x110] sm:$0x1] }
 0x305   : > { %v4726_v30 = vsel %vm17994_vm2, %v4724_v50, %v4725_v54  ;;  %v4736_v18 = vrot.slane %v16390_v61, 5  ;;  %v13921_v24 = vcombine.low %v7717_v13, %v7720_v45  ;;  %v4716_v38 = vsel %vm17994_vm2, %v13660_v22, %v4715_v27  ;;  %v7480_v52 = vld [vmem:[#allocation2 + $0x114] sm:$0xe]  ;;  %v16392_v4 = vld [vmem:[#allocation2 + $0x124] sm:$0xf] }
 0x306   : > { %15037 = vmatmul.mubr.msk.bf16.gmra.mrb[92].mxu0 %vm700_vm1, %v13691_v34  ;;  %v7726_v43 = vrot.slane %v16391_v57, 5  ;;  %v13693_v7 = vcombine.low %v4716_v38, %v4719_v26  ;;  %v13889_v35 = vrot.slane %v7479_v1, 9  ;;  %v4723_v23 = vsel %vm17994_vm2, %v13661_v44, %v4722_v11  ;;  %v16393_v37 = vld [vmem:[#allocation2 + $0x11c] sm:$0x1]  ;;  %v16394_v11 = vld [vmem:[#allocation2 + $0x104] sm:$0x1] }
 0x307   : > { %15235 = vmatmul.mubr.msk.bf16.gmra.mrb[0].mxu1 %vm700_vm1, %v13918_v39  ;;  %15040 = vmatprep.mubr.msk.bf16.mxu0 %vm700_vm1, %v13692_v10  ;;  %v7732_v46 = vrot.slane %v7730_v62, 4  ;;  %v13694_v42 = vcombine.low %v4723_v23, %v4726_v30  ;;  %v4731_v3 = vrot.slane %v4729_v20, 4  ;;  %v7737_v31 = vrot.slane %v16392_v4, 5  ;;  %v4514_v39 = vld [vmem:[#allocation2 + $0xfc] sm:$0xe] }
 0x308   : > { %15238 = vmatprep.mubr.msk.bf16.mxu1 %vm700_vm1, %v13919_v56  ;;  %v7727_v55 = vsel %vm17994_vm2, %v7725_v36, %v7726_v43  ;;  %v7733_v27 = vrot.slane %v16393_v37, 5  ;;  %v4738_v29 = vrot.slane %v4736_v18, 4  ;;  %v7724_v53 = vsel %vm17994_vm2, %v13889_v35, %v7723_v59  ;;  %v4515_v0 = vld [vmem:[#allocation2 + $0x108] sm:$0xe]  ;;  %v16395_v10 = vld [vmem:[#allocation2 + $0x110] sm:$0x1] }
 0x309   : > { %v13890_v60 = vrot.slane %v7480_v52, 9  ;;  %v4732_v56 = vrot.slane %v16394_v11, 5  ;;  %v13922_v48 = vcombine.low %v7724_v53, %v7727_v55  ;;  %v4739_v34 = vrot.slane %v16395_v10, 5  ;;  %v16396_v47 = vld [vmem:[#allocation2 + $0x130] sm:$0xf] }
 0x30a   : > { %v7734_v41 = vsel %vm17994_vm2, %v7732_v46, %v7733_v27  ;;  %v7744_v19 = vrot.slane %v16396_v47, 5  ;;  %v13662_v21 = vrot.slane %v4514_v39, 9  ;;  %v7481_v51 = vld [vmem:[#allocation2 + $0x120] sm:$0xe]  ;;  %v7739_v12 = vrot.slane %v7737_v31, 4 }
 0x30b   : > { %v4733_v40 = vsel %vm17994_vm2, %v4731_v3, %v4732_v56  ;;  %v16397_v59 = vld [vmem:[#allocation2 + $0x118] sm:$0xf]  ;;  %v7731_v17 = vsel %vm17994_vm2, %v13890_v60, %v7730_v62  ;;  %v13663_v9 = vrot.slane %v4515_v0, 9  ;;  %v4740_v50 = vsel %vm17994_vm2, %v4738_v29, %v4739_v34  ;;  %v16398_v14 = vld [vmem:[#allocation2 + $0x124] sm:$0xf] }
 0x30c   : > { %v4743_v58 = vrot.slane %v16397_v59, 5  ;;  %v4750_v49 = vrot.slane %v16398_v14, 5  ;;  %v13923_v5 = vcombine.low %v7731_v17, %v7734_v41  ;;  %v4730_v63 = vsel %vm17994_vm2, %v13662_v21, %v4729_v20  ;;  %v16399_v2 = vld [vmem:[#allocation2 + $0x128] sm:$0x1]  ;;  %v7482_v6 = vld [vmem:[#allocation2 + $0x12c] sm:$0xe] }
 0x30d   : > { %v13695_v45 = vcombine.low %v4730_v63, %v4733_v40  ;;  %v13891_v16 = vrot.slane %v7481_v51, 9  ;;  %v4737_v54 = vsel %vm17994_vm2, %v13663_v9, %v4736_v18  ;;  %v7746_v62 = vrot.slane %v7744_v19, 4  ;;  %v16400_v36 = vld [vmem:[#allocation2 + $0x13c] sm:$0xf]  ;;  %v16401_v20 = vld [vmem:[#allocation2 + $0x134] sm:$0x1] }
 0x30e   : > { %15041 = vmatmul.mubr.msk.bf16.gmra.mrb[96].mxu0 %vm700_vm1, %v13693_v7  ;;  %v13696_v26 = vcombine.low %v4737_v54, %v4740_v50  ;;  %v4745_v1 = vrot.slane %v4743_v58, 4  ;;  %v7751_v25 = vrot.slane %v16400_v36, 5  ;;  %v7747_v13 = vrot.slane %v16401_v20, 5  ;;  %v4516_v44 = vld [vmem:[#allocation2 + $0x114] sm:$0xe] }
 0x30f   : > { %15239 = vmatmul.mubr.msk.bf16.gmra.mrb[4].mxu1 %vm700_vm1, %v13920_v15  ;;  %15044 = vmatprep.mubr.msk.bf16.mxu0 %vm700_vm1, %v13694_v42  ;;  %v7740_v15 = vrot.slane %v16399_v2, 5  ;;  %v4752_v30 = vrot.slane %v4750_v49, 4  ;;  %v7738_v61 = vsel %vm17994_vm2, %v13891_v16, %v7737_v31  ;;  %v13892_v18 = vrot.slane %v7482_v6, 9  ;;  %v4517_v57 = vld [vmem:[#allocation2 + $0x120] sm:$0xe] }
 0x310   : > { %15242 = vmatprep.mubr.msk.bf16.mxu1 %vm700_vm1, %v13921_v24  ;;  %v16402_v24 = vld [vmem:[#allocation2 + $0x11c] sm:$0x1]  ;;  %v7748_v7 = vsel %vm17994_vm2, %v7746_v62, %v7747_v13  ;;  %v16403_v35 = vld [vmem:[#allocation2 + $0x128] sm:$0x1]  ;;  %v13664_v55 = vrot.slane %v4516_v44, 9  ;;  %v7753_v4 = vrot.slane %v7751_v25, 4 }
 0x311   : > { %v7741_v22 = vsel %vm17994_vm2, %v7739_v12, %v7740_v15  ;;  %v4746_v38 = vrot.slane %v16402_v24, 5  ;;  %v4753_v23 = vrot.slane %v16403_v35, 5  ;;  %v16404_v52 = vld [vmem:[#allocation2 + $0x148] sm:$0xf]  ;;  %v7483_v3 = vld [vmem:[#allocation2 + $0x138] sm:$0xe]  ;;  %v7745_v27 = vsel %vm17994_vm2, %v13892_v18, %v7744_v19 }
 0x312   : > { %v13924_v43 = vcombine.low %v7738_v61, %v7741_v22  ;;  %v7758_v46 = vrot.slane %v16404_v52, 5  ;;  %v16405_v31 = vld [vmem:[#allocation2 + $0x130] sm:$0xf]  ;;  %v13665_v39 = vrot.slane %v4517_v57, 9  ;;  %v16406_v53 = vld [vmem:[#allocation2 + $0x13c] sm:$0xf]  ;;  %v13925_v11 = vcombine.low %v7745_v27, %v7748_v7 }
 0x313   : > { %v4747_v42 = vsel %vm17994_vm2, %v4745_v1, %v4746_v38  ;;  %v4757_v37 = vrot.slane %v16405_v31, 5  ;;  %v4754_v29 = vsel %vm17994_vm2, %v4752_v30, %v4753_v23  ;;  %v4764_v60 = vrot.slane %v16406_v53, 5  ;;  %v16407_v0 = vld [vmem:[#allocation2 + $0x140] sm:$0x1]  ;;  %v7484_v47 = vld [vmem:[#allocation2 + $0x144] sm:$0xe] }
 0x314   : > { %v4744_v56 = vsel %vm17994_vm2, %v13664_v55, %v4743_v58  ;;  %v13893_v10 = vrot.slane %v7483_v3, 9  ;;  %v4751_v34 = vsel %vm17994_vm2, %v13665_v39, %v4750_v49  ;;  %v7760_v19 = vrot.slane %v7758_v46, 4  ;;  %v16408_v12 = vld [vmem:[#allocation2 + $0x154] sm:$0xf]  ;;  %v16409_v58 = vld [vmem:[#allocation2 + $0x14c] sm:$0x1] }
 0x315   : > { %v13697_v41 = vcombine.low %v4744_v56, %v4747_v42  ;;  %v13698_v40 = vcombine.low %v4751_v34, %v4754_v29  ;;  %v4759_v51 = vrot.slane %v4757_v37, 4  ;;  %v7765_v59 = vrot.slane %v16408_v12, 5  ;;  %v4518_v9 = vld [vmem:[#allocation2 + $0x12c] sm:$0xe]  ;;  %v4519_v2 = vld [vmem:[#allocation2 + $0x138] sm:$0xe] }
 0x316   : > { %15045 = vmatmul.mubr.msk.bf16.gmra.mrb[100].mxu0 %vm700_vm1, %v13695_v45  ;;  %v7761_v17 = vrot.slane %v16409_v58, 5  ;;  %v4766_v50 = vrot.slane %v4764_v60, 4  ;;  %v7752_v14 = vsel %vm17994_vm2, %v13893_v10, %v7751_v25  ;;  %v13894_v49 = vrot.slane %v7484_v47, 9  ;;  %v16411_v16 = vld [vmem:[#allocation2 + $0x140] sm:$0x1] }
 0x317   : > { %15243 = vmatmul.mubr.msk.bf16.gmra.mrb[8].mxu1 %vm700_vm1, %v13922_v48  ;;  %15048 = vmatprep.mubr.msk.bf16.mxu0 %vm700_vm1, %v13696_v26  ;;  %v7754_v48 = vrot.slane %v16407_v0, 5  ;;  %v4767_v54 = vrot.slane %v16411_v16, 5  ;;  %v16412_v6 = vld [vmem:[#allocation2 + $0x160] sm:$0xf]  ;;  %v13666_v22 = vrot.slane %v4518_v9, 9  ;;  %v7767_v1 = vrot.slane %v7765_v59, 4 }
 0x318   : > { %15246 = vmatprep.mubr.msk.bf16.mxu1 %vm700_vm1, %v13923_v5  ;;  %v16410_v5 = vld [vmem:[#allocation2 + $0x134] sm:$0x1]  ;;  %v7762_v45 = vsel %vm17994_vm2, %v7760_v19, %v7761_v17  ;;  %v7772_v62 = vrot.slane %v16412_v6, 5  ;;  %v16413_v36 = vld [vmem:[#allocation2 + $0x148] sm:$0xf]  ;;  %v7759_v20 = vsel %vm17994_vm2, %v13894_v49, %v7758_v46  ;;  %v13667_v44 = vrot.slane %v4519_v2, 9 }
 0x319   : > { %v7755_v21 = vsel %vm17994_vm2, %v7753_v4, %v7754_v48  ;;  %v4760_v63 = vrot.slane %v16410_v5, 5  ;;  %v4771_v25 = vrot.slane %v16413_v36, 5  ;;  %v7485_v13 = vld [vmem:[#allocation2 + $0x150] sm:$0xe]  ;;  %v4768_v30 = vsel %vm17994_vm2, %v4766_v50, %v4767_v54  ;;  %v16414_v61 = vld [vmem:[#allocation2 + $0x154] sm:$0xf] }
 0x31a   : > { %v13926_v15 = vcombine.low %v7752_v14, %v7755_v21  ;;  %v4778_v18 = vrot.slane %v16414_v61, 5  ;;  %v13927_v24 = vcombine.low %v7759_v20, %v7762_v45  ;;  %v4758_v38 = vsel %vm17994_vm2, %v13666_v22, %v4757_v37  ;;  %v16415_v57 = vld [vmem:[#allocation2 + $0x158] sm:$0x1]  ;;  %v7486_v23 = vld [vmem:[#allocation2 + $0x15c] sm:$0xe] }
 0x31b   : > { %v4761_v26 = vsel %vm17994_vm2, %v4759_v51, %v4760_v63  ;;  %v4765_v35 = vsel %vm17994_vm2, %v13667_v44, %v4764_v60  ;;  %v7774_v52 = vrot.slane %v7772_v62, 4  ;;  %v13895_v46 = vrot.slane %v7485_v13, 9  ;;  %v16416_v4 = vld [vmem:[#allocation2 + $0x164] sm:$0x1]  ;;  %v4520_v37 = vld [vmem:[#allocation2 + $0x144] sm:$0xe] }
 0x31c   : > { %v13699_v7 = vcombine.low %v4758_v38, %v4761_v26  ;;  %v13700_v42 = vcombine.low %v4765_v35, %v4768_v30  ;;  %v4773_v3 = vrot.slane %v4771_v25, 4  ;;  %v7775_v31 = vrot.slane %v16416_v4, 5  ;;  %v16417_v27 = vld [vmem:[#allocation2 + $0x16c] sm:$0xf]  ;;  %v4521_v0 = vld [vmem:[#allocation2 + $0x150] sm:$0xe] }
 0x31d   : > { %v7779_v39 = vrot.slane %v16417_v27, 5  ;;  %v4780_v29 = vrot.slane %v4778_v18, 4  ;;  %v7766_v53 = vsel %vm17994_vm2, %v13895_v46, %v7765_v59  ;;  %v13896_v60 = vrot.slane %v7486_v23, 9  ;;  %v16419_v10 = vld [vmem:[#allocation2 + $0x158] sm:$0x1] }
 0x31e   : > { %15049 = vmatmul.mubr.msk.bf16.gmra.mrb[104].mxu0 %vm700_vm1, %v13697_v41  ;;  %v7776_v41 = vsel %vm17994_vm2, %v7774_v52, %v7775_v31  ;;  %v4781_v34 = vrot.slane %v16419_v10, 5  ;;  %v16420_v47 = vld [vmem:[#allocation2 + $0x178] sm:$0xf]  ;;  %v16421_v12 = vld [vmem:[#allocation2 + $0x160] sm:$0xf]  ;;  %v13669_v9 = vrot.slane %v4521_v0, 9 }
 0x31f   : > { %15247 = vmatmul.mubr.msk.bf16.gmra.mrb[12].mxu1 %vm700_vm1, %v13924_v43  ;;  %15052 = vmatprep.mubr.msk.bf16.mxu0 %vm700_vm1, %v13698_v40  ;;  %v7768_v43 = vrot.slane %v16415_v57, 5  ;;  %v7786_v19 = vrot.slane %v16420_v47, 5  ;;  %v7773_v21 = vsel %vm17994_vm2, %v13896_v60, %v7772_v62  ;;  %v13668_v40 = vrot.slane %v4520_v37, 9  ;;  %v7487_v58 = vld [vmem:[#allocation2 + $0x168] sm:$0xe] }
 0x320   : > { %15250 = vmatprep.mubr.msk.bf16.mxu1 %vm700_vm1, %v13925_v11  ;;  %v16418_v11 = vld [vmem:[#allocation2 + $0x14c] sm:$0x1]  ;;  %v4785_v59 = vrot.slane %v16421_v12, 5  ;;  %v7781_v17 = vrot.slane %v7779_v39, 4  ;;  %v4782_v50 = vsel %vm17994_vm2, %v4780_v29, %v4781_v34  ;;  %v13929_v5 = vcombine.low %v7773_v21, %v7776_v41  ;;  %v7488_v26 = vld [vmem:[#allocation2 + $0x174] sm:$0xe] }
 0x321   : > { %v7769_v55 = vsel %vm17994_vm2, %v7767_v1, %v7768_v43  ;;  %v4774_v56 = vrot.slane %v16418_v11, 5  ;;  %v16422_v14 = vld [vmem:[#allocation2 + $0x16c] sm:$0xf]  ;;  %v4772_v63 = vsel %vm17994_vm2, %v13668_v40, %v4771_v25  ;;  %v4779_v16 = vsel %vm17994_vm2, %v13669_v9, %v4778_v18  ;;  %v16424_v25 = vld [vmem:[#allocation2 + $0x17c] sm:$0x1] }
 0x322   : > { %v13928_v48 = vcombine.low %v7766_v53, %v7769_v55  ;;  %v4792_v49 = vrot.slane %v16422_v14, 5  ;;  %v7788_v54 = vrot.slane %v7786_v19, 4  ;;  %v1365_v6 = vld [vmem:[#allocation2 + $0xcc] sm:$0x1]  ;;  %v13897_v62 = vrot.slane %v7487_v58, 9 }
 0x323   : > { %v4775_v51 = vsel %vm17994_vm2, %v4773_v3, %v4774_v56  ;;  %v13702_v22 = vcombine.low %v4779_v16, %v4782_v50  ;;  %v4787_v1 = vrot.slane %v4785_v59, 4  ;;  %v7789_v20 = vrot.slane %v16424_v25, 5  ;;  %v4522_v13 = vld [vmem:[#allocation2 + $0x15c] sm:$0xe]  ;;  %v16425_v61 = vld [vmem:[#allocation2 + $0x164] sm:$0x1] }
 0x324   : > { %v13701_v2 = vcombine.low %v4772_v63, %v4775_v51  ;;  %v4794_v44 = vrot.slane %v4792_v49, 4  ;;  %v7780_v30 = vsel %vm17994_vm2, %v13897_v62, %v7779_v39  ;;  %v4788_v18 = vrot.slane %v16425_v61, 5  ;;  %v4523_v57 = vld [vmem:[#allocation2 + $0x168] sm:$0xe]  ;;  %v16427_v23 = vld [vmem:[#allocation2 + $0x170] sm:$0x1] }
 0x325   : > { %v1366_v43 = vsel %vm16742_vm4, 0, %v1365_v6  ;;  %v7790_v35 = vsel %vm17994_vm2, %v7788_v54, %v7789_v20  ;;  %v4795_v52 = vrot.slane %v16427_v23, 5  ;;  %v16428_v46 = vld [vmem:[#allocation2 + $0x190] sm:$0xf]  ;;  %v13670_v3 = vrot.slane %v4522_v13, 9 }
 0x326   : > { %15053 = vmatmul.mubr.msk.bf16.gmra.mrb[108].mxu0 %vm700_vm1, %v13699_v7  ;;  %v13898_v7 = vrot.slane %v7488_v26, 9  ;;  %v7800_v55 = vrot.slane %v16428_v46, 5  ;;  %1367 = vst [vmem:[#allocation2 + $0xcc] sm:$0x1] %v1366_v43  ;;  %v4789_v4 = vsel %vm17994_vm2, %v4787_v1, %v4788_v18  ;;  %v16429_v31 = vld [vmem:[#allocation2 + $0x178] sm:$0xf] }
 0x327   : > { %15251 = vmatmul.mubr.msk.bf16.gmra.mrb[16].mxu1 %vm700_vm1, %v13926_v15  ;;  %15056 = vmatprep.mubr.msk.bf16.mxu0 %vm700_vm1, %v13700_v42  ;;  %v16423_v15 = vld [vmem:[#allocation2 + $0x170] sm:$0x1]  ;;  %v4799_v37 = vrot.slane %v16429_v31, 5  ;;  %v13671_v39 = vrot.slane %v4523_v57, 9  ;;  %v4796_v29 = vsel %vm17994_vm2, %v4794_v44, %v4795_v52  ;;  %v16430_v53 = vld [vmem:[#allocation2 + $0x184] sm:$0xf]  ;;  %v4786_v56 = vsel %vm17994_vm2, %v13670_v3, %v4785_v59 }
 0x328   : > { %15254 = vmatprep.mubr.msk.bf16.mxu1 %vm700_vm1, %v13927_v24  ;;  %v7782_v45 = vrot.slane %v16423_v15, 5  ;;  %v16426_v24 = vld [vmem:[#allocation2 + $0x184] sm:$0xf]  ;;  %v7787_v27 = vsel %vm17994_vm2, %v13898_v7, %v7786_v19  ;;  %v4806_v60 = vrot.slane %v16430_v53, 5  ;;  %v7489_v41 = vld [vmem:[#allocation2 + $0x180] sm:$0xe] }
 0x329   : > { %v7793_v38 = vrot.slane %v16426_v24, 5  ;;  %v13931_v11 = vcombine.low %v7787_v27, %v7790_v35  ;;  %v4793_v10 = vsel %vm17994_vm2, %v13671_v39, %v4792_v49  ;;  %v7802_v34 = vrot.slane %v7800_v55, 4  ;;  %v16431_v47 = vld [vmem:[#allocation2 + $0x188] sm:$0x1]  ;;  %v7490_v40 = vld [vmem:[#allocation2 + $0x18c] sm:$0xe] }
 0x32a   : > { %v7783_v36 = vsel %vm17994_vm2, %v7781_v17, %v7782_v45  ;;  %v7796_v19 = vrot.slane %v16431_v47, 5  ;;  %v13704_v21 = vcombine.low %v4793_v10, %v4796_v29  ;;  %v4801_v51 = vrot.slane %v4799_v37, 4  ;;  %v16432_v12 = vld [vmem:[#allocation2 + $0x194] sm:$0x1]  ;;  %v4524_v58 = vld [vmem:[#allocation2 + $0x174] sm:$0xe] }
 0x32b   : > { %v13930_v42 = vcombine.low %v7780_v30, %v7783_v36  ;;  %v7795_v0 = vrot.slane %v7793_v38, 4  ;;  %v7803_v59 = vrot.slane %v16432_v12, 5  ;;  %v4525_v17 = vld [vmem:[#allocation2 + $0x180] sm:$0xe]  ;;  %v4808_v9 = vrot.slane %v4806_v60, 4  ;;  %v16187_v29 = vld [vmem:[#allocation2 + $0x18] sm:$0xff]  }
 0x32c   : > { %v13899_v50 = vrot.slane %v7489_v41, 9  ;;  %v16433_v49 = vld [vmem:[#allocation2 + $0x17c] sm:$0x1]  ;;  %v13900_v15 = vrot.slane %v7490_v40, 9  ;;  %v16435_v16 = vld [vmem:[#allocation2 + $0x188] sm:$0x1] }
 0x32d   : > { %v7797_v14 = vsel %vm17994_vm2, %v7795_v0, %v7796_v19  ;;  %v16434_v63 = vld [vmem:[#allocation2 + $0x19c] sm:$0xf]  ;;  %v7804_v45 = vsel %vm17994_vm2, %v7802_v34, %v7803_v59  ;;  %v4809_v54 = vrot.slane %v16435_v16, 5  ;;  %v13672_v62 = vrot.slane %v4524_v58, 9  ;;  %v16436_v26 = vld [vmem:[#allocation2 + $0x190] sm:$0xf] }
 0x32e   : > { %15057 = vmatmul.mubr.msk.bf16.gmra.mrb[112].mxu0 %vm700_vm1, %v13701_v2  ;;  %v7807_v2 = vrot.slane %v16434_v63, 5  ;;  %v7794_v6 = vsel %vm17994_vm2, %v13899_v50, %v7793_v38  ;;  %v4813_v1 = vrot.slane %v16436_v26, 5  ;;  %v7801_v25 = vsel %vm17994_vm2, %v13900_v15, %v7800_v55  ;;  %v7491_v24 = vld [vmem:[#allocation2 + $0x198] sm:$0xe]  ;;  %v16437_v57 = vld [vmem:[#allocation2 + $0x1a0] sm:$0x1] }
 0x32f   : > { %15255 = vmatmul.mubr.msk.bf16.gmra.mrb[20].mxu1 %vm700_vm1, %v13928_v48  ;;  %15060 = vmatprep.mubr.msk.bf16.mxu0 %vm700_vm1, %v13702_v22  ;;  %v13703_v48 = vcombine.low %v4786_v56, %v4789_v4  ;;  %v13932_v36 = vcombine.low %v7794_v6, %v7797_v14  ;;  %v13673_v20 = vrot.slane %v4525_v17, 9  ;;  %v4810_v13 = vsel %vm17994_vm2, %v4808_v9, %v4809_v54  ;;  %v1419_v23 = vld [vmem:[#allocation2 + $0x1a4] sm:$0x1]  ;;  %v4526_v52 = vld [vmem:[#allocation2 + $0x18c] sm:$0xe]  ;;  %v16191_v10 = vld [vmem:[#allocation2 + $0x18] sm:$0xff]  }
 0x330   : > { %15258 = vmatprep.mubr.msk.bf16.mxu1 %vm700_vm1, %v13929_v5  ;;  %v4802_v5 = vrot.slane %v16433_v49, 5  ;;  %v13933_v44 = vcombine.low %v7801_v25, %v7804_v45  ;;  %v4800_v30 = vsel %vm17994_vm2, %v13672_v62, %v4799_v37  ;;  %v7809_v61 = vrot.slane %v7807_v2, 4  ;;  %v16438_v3 = vld [vmem:[#allocation2 + $0x194] sm:$0x1]  ;;  %v16439_v56 = vld [vmem:[%s20209_s4 + $0xe] sm:$0x3] }
 0x331   : > { %v4807_v38 = vsel %vm17994_vm2, %v13673_v20, %v4806_v60  ;;  %v7810_v43 = vrot.slane %v16437_v57, 5  ;;  %v4815_v35 = vrot.slane %v4813_v1, 4  ;;  %v1420_v46 = vsel %vm16742_vm4, 0, %v1419_v23  ;;  %v16189_v60 = vld [vmem:[#allocation2 + $0xc] sm:$0xff]   ;;  %v16193_v34 = vld [vmem:[#allocation2 + $0x24] sm:$0xff]   ;;  %v16192_v47 = vld [vmem:[#allocation2 + $0x3c] sm:$0xff]  }
 0x332   : > { %v4803_v22 = vsel %vm17994_vm2, %v4801_v51, %v4802_v5  ;;  %v13706_v7 = vcombine.low %v4807_v38, %v4810_v13  ;;  %v13901_v55 = vrot.slane %v7491_v24, 9  ;;  %v4816_v4 = vrot.slane %v16438_v3, 5  ;;  %1421 = vst [vmem:[#allocation2 + $0x1a4] sm:$0x1] %v1420_v46  ;;  %v18355_v41 = vld [vmem:[%s20209_s4 + $0x10] sm:$0x3] }
 0x333   : > { %v13705_v18 = vcombine.low %v4800_v30, %v4803_v22  ;;  %v13674_v37 = vrot.slane %v4526_v52, 9  ;;  %v10100_v0 = vsel %vm797_vm0, %v16439_v56, 0  ;;  %v16194_v19 = vld [vmem:[#allocation2 + $0x48] sm:$0xff]   ;;  %v16197_v40 = vld [vmem:[#allocation2 + $0x3c] sm:$0xff]   ;;  %v16196_v51 = vld [vmem:[#allocation2 + $0x54] sm:$0xff]   ;;  %vm11711_vm4 = vcmask 1041409  }
 0x334   : > { %v7808_v31 = vsel %vm17994_vm2, %v13901_v55, %v7807_v2  ;;  %v4817_v27 = vsel %vm17994_vm2, %v4815_v35, %v4816_v4  ;;  %v16198_v12 = vld [vmem:[#allocation2 + $0x60] sm:$0xff]   ;;  %v16199_v59 = vld [vmem:[#allocation2 + $0x48] sm:$0xff]   ;;  %v16201_v58 = vld [vmem:[#allocation2 + $0x54] sm:$0xff]   ;;  %vm11868_vm7 = vcmask 7168  }
 0x335   : > { %v4814_v28 = vsel %vm17994_vm2, %v13674_v37, %v4813_v1  ;;  %v16200_v17 = vld [vmem:[#allocation2 + $0x6c] sm:$0xff]   ;;  %v16202_v9 = vld [vmem:[#allocation2 + $0x78] sm:$0xff]   ;;  %v16203_v50 = vld [vmem:[#allocation2 + $0x60] sm:$0xff]  }
 0x336   : > { %15061 = vmatmul.mubr.msk.bf16.gmra.mrb[116].mxu0 %vm700_vm1, %v13703_v48  ;;  %v13707_v53 = vcombine.low %v4814_v28, %v4817_v27  ;;  %v16190_v48 = vld [vmem:[#allocation2 + $0x30] sm:$0xff]   ;;  %v16204_v49 = vld [vmem:[#allocation2 + $0x84] sm:$0xff]   ;;  %v16207_v63 = vld [vmem:[#allocation2 + $0x78] sm:$0xff]  }
 0x337   : > { %15259 = vmatmul.mubr.msk.bf16.gmra.mrb[24].mxu1 %vm700_vm1, %v13930_v42  ;;  %15064 = vmatprep.mubr.msk.bf16.mxu0 %vm700_vm1, %v13704_v21  ;;  %v7811_v42 = vsel %vm17994_vm2, %v7809_v61, %v7810_v43  ;;  %v16195_v21 = vld [vmem:[#allocation2 + $0x30] sm:$0xff]   ;;  %v16209_v2 = vld [vmem:[#allocation2 + $0x84] sm:$0xff]   ;;  %v16208_v15 = vld [vmem:[#allocation2 + $0x9c] sm:$0xff]  }
 0x338   : > { %15262 = vmatprep.mubr.msk.bf16.mxu1 %vm700_vm1, %v13931_v11  ;;  %v13934_v39 = vcombine.low %v7808_v31, %v7811_v42  ;;  %v16188_v11 = vld [vmem:[#allocation2 + $0x24] sm:$0xff]   ;;  %v16205_v14 = vld [vmem:[#allocation2 + $0x6c] sm:$0xff]   ;;  %v16213_v54 = vld [vmem:[#allocation2 + $0x9c] sm:$0xff]  }
 0x339   : > { %v16206_v5 = vld [vmem:[#allocation2 + $0x90] sm:$0xff]   ;;  %v16210_v45 = vld [vmem:[#allocation2 + $0xa8] sm:$0xff]   ;;  %v16214_v62 = vld [vmem:[#allocation2 + $0xc0] sm:$0xff]  }
 0x33a   : > { %v16211_v16 = vld [vmem:[#allocation2 + $0x90] sm:$0xff]   ;;  %v16215_v22 = vld [vmem:[#allocation2 + $0xa8] sm:$0xff]   ;;  %v16218_v20 = vld [vmem:[#allocation2 + $0xfc] sm:$0xff]  }
 0x33b   : > { %v16212_v6 = vld [vmem:[#allocation2 + $0xb4] sm:$0xff]   ;;  %v16219_v13 = vld [vmem:[#allocation2 + $0x108] sm:$0xff]   ;;  %v16221_v30 = vld [vmem:[#allocation2 + $0x120] sm:$0xff]  }
 0x33c   : > { %v1475_v26 = vld [vmem:[#allocation2 + $0xd4] sm:$0x1]  ;;  %v16222_v61 = vld [vmem:[#allocation2 + $0x12c] sm:$0xff]   ;;  %v16224_v24 = vld [vmem:[#allocation2 + $0x144] sm:$0xff]  }
 0x33d   : > { %v1476_v1 = vsel %vm16751_vm6, 0, %v1475_v26  ;;  %v16217_v25 = vld [vmem:[#allocation2 + $0xf0] sm:$0xff]   ;;  %v9041_v57 = vld [vmem:[#allocation2 + $0x18] sm:$0xf]  ;;  %v9042_v43 = vld [vmem:[#allocation2 + $0x1c] sm:$0xf] }
 0x33e   : > { %15065 = vmatmul.mubr.msk.bf16.gmra.mrb[120].mxu0 %vm700_vm1, %v13705_v18  ;;  %1477 = vst [vmem:[#allocation2 + $0xd4] sm:$0x1] %v1476_v1  ;;  %v16223_v18 = vld [vmem:[#allocation2 + $0x138] sm:$0xff]   ;;  %v16225_v38 = vld [vmem:[#allocation2 + $0x150] sm:$0xff]   ;;  %v9045_v35 = vld [vmem:[#allocation2 + $0x28] sm:$0xf] }
 0x33f   : > { %15263 = vmatmul.mubr.msk.bf16.gmra.mrb[28].mxu1 %vm700_vm1, %v13932_v36  ;;  %15068 = vmatprep.mubr.msk.bf16.mxu0 %vm700_vm1, %v13706_v7  ;;  %v16216_v36 = vld [vmem:[#allocation2 + $0xcc] sm:$0xff]   ;;  %v9044_v7 = vld [vmem:[#allocation2 + $0x24] sm:$0xf]  ;;  %v9138_v23 = vshrl.u32 %v9041_v57, 16  ;;  %v9141_v52 = vshll.u32 %v9041_v57, 16  ;;  %v9147_v55 = vshll.u32 %v9042_v43, 16 }
 0x340   : > { %15266 = vmatprep.mubr.msk.bf16.mxu1 %vm700_vm1, %v13933_v44  ;;  %v16220_v44 = vld [vmem:[#allocation2 + $0x114] sm:$0xff]   ;;  %v9151_v42 = vshrl.u32 %v9042_v43, 16  ;;  %v9162_v3 = vshrl.u32 %v9044_v7, 16  ;;  %v9165_v4 = vshll.u32 %v9044_v7, 16  ;;  %v16226_v31 = vld [vmem:[#allocation2 + $0x15c] sm:$0xff]   ;;  %v9171_v37 = vshll.u32 %v9045_v35, 16 }
 0x341   : > { %v9048_v46 = vld [vmem:[#allocation2 + $0x34] sm:$0xf]  ;;  %v9175_v27 = vshrl.u32 %v9045_v35, 16  ;;  %v9050_v56 = vld [vmem:[#allocation2 + $0x3c] sm:$0xf]  ;;  %v16229_v26 = vld [vmem:[#allocation2 + $0x180] sm:$0xff]  }
 0x342   : > { %v9195_v28 = vshll.u32 %v9048_v46, 16 }
 0x346   : > { %15069 = vmatmul.mubr.msk.bf16.gmra.mrb[124].mxu0 %vm700_vm1, %v13707_v53  ;;  %v9199_v53 = vshrl.u32 %v9048_v46, 16 }
 0x347   : > { %15267 = vmatmul.mubr.msk.bf16.gmra.mrb[32].mxu1 %vm700_vm1, %v13934_v39  ;;  %15074 = vmatprep.mubr.msk.bf16.mxu0 %vm700_vm1, %v16189_v60  ;;  %v16227_v39 = vld [vmem:[#allocation2 + $0x168] sm:$0xff]   ;;  %v9140_v60 = vrot.slane %v9138_v23, 4 }
 0x348   : > { %15272 = vmatprep.mubr.msk.bf16.mxu1 %vm700_vm1, %v16187_v29  ;;  %v9047_v29 = vld [vmem:[#allocation2 + $0x30] sm:$0xf] }
 0x34e   : > { %15075 = vmatmul.mubr.msk.bf16.vlgmr.msra.gmra.mrb[64].mxu0 %vm700_vm1, %v16191_v10  ;;  %v9153_v10 = vrot.slane %v9151_v42, 4  ;;  %v9052_v42 = vld [vmem:[#allocation2 + $0x44] sm:$0x1] }
 0x34f   : > { %15273 = vmatmul.mubr.msk.bf16.vlgmr.msra.gmra.mrb[36].mxu1 %vm700_vm1, %v16188_v11  ;;  %15078 = vmatprep.mubr.msk.bf16.mxu0 %vm700_vm1, %v16193_v34  ;;  %v9143_v11 = vrot.slane %v9141_v52, 5  ;;  %v9164_v34 = vrot.slane %v9162_v3, 4  ;;  %v9057_v52 = vld [vmem:[#allocation2 + $0x58] sm:$0xf] }
 0x350   : > { %15337 = vmatpush3.bf16.msra.mxu1 %v10100_v0  ;;  %15276 = vmatprep.mubr.msk.bf16.mxu1 %vm700_vm1, %v16190_v48  ;;  %v9043_v0 = vld [vmem:[#allocation2 + $0x20] sm:$0x1]  ;;  %v18400_v48 = vrot.slane %v9147_v55, 5 }
 0x351   : > { %16079 = vmatprep.subr.msk.bf16.mxu1 %vm797_vm0, %v18355_v41 }
 0x356   : > { %15079 = vmatmul.mubr.msk.bf16.gmra.mrb[68].mxu0 %vm700_vm1, %v16195_v21  ;;  %v9177_v21 = vrot.slane %v9175_v27, 4  ;;  %v9055_v27 = vld [vmem:[#allocation2 + $0x50] sm:$0x1] }
 0x357   : > { %15277 = vmatmul.mubr.msk.bf16.gmra.mrb[40].mxu1 %vm700_vm1, %v16192_v47  ;;  %15082 = vmatprep.mubr.msk.bf16.mxu0 %vm700_vm1, %v16197_v40  ;;  %v9167_v47 = vrot.slane %v9165_v4, 5  ;;  %v9186_v40 = vshrl.u32 %v9047_v29, 16 }
 0x358   : > { %15280 = vmatprep.mubr.msk.bf16.mxu1 %vm700_vm1, %v16194_v19  ;;  %v18402_v19 = vrot.slane %v9171_v37, 5 }
 0x35e   : > { %15083 = vmatmul.mubr.msk.bf16.gmra.mrb[72].mxu0 %vm700_vm1, %v16199_v59  ;;  %v18404_v59 = vrot.slane %v9195_v28, 5 }
 0x35f   : > { %15281 = vmatmul.mubr.msk.bf16.gmra.mrb[44].mxu1 %vm700_vm1, %v16196_v51  ;;  %15086 = vmatprep.mubr.msk.bf16.mxu0 %vm700_vm1, %v16201_v58  ;;  %v9189_v51 = vshll.u32 %v9047_v29, 16  ;;  %v9201_v58 = vrot.slane %v9199_v53, 4 }
 0x360   : > { %15284 = vmatprep.mubr.msk.bf16.mxu1 %vm700_vm1, %v16198_v12  ;;  %v9051_v12 = vld [vmem:[#allocation2 + $0x40] sm:$0xf] }
 0x366   : > { %15087 = vmatmul.mubr.msk.bf16.gmra.mrb[76].mxu0 %vm700_vm1, %v16203_v50  ;;  %v9144_v50 = vor.u32 %v9143_v11, %v9140_v60  ;;  %v9056_v60 = vld [vmem:[#allocation2 + $0x54] sm:$0xf]  ;;  %v9267_v11 = vshll.u32 %v9057_v52, 16 }
 0x367   : > { %15285 = vmatmul.mubr.msk.bf16.gmra.mrb[48].mxu1 %vm700_vm1, %v16200_v17  ;;  %15090 = vmatprep.mubr.msk.bf16.mxu0 %vm700_vm1, %v16205_v14  ;;  %v9210_v17 = vshrl.u32 %v9050_v56, 16  ;;  %v9046_v14 = vld [vmem:[#allocation2 + $0x2c] sm:$0x1] }
 0x368   : > { %15288 = vmatprep.mubr.msk.bf16.mxu1 %vm700_vm1, %v16202_v9  ;;  %v9213_v9 = vshll.u32 %v9050_v56, 16  ;;  %v9181_v1 = vshll.u32 %v9046_v14, 16  ;;  %v9271_v56 = vshrl.u32 %v9057_v52, 16  ;;  %v9258_v14 = vshrl.u32 %v9056_v60, 16 }
 0x36a   : > { %v9183_v46 = vrot.slane %v9181_v1, 5  ;;  %v9260_v32 = vrot.slane %v9258_v14, 4 }
 0x36e   : > { %15091 = vmatmul.mubr.msk.bf16.gmra.mrb[80].mxu0 %vm700_vm1, %v16207_v63  ;;  %v9157_v63 = vshll.u32 %v9043_v0, 16  ;;  %v16230_v0 = vld [vmem:[#allocation2 + $0x18c] sm:$0xff]  }
 0x36f   : > { %15289 = vmatmul.mubr.msk.bf16.gmra.mrb[52].mxu1 %vm700_vm1, %v16204_v49  ;;  %15094 = vmatprep.mubr.msk.bf16.mxu0 %vm700_vm1, %v16209_v2  ;;  %v9049_v49 = vld [vmem:[#allocation2 + $0x38] sm:$0x1]  ;;  %v9219_v2 = vshll.u32 %v9051_v12, 16 }
 0x370   : > { %15292 = vmatprep.mubr.msk.bf16.mxu1 %vm700_vm1, %v16206_v5  ;;  %v9154_v5 = vor.u32 %v9153_v10, %v18400_v48 }
 0x372   : > { %v9155_v43 = vrot.slane %v9154_v5, 4 }
 0x376   : > { %15095 = vmatmul.mubr.msk.bf16.gmra.mrb[84].mxu0 %vm700_vm1, %v16211_v16  ;;  %v16228_v16 = vld [vmem:[#allocation2 + $0x174] sm:$0xff]  }
 0x377   : > { %15293 = vmatmul.mubr.msk.bf16.gmra.mrb[56].mxu1 %vm700_vm1, %v16208_v15  ;;  %15098 = vmatprep.mubr.msk.bf16.mxu0 %vm700_vm1, %v16213_v54  ;;  %v9223_v15 = vshrl.u32 %v9051_v12, 16  ;;  %v9168_v54 = vor.u32 %v9167_v47, %v9164_v34  ;;  %v9229_v12 = vshll.u32 %v9052_v42, 16 }
 0x378   : > { %15296 = vmatprep.mubr.msk.bf16.mxu1 %vm700_vm1, %v16210_v45  ;;  %v9053_v45 = vld [vmem:[#allocation2 + $0x48] sm:$0xf] }
 0x379   : > { %v9225_v57 = vrot.slane %v9223_v15, 4  ;;  %v9169_v7 = vrot.slane %v9168_v54, 4  ;;  %v1529_v15 = vld [vmem:[#allocation2 + $0x1ac] sm:$0x1]  ;;  %v9231_v1 = vrot.slane %v9229_v12, 5 }
 0x37b   : > { %v9174_v34 = vsel %vm16822_vm10, %v9169_v7, %v18402_v19  ;;  %v9066_v7 = vld [vmem:[#allocation2 + $0x7c] sm:$0xf] }
 0x37e   : > { %15099 = vmatmul.mubr.msk.bf16.gmra.mrb[88].mxu0 %vm700_vm1, %v16215_v22  ;;  %v9191_v22 = vrot.slane %v9189_v51, 5 }
 0x37f   : > { %15297 = vmatmul.mubr.msk.bf16.gmra.mrb[60].mxu1 %vm700_vm1, %v16212_v6  ;;  %v9178_v6 = vor.u32 %v9177_v21, %v18402_v19  ;;  %v16231_v21 = vld [vmem:[#allocation2 + $0x198] sm:$0xff]  }
 0x380   : > { %15300 = vmatprep.mubr.msk.bf16.mxu1 %vm700_vm1, %v16214_v62  ;;  %v9188_v62 = vrot.slane %v9186_v40, 4 }
 0x381   : > { %v9179_v35 = vrot.slane %v9178_v6, 4  ;;  %v1530_v6 = vsel %vm16751_vm6, 0, %v1529_v15  ;;  %v11002_v15 = vsel %vm797_vm0, %v18355_v41, 0  ;;  %v9069_v41 = vld [vmem:[#allocation2 + $0x88] sm:$0xf]  ;;  %vm11872_vm6 = vcmask 1040384  }
 0x382   : > { %v9192_v23 = vor.u32 %v9191_v22, %v9188_v62  ;;  %1531 = vst [vmem:[#allocation2 + $0x1ac] sm:$0x1] %v1530_v6 }
 0x384   : > { %v9193_v47 = vrot.slane %v9192_v23, 4 }
 0x387   : > { %15301 = vmatmul.mubr.msk.bf16.gmra.mrb[0].mxu1 %vm700_vm1, %v16216_v36  ;;  %v9202_v36 = vor.u32 %v9201_v58, %v18404_v59 }
 0x388   : > { %15304 = vmatprep.mubr.msk.bf16.mxu1 %vm700_vm1, %v16217_v25  ;;  %v9212_v25 = vrot.slane %v9210_v17, 4  ;;  %v9059_v17 = vld [vmem:[#allocation2 + $0x60] sm:$0xf] }
 0x389   : > { %v9203_v55 = vrot.slane %v9202_v36, 4  ;;  %v9285_v54 = vshll.u32 %v9059_v17, 16  ;;  %v9060_v36 = vld [vmem:[#allocation2 + $0x64] sm:$0xf] }
 0x38b   : > { %v9287_v52 = vrot.slane %v9285_v54, 5 }
 0x38f   : > { %15305 = vmatmul.mubr.msk.bf16.gmra.mrb[4].mxu1 %vm700_vm1, %v16218_v20  ;;  %v9215_v20 = vrot.slane %v9213_v9, 5 }
 0x390   : > { %15308 = vmatprep.mubr.msk.bf16.mxu1 %vm700_vm1, %v16219_v13  ;;  %v9145_v13 = vrot.slane %v9144_v50, 4  ;;  %v9253_v50 = vshll.u32 %v9055_v27, 16  ;;  %v9339_v27 = vshll.u32 %v9066_v7, 16 }
 0x391   : > { %v9216_v3 = vor.u32 %v9215_v20, %v9212_v25  ;;  %v9062_v25 = vld [vmem:[#allocation2 + $0x6c] sm:$0xf]  ;;  %v16232_v20 = vld [vmem:[#allocation2 + $0x1a4] sm:$0xff]  }
 0x392   : > { %v9309_v42 = vshll.u32 %v9062_v25, 16 }
 0x393   : > { %v9217_v51 = vrot.slane %v9216_v3, 4 }
 0x397   : > { %15309 = vmatmul.mubr.msk.bf16.gmra.mrb[8].mxu1 %vm700_vm1, %v16220_v44  ;;  %v9205_v44 = vshll.u32 %v9049_v49, 16  ;;  %v9261_v49 = vshll.u32 %v9056_v60, 16 }
 0x398   : > { %15312 = vmatprep.mubr.msk.bf16.mxu1 %vm700_vm1, %v16221_v30  ;;  %v9054_v30 = vld [vmem:[#allocation2 + $0x4c] sm:$0xf] }
 0x399   : > { %v9243_v4 = vshll.u32 %v9054_v30, 16  ;;  %v9207_v37 = vrot.slane %v9205_v44, 5  ;;  %v9247_v53 = vshrl.u32 %v9054_v30, 16  ;;  %v18446_v44 = vrot.slane %v9253_v50, 5  ;;  %v9063_v30 = vld [vmem:[#allocation2 + $0x70] sm:$0xf] }
 0x39a   : > { %v9315_v3 = vshll.u32 %v9063_v30, 16 }
 0x39b   : > { %v9208_v40 = vsel %vm16822_vm10, %v9203_v55, %v9207_v37  ;;  %v18426_v58 = vrot.slane %v9243_v4, 5  ;;  %v9249_v5 = vrot.slane %v9247_v53, 4  ;;  %v9306_v55 = vshrl.u32 %v9062_v25, 16  ;;  %v9067_v25 = vld [vmem:[#allocation2 + $0x80] sm:$0x1] }
 0x39c   : > { %v9319_v4 = vshrl.u32 %v9063_v30, 16 }
 0x39f   : > { %15313 = vmatmul.mubr.msk.bf16.gmra.mrb[12].mxu1 %vm700_vm1, %v16222_v61  ;;  %v9234_v61 = vshrl.u32 %v9053_v45, 16 }
 0x3a0   : > { %15316 = vmatprep.mubr.msk.bf16.mxu1 %vm700_vm1, %v16223_v18  ;;  %v9237_v18 = vshll.u32 %v9053_v45, 16  ;;  %v9198_v45 = vsel %vm16822_vm10, %v9193_v47, %v18404_v59  ;;  %v9308_v47 = vrot.slane %v9306_v55, 4 }
 0x3a2   : > { %v9239_v29 = vrot.slane %v9237_v18, 5  ;;  %v9250_v18 = vor.u32 %v9249_v5, %v18426_v58 }
 0x3a7   : > { %15317 = vmatmul.mubr.msk.bf16.gmra.mrb[16].mxu1 %vm700_vm1, %v16224_v24  ;;  %v9159_v24 = vrot.slane %v9157_v63, 5  ;;  %v18430_v63 = vrot.slane %v9267_v11, 5 }
 0x3a8   : > { %15320 = vmatprep.mubr.msk.bf16.mxu1 %vm700_vm1, %v16225_v38  ;;  %v18411_v38 = vrot.slane %v9219_v2, 5  ;;  %v9273_v2 = vrot.slane %v9271_v56, 4 }
 0x3a9   : > { %v9160_v10 = vsel %vm16822_vm10, %v9155_v43, %v9159_v24  ;;  %v9263_v24 = vrot.slane %v9261_v49, 5  ;;  %v9065_v43 = vld [vmem:[#allocation2 + $0x78] sm:$0xf] }
 0x3aa   : > { %v9226_v28 = vor.u32 %v9225_v57, %v18411_v38  ;;  %v9274_v57 = vor.u32 %v9273_v2, %v18430_v63  ;;  %v9333_v37 = vshll.u32 %v9065_v43, 16 }
 0x3ab   : > { %v9264_v53 = vor.u32 %v9263_v24, %v9260_v32 }
 0x3ac   : > { %v9227_v19 = vrot.slane %v9226_v28, 4  ;;  %v9251_v28 = vrot.slane %v9250_v18, 4  ;;  %v9275_v11 = vrot.slane %v9274_v57, 4  ;;  %v9071_v18 = vld [vmem:[#allocation2 + $0x90] sm:$0xf]  ;;  %v9363_v57 = vshll.u32 %v9069_v41, 16 }
 0x3ad   : > { %v9265_v14 = vrot.slane %v9264_v53, 4 }
 0x3af   : > { %15321 = vmatmul.mubr.msk.bf16.gmra.mrb[20].mxu1 %vm700_vm1, %v16226_v31  ;;  %v9150_v31 = vsel %vm16822_vm10, %v9145_v13, %v18400_v48  ;;  %v9184_v48 = vsel %vm16822_vm10, %v9179_v35, %v9183_v46  ;;  %v9222_v13 = vsel %vm16822_vm10, %v9217_v51, %v18411_v38  ;;  %v9058_v35 = vld [vmem:[#allocation2 + $0x5c] sm:$0x1]  ;;  %v9291_v38 = vshll.u32 %v9060_v36, 16 }
 0x3b0   : > { %15324 = vmatprep.mubr.msk.bf16.mxu1 %vm700_vm1, %v16227_v39  ;;  %v9236_v39 = vrot.slane %v9234_v61, 4  ;;  %v14033_v62 = vcombine.low %v9150_v31, %v9160_v10  ;;  %v18437_v22 = vcombine.low %v9174_v34, %v9184_v48  ;;  %v9232_v61 = vsel %vm16822_vm10, %v9227_v19, %v9231_v1  ;;  %v9068_v34 = vld [vmem:[#allocation2 + $0x84] sm:$0xf]  ;;  %v9061_v48 = vld [vmem:[#allocation2 + $0x68] sm:$0x1] }
 0x3b1   : > { %v9295_v46 = vshrl.u32 %v9060_v36, 16  ;;  %v9330_v31 = vshrl.u32 %v9065_v43, 16  ;;  %v9277_v60 = vshll.u32 %v9058_v35, 16  ;;  %v9321_v51 = vrot.slane %v9319_v4, 4  ;;  %v9064_v19 = vld [vmem:[#allocation2 + $0x74] sm:$0x1] }
 0x3b2   : > { %v9240_v9 = vor.u32 %v9239_v29, %v9236_v39  ;;  %v9343_v39 = vshrl.u32 %v9066_v7, 16  ;;  %v18454_v29 = vcombine.low %v9222_v13, %v9232_v61  ;;  %v9354_v5 = vshrl.u32 %v9068_v34, 16  ;;  %v9072_v7 = vld [vmem:[#allocation2 + $0x94] sm:$0xf] }
 0x3b3   : > { %v9297_v10 = vrot.slane %v9295_v46, 4  ;;  %v9332_v12 = vrot.slane %v9330_v31, 4  ;;  %v9279_v49 = vrot.slane %v9277_v60, 5  ;;  %v9357_v2 = vshll.u32 %v9068_v34, 16 }
 0x3b4   : > { %v18444_v59 = vrot.slane %v9240_v9, 4  ;;  %v18460_v9 = vrot.slane %v9339_v27, 5  ;;  %v9345_v50 = vrot.slane %v9343_v39, 4  ;;  %v9301_v54 = vshll.u32 %v9061_v48, 16 }
 0x3b5   : > { %v9280_v6 = vsel %vm16822_vm10, %v9275_v11, %v9279_v49  ;;  %v9270_v32 = vsel %vm16822_vm10, %v9265_v14, %v18430_v63  ;;  %v9356_v30 = vrot.slane %v9354_v5, 4  ;;  %v9359_v61 = vrot.slane %v9357_v2, 5 }
 0x3b6   : > { %v9303_v24 = vrot.slane %v9301_v54, 5  ;;  %v9367_v43 = vshrl.u32 %v9069_v41, 16  ;;  %v18485_v35 = vcombine.low %v9270_v32, %v9280_v6  ;;  %v9378_v31 = vshrl.u32 %v9071_v18, 16  ;;  %v9080_v41 = vld [vmem:[#allocation2 + $0xb4] sm:$0xf] }
 0x3b7   : > { %15325 = vmatmul.mubr.msk.bf16.gmra.mrb[24].mxu1 %vm700_vm1, %v16228_v16  ;;  %v9282_v16 = vshrl.u32 %v9059_v17, 16  ;;  %v9335_v17 = vrot.slane %v9333_v37, 5  ;;  %v9360_v4 = vor.u32 %v9359_v61, %v9356_v30  ;;  %v9381_v37 = vshll.u32 %v9071_v18, 16  ;;  %v9081_v32 = vld [vmem:[#allocation2 + $0xb8] sm:$0xf] }
 0x3b8   : > { %15328 = vmatprep.mubr.msk.bf16.mxu1 %vm700_vm1, %v16229_v26  ;;  %v18439_v26 = vcombine.low %v9198_v45, %v9208_v40  ;;  %v18458_v40 = vrot.slane %v9315_v3, 5  ;;  %v9246_v45 = vsel %vm16822_vm10, %v18444_v59, %v18426_v58  ;;  %v9346_v59 = vor.u32 %v9345_v50, %v18460_v9  ;;  %v9070_v3 = vld [vmem:[#allocation2 + $0x8c] sm:$0x1] }
 0x3b9   : > { %v9284_v23 = vrot.slane %v9282_v16, 4  ;;  %v9256_v16 = vsel %vm16822_vm10, %v9251_v28, %v18446_v44  ;;  %v9336_v13 = vor.u32 %v9335_v17, %v9332_v12  ;;  %v9387_v27 = vshll.u32 %v9072_v7, 16  ;;  %v9078_v12 = vld [vmem:[#allocation2 + $0xac] sm:$0xf]  ;;  %v9073_v17 = vld [vmem:[#allocation2 + $0x98] sm:$0x1] }
 0x3ba   : > { %v9322_v58 = vor.u32 %v9321_v51, %v18458_v40  ;;  %v14037_v44 = vcombine.low %v9246_v45, %v9256_v16  ;;  %v9347_v55 = vrot.slane %v9346_v59, 4  ;;  %v18491_v28 = vrot.slane %v9363_v57, 5  ;;  %v9079_v57 = vld [vmem:[#allocation2 + $0xb0] sm:$0x1] }
 0x3bb   : > { %v9288_v56 = vor.u32 %v9287_v52, %v9284_v23  ;;  %v9337_v63 = vrot.slane %v9336_v13, 4  ;;  %v9369_v53 = vrot.slane %v9367_v43, 4  ;;  %v9391_v60 = vshrl.u32 %v9072_v7, 16 }
 0x3bc   : > { %v9373_v51 = vshll.u32 %v9070_v3, 16  ;;  %v9380_v50 = vrot.slane %v9378_v31, 4  ;;  %v9383_v14 = vrot.slane %v9381_v37, 5  ;;  %v9435_v16 = vshll.u32 %v9078_v12, 16 }
 0x3bd   : > { %v9370_v49 = vor.u32 %v9369_v53, %v18491_v28  ;;  %v9439_v54 = vshrl.u32 %v9078_v12, 16  ;;  %v9397_v13 = vshll.u32 %v9073_v17, 16  ;;  %v9463_v3 = vshrl.u32 %v9081_v32, 16  ;;  %v9085_v12 = vld [vmem:[#allocation2 + $0xc8] sm:$0x1] }
 0x3bf   : > { %15329 = vmatmul.mubr.msk.bf16.gmra.mrb[28].mxu1 %vm700_vm1, %v16230_v0  ;;  %v18456_v0 = vrot.slane %v9291_v38, 5  ;;  %v9323_v38 = vrot.slane %v9322_v58, 4  ;;  %v9371_v7 = vrot.slane %v9370_v49, 4  ;;  %v9399_v53 = vrot.slane %v9397_v13, 5 }
 0x3c0   : > { %15332 = vmatprep.mubr.msk.bf16.mxu1 %vm700_vm1, %v16231_v21  ;;  %v9311_v21 = vrot.slane %v9309_v42, 5  ;;  %v9075_v42 = vld [vmem:[#allocation2 + $0xa0] sm:$0xf] }
 0x3c1   : > { %v9298_v1 = vor.u32 %v9297_v10, %v18456_v0  ;;  %v9411_v10 = vshll.u32 %v9075_v42, 16  ;;  %v9415_v34 = vshrl.u32 %v9075_v42, 16  ;;  %v9459_v42 = vshll.u32 %v9081_v32, 16 }
 0x3c2   : > { %v9312_v36 = vor.u32 %v9311_v21, %v9308_v47  ;;  %v9342_v47 = vsel %vm16822_vm10, %v9337_v63, %v18460_v9  ;;  %v9077_v9 = vld [vmem:[#allocation2 + $0xa8] sm:$0xf]  ;;  %v9450_v63 = vshrl.u32 %v9080_v41, 16 }
 0x3c3   : > { %v9299_v23 = vrot.slane %v9298_v1, 4  ;;  %v9417_v45 = vrot.slane %v9415_v34, 4  ;;  %v9426_v59 = vshrl.u32 %v9077_v9, 16 }
 0x3c4   : > { %v9313_v52 = vrot.slane %v9312_v36, 4  ;;  %v18519_v36 = vrot.slane %v9373_v51, 5  ;;  %v9465_v51 = vrot.slane %v9463_v3, 4 }
 0x3c5   : > { %v9304_v11 = vsel %vm16822_vm10, %v9299_v23, %v9303_v24  ;;  %v18533_v23 = vrot.slane %v9435_v16, 5  ;;  %v9428_v37 = vrot.slane %v9426_v59, 4 }
 0x3c7   : > { %15333 = vmatmul.mubr.msk.bf16.gmra.mrb[32].mxu1 %vm700_vm1, %v16232_v20  ;;  %v9325_v20 = vshll.u32 %v9064_v19, 16  ;;  %v9393_v19 = vrot.slane %v9391_v60, 4 }
 0x3c8   : > { %15338 = vmatprep.mubr.msk.bf16.mxu1 %vm700_vm1, %v14033_v62  ;;  %v18473_v62 = vrot.slane %v9288_v56, 4  ;;  %v9318_v56 = vsel %vm16822_vm10, %v9313_v52, %v18458_v40  ;;  %v18508_v40 = vrot.slane %v9360_v4, 4  ;;  %v9441_v52 = vrot.slane %v9439_v54, 4 }
 0x3c9   : > { %v9327_v46 = vrot.slane %v9325_v20, 5  ;;  %v9384_v20 = vor.u32 %v9383_v14, %v9380_v50  ;;  %v9376_v50 = vsel %vm16822_vm10, %v9371_v7, %v18519_v36 }
 0x3ca   : > { %v9366_v61 = vsel %vm16822_vm10, %v18508_v40, %v18491_v28  ;;  %v18588_v28 = vld [vmem:[#allocation2 + $0x190] sm:$0xf]  ;;  %v18590_v40 = vld [vmem:[#allocation2 + $0x194] sm:$0x1] }
 0x3cb   : > { %v9328_v48 = vsel %vm16822_vm10, %v9323_v38, %v9327_v46  ;;  %v9084_v38 = vld [vmem:[#allocation2 + $0xc4] sm:$0xf]  ;;  %v9385_v4 = vrot.slane %v9384_v20, 4 }
 0x3cc   : > { %v9487_v34 = vshrl.u32 %v9084_v38, 16 }
 0x3cf   : > { %15339 = vmatmul.mubr.msk.bf16.vlgmr.msra.gmra.mrb[36].mxu1 %vm700_vm1, %v18437_v22  ;;  %v9349_v22 = vshll.u32 %v9067_v25, 16  ;;  %v9076_v25 = vld [vmem:[#allocation2 + $0xa4] sm:$0x1] }
 0x3d0   : > { %15403 = vmatpush3.bf16.msra.mxu1 %v11002_v15  ;;  %15342 = vmatprep.mubr.msk.bf16.mxu1 %vm700_vm1, %v18439_v26  ;;  %v9294_v26 = vsel %vm16822_vm10, %v18473_v62, %v18456_v0  ;;  %v9074_v0 = vld [vmem:[#allocation2 + $0x9c] sm:$0xf]  ;;  %v18513_v15 = vrot.slane %v9411_v10, 5  ;;  %v18515_v62 = vcombine.low %v9318_v56, %v9328_v48  ;;  %v9421_v31 = vshll.u32 %v9076_v25, 16  ;;  %v18555_v25 = vld [vmem:[#allocation2 + $0xf4] sm:$0xf] }
 0x3d1   : > { %v9351_v39 = vrot.slane %v9349_v22, 5  ;;  %v9402_v5 = vshrl.u32 %v9074_v0, 16  ;;  %v9405_v2 = vshll.u32 %v9074_v0, 16  ;;  %v14039_v6 = vcombine.low %v9294_v26, %v9304_v11 }
 0x3d2   : > { %v9418_v26 = vor.u32 %v9417_v45, %v18513_v15  ;;  %v9445_v11 = vshll.u32 %v9079_v57, 16  ;;  %v9442_v0 = vor.u32 %v9441_v52, %v18533_v23  ;;  %v9483_v10 = vshll.u32 %v9084_v38, 16 }
 0x3d3   : > { %v9352_v21 = vsel %vm16822_vm10, %v9347_v55, %v9351_v39  ;;  %v9404_v24 = vrot.slane %v9402_v5, 4  ;;  %v9407_v22 = vrot.slane %v9405_v2, 5  ;;  %v9453_v55 = vshll.u32 %v9080_v41, 16  ;;  %v9082_v5 = vld [vmem:[#allocation2 + $0xbc] sm:$0x1] }
 0x3d4   : > { %v18517_v1 = vcombine.low %v9342_v47, %v9352_v21  ;;  %v9419_v56 = vrot.slane %v9418_v26, 4  ;;  %v9452_v48 = vrot.slane %v9450_v63, 4  ;;  %v18541_v21 = vrot.slane %v9459_v42, 5  ;;  %v9089_v2 = vld [vmem:[#allocation2 + $0xf0] sm:$0xf] }
 0x3d5   : > { %v9408_v60 = vor.u32 %v9407_v22, %v9404_v24  ;;  %v9455_v47 = vrot.slane %v9453_v55, 5  ;;  %v9423_v49 = vrot.slane %v9421_v31, 5  ;;  %v9447_v54 = vrot.slane %v9445_v11, 5  ;;  %v18579_v55 = vld [vmem:[#allocation2 + $0xfc] sm:$0xf] }
 0x3d6   : > { %v9443_v36 = vrot.slane %v9442_v0, 4  ;;  %v18559_v13 = vrot.slane %v9483_v10, 5  ;;  %v9469_v24 = vshll.u32 %v9082_v5, 16  ;;  %v9493_v57 = vshll.u32 %v9085_v12, 16  ;;  %v18613_v10 = vld [vmem:[#allocation2 + $0x1a0] sm:$0x1] }
 0x3d7   : > { %15343 = vmatmul.mubr.msk.bf16.gmra.mrb[40].mxu1 %vm700_vm1, %v18454_v29  ;;  %v18510_v29 = vrot.slane %v9387_v27, 5  ;;  %v9409_v16 = vrot.slane %v9408_v60, 4  ;;  %v9456_v32 = vor.u32 %v9455_v47, %v9452_v48  ;;  %v9522_v7 = vshrl.u32 %v9089_v2, 16  ;;  %v9087_v47 = vld [vmem:[#allocation2 + $0xd0] sm:$0xf] }
 0x3d8   : > { %15346 = vmatprep.mubr.msk.bf16.mxu1 %vm700_vm1, %v14037_v44  ;;  %v9429_v44 = vshll.u32 %v9077_v9, 16  ;;  %v9525_v26 = vshll.u32 %v9089_v2, 16  ;;  %v9531_v63 = vshll.u32 %v18555_v25, 16  ;;  %v18607_v11 = vrot.slane %v9493_v57, 5 }
 0x3d9   : > { %v18521_v58 = vpop.f32.mrb[92].mxu0  ;;  %v9394_v18 = vor.u32 %v9393_v19, %v18510_v29  ;;  %v9390_v14 = vsel %vm16822_vm10, %v9385_v4, %v18510_v29  ;;  %v9489_v29 = vrot.slane %v9487_v34, 4  ;;  %v9414_v38 = vsel %vm16822_vm10, %v9409_v16, %v18513_v15 }
 0x3da   : > { %20240 = vst [vmem:[#allocation7_spill] sm:$0xff] %v18521_v58  ;;  %v18523_v30 = vpop.f32.mrb[93].mxu0  ;;  %v9431_v27 = vrot.slane %v9429_v44, 5  ;;  %v9424_v44 = vsel %vm16822_vm10, %v9419_v56, %v9423_v49  ;;  %v18596_v31 = vrot.slane %v9456_v32, 4  ;;  %v9086_v56 = vld [vmem:[#allocation2 + $0xcc] sm:$0xf] }
 0x3db   : > { %20241 = vst [vmem:[#allocation8_spill] sm:$0xff] %v18523_v30  ;;  %v18530_v43 = vpop.f32.mrb[94].mxu0  ;;  %v9395_v39 = vrot.slane %v9394_v18, 4  ;;  %v9466_v18 = vor.u32 %v9465_v51, %v18541_v21  ;;  %v9490_v4 = vor.u32 %v9489_v29, %v18559_v13  ;;  %v18594_v15 = vcombine.low %v9414_v38, %v9424_v44 }
 0x3dc   : > { %20242 = vst [vmem:[#allocation9_spill] sm:$0xff] %v18530_v43  ;;  %v18537_v46 = vpop.f32.mrb[95].mxu0  ;;  %v9432_v19 = vor.u32 %v9431_v27, %v9428_v37  ;;  %v18600_v27 = vrot.slane %v9469_v24, 5  ;;  %v18609_v0 = vrot.slane %v9522_v7, 4  ;;  %v18617_v51 = vrot.slane %v9531_v63, 5 }
 0x3dd   : > { %20243 = vst [vmem:[#allocation10_spill] sm:$0xff] %v18537_v46  ;;  %v9400_v45 = vsel %vm16822_vm10, %v9395_v39, %v9399_v53  ;;  %v18598_v37 = vrot.slane %v9466_v18, 4  ;;  %v10484_v39 = vld [vmem:[#allocation2 + $0x18c] sm:$0xe]  ;;  %v9535_v12 = vshrl.u32 %v18555_v25, 16  ;;  %v9546_v5 = vshrl.u32 %v18579_v55, 16 }
 0x3de   : > { %v9433_v22 = vrot.slane %v9432_v19, 4  ;;  %v14043_v52 = vcombine.low %v9390_v14, %v9400_v45  ;;  %v18625_v19 = vrot.slane %v9490_v4, 4  ;;  %v14126_v2 = vrot.slane %v10484_v39, 9  ;;  %v10485_v45 = vld [vmem:[#allocation2 + $0x198] sm:$0xe] }
 0x3df   : > { %15347 = vmatmul.mubr.msk.bf16.gmra.mrb[44].mxu1 %vm700_vm1, %v18485_v35  ;;  %v9083_v35 = vld [vmem:[#allocation2 + $0xc0] sm:$0xf]  ;;  %v10791_v25 = vrot.slane %v18590_v40, 5  ;;  %v9507_v29 = vshll.u32 %v9087_v47, 16  ;;  %v9511_v44 = vshrl.u32 %v9087_v47, 16  ;;  %v14127_v24 = vrot.slane %v10485_v45, 9 }
 0x3e0   : > { %15350 = vmatprep.mubr.msk.bf16.mxu1 %vm700_vm1, %v14039_v6  ;;  %v9474_v6 = vshrl.u32 %v9083_v35, 16  ;;  %v9477_v20 = vshll.u32 %v9083_v35, 16  ;;  %v9438_v60 = vsel %vm16822_vm10, %v9433_v22, %v18533_v23  ;;  %v18611_v35 = vrot.slane %v9525_v26, 5  ;;  %v9091_v7 = vld [vmem:[#allocation2 + $0xf8] sm:$0x1] }
 0x3e1   : > { %v18543_v17 = vpop.f32.mrb[96].mxu0  ;;  %v10788_v23 = vrot.slane %v18588_v28, 5  ;;  %v10798_v57 = vrot.slane %v18613_v10, 5  ;;  %v9537_v26 = vrot.slane %v9535_v12, 4  ;;  %v9088_v45 = vld [vmem:[#allocation2 + $0xd4] sm:$0x1] }
 0x3e2   : > { %20244 = vst [vmem:[#allocation11_spill] sm:$0xff] %v18543_v17  ;;  %v18551_v9 = vpop.f32.mrb[97].mxu0  ;;  %v18583_v42 = vrot.slane %v9474_v6, 4  ;;  %v18585_v3 = vrot.slane %v9477_v20, 5  ;;  %v9501_v20 = vshll.u32 %v9086_v56, 16 }
 0x3e3   : > { %20245 = vst [vmem:[#allocation12_spill] sm:$0xff] %v18551_v9  ;;  %v18557_v41 = vpop.f32.mrb[98].mxu0  ;;  %v10790_v6 = vrot.slane %v10788_v23, 4  ;;  %v18636_v32 = vsel %vm17994_vm2, %v14126_v2, %v10788_v23  ;;  %v9472_v23 = vsel %vm16822_vm10, %v18598_v37, %v18600_v27  ;;  %v9538_v27 = vor.u32 %v9537_v26, %v18617_v51 }
 0x3e4   : > { %20246 = vst [vmem:[#allocation13_spill] sm:$0xff] %v18557_v41  ;;  %v18563_v59 = vpop.f32.mrb[99].mxu0  ;;  %v9480_v49 = vor.u32 %v18585_v3, %v18583_v42  ;;  %v9096_v42 = vld [vmem:[#allocation2 + $0x10c] sm:$0xf] }
 0x3e5   : > { %20247 = vst [vmem:[#allocation14_spill] sm:$0xff] %v18563_v59  ;;  %v18640_v18 = vsel %vm17994_vm2, %v10790_v6, %v10791_v25  ;;  %v9496_v25 = vsel %vm16822_vm10, %v18625_v19, %v18607_v11 }
 0x3e6   : > { %v9481_v2 = vrot.slane %v9480_v49, 4  ;;  %v9548_v49 = vrot.slane %v9546_v5, 4 }
 0x3e7   : > { %15351 = vmatmul.mubr.msk.bf16.gmra.mrb[48].mxu1 %vm700_vm1, %v18515_v62  ;;  %v14042_v62 = vcombine.low %v9366_v61, %v9376_v50  ;;  %v18592_v61 = vld [vmem:[#allocation2 + $0x19c] sm:$0xf]  ;;  %v9093_v50 = vld [vmem:[#allocation2 + $0x100] sm:$0xf] }
 0x3e8   : > { %15354 = vmatprep.mubr.msk.bf16.mxu1 %vm700_vm1, %v18517_v1  ;;  %v9448_v1 = vsel %vm16822_vm10, %v9443_v36, %v9447_v54  ;;  %v9498_v54 = vshrl.u32 %v9086_v56, 16  ;;  %v10795_v36 = vrot.slane %v18592_v61, 5  ;;  %v18656_v56 = vrot.slane %v9507_v29, 5 }
 0x3e9   : > { %v18602_v53 = vpop.f32.mrb[100].mxu0  ;;  %v14045_v48 = vcombine.low %v9438_v60, %v9448_v1  ;;  %v9559_v1 = vshrl.u32 %v9093_v50, 16  ;;  %v9503_v60 = vrot.slane %v9501_v20, 5  ;;  %v9095_v20 = vld [vmem:[#allocation2 + $0x108] sm:$0xf] }
 0x3ea   : > { %20248 = vst [vmem:[#allocation15_spill] sm:$0xff] %v18602_v53  ;;  %v18615_v34 = vpop.f32.mrb[101].mxu0  ;;  %v10797_v22 = vrot.slane %v10795_v36, 4  ;;  %v9500_v63 = vrot.slane %v9498_v54, 4  ;;  %v18648_v3 = vsel %vm17994_vm2, %v14127_v24, %v10795_v36  ;;  %v9541_v54 = vshll.u32 %v9091_v7, 16 }
 0x3eb   : > { %20249 = vst [vmem:[#allocation16_spill] sm:$0xff] %v18615_v34  ;;  %v18621_v14 = vpop.f32.mrb[102].mxu0  ;;  %v9528_v36 = vor.u32 %v18611_v35, %v18609_v0  ;;  %v9517_v0 = vshll.u32 %v9088_v45, 16  ;;  %v9561_v35 = vrot.slane %v9559_v1, 4  ;;  %v9573_v7 = vshll.u32 %v9095_v20, 16 }
 0x3ec   : > { %20250 = vst [vmem:[#allocation17_spill] sm:$0xff] %v18621_v14  ;;  %v18629_v16 = vpop.f32.mrb[103].mxu0  ;;  %v18652_v4 = vsel %vm17994_vm2, %v10797_v22, %v10798_v57  ;;  %v9504_v11 = vor.u32 %v9503_v60, %v9500_v63  ;;  %v9094_v22 = vld [vmem:[#allocation2 + $0x104] sm:$0x1]  ;;  %v9570_v57 = vshrl.u32 %v9095_v20, 16  ;;  %v9543_v63 = vrot.slane %v9541_v54, 5 }
 0x3ed   : > { %20251 = vst [vmem:[#allocation18_spill] sm:$0xff] %v18629_v16  ;;  %v9529_v26 = vrot.slane %v9528_v36, 4  ;;  %v9099_v1 = vld [vmem:[#allocation2 + $0x118] sm:$0xf]  ;;  %v9519_v20 = vrot.slane %v9517_v0, 5 }
 0x3ee   : > { %v9572_v36 = vrot.slane %v9570_v57, 4  ;;  %v18816_v16 = vld [vmem:[#allocation2 + $0x160] sm:$0xf] }
 0x3ef   : > { %15355 = vmatmul.mubr.msk.bf16.gmra.mrb[52].mxu1 %vm700_vm1, %v14042_v62  ;;  %v9549_v62 = vshll.u32 %v18579_v55, 16  ;;  %v9513_v55 = vrot.slane %v9511_v44, 4 }
 0x3f0   : > { %15358 = vmatprep.mubr.msk.bf16.mxu1 %vm700_vm1, %v14043_v52  ;;  %v9555_v52 = vshll.u32 %v9093_v50, 16  ;;  %v9462_v50 = vsel %vm16822_vm10, %v18596_v31, %v18541_v21  ;;  %v9579_v21 = vshll.u32 %v9096_v42, 16  ;;  %v9583_v31 = vshrl.u32 %v9096_v42, 16 }
 0x3f1   : > { %v18654_v39 = vpop.f32.mrb[104].mxu0  ;;  %v9551_v29 = vrot.slane %v9549_v62, 5  ;;  %v9514_v19 = vor.u32 %v9513_v55, %v18656_v56  ;;  %v14046_v24 = vcombine.low %v9462_v50, %v9472_v23  ;;  %v18692_v55 = vld [vmem:[#allocation2 + $0x110] sm:$0x1]  ;;  %v9505_v23 = vrot.slane %v9504_v11, 4 }
 0x3f2   : > { %20252 = vst [vmem:[#allocation19_spill] sm:$0xff] %v18654_v39  ;;  %v18660_v12 = vpop.f32.mrb[105].mxu0  ;;  %v18683_v44 = vrot.slane %v9555_v52, 5  ;;  %v18690_v5 = vrot.slane %v9579_v21, 5  ;;  %v9585_v62 = vrot.slane %v9583_v31, 4  ;;  %v9575_v21 = vrot.slane %v9573_v7, 5 }
 0x3f3   : > { %20253 = vst [vmem:[#allocation20_spill] sm:$0xff] %v18660_v12  ;;  %v18670_v6 = vpop.f32.mrb[106].mxu0  ;;  %v9098_v52 = vld [vmem:[#allocation2 + $0x114] sm:$0xf]  ;;  %v9552_v60 = vor.u32 %v9551_v29, %v9548_v49  ;;  %v9515_v45 = vrot.slane %v9514_v19, 4  ;;  %v9565_v49 = vshll.u32 %v9094_v22, 16 }
 0x3f4   : > { %20254 = vst [vmem:[#allocation21_spill] sm:$0xff] %v18670_v6  ;;  %v18680_v37 = vpop.f32.mrb[107].mxu0  ;;  %v9562_v47 = vor.u32 %v9561_v35, %v18683_v44  ;;  %v9597_v31 = vshll.u32 %v9098_v52, 16  ;;  %v9586_v29 = vor.u32 %v9585_v62, %v18690_v5  ;;  %v9603_v11 = vshll.u32 %v9099_v1, 16  ;;  %v9104_v62 = vld [vmem:[#allocation2 + $0x12c] sm:$0xf] }
 0x3f5   : > { %20255 = vst [vmem:[#allocation22_spill] sm:$0xff] %v18680_v37  ;;  %v9553_v35 = vrot.slane %v9552_v60, 4  ;;  %v9589_v57 = vshll.u32 %v18692_v55, 16  ;;  %v9607_v7 = vshrl.u32 %v9099_v1, 16  ;;  %v9520_v22 = vsel %vm16822_vm10, %v9515_v45, %v9519_v20  ;;  %v9116_v12 = vld [vmem:[#allocation2 + $0x15c] sm:$0xf] }
 0x3f6   : > { %v9599_v60 = vrot.slane %v9597_v31, 5  ;;  %v9587_v1 = vrot.slane %v9586_v29, 4  ;;  %v18721_v38 = vrot.slane %v9603_v11, 5  ;;  %v9645_v45 = vshll.u32 %v9104_v62, 16  ;;  %v18734_v11 = vld [vmem:[#allocation2 + $0x128] sm:$0x1] }
 0x3f7   : > { %15359 = vmatmul.mubr.msk.bf16.gmra.mrb[56].mxu1 %vm700_vm1, %v18594_v15  ;;  %v9486_v15 = vsel %vm16822_vm10, %v9481_v2, %v18559_v13  ;;  %v18697_v13 = vld [vmem:[#allocation2 + $0x124] sm:$0xf]  ;;  %v9591_v37 = vrot.slane %v9589_v57, 5  ;;  %v9738_v14 = vshrl.u32 %v9116_v12, 16  ;;  %v9741_v34 = vshll.u32 %v9116_v12, 16 }
 0x3f8   : > { %15362 = vmatprep.mubr.msk.bf16.mxu1 %vm700_vm1, %v14045_v48  ;;  %v14047_v42 = vcombine.low %v9486_v15, %v9496_v25  ;;  %v9539_v48 = vrot.slane %v9538_v27, 4  ;;  %v9594_v25 = vshrl.u32 %v9098_v52, 16  ;;  %v9534_v27 = vsel %vm16822_vm10, %v9529_v26, %v18617_v51  ;;  %v9101_v15 = vld [vmem:[#allocation2 + $0x120] sm:$0xf] }
 0x3f9   : > { %v18694_v50 = vpop.f32.mrb[108].mxu0  ;;  %v9510_v51 = vsel %vm16822_vm10, %v9505_v23, %v18656_v56  ;;  %v9631_v26 = vshrl.u32 %v18697_v13, 16  ;;  %v9563_v52 = vrot.slane %v9562_v47, 4  ;;  %v18723_v56 = vld [vmem:[#allocation2 + $0x130] sm:$0xf]  ;;  %v9642_v23 = vshrl.u32 %v9104_v62, 16 }
 0x3fa   : > { %20256 = vst [vmem:[#allocation23_spill] sm:$0xff] %v18694_v50  ;;  %v18699_v2 = vpop.f32.mrb[109].mxu0  ;;  %v9544_v0 = vsel %vm16822_vm10, %v9539_v48, %v9543_v63  ;;  %v9576_v48 = vor.u32 %v9575_v21, %v9572_v36  ;;  %v9596_v63 = vrot.slane %v9594_v25, 4  ;;  %v9567_v50 = vrot.slane %v9565_v49, 5  ;;  %v9107_v62 = vld [vmem:[#allocation2 + $0x138] sm:$0xf] }
 0x3fb   : > { %20257 = vst [vmem:[#allocation24_spill] sm:$0xff] %v18699_v2  ;;  %v18701_v54 = vpop.f32.mrb[110].mxu0  ;;  %v9609_v2 = vrot.slane %v9607_v7, 4  ;;  %v9633_v47 = vrot.slane %v9631_v26, 4  ;;  %v14049_v36 = vcombine.low %v9534_v27, %v9544_v0  ;;  %v9558_v25 = vsel %vm16822_vm10, %v9553_v35, %v18683_v44  ;;  %v18736_v7 = vld [vmem:[#allocation2 + $0x13c] sm:$0xf] }
 0x3fc   : > { %20258 = vst [vmem:[#allocation25_spill] sm:$0xff] %v18701_v54  ;;  %v18708_v19 = vpop.f32.mrb[111].mxu0  ;;  %v14048_v54 = vcombine.low %v9510_v51, %v9520_v22  ;;  %v9577_v31 = vrot.slane %v9576_v48, 4  ;;  %v9600_v29 = vor.u32 %v9599_v60, %v9596_v63  ;;  %v9568_v49 = vsel %vm16822_vm10, %v9563_v52, %v9567_v50  ;;  %v18744_v0 = vld [vmem:[#allocation2 + $0x11c] sm:$0x1] }
 0x3fd   : > { %20259 = vst [vmem:[#allocation26_spill] sm:$0xff] %v18708_v19  ;;  %v9621_v19 = vshll.u32 %v9101_v15, 16  ;;  %v9592_v27 = vsel %vm16822_vm10, %v9587_v1, %v9591_v37  ;;  %v9610_v35 = vor.u32 %v9609_v2, %v18721_v38  ;;  %v9644_v22 = vrot.slane %v9642_v23, 4 }
 0x3fe   : > { %v9651_v26 = vshll.u32 %v18723_v56, 16  ;;  %v9655_v37 = vshrl.u32 %v18723_v56, 16  ;;  %v9675_v52 = vshll.u32 %v18736_v7, 16  ;;  %v9582_v2 = vsel %vm16822_vm10, %v9577_v31, %v18690_v5 }
 0x3ff   : > { %15363 = vmatmul.mubr.msk.bf16.gmra.mrb[60].mxu1 %vm700_vm1, %v14046_v24  ;;  %v9627_v24 = vshll.u32 %v18697_v13, 16  ;;  %v9623_v51 = vrot.slane %v9621_v19, 5  ;;  %v9679_v19 = vshrl.u32 %v18736_v7, 16  ;;  %v9601_v48 = vrot.slane %v9600_v29, 4 }
 0x400   : > { %15366 = vmatprep.mubr.msk.bf16.mxu1 %vm700_vm1, %v14047_v42  ;;  %v9618_v42 = vshrl.u32 %v9101_v15, 16  ;;  %v9613_v63 = vshll.u32 %v18744_v0, 16  ;;  %v9637_v1 = vshll.u32 %v18734_v11, 16  ;;  %v9669_v23 = vshll.u32 %v9107_v62, 16 }
 0x401   : > { %v18725_v20 = vpop.f32.mrb[112].mxu0  ;;  %v18727_v6 = vrot.slane %v9627_v24, 5  ;;  %v9647_v24 = vrot.slane %v9645_v45, 5  ;;  %v18761_v45 = vld [vmem:[#allocation2 + $0x148] sm:$0xf]  ;;  %v9657_v31 = vrot.slane %v9655_v37, 4 }
 0x402   : > { %20260 = vst [vmem:[#allocation27_spill] sm:$0xff] %v18725_v20  ;;  %v18729_v21 = vpop.f32.mrb[113].mxu0  ;;  %v9620_v57 = vrot.slane %v9618_v42, 4  ;;  %v9666_v42 = vshrl.u32 %v9107_v62, 16  ;;  %v18769_v29 = vrot.slane %v9675_v52, 5  ;;  %v9699_v62 = vshll.u32 %v18761_v45, 16 }
 0x403   : > { %20261 = vst [vmem:[#allocation28_spill] sm:$0xff] %v18729_v21  ;;  %v18738_v15 = vpop.f32.mrb[114].mxu0  ;;  %v9634_v50 = vor.u32 %v9633_v47, %v18727_v6  ;;  %v14051_v47 = vcombine.low %v9582_v2, %v9592_v27  ;;  %v9606_v27 = vsel %vm16822_vm10, %v9601_v48, %v18721_v38  ;;  %v9671_v52 = vrot.slane %v9669_v23, 5  ;;  %v18786_v48 = vld [vmem:[#allocation2 + $0x140] sm:$0x1] }
 0x404   : > { %20262 = vst [vmem:[#allocation29_spill] sm:$0xff] %v18738_v15  ;;  %v18747_v44 = vpop.f32.mrb[115].mxu0  ;;  %v9624_v60 = vor.u32 %v9623_v51, %v9620_v57  ;;  %v9648_v15 = vor.u32 %v9647_v24, %v9644_v22  ;;  %v9681_v57 = vrot.slane %v9679_v19, 4  ;;  %v9703_v22 = vshrl.u32 %v18761_v45, 16  ;;  %v9113_v24 = vld [vmem:[#allocation2 + $0x150] sm:$0xf] }
 0x405   : > { %20263 = vst [vmem:[#allocation30_spill] sm:$0xff] %v18747_v44  ;;  %v18763_v44 = vld [vmem:[#allocation2 + $0x134] sm:$0x1]  ;;  %v9635_v5 = vrot.slane %v9634_v50, 4  ;;  %v9639_v50 = vrot.slane %v9637_v1, 5  ;;  %v9668_v37 = vrot.slane %v9666_v42, 4 }
 0x406   : > { %v9625_v2 = vrot.slane %v9624_v60, 4  ;;  %v9661_v38 = vshll.u32 %v18763_v44, 16  ;;  %v18791_v1 = vrot.slane %v9648_v15, 4  ;;  %v9682_v42 = vor.u32 %v9681_v57, %v18769_v29  ;;  %v18795_v23 = vld [vmem:[#allocation2 + $0x154] sm:$0xf] }
 0x407   : > { %15367 = vmatmul.mubr.msk.bf16.gmra.mrb[0].mxu1 %vm700_vm1, %v14048_v54  ;;  %v14050_v54 = vcombine.low %v9558_v25, %v9568_v49  ;;  %v18765_v25 = vrot.slane %v9651_v26, 5  ;;  %v9110_v49 = vld [vmem:[#allocation2 + $0x144] sm:$0xf]  ;;  %v9640_v60 = vsel %vm16822_vm10, %v9635_v5, %v9639_v50  ;;  %v9685_v15 = vshll.u32 %v18786_v48, 16  ;;  %v18803_v5 = vld [vmem:[#allocation2 + $0x14c] sm:$0x1] }
 0x408   : > { %15370 = vmatprep.mubr.msk.bf16.mxu1 %vm700_vm1, %v14049_v36  ;;  %v9611_v36 = vrot.slane %v9610_v35, 4  ;;  %v9615_v35 = vrot.slane %v9613_v63, 5  ;;  %v9690_v63 = vshrl.u32 %v9110_v49, 16  ;;  %v9723_v57 = vshll.u32 %v18795_v23, 16 }
 0x409   : > { %v18767_v21 = vpop.f32.mrb[116].mxu0 }
 0x40a   : > { %20264 = vst [vmem:[#allocation31_spill] sm:$0xff] %v18767_v21  ;;  %v18771_v51 = vpop.f32.mrb[117].mxu0  ;;  %v9693_v21 = vshll.u32 %v9110_v49, 16  ;;  %v9672_v49 = vor.u32 %v9671_v52, %v9668_v37  ;;  %v9683_v37 = vrot.slane %v9682_v42, 4 }
 0x40b   : > { %20265 = vst [vmem:[#allocation32_spill] sm:$0xff] %v18771_v51  ;;  %v18778_v26 = vpop.f32.mrb[118].mxu0  ;;  %v9616_v51 = vsel %vm16822_vm10, %v9611_v36, %v9615_v35  ;;  %v18797_v36 = vrot.slane %v9699_v62, 5  ;;  %v9705_v35 = vrot.slane %v9703_v22, 4  ;;  %v9727_v62 = vshrl.u32 %v18795_v23, 16 }
 0x40c   : > { %20266 = vst [vmem:[#allocation33_spill] sm:$0xff] %v18778_v26  ;;  %v18781_v19 = vpop.f32.mrb[119].mxu0  ;;  %v9717_v26 = vshll.u32 %v9113_v24, 16  ;;  %v14052_v20 = vcombine.low %v9606_v27, %v9616_v51  ;;  %v9695_v50 = vrot.slane %v9693_v21, 5  ;;  %v9663_v27 = vrot.slane %v9661_v38, 5 }
 0x40d   : > { %20267 = vst [vmem:[#allocation34_spill] sm:$0xff] %v18781_v19  ;;  %v9714_v19 = vshrl.u32 %v9113_v24, 16  ;;  %v9119_v24 = vld [vmem:[#allocation2 + $0x168] sm:$0xf]  ;;  %v9706_v21 = vor.u32 %v9705_v35, %v18797_v36  ;;  %v9729_v42 = vrot.slane %v9727_v62, 4  ;;  %v9751_v35 = vshrl.u32 %v18816_v16, 16 }
 0x40e   : > { %v9765_v12 = vshll.u32 %v9119_v24, 16  ;;  %v9740_v62 = vrot.slane %v9738_v14, 4 }
 0x40f   : > { %15371 = vmatmul.mubr.msk.bf16.gmra.mrb[4].mxu1 %vm700_vm1, %v14050_v54  ;;  %v9658_v54 = vor.u32 %v9657_v31, %v18765_v25  ;;  %v9692_v31 = vrot.slane %v9690_v63, 4  ;;  %v9716_v52 = vrot.slane %v9714_v19, 4  ;;  %v9719_v63 = vrot.slane %v9717_v26, 5  ;;  %v18826_v19 = vld [vmem:[#allocation2 + $0x16c] sm:$0xf] }
 0x410   : > { %15374 = vmatprep.mubr.msk.bf16.mxu1 %vm700_vm1, %v14051_v47  ;;  %v9630_v47 = vsel %vm16822_vm10, %v9625_v2, %v18727_v6  ;;  %v9654_v6 = vsel %vm16822_vm10, %v18791_v1, %v18765_v25  ;;  %v9709_v1 = vshll.u32 %v18803_v5, 16  ;;  %v9747_v26 = vshll.u32 %v18816_v16, 16 }
 0x411   : > { %v14053_v22 = vcombine.low %v9630_v47, %v9640_v60  ;;  %v18807_v39 = vpop.f32.mrb[120].mxu0  ;;  %v9659_v51 = vrot.slane %v9658_v54, 4  ;;  %v9673_v47 = vrot.slane %v9672_v49, 4  ;;  %v9696_v38 = vor.u32 %v9695_v50, %v9692_v31 }
 0x412   : > { %20268 = vst [vmem:[#allocation35_spill] sm:$0xff] %v18807_v39  ;;  %v18813_v2 = vpop.f32.mrb[121].mxu0  ;;  %v9687_v39 = vrot.slane %v9685_v15, 5  ;;  %v18824_v54 = vrot.slane %v9723_v57, 5  ;;  %v9762_v49 = vshrl.u32 %v9119_v24, 16  ;;  %v9707_v31 = vrot.slane %v9706_v21, 4 }
 0x413   : > { %20269 = vst [vmem:[#allocation36_spill] sm:$0xff] %v18813_v2  ;;  %v18818_v60 = vpop.f32.mrb[122].mxu0  ;;  %v9720_v50 = vor.u32 %v9719_v63, %v9716_v52  ;;  %v18835_v57 = vld [vmem:[#allocation2 + $0x158] sm:$0x1]  ;;  %v9678_v24 = vsel %vm16822_vm10, %v9673_v47, %v18769_v29  ;;  %v9697_v2 = vrot.slane %v9696_v38, 4  ;;  %v9711_v53 = vrot.slane %v9709_v1, 5 }
 0x414   : > { %20270 = vst [vmem:[#allocation37_spill] sm:$0xff] %v18818_v60  ;;  %v18821_v25 = vpop.f32.mrb[123].mxu0  ;;  %v9688_v15 = vsel %vm16822_vm10, %v9683_v37, %v9687_v39  ;;  %v9775_v60 = vshrl.u32 %v18826_v19, 16  ;;  %v18845_v39 = vrot.slane %v9747_v26, 5  ;;  %v9753_v37 = vrot.slane %v9751_v35, 4 }
 0x415   : > { %20271 = vst [vmem:[#allocation38_spill] sm:$0xff] %v18821_v25  ;;  %v9743_v25 = vrot.slane %v9741_v34, 5  ;;  %v9764_v21 = vrot.slane %v9762_v49, 4  ;;  %v9767_v14 = vrot.slane %v9765_v12, 5  ;;  %v14055_v52 = vcombine.low %v9678_v24, %v9688_v15  ;;  %v9122_v47 = vld [vmem:[#allocation2 + $0x174] sm:$0xf] }
 0x416   : > { %v9712_v59 = vsel %vm16822_vm10, %v9707_v31, %v9711_v53  ;;  %v9733_v29 = vshll.u32 %v18835_v57, 16  ;;  %v9721_v1 = vrot.slane %v9720_v50, 4  ;;  %v9777_v26 = vrot.slane %v9775_v60, 4  ;;  %v18856_v35 = vld [vmem:[#allocation2 + $0x178] sm:$0xf] }
 0x417   : > { %15375 = vmatmul.mubr.msk.bf16.gmra.mrb[8].mxu1 %vm700_vm1, %v14052_v20  ;;  %v9664_v20 = vsel %vm16822_vm10, %v9659_v51, %v9663_v27  ;;  %v9730_v51 = vor.u32 %v9729_v42, %v18824_v54  ;;  %v9744_v42 = vor.u32 %v9743_v25, %v9740_v62  ;;  %v9702_v53 = vsel %vm16822_vm10, %v9697_v2, %v18797_v36  ;;  %v18864_v12 = vld [vmem:[#allocation2 + $0x164] sm:$0x1] }
 0x418   : > { %15378 = vmatprep.mubr.msk.bf16.mxu1 %vm700_vm1, %v14053_v22  ;;  %v9771_v22 = vshll.u32 %v18826_v19, 16  ;;  %v14054_v34 = vcombine.low %v9654_v6, %v9664_v20  ;;  %v9754_v25 = vor.u32 %v9753_v37, %v18845_v39  ;;  %v18868_v20 = vld [vmem:[#allocation2 + $0x170] sm:$0x1]  ;;  %v9768_v60 = vor.u32 %v9767_v14, %v9764_v21  ;;  %v18870_v50 = vld [vmem:[#allocation2 + $0x184] sm:$0xf] }
 0x419   : > { %v18843_v27 = vpop.f32.mrb[124].mxu0  ;;  %v9731_v49 = vrot.slane %v9730_v51, 4  ;;  %v9786_v15 = vshrl.u32 %v9122_v47, 16  ;;  %v9789_v31 = vshll.u32 %v9122_v47, 16  ;;  %v14056_v62 = vcombine.low %v9702_v53, %v9712_v59  ;;  %v9125_v21 = vld [vmem:[#allocation2 + $0x180] sm:$0xf] }
 0x41a   : > { %20272 = vst [vmem:[#allocation39_spill] sm:$0xff] %v18843_v27  ;;  %v18847_v63 = vpop.f32.mrb[125].mxu0  ;;  %v18854_v27 = vrot.slane %v9771_v22, 5  ;;  %v9735_v22 = vrot.slane %v9733_v29, 5  ;;  %v9795_v24 = vshll.u32 %v18856_v35, 16  ;;  %v9799_v36 = vshrl.u32 %v18856_v35, 16 }
 0x41b   : > { %20273 = vst [vmem:[#allocation40_spill] sm:$0xff] %v18847_v63  ;;  %v18852_v38 = vpop.f32.mrb[126].mxu0  ;;  %v9726_v2 = vsel %vm16822_vm10, %v9721_v1, %v18824_v54  ;;  %v9745_v51 = vrot.slane %v9744_v42, 4  ;;  %v9757_v37 = vshll.u32 %v18864_v12, 16  ;;  %v9781_v59 = vshll.u32 %v18868_v20, 16 }
 0x41c   : > { %20274 = vst [vmem:[#allocation41_spill] sm:$0xff] %v18852_v38  ;;  %v18859_v6 = vpop.f32.mrb[127].mxu0  ;;  %v9736_v14 = vsel %vm16822_vm10, %v9731_v49, %v9735_v22  ;;  %v9819_v29 = vshll.u32 %v18870_v50, 16  ;;  %v9823_v47 = vshrl.u32 %v18870_v50, 16  ;;  %v9755_v54 = vrot.slane %v9754_v25, 4 }
 0x41d   : > { %20275 = vst [vmem:[#allocation42_spill] sm:$0xff] %v18859_v6  ;;  %v9769_v1 = vrot.slane %v9768_v60, 4  ;;  %v9788_v42 = vrot.slane %v9786_v15, 4  ;;  %v9791_v6 = vrot.slane %v9789_v31, 5  ;;  %v9801_v63 = vrot.slane %v9799_v36, 4 }
 0x41e   : > { %v9810_v49 = vshrl.u32 %v9125_v21, 16  ;;  %v9813_v22 = vshll.u32 %v9125_v21, 16  ;;  %v14057_v41 = vcombine.low %v9726_v2, %v9736_v14  ;;  %v9759_v17 = vrot.slane %v9757_v37, 5  ;;  %v9128_v31 = vld [vmem:[#allocation2 + $0x18c] sm:$0xf] }
 0x41f   : > { %15379 = vmatmul.mubr.msk.bf16.gmra.mrb[12].mxu1 %vm700_vm1, %v14054_v34  ;;  %v9778_v34 = vor.u32 %v9777_v26, %v18854_v27  ;;  %v18890_v26 = vrot.slane %v9795_v24, 5  ;;  %v9750_v25 = vsel %vm16822_vm10, %v9745_v51, %v18845_v39  ;;  %v18900_v60 = vrot.slane %v9819_v29, 5  ;;  %v18910_v39 = vld [vmem:[#allocation2 + $0x188] sm:$0x1]  ;;  %v9131_v14 = vld [vmem:[#allocation2 + $0x198] sm:$0xf] }
 0x420   : > { %15382 = vmatprep.mubr.msk.bf16.mxu1 %vm700_vm1, %v14055_v52  ;;  %v18882_v52 = vld [vmem:[#allocation2 + $0x17c] sm:$0x1]  ;;  %v9825_v15 = vrot.slane %v9823_v47, 4  ;;  %v9760_v24 = vsel %vm16822_vm10, %v9755_v54, %v9759_v17  ;;  %v9783_v36 = vrot.slane %v9781_v59, 5  ;;  %v9792_v2 = vor.u32 %v9791_v6, %v9788_v42 }
 0x421   : > { %v18886_v53 = vpop.f32.mrb[64].mxu0  ;;  %v9779_v46 = vrot.slane %v9778_v34, 4  ;;  %v9805_v37 = vshll.u32 %v18882_v52, 16  ;;  %v9802_v34 = vor.u32 %v9801_v63, %v18890_v26  ;;  %v9812_v51 = vrot.slane %v9810_v49, 4 }
 0x422   : > { %v18888_v38 = vpop.f32.mrb[65].mxu0  ;;  %v9815_v21 = vrot.slane %v9813_v22, 5  ;;  %v9834_v29 = vshrl.u32 %v9128_v31, 16  ;;  %v9843_v17 = vshll.u32 %v18588_v28, 16  ;;  %v9847_v6 = vshrl.u32 %v18588_v28, 16 }
 0x423   : > { %20276 = vst [vmem:[#allocation43_spill] sm:$0xff] %v18888_v38  ;;  %v18892_v9 = vpop.f32.mrb[66].mxu0  ;;  %v9826_v59 = vor.u32 %v9825_v15, %v18900_v60  ;;  %v9837_v47 = vshll.u32 %v9128_v31, 16  ;;  %v9871_v63 = vshrl.u32 %v18592_v61, 16  ;;  %v9807_v42 = vrot.slane %v9805_v37, 5 }
 0x424   : > { %20277 = vst [vmem:[#allocation44_spill] sm:$0xff] %v18892_v9  ;;  %v18895_v43 = vpop.f32.mrb[67].mxu0  ;;  %v9829_v49 = vshll.u32 %v18910_v39, 16  ;;  %v9858_v22 = vshrl.u32 %v9131_v14, 16  ;;  %v9816_v58 = vor.u32 %v9815_v21, %v9812_v51  ;;  %v9861_v28 = vshll.u32 %v9131_v14, 16 }
 0x425   : > { %20278 = vst [vmem:[#allocation45_spill] sm:$0xff] %v18895_v43  ;;  %v9134_v43 = vld [vmem:[#allocation2 + $0x1a4] sm:$0xf]  ;;  %v18924_v15 = vld [vmem:[#allocation2 + $0x1a8] sm:$0xf]  ;;  %v9803_v9 = vrot.slane %v9802_v34, 4 }
 0x426   : > { %v9845_v38 = vrot.slane %v9843_v17, 5  ;;  %v9827_v37 = vrot.slane %v9826_v59, 4  ;;  %v9882_v51 = vshrl.u32 %v9134_v43, 16  ;;  %v9885_v21 = vshll.u32 %v9134_v43, 16 }
 0x427   : > { %15383 = vmatmul.mubr.msk.bf16.gmra.mrb[16].mxu1 %vm700_vm1, %v14056_v62  ;;  %v9774_v62 = vsel %vm16822_vm10, %v9769_v1, %v18854_v27  ;;  %v9867_v27 = vshll.u32 %v18592_v61, 16  ;;  %v9793_v1 = vrot.slane %v9792_v2, 4  ;;  %v9836_v61 = vrot.slane %v9834_v29, 4 }
 0x428   : > { %15386 = vmatprep.mubr.msk.bf16.mxu1 %vm700_vm1, %v14057_v41  ;;  %v9784_v41 = vsel %vm16822_vm10, %v9779_v46, %v9783_v36  ;;  %v14058_v46 = vcombine.low %v9750_v25, %v9760_v24  ;;  %v9839_v25 = vrot.slane %v9837_v47, 5  ;;  %v9891_v14 = vshll.u32 %v18924_v15, 16 }
 0x429   : > { %v18919_v54 = vpop.f32.mrb[68].mxu0  ;;  %v14059_v36 = vcombine.low %v9774_v62, %v9784_v41  ;;  %v9869_v24 = vrot.slane %v9867_v27, 5  ;;  %v9873_v62 = vrot.slane %v9871_v63, 4  ;;  %v9895_v41 = vshrl.u32 %v18924_v15, 16 }
 0x42a   : > { %20279 = vst [vmem:[#allocation46_spill] sm:$0xff] %v18919_v54  ;;  %v18922_v30 = vpop.f32.mrb[69].mxu0  ;;  %v9849_v54 = vrot.slane %v9847_v6, 4  ;;  %v9817_v34 = vrot.slane %v9816_v58, 4  ;;  %v9831_v29 = vrot.slane %v9829_v49, 5  ;;  %v9860_v17 = vrot.slane %v9858_v22, 4 }
 0x42b   : > { %v18926_v31 = vpop.f32.mrb[70].mxu0  ;;  %v9863_v6 = vrot.slane %v9861_v28, 5  ;;  %v9808_v59 = vsel %vm16822_vm10, %v9803_v9, %v9807_v42  ;;  %v9840_v43 = vor.u32 %v9839_v25, %v9836_v61  ;;  %v9853_v63 = vshll.u32 %v18590_v40, 16  ;;  %v18950_v42 = vld [vmem:[#allocation2 + $0x1ac] sm:$0x1] }
 0x42c   : > { %20280 = vst [vmem:[#allocation47_spill] sm:$0xff] %v18926_v31  ;;  %v18929_v2 = vpop.f32.mrb[71].mxu0  ;;  %v9850_v47 = vor.u32 %v9849_v54, %v9845_v38  ;;  %v9832_v27 = vsel %vm16822_vm10, %v9827_v37, %v9831_v29  ;;  %v9884_v58 = vrot.slane %v9882_v51, 4  ;;  %v9887_v49 = vrot.slane %v9885_v21, 5 }
 0x42d   : > { %20281 = vst [vmem:[#allocation48_spill] sm:$0xff] %v18929_v2  ;;  %v9893_v22 = vrot.slane %v9891_v14, 5  ;;  %v9897_v28 = vrot.slane %v9895_v41, 4  ;;  %v9864_v54 = vor.u32 %v9863_v6, %v9860_v17  ;;  %v9901_v41 = vshll.u32 %v18950_v42, 16 }
 0x42e   : > { %v9851_v37 = vrot.slane %v9850_v47, 4  ;;  %v9888_v21 = vor.u32 %v9887_v49, %v9884_v58 }
 0x42f   : > { %15387 = vmatmul.mubr.msk.bf16.gmra.mrb[20].mxu1 %vm700_vm1, %v14058_v46  ;;  %v9798_v46 = vsel %vm16822_vm10, %v9793_v1, %v18890_v26  ;;  %v9822_v26 = vsel %vm16822_vm10, %v9817_v34, %v18900_v60  ;;  %v9877_v1 = vshll.u32 %v18613_v10, 16  ;;  %v9841_v60 = vrot.slane %v9840_v43, 4 }
 0x430   : > { %15390 = vmatprep.mubr.msk.bf16.mxu1 %vm700_vm1, %v14059_v36  ;;  %v9874_v36 = vor.u32 %v9873_v62, %v9869_v24  ;;  %v14060_v31 = vcombine.low %v9798_v46, %v9808_v59  ;;  %v14061_v40 = vcombine.low %v9822_v26, %v9832_v27  ;;  %v9855_v62 = vrot.slane %v9853_v63, 5 }
 0x431   : > { %v18942_v2 = vpop.f32.mrb[72].mxu0  ;;  %v9898_v14 = vor.u32 %v9897_v28, %v9893_v22  ;;  %v9865_v10 = vrot.slane %v9864_v54, 4  ;;  %v9879_v34 = vrot.slane %v9877_v1, 5  ;;  %v9846_v46 = vsel %vm16822_vm10, %v9841_v60, %v9845_v38 }
 0x432   : > { %v18947_v9 = vpop.f32.mrb[73].mxu0  ;;  %v9875_v51 = vrot.slane %v9874_v36, 4  ;;  %v9856_v29 = vsel %vm16822_vm10, %v9851_v37, %v9855_v62  ;;  %v9889_v47 = vrot.slane %v9888_v21, 4  ;;  %v9903_v43 = vrot.slane %v9901_v41, 5  ;;  %v16442_v62 = vld [vmem:[#allocation2 + $0x28] sm:$0xf] }
 0x433   : > { %v18952_v61 = vpop.f32.mrb[74].mxu0  ;;  %v9899_v27 = vrot.slane %v9898_v14, 4  ;;  %v14062_v63 = vcombine.low %v9846_v46, %v9856_v29  ;;  %v9870_v36 = vsel %vm16822_vm10, %v9865_v10, %v9869_v24  ;;  %v16441_v24 = vld [vmem:[#allocation2 + $0x20] sm:$0x1]  ;;  %v16443_v41 = vld [vmem:[#allocation2 + $0x34] sm:$0xf] }
 0x434   : > { %v18955_v25 = vpop.f32.mrb[75].mxu0  ;;  %v9880_v17 = vsel %vm16822_vm10, %v9875_v51, %v9879_v34  ;;  %v9894_v38 = vsel %vm16822_vm10, %v9889_v47, %v9893_v22  ;;  %v10588_v37 = vrot.slane %v16441_v24, 5  ;;  %v10592_v51 = vrot.slane %v16442_v62, 5  ;;  %v10456_v47 = vld [vmem:[#allocation2 + $0x24] sm:$0xe] }
 0x435   : > { %v14063_v49 = vcombine.low %v9870_v36, %v9880_v17  ;;  %v9904_v1 = vsel %vm16822_vm10, %v9899_v27, %v9903_v43  ;;  %v10599_v10 = vrot.slane %v16443_v41, 5  ;;  %v16444_v43 = vld [vmem:[#allocation2 + $0x2c] sm:$0x1]  ;;  %v10457_v36 = vld [vmem:[#allocation2 + $0x30] sm:$0xe] }
 0x436   : > { %v14064_v60 = vcombine.low %v9894_v38, %v9904_v1  ;;  %v16446_v1 = vld [vmem:[#allocation2 + $0x40] sm:$0xf]  ;;  %v14099_v24 = vrot.slane %v10457_v36, 9  ;;  %v16447_v62 = vld [vmem:[#allocation2 + $0x4c] sm:$0xf] }
 0x437   : > { %15391 = vmatmul.mubr.msk.bf16.gmra.mrb[24].mxu1 %vm700_vm1, %v14060_v31  ;;  %v16440_v31 = vld [vmem:[#allocation2 + $0x1c] sm:$0xf]  ;;  %v10601_v27 = vrot.slane %v10599_v10, 4 }
 0x438   : > { %15394 = vmatprep.mubr.msk.bf16.mxu1 %vm700_vm1, %v14061_v40  ;;  %v10585_v6 = vrot.slane %v16440_v31, 5  ;;  %v10455_v40 = vld [vmem:[#allocation2 + $0x18] sm:$0xe]  ;;  %v10594_v31 = vrot.slane %v10592_v51, 4 }
 0x439   : > { %v18965_v59 = vpop.f32.mrb[76].mxu0  ;;  %v14097_v21 = vrot.slane %v10455_v40, 9  ;;  %v10606_v40 = vrot.slane %v16446_v1, 5 }
 0x43a   : > { %v18969_v58 = vpop.f32.mrb[77].mxu0  ;;  %v10587_v54 = vrot.slane %v10585_v6, 4 }
 0x43b   : > { %v18971_v28 = vpop.f32.mrb[78].mxu0  ;;  %v10586_v22 = vsel %vm17994_vm2, %v14097_v21, %v10585_v6  ;;  %v14098_v6 = vrot.slane %v10456_v47, 9 }
 0x43c   : > { %v18974_v26 = vpop.f32.mrb[79].mxu0  ;;  %v10589_v14 = vsel %vm17994_vm2, %v10587_v54, %v10588_v37 }
 0x43d   : > { %v14130_v33 = vcombine.low %v10586_v22, %v10589_v14  ;;  %v10593_v21 = vsel %vm17994_vm2, %v14098_v6, %v10592_v51  ;;  %v10600_v22 = vsel %vm17994_vm2, %v14099_v24, %v10599_v10  ;;  %v16448_v51 = vld [vmem:[#allocation2 + $0x44] sm:$0x1]  ;;  %v16449_v6 = vld [vmem:[#allocation2 + $0x50] sm:$0x1]  ;;  %v16450_v24 = vld [vmem:[#allocation2 + $0x58] sm:$0xf] }
 0x43f   : > { %15395 = vmatmul.mubr.msk.bf16.gmra.mrb[28].mxu1 %vm700_vm1, %v14062_v63  ;;  %v10595_v63 = vrot.slane %v16444_v43, 5  ;;  %v10608_v43 = vrot.slane %v10606_v40, 4 }
 0x440   : > { %15398 = vmatprep.mubr.msk.bf16.mxu1 %vm700_vm1, %v14063_v49  ;;  %v16445_v49 = vld [vmem:[#allocation2 + $0x38] sm:$0x1] }
 0x441   : > { %v18983_v34 = vpop.f32.mrb[80].mxu0  ;;  %v10602_v54 = vrot.slane %v16445_v49, 5  ;;  %v10596_v38 = vsel %vm17994_vm2, %v10594_v31, %v10595_v63  ;;  %v10458_v63 = vld [vmem:[#allocation2 + $0x3c] sm:$0xe]  ;;  %v10609_v49 = vrot.slane %v16448_v51, 5 }
 0x442   : > { %v18987_v29 = vpop.f32.mrb[81].mxu0  ;;  %v14131_v41 = vcombine.low %v10593_v21, %v10596_v38  ;;  %v10616_v38 = vrot.slane %v16449_v6, 5  ;;  %v14100_v10 = vrot.slane %v10458_v63, 9 }
 0x443   : > { %v18989_v17 = vpop.f32.mrb[82].mxu0  ;;  %v10603_v37 = vsel %vm17994_vm2, %v10601_v27, %v10602_v54  ;;  %v10459_v54 = vld [vmem:[#allocation2 + $0x48] sm:$0xe]  ;;  %v10610_v1 = vsel %vm17994_vm2, %v10608_v43, %v10609_v49 }
 0x444   : > { %v18992_v46 = vpop.f32.mrb[83].mxu0  ;;  %v14132_v31 = vcombine.low %v10600_v22, %v10603_v37  ;;  %v10620_v37 = vrot.slane %v16450_v24, 5 }
 0x447   : > { %15399 = vmatmul.mubr.msk.bf16.gmra.mrb[32].mxu1 %vm700_vm1, %v14064_v60  ;;  %v10613_v60 = vrot.slane %v16447_v62, 5  ;;  %v14101_v62 = vrot.slane %v10459_v54, 9  ;;  %v10622_v54 = vrot.slane %v10620_v37, 4 }
 0x448   : > { %15404 = vmatprep.mubr.msk.bf16.mxu1 %vm700_vm1, %v14130_v33 }
 0x449   : > { %v19001_v14 = vpop.f32.mrb[84].mxu0  ;;  %v10615_v36 = vrot.slane %v10613_v60, 4  ;;  %v10614_v63 = vsel %vm17994_vm2, %v14101_v62, %v10613_v60 }
 0x44a   : > { %20282 = vst [vmem:[#allocation49_spill] sm:$0xff] %v19001_v14  ;;  %v19005_v33 = vpop.f32.mrb[85].mxu0 }
 0x44b   : > { %20283 = vst [vmem:[#allocation50_spill] sm:$0xff] %v19005_v33  ;;  %v19007_v47 = vpop.f32.mrb[86].mxu0  ;;  %v10617_v21 = vsel %vm17994_vm2, %v10615_v36, %v10616_v38  ;;  %v10460_v38 = vld [vmem:[#allocation2 + $0x54] sm:$0xe] }
 0x44c   : > { %20284 = vst [vmem:[#allocation51_spill] sm:$0xff] %v19007_v47  ;;  %v19010_v27 = vpop.f32.mrb[87].mxu0  ;;  %v14134_v43 = vcombine.low %v10614_v63, %v10617_v21  ;;  %v14102_v60 = vrot.slane %v10460_v38, 9  ;;  %v16454_v21 = vld [vmem:[#allocation2 + $0x70] sm:$0xf] }
 0x44d   : > { %20285 = vst [vmem:[#allocation52_spill] sm:$0xff] %v19010_v27  ;;  %v10634_v63 = vrot.slane %v16454_v21, 5 }
 0x44f   : > { %15405 = vmatmul.mubr.msk.bf16.vlgmr.msra.gmra.mrb[36].mxu1 %vm700_vm1, %v14131_v41  ;;  %v16451_v41 = vld [vmem:[#allocation2 + $0x64] sm:$0xf]  ;;  %v10636_v38 = vrot.slane %v10634_v63, 4 }
 0x450   : > { %15408 = vmatprep.mubr.msk.bf16.mxu1 %vm700_vm1, %v14132_v31  ;;  %v10627_v22 = vrot.slane %v16451_v41, 5  ;;  %v10607_v31 = vsel %vm17994_vm2, %v14100_v10, %v10606_v40  ;;  %v16452_v40 = vld [vmem:[#allocation2 + $0x5c] sm:$0x1]  ;;  %v16453_v41 = vld [vmem:[#allocation2 + $0x68] sm:$0x1] }
 0x451   : > { %v19019_v27 = vpop.f32.mrb[88].mxu0  ;;  %v14133_v51 = vcombine.low %v10607_v31, %v10610_v1  ;;  %v10623_v10 = vrot.slane %v16452_v40, 5  ;;  %v10461_v1 = vld [vmem:[#allocation2 + $0x60] sm:$0xe]  ;;  %v10630_v31 = vrot.slane %v16453_v41, 5 }
 0x452   : > { %20286 = vst [vmem:[#allocation53_spill] sm:$0xff] %v19019_v27  ;;  %v19023_v6 = vpop.f32.mrb[89].mxu0  ;;  %v10629_v24 = vrot.slane %v10627_v22, 4 }
 0x453   : > { %20287 = vst [vmem:[#allocation54_spill] sm:$0xff] %v19023_v6  ;;  %v19025_v49 = vpop.f32.mrb[90].mxu0  ;;  %v10624_v62 = vsel %vm17994_vm2, %v10622_v54, %v10623_v10  ;;  %v10462_v54 = vld [vmem:[#allocation2 + $0x6c] sm:$0xe] }
 0x454   : > { %20288 = vst [vmem:[#allocation55_spill] sm:$0xff] %v19025_v49  ;;  %v19028_v36 = vpop.f32.mrb[91].mxu0  ;;  %v14103_v49 = vrot.slane %v10461_v1, 9  ;;  %v16456_v1 = vld [vmem:[#allocation2 + $0x74] sm:$0x1]  ;;  %v14104_v47 = vrot.slane %v10462_v54, 9 }
 0x455   : > { %20289 = vst [vmem:[#allocation56_spill] sm:$0xff] %v19028_v36  ;;  %v16455_v36 = vld [vmem:[#allocation2 + $0x7c] sm:$0xf]  ;;  %v10637_v21 = vrot.slane %v16456_v1, 5 }
 0x456   : > { %v10641_v6 = vrot.slane %v16455_v36, 5  ;;  %v10628_v40 = vsel %vm17994_vm2, %v14103_v49, %v10627_v22 }
 0x457   : > { %15409 = vmatmul.mubr.msk.bf16.gmra.mrb[40].mxu1 %vm700_vm1, %v14133_v51  ;;  %v10631_v51 = vsel %vm17994_vm2, %v10629_v24, %v10630_v31  ;;  %v10463_v24 = vld [vmem:[#allocation2 + $0x78] sm:$0xe]  ;;  %v16457_v31 = vld [vmem:[#allocation2 + $0x80] sm:$0x1] }
 0x458   : > { %15412 = vmatprep.mubr.msk.bf16.mxu1 %vm700_vm1, %v14134_v43  ;;  %v10621_v43 = vsel %vm17994_vm2, %v14102_v60, %v10620_v37  ;;  %v14136_v41 = vcombine.low %v10628_v40, %v10631_v51  ;;  %v10643_v10 = vrot.slane %v10641_v6, 4  ;;  %v10644_v36 = vrot.slane %v16457_v31, 5  ;;  %v16458_v60 = vld [vmem:[#allocation2 + $0x88] sm:$0xf] }
 0x459   : > { %v14135_v27 = vcombine.low %v10621_v43, %v10624_v62  ;;  %v10638_v37 = vsel %vm17994_vm2, %v10636_v38, %v10637_v21  ;;  %v10648_v62 = vrot.slane %v16458_v60, 5  ;;  %v14105_v22 = vrot.slane %v10463_v24, 9  ;;  %v10464_v38 = vld [vmem:[#allocation2 + $0x84] sm:$0xe]  ;;  %v16460_v24 = vld [vmem:[#allocation2 + $0x8c] sm:$0x1] }
 0x45a   : > { %v10645_v49 = vsel %vm17994_vm2, %v10643_v10, %v10644_v36  ;;  %v10635_v43 = vsel %vm17994_vm2, %v14104_v47, %v10634_v63  ;;  %v10651_v31 = vrot.slane %v16460_v24, 5  ;;  %v10465_v10 = vld [vmem:[#allocation2 + $0x90] sm:$0xe]  ;;  %v16461_v36 = vld [vmem:[#allocation2 + $0x98] sm:$0x1] }
 0x45b   : > { %v14137_v40 = vcombine.low %v10635_v43, %v10638_v37  ;;  %v10650_v54 = vrot.slane %v10648_v62, 4  ;;  %v10658_v60 = vrot.slane %v16461_v36, 5  ;;  %v16462_v63 = vld [vmem:[#allocation2 + $0xa0] sm:$0xf] }
 0x45c   : > { %v10662_v37 = vrot.slane %v16462_v63, 5 }
 0x45d   : > { %v10652_v47 = vsel %vm17994_vm2, %v10650_v54, %v10651_v31  ;;  %v10466_v54 = vld [vmem:[#allocation2 + $0x9c] sm:$0xe] }
 0x45f   : > { %15413 = vmatmul.mubr.msk.bf16.gmra.mrb[44].mxu1 %vm700_vm1, %v14135_v27  ;;  %v16459_v27 = vld [vmem:[#allocation2 + $0x94] sm:$0xf] }
 0x460   : > { %15416 = vmatprep.mubr.msk.bf16.mxu1 %vm700_vm1, %v14136_v41  ;;  %v10655_v51 = vrot.slane %v16459_v27, 5  ;;  %v10642_v41 = vsel %vm17994_vm2, %v14105_v22, %v10641_v6  ;;  %v14106_v27 = vrot.slane %v10464_v38, 9  ;;  %v14107_v6 = vrot.slane %v10465_v10, 9  ;;  %v16464_v10 = vld [vmem:[#allocation2 + $0xa4] sm:$0x1] }
 0x461   : > { %v14138_v1 = vcombine.low %v10642_v41, %v10645_v49  ;;  %v16463_v49 = vld [vmem:[#allocation2 + $0xac] sm:$0xf]  ;;  %v10664_v38 = vrot.slane %v10662_v37, 4  ;;  %v10665_v36 = vrot.slane %v16464_v10, 5 }
 0x462   : > { %v10657_v21 = vrot.slane %v10655_v51, 4  ;;  %v10669_v43 = vrot.slane %v16463_v49, 5  ;;  %v14108_v49 = vrot.slane %v10466_v54, 9 }
 0x464   : > { %v10659_v22 = vsel %vm17994_vm2, %v10657_v21, %v10658_v60  ;;  %v10671_v31 = vrot.slane %v10669_v43, 4  ;;  %v10467_v21 = vld [vmem:[#allocation2 + $0xa8] sm:$0xe]  ;;  %v16465_v60 = vld [vmem:[#allocation2 + $0xb0] sm:$0x1] }
 0x465   : > { %v10672_v63 = vrot.slane %v16465_v60, 5 }
 0x467   : > { %15417 = vmatmul.mubr.msk.bf16.gmra.mrb[48].mxu1 %vm700_vm1, %v14137_v40  ;;  %v10649_v40 = vsel %vm17994_vm2, %v14106_v27, %v10648_v62  ;;  %v10666_v62 = vsel %vm17994_vm2, %v10664_v38, %v10665_v36  ;;  %v16466_v27 = vld [vmem:[#allocation2 + $0xb8] sm:$0xf]  ;;  %v10468_v38 = vld [vmem:[#allocation2 + $0xb4] sm:$0xe] }
 0x468   : > { %15420 = vmatprep.mubr.msk.bf16.mxu1 %vm700_vm1, %v14138_v1  ;;  %v14139_v41 = vcombine.low %v10649_v40, %v10652_v47  ;;  %v10656_v1 = vsel %vm17994_vm2, %v14107_v6, %v10655_v51  ;;  %v10676_v47 = vrot.slane %v16466_v27, 5  ;;  %v14109_v51 = vrot.slane %v10467_v21, 9  ;;  %v16468_v21 = vld [vmem:[#allocation2 + $0xbc] sm:$0x1] }
 0x469   : > { %v14140_v24 = vcombine.low %v10656_v1, %v10659_v22  ;;  %v10673_v6 = vsel %vm17994_vm2, %v10671_v31, %v10672_v63  ;;  %v16467_v22 = vld [vmem:[#allocation2 + $0xc4] sm:$0xf]  ;;  %v10679_v60 = vrot.slane %v16468_v21, 5  ;;  %v10469_v31 = vld [vmem:[#allocation2 + $0xc0] sm:$0xe] }
 0x46a   : > { %v10683_v40 = vrot.slane %v16467_v22, 5  ;;  %v10678_v54 = vrot.slane %v10676_v47, 4  ;;  %v16469_v63 = vld [vmem:[#allocation2 + $0xd0] sm:$0xf]  ;;  %v16470_v22 = vld [vmem:[#allocation2 + $0xc8] sm:$0x1] }
 0x46b   : > { %v10690_v27 = vrot.slane %v16469_v63, 5  ;;  %v10686_v33 = vrot.slane %v16470_v22, 5  ;;  %v16472_v21 = vld [vmem:[#allocation2 + $0xd4] sm:$0x1] }
 0x46c   : > { %v10685_v36 = vrot.slane %v10683_v40, 4  ;;  %v10693_v63 = vrot.slane %v16472_v21, 5  ;;  %v16476_v21 = vld [vmem:[#allocation2 + $0x104] sm:$0x1] }
 0x46f   : > { %15421 = vmatmul.mubr.msk.bf16.gmra.mrb[52].mxu1 %vm700_vm1, %v14139_v41  ;;  %v10663_v41 = vsel %vm17994_vm2, %v14108_v49, %v10662_v37  ;;  %v10470_v37 = vld [vmem:[#allocation2 + $0xcc] sm:$0xe]  ;;  %v14110_v49 = vrot.slane %v10468_v38, 9 }
 0x470   : > { %15424 = vmatprep.mubr.msk.bf16.mxu1 %vm700_vm1, %v14140_v24  ;;  %v14141_v1 = vcombine.low %v10663_v41, %v10666_v62  ;;  %v10670_v24 = vsel %vm17994_vm2, %v14109_v51, %v10669_v43  ;;  %v10680_v43 = vsel %vm17994_vm2, %v10678_v54, %v10679_v60  ;;  %v14111_v62 = vrot.slane %v10469_v31, 9  ;;  %v16473_v60 = vld [vmem:[#allocation2 + $0xf8] sm:$0x1] }
 0x471   : > { %v14142_v10 = vcombine.low %v10670_v24, %v10673_v6  ;;  %v10687_v51 = vsel %vm17994_vm2, %v10685_v36, %v10686_v33  ;;  %v16471_v6 = vld [vmem:[#allocation2 + $0xf4] sm:$0xf]  ;;  %v14112_v24 = vrot.slane %v10470_v37, 9  ;;  %v10471_v36 = vld [vmem:[#allocation2 + $0xf0] sm:$0xe]  ;;  %v10700_v31 = vrot.slane %v16473_v60, 5 }
 0x472   : > { %v10697_v41 = vrot.slane %v16471_v6, 5  ;;  %v10684_v38 = vsel %vm17994_vm2, %v14111_v62, %v10683_v40  ;;  %v16474_v37 = vld [vmem:[#allocation2 + $0x100] sm:$0xf]  ;;  %v14113_v6 = vrot.slane %v10471_v36, 9 }
 0x473   : > { %v14144_v22 = vcombine.low %v10684_v38, %v10687_v51  ;;  %v10691_v33 = vsel %vm17994_vm2, %v14112_v24, %v10690_v27  ;;  %v10472_v24 = vld [vmem:[#allocation2 + $0xfc] sm:$0xe]  ;;  %v10473_v38 = vld [vmem:[#allocation2 + $0x108] sm:$0xe] }
 0x474   : > { %v10699_v54 = vrot.slane %v10697_v41, 4  ;;  %v10698_v51 = vsel %vm17994_vm2, %v14113_v6, %v10697_v41  ;;  %v14115_v41 = vrot.slane %v10473_v38, 9 }
 0x476   : > { %v10701_v40 = vsel %vm17994_vm2, %v10699_v54, %v10700_v31  ;;  %v10725_v31 = vrot.slane %v18697_v13, 5  ;;  %v10728_v13 = vrot.slane %v18734_v11, 5 }
 0x477   : > { %15425 = vmatmul.mubr.msk.bf16.gmra.mrb[56].mxu1 %vm700_vm1, %v14141_v1  ;;  %v10677_v1 = vsel %vm17994_vm2, %v14110_v49, %v10676_v47  ;;  %v10704_v49 = vrot.slane %v16474_v37, 5 }
 0x478   : > { %15428 = vmatprep.mubr.msk.bf16.mxu1 %vm700_vm1, %v14142_v10  ;;  %v10692_v10 = vrot.slane %v10690_v27, 4  ;;  %v14143_v14 = vcombine.low %v10677_v1, %v10680_v43  ;;  %v14146_v1 = vcombine.low %v10698_v51, %v10701_v40  ;;  %v10727_v51 = vrot.slane %v10725_v31, 4 }
 0x479   : > { %v10706_v27 = vrot.slane %v10704_v49, 4 }
 0x47a   : > { %v10694_v47 = vsel %vm17994_vm2, %v10692_v10, %v10693_v63  ;;  %v10707_v63 = vrot.slane %v16476_v21, 5  ;;  %v10729_v21 = vsel %vm17994_vm2, %v10727_v51, %v10728_v13  ;;  %v10478_v51 = vld [vmem:[#allocation2 + $0x144] sm:$0xe] }
 0x47b   : > { %v14145_v43 = vcombine.low %v10691_v33, %v10694_v47  ;;  %v14114_v33 = vrot.slane %v10472_v24, 9  ;;  %v16477_v47 = vld [vmem:[#allocation2 + $0x118] sm:$0xf]  ;;  %v14120_v13 = vrot.slane %v10478_v51, 9 }
 0x47c   : > { %v10708_v54 = vsel %vm17994_vm2, %v10706_v27, %v10707_v63  ;;  %v10718_v36 = vrot.slane %v16477_v47, 5  ;;  %v10475_v27 = vld [vmem:[#allocation2 + $0x120] sm:$0xe]  ;;  %v10739_v63 = vrot.slane %v18736_v7, 5  ;;  %v10742_v7 = vrot.slane %v18786_v48, 5 }
 0x47d   : > { %v10705_v37 = vsel %vm17994_vm2, %v14114_v33, %v10704_v49 }
 0x47e   : > { %v10720_v40 = vrot.slane %v10718_v36, 4  ;;  %v10741_v47 = vrot.slane %v10739_v63, 4 }
 0x47f   : > { %15429 = vmatmul.mubr.msk.bf16.gmra.mrb[60].mxu1 %vm700_vm1, %v14143_v14  ;;  %v16475_v14 = vld [vmem:[#allocation2 + $0x10c] sm:$0xf] }
 0x480   : > { %15432 = vmatprep.mubr.msk.bf16.mxu1 %vm700_vm1, %v14144_v22  ;;  %v10711_v62 = vrot.slane %v16475_v14, 5  ;;  %v10714_v22 = vrot.slane %v18692_v55, 5  ;;  %v10474_v14 = vld [vmem:[#allocation2 + $0x114] sm:$0xe] }
 0x481   : > { %v14116_v24 = vrot.slane %v10474_v14, 9 }
 0x482   : > { %v10713_v10 = vrot.slane %v10711_v62, 4  ;;  %v10712_v6 = vsel %vm17994_vm2, %v14115_v41, %v10711_v62  ;;  %v14117_v62 = vrot.slane %v10475_v27, 9  ;;  %v10477_v41 = vld [vmem:[#allocation2 + $0x138] sm:$0xe]  ;;  %v10479_v27 = vld [vmem:[#allocation2 + $0x150] sm:$0xe] }
 0x483   : > { %v10719_v38 = vsel %vm17994_vm2, %v14116_v24, %v10718_v36 }
 0x484   : > { %v10715_v60 = vsel %vm17994_vm2, %v10713_v10, %v10714_v22  ;;  %v10732_v10 = vrot.slane %v18723_v56, 5  ;;  %v10735_v56 = vrot.slane %v18763_v44, 5 }
 0x485   : > { %v14148_v55 = vcombine.low %v10712_v6, %v10715_v60  ;;  %v10753_v6 = vrot.slane %v18795_v23, 5  ;;  %v10756_v23 = vrot.slane %v18835_v57, 5 }
 0x486   : > { %v10734_v33 = vrot.slane %v10732_v10, 4 }
 0x487   : > { %15433 = vmatmul.mubr.msk.bf16.gmra.mrb[0].mxu1 %vm700_vm1, %v14145_v43  ;;  %v14147_v43 = vcombine.low %v10705_v37, %v10708_v54  ;;  %v10476_v54 = vld [vmem:[#allocation2 + $0x12c] sm:$0xe]  ;;  %v10746_v37 = vrot.slane %v18761_v45, 5  ;;  %v10749_v45 = vrot.slane %v18803_v5, 5 }
 0x488   : > { %15436 = vmatprep.mubr.msk.bf16.mxu1 %vm700_vm1, %v14146_v1  ;;  %v10721_v1 = vrot.slane %v18744_v0, 5  ;;  %v10726_v0 = vsel %vm17994_vm2, %v14117_v62, %v10725_v31  ;;  %v14118_v60 = vrot.slane %v10476_v54, 9  ;;  %v10736_v36 = vsel %vm17994_vm2, %v10734_v33, %v10735_v56  ;;  %v10481_v33 = vld [vmem:[#allocation2 + $0x168] sm:$0xe] }
 0x489   : > { %v14150_v11 = vcombine.low %v10726_v0, %v10729_v21  ;;  %v14119_v31 = vrot.slane %v10477_v41, 9  ;;  %v10748_v14 = vrot.slane %v10746_v37, 4  ;;  %v10767_v21 = vrot.slane %v18826_v19, 5  ;;  %v10480_v0 = vld [vmem:[#allocation2 + $0x15c] sm:$0xe] }
 0x48a   : > { %v10722_v49 = vsel %vm17994_vm2, %v10720_v40, %v10721_v1  ;;  %v10755_v1 = vrot.slane %v10753_v6, 4  ;;  %v10770_v19 = vrot.slane %v18868_v20, 5  ;;  %v14122_v54 = vrot.slane %v10480_v0, 9 }
 0x48b   : > { %v14149_v22 = vcombine.low %v10719_v38, %v10722_v49  ;;  %v10740_v44 = vsel %vm17994_vm2, %v14119_v31, %v10739_v63  ;;  %v10750_v24 = vsel %vm17994_vm2, %v10748_v14, %v10749_v45  ;;  %v10760_v49 = vrot.slane %v18816_v16, 5 }
 0x48c   : > { %v10757_v62 = vsel %vm17994_vm2, %v10755_v1, %v10756_v23  ;;  %v10747_v63 = vsel %vm17994_vm2, %v14120_v13, %v10746_v37  ;;  %v10763_v16 = vrot.slane %v18864_v12, 5  ;;  %v10774_v56 = vrot.slane %v18856_v35, 5 }
 0x48d   : > { %v14153_v38 = vcombine.low %v10747_v63, %v10750_v24  ;;  %v14123_v41 = vrot.slane %v10481_v33, 9  ;;  %v10777_v35 = vrot.slane %v18882_v52, 5  ;;  %v10802_v52 = vrot.slane %v18924_v15, 5 }
 0x48e   : > { %v10776_v31 = vrot.slane %v10774_v56, 4  ;;  %v10805_v24 = vrot.slane %v18950_v42, 5 }
 0x48f   : > { %15437 = vmatmul.mubr.msk.bf16.gmra.mrb[4].mxu1 %vm700_vm1, %v14147_v43  ;;  %v10743_v43 = vsel %vm17994_vm2, %v10741_v47, %v10742_v7  ;;  %v10768_v12 = vsel %vm17994_vm2, %v14123_v41, %v10767_v21  ;;  %v10804_v13 = vrot.slane %v10802_v52, 4 }
 0x490   : > { %15440 = vmatprep.mubr.msk.bf16.mxu1 %vm700_vm1, %v14148_v55  ;;  %v10733_v55 = vsel %vm17994_vm2, %v14118_v60, %v10732_v10  ;;  %v14152_v48 = vcombine.low %v10740_v44, %v10743_v43  ;;  %v14121_v10 = vrot.slane %v10479_v27, 9  ;;  %v10781_v60 = vrot.slane %v18870_v50, 5  ;;  %v10482_v43 = vld [vmem:[#allocation2 + $0x174] sm:$0xe] }
 0x491   : > { %v14151_v40 = vcombine.low %v10733_v55, %v10736_v36  ;;  %v10761_v36 = vsel %vm17994_vm2, %v14122_v54, %v10760_v49  ;;  %v10483_v55 = vld [vmem:[#allocation2 + $0x180] sm:$0xe]  ;;  %v10784_v50 = vrot.slane %v18910_v39, 5  ;;  %v10778_v44 = vsel %vm17994_vm2, %v10776_v31, %v10777_v35  ;;  %v10486_v39 = vld [vmem:[#allocation2 + $0x1a4] sm:$0xe] }
 0x492   : > { %v10754_v5 = vsel %vm17994_vm2, %v14121_v10, %v10753_v6  ;;  %v10783_v6 = vrot.slane %v10781_v60, 4  ;;  %v14128_v23 = vrot.slane %v10486_v39, 9  ;;  %v20291_v10 = vcombine.low %v18648_v3, %v18652_v4  ;;  %v20294_v54 = vld [vmem:[#allocation45_spill] sm:$0xff] }
 0x493   : > { %v14154_v57 = vcombine.low %v10754_v5, %v10757_v62  ;;  %v10806_v15 = vsel %vm17994_vm2, %v10804_v13, %v10805_v24  ;;  %v20292_v5 = vld [vmem:[#allocation43_spill] sm:$0xff] }
 0x494   : > { %v10785_v14 = vsel %vm17994_vm2, %v10783_v6, %v10784_v50  ;;  %v10803_v62 = vsel %vm17994_vm2, %v14128_v23, %v10802_v52  ;;  %v20297_v23 = vld [vmem:[#allocation48_spill] sm:$0xff] }
 0x497   : > { %15441 = vmatmul.mubr.msk.bf16.gmra.mrb[8].mxu1 %vm700_vm1, %v14149_v22  ;;  %v10762_v22 = vrot.slane %v10760_v49, 4  ;;  %v20290_v49 = vcombine.low %v18636_v32, %v18640_v18  ;;  %v11706_v32 = vld [vmem:[%s20212_s7] sm:$0x3]  ;;  %v16547_v18 = vmov 0.0  }
 0x498   : > { %15444 = vmatprep.mubr.msk.bf16.mxu1 %vm700_vm1, %v14150_v11  ;;  %v10769_v11 = vrot.slane %v10767_v21, 4  ;;  %v14161_v21 = vcombine.low %v10803_v62, %v10806_v15  ;;  %15468 = vmatprep.subr.bf16.mxu0 %v16547_v18  ;;  %v19191_v3 = vsel %vm797_vm0, %v11706_v32, 0 }
 0x499   : > { %v10764_v47 = vsel %vm17994_vm2, %v10762_v22, %v10763_v16  ;;  %15469 = vmatpush3.bf16.msra.mxu0 %v19191_v3  ;;  %15470 = vmatprep.mubr.msk.bf16.mxu0 %vm16548_vm3, %v16547_v18 }
 0x49a   : > { %v10771_v7 = vsel %vm17994_vm2, %v10769_v11, %v10770_v19  ;;  %v14155_v37 = vcombine.low %v10761_v36, %v10764_v47  ;;  %v20293_v11 = vld [vmem:[#allocation44_spill] sm:$0xff] }
 0x49b   : > { %v14156_v20 = vcombine.low %v10768_v12, %v10771_v7 }
 0x49f   : > { %15445 = vmatmul.mubr.msk.bf16.gmra.mrb[12].mxu1 %vm700_vm1, %v14151_v40  ;;  %v14124_v40 = vrot.slane %v10482_v43, 9  ;;  %v20295_v43 = vld [vmem:[#allocation46_spill] sm:$0xff] }
 0x4a0   : > { %15448 = vmatprep.mubr.msk.bf16.mxu1 %vm700_vm1, %v14152_v48  ;;  %v14125_v48 = vrot.slane %v10483_v55, 9 }
 0x4a1   : > { %v10775_v51 = vsel %vm17994_vm2, %v14124_v40, %v10774_v56 }
 0x4a2   : > { %v14157_v1 = vcombine.low %v10775_v51, %v10778_v44  ;;  %v10782_v45 = vsel %vm17994_vm2, %v14125_v48, %v10781_v60  ;;  %v20296_v51 = vld [vmem:[#allocation47_spill] sm:$0xff] }
 0x4a3   : > { %v14158_v27 = vcombine.low %v10782_v45, %v10785_v14 }
 0x4a7   : > { %15449 = vmatmul.mubr.msk.bf16.gmra.mrb[16].mxu1 %vm700_vm1, %v14153_v38  ;;  %v19203_v38 = vld [vmem:[%s20211_s6] ss:$0 sm:$0xff] }
 0x4a8   : > { %15452 = vmatprep.mubr.msk.bf16.mxu1 %vm700_vm1, %v14154_v57 }
 0x4af   : > { %15453 = vmatmul.mubr.msk.bf16.gmra.mrb[20].mxu1 %vm700_vm1, %v14155_v37 }
 0x4b0   : > { %15456 = vmatprep.mubr.msk.bf16.mxu1 %vm700_vm1, %v14156_v20 }
 0x4b7   : > { %15457 = vmatmul.mubr.msk.bf16.gmra.mrb[24].mxu1 %vm700_vm1, %v14157_v1 }
 0x4b8   : > { %15460 = vmatprep.mubr.msk.bf16.mxu1 %vm700_vm1, %v14158_v27 }
 0x4bf   : > { %15461 = vmatmul.mubr.msk.bf16.gmra.mrb[28].mxu1 %vm700_vm1, %v20290_v49 }
 0x4c0   : > { %15464 = vmatprep.mubr.msk.bf16.mxu1 %vm700_vm1, %v20291_v10 }
 0x4c7   : > { %15465 = vmatmul.mubr.msk.bf16.gmra.mrb[32].mxu1 %vm700_vm1, %v14161_v21 }
 0x522   : > { %v15406_v4 = vpop.f32.mrb[36].mxu1 }
 0x523   : > { %v15557_v42 = vadd.f32 %v15406_v4, %v18886_v53  ;;  %v11038_v63 = vpop.f32.mrb[37].mxu1 }
 0x524   : > { %v15558_v57 = vadd.f32 %v11038_v63, %v20292_v5  ;;  %v15407_v22 = vpop.f32.mrb[38].mxu1 }
 0x525   : > { %v11366_v0 = vmul.f32 %v15557_v42, %v19197_v8  ;;  %v15559_v16 = vadd.f32 %v15407_v22, %v20293_v11  ;;  %v11041_v33 = vpop.f32.mrb[39].mxu1 }
 0x526   : > { %v11364_v19 = vmul.f32 %v15558_v57, %v19197_v8  ;;  %v15560_v47 = vadd.f32 %v11041_v33, %v20294_v54 }
 0x527   : > { %v11437_v53 = vadd.f32 %v19203_v38, %v11366_v0  ;;  %v11367_v56 = vmul.f32 %v15559_v16, %v19197_v8 }
 0x528   : > { %v11435_v41 = vadd.f32 %v19203_v38, %v11364_v19  ;;  %v11365_v7 = vmul.f32 %v15560_v47, %v19197_v8 }
 0x529   : > { %v11438_v60 = vadd.f32 %v19203_v38, %v11367_v56  ;;  %v11501_v20 = vmax.f32 %v11437_v53, 0.0 }
 0x52a   : > { %v11499_v36 = vmax.f32 %v11435_v41, 0.0  ;;  %v11436_v37 = vadd.f32 %v19203_v38, %v11365_v7  ;;  %v15410_v12 = vpop.f32.mrb[40].mxu1 }
 0x52b   : > { %v11502_v31 = vmax.f32 %v11438_v60, 0.0  ;;  %v15561_v6 = vadd.f32 %v15410_v12, %v20295_v43  ;;  %v11054_v35 = vpop.f32.mrb[41].mxu1  ;;  %v11566_v10 = vsel %vm700_vm1, %v11501_v20, 0.0 }
 0x52c   : > { %v11500_v55 = vmax.f32 %v11436_v37, 0.0  ;;  %v15562_v50 = vadd.f32 %v11054_v35, %v18922_v30  ;;  %v15411_v40 = vpop.f32.mrb[42].mxu1  ;;  %v11563_v44 = vsel %vm700_vm1, %v11499_v36, 0.0 }
 0x52d   : > { %v19219_v48 = vpack.c.bf16 %v11502_v31, %v11501_v20  ;;  %v11370_v14 = vmul.f32 %v15561_v6, %v19197_v8  ;;  %v15563_v1 = vadd.f32 %v15411_v40, %v20296_v51  ;;  %v11057_v45 = vpop.f32.mrb[43].mxu1  ;;  %v11568_v4 = vsel %vm700_vm1, %v11502_v31, 0.0 }
 0x52e   : > { %v11564_v27 = vsel %vm700_vm1, %v11500_v55, 0.0  ;;  %v19224_v52 = vpack.c.bf16 %v11500_v55, %v11499_v36  ;;  %v11368_v39 = vmul.f32 %v15562_v50, %v19197_v8  ;;  %v15564_v13 = vadd.f32 %v11057_v45, %v20297_v23 }
 0x52f   : > { %v11565_v24 = vadd.f32 %v11564_v27, %v11563_v44  ;;  %v11441_v30 = vadd.f32 %v19203_v38, %v11370_v14  ;;  %v11371_v49 = vmul.f32 %v15563_v1, %v19197_v8 }
 0x530   : > { %v11439_v62 = vadd.f32 %v19203_v38, %v11368_v39  ;;  %v11369_v15 = vmul.f32 %v15564_v13, %v19197_v8 }
 0x531   : > { %v11567_v21 = vadd.f32 %v11566_v10, %v11565_v24  ;;  %v11442_v32 = vadd.f32 %v19203_v38, %v11371_v49  ;;  %v11505_v57 = vmax.f32 %v11441_v30, 0.0 }
 0x532   : > { %v11503_v42 = vmax.f32 %v11439_v62, 0.0  ;;  %v11440_v63 = vadd.f32 %v19203_v38, %v11369_v15  ;;  %v15414_v5 = vpop.f32.mrb[44].mxu1 }
 0x533   : > { %v11569_v22 = vadd.f32 %v11568_v4, %v11567_v21  ;;  %v11506_v0 = vmax.f32 %v11442_v32, 0.0  ;;  %v15565_v11 = vadd.f32 %v15414_v5, %v18942_v2  ;;  %v11070_v16 = vpop.f32.mrb[45].mxu1 }
 0x534   : > { %v11570_v33 = vsel %vm700_vm1, %v11503_v42, 0.0  ;;  %v11504_v19 = vmax.f32 %v11440_v63, 0.0  ;;  %v15566_v54 = vadd.f32 %v11070_v16, %v18947_v9  ;;  %v15415_v47 = vpop.f32.mrb[46].mxu1  ;;  %v11574_v9 = vsel %vm700_vm1, %v11505_v57, 0.0 }
 0x535   : > { %v11571_v53 = vadd.f32 %v11570_v33, %v11569_v22  ;;  %v19239_v56 = vpack.c.bf16 %v11506_v0, %v11505_v57  ;;  %v11374_v41 = vmul.f32 %v15565_v11, %v19197_v8  ;;  %v11073_v7 = vpop.f32.mrb[47].mxu1  ;;  %v15567_v2 = vadd.f32 %v15415_v47, %v18952_v61 }
 0x536   : > { %v11572_v60 = vsel %vm700_vm1, %v11504_v19, 0.0  ;;  %v19243_v36 = vpack.c.bf16 %v11504_v19, %v11503_v42  ;;  %v11372_v37 = vmul.f32 %v15566_v54, %v19197_v8  ;;  %v15568_v20 = vadd.f32 %v11073_v7, %v18955_v25 }
 0x537   : > { %v11573_v12 = vadd.f32 %v11572_v60, %v11571_v53  ;;  %v11445_v31 = vadd.f32 %v19203_v38, %v11374_v41  ;;  %v11375_v6 = vmul.f32 %v15567_v2, %v19197_v8  ;;  %v11576_v50 = vsel %vm700_vm1, %v11506_v0, 0.0 }
 0x538   : > { %v11443_v43 = vadd.f32 %v19203_v38, %v11372_v37  ;;  %v11373_v55 = vmul.f32 %v15568_v20, %v19197_v8 }
 0x539   : > { %v11575_v35 = vadd.f32 %v11574_v9, %v11573_v12  ;;  %v11446_v44 = vadd.f32 %v19203_v38, %v11375_v6  ;;  %v11509_v45 = vmax.f32 %v11445_v31, 0.0 }
 0x53a   : > { %v11507_v40 = vmax.f32 %v11443_v43, 0.0  ;;  %v15418_v61 = vpop.f32.mrb[48].mxu1  ;;  %v11444_v25 = vadd.f32 %v19203_v38, %v11373_v55 }
 0x53b   : > { %v11577_v14 = vadd.f32 %v11576_v50, %v11575_v35  ;;  %v15569_v51 = vadd.f32 %v15418_v61, %v18965_v59  ;;  %v11086_v1 = vpop.f32.mrb[49].mxu1  ;;  %v11510_v39 = vmax.f32 %v11446_v44, 0.0  ;;  %v11582_v57 = vsel %vm700_vm1, %v11509_v45, 0.0 }
 0x53c   : > { %v11578_v27 = vsel %vm700_vm1, %v11507_v40, 0.0  ;;  %v15570_v23 = vadd.f32 %v11086_v1, %v18969_v58  ;;  %v15419_v13 = vpop.f32.mrb[50].mxu1  ;;  %v11508_v30 = vmax.f32 %v11444_v25, 0.0  ;;  %v16549_v61 = vmov 0.0|0.0  }
 0x53d   : > { %v11579_v24 = vadd.f32 %v11578_v27, %v11577_v14  ;;  %v11378_v49 = vmul.f32 %v15569_v51, %v19197_v8  ;;  %v15571_v10 = vadd.f32 %v15419_v13, %v18971_v28  ;;  %v11089_v62 = vpop.f32.mrb[51].mxu1  ;;  %v19261_v15 = vpack.c.bf16 %v11510_v39, %v11509_v45  ;;  %15552 = vmatprep.subr.bf16.mxu0 %v16549_v61  ;;  %v20298_v13 = vld [vmem:[#allocation49_spill] sm:$0xff] }
 0x53e   : > { %v11376_v21 = vmul.f32 %v15570_v23, %v19197_v8  ;;  %v15572_v59 = vadd.f32 %v11089_v62, %v18974_v26  ;;  %v11580_v32 = vsel %vm700_vm1, %v11508_v30, 0.0  ;;  %v19266_v4 = vpack.c.bf16 %v11508_v30, %v11507_v40  ;;  %v20299_v62 = vld [vmem:[#allocation50_spill] sm:$0xff] }
 0x53f   : > { %v11449_v58 = vadd.f32 %v19203_v38, %v11378_v49  ;;  %v11379_v42 = vmul.f32 %v15571_v10, %v19197_v8  ;;  %v11581_v63 = vadd.f32 %v11580_v32, %v11579_v24  ;;  %v11584_v33 = vsel %vm700_vm1, %v11510_v39, 0.0 }
 0x540   : > { %v11447_v5 = vadd.f32 %v19203_v38, %v11376_v21  ;;  %v11377_v28 = vmul.f32 %v15572_v59, %v19197_v8 }
 0x541   : > { %v11450_v22 = vadd.f32 %v19203_v38, %v11379_v42  ;;  %v11583_v26 = vadd.f32 %v11582_v57, %v11581_v63  ;;  %v11513_v19 = vmax.f32 %v11449_v58, 0.0  ;;  %v20300_v57 = vld [vmem:[#allocation51_spill] sm:$0xff] }
 0x542   : > { %v11511_v0 = vmax.f32 %v11447_v5, 0.0  ;;  %v11448_v11 = vadd.f32 %v19203_v38, %v11377_v28  ;;  %v15422_v16 = vpop.f32.mrb[52].mxu1 }
 0x543   : > { %v11514_v54 = vmax.f32 %v11450_v22, 0.0  ;;  %v15573_v47 = vadd.f32 %v15422_v16, %v18983_v34  ;;  %v11102_v53 = vpop.f32.mrb[53].mxu1  ;;  %v11585_v41 = vadd.f32 %v11584_v33, %v11583_v26  ;;  %v20301_v26 = vld [vmem:[#allocation52_spill] sm:$0xff] }
 0x544   : > { %v11586_v7 = vsel %vm700_vm1, %v11511_v0, 0.0  ;;  %v11512_v60 = vmax.f32 %v11448_v11, 0.0  ;;  %v15574_v37 = vadd.f32 %v11102_v53, %v18987_v29  ;;  %v15423_v2 = vpop.f32.mrb[54].mxu1 }
 0x545   : > { %v19281_v12 = vpack.c.bf16 %v11514_v54, %v11513_v19  ;;  %v11382_v20 = vmul.f32 %v15573_v47, %v19197_v8  ;;  %v15575_v9 = vadd.f32 %v15423_v2, %v18989_v17  ;;  %v11105_v31 = vpop.f32.mrb[55].mxu1  ;;  %v11587_v43 = vadd.f32 %v11586_v7, %v11585_v41 }
 0x546   : > { %v11588_v6 = vsel %vm700_vm1, %v11512_v60, 0.0  ;;  %v19286_v35 = vpack.c.bf16 %v11512_v60, %v11511_v0  ;;  %v11380_v34 = vmul.f32 %v15574_v37, %v19197_v8  ;;  %v15576_v29 = vadd.f32 %v11105_v31, %v18992_v46 }
 0x547   : > { %v11453_v55 = vadd.f32 %v19203_v38, %v11382_v20  ;;  %v11383_v50 = vmul.f32 %v15575_v9, %v19197_v8  ;;  %v11589_v40 = vadd.f32 %v11588_v6, %v11587_v43  ;;  %v11590_v17 = vsel %vm700_vm1, %v11513_v19, 0.0  ;;  %v20302_v43 = vld [vmem:[#allocation53_spill] sm:$0xff] }
 0x548   : > { %v11451_v44 = vadd.f32 %v19203_v38, %v11380_v34  ;;  %v11381_v25 = vmul.f32 %v15576_v29, %v19197_v8  ;;  %v11592_v51 = vsel %vm700_vm1, %v11514_v54, 0.0 }
 0x549   : > { %v11454_v14 = vadd.f32 %v19203_v38, %v11383_v50  ;;  %v11591_v1 = vadd.f32 %v11590_v17, %v11589_v40  ;;  %v11517_v39 = vmax.f32 %v11453_v55, 0.0  ;;  %v20303_v17 = vld [vmem:[#allocation54_spill] sm:$0xff] }
 0x54a   : > { %v11515_v45 = vmax.f32 %v11451_v44, 0.0  ;;  %v15426_v27 = vpop.f32.mrb[56].mxu1  ;;  %v11452_v46 = vadd.f32 %v19203_v38, %v11381_v25  ;;  %v20304_v25 = vld [vmem:[#allocation55_spill] sm:$0xff] }
 0x54b   : > { %v11518_v23 = vmax.f32 %v11454_v14, 0.0  ;;  %v15577_v24 = vadd.f32 %v15426_v27, %v20298_v13  ;;  %v11118_v30 = vpop.f32.mrb[57].mxu1  ;;  %v11593_v49 = vadd.f32 %v11592_v51, %v11591_v1  ;;  %v11598_v41 = vsel %vm700_vm1, %v11517_v39, 0.0 }
 0x54c   : > { %v11594_v10 = vsel %vm700_vm1, %v11515_v45, 0.0  ;;  %v15578_v21 = vadd.f32 %v11118_v30, %v20299_v62  ;;  %v15427_v59 = vpop.f32.mrb[58].mxu1  ;;  %v11516_v58 = vmax.f32 %v11452_v46, 0.0 }
 0x54d   : > { %v19301_v32 = vpack.c.bf16 %v11518_v23, %v11517_v39  ;;  %v11386_v42 = vmul.f32 %v15577_v24, %v19197_v8  ;;  %v11121_v63 = vpop.f32.mrb[59].mxu1  ;;  %v11595_v5 = vadd.f32 %v11594_v10, %v11593_v49  ;;  %v15579_v22 = vadd.f32 %v15427_v59, %v20300_v57  ;;  %v20305_v49 = vld [vmem:[#allocation56_spill] sm:$0xff] }
 0x54e   : > { %v11384_v28 = vmul.f32 %v15578_v21, %v19197_v8  ;;  %v15580_v0 = vadd.f32 %v11121_v63, %v20301_v26  ;;  %v11596_v11 = vsel %vm700_vm1, %v11516_v58, 0.0  ;;  %v19308_v16 = vpack.c.bf16 %v11516_v58, %v11515_v45  ;;  %v20306_v26 = vld [vmem:[#allocation7_spill] sm:$0xff] }
 0x54f   : > { %v11457_v33 = vadd.f32 %v19203_v38, %v11386_v42  ;;  %v11597_v19 = vadd.f32 %v11596_v11, %v11595_v5  ;;  %v11387_v47 = vmul.f32 %v15579_v22, %v19197_v8  ;;  %v11600_v9 = vsel %vm700_vm1, %v11518_v23, 0.0 }
 0x550   : > { %v11455_v54 = vadd.f32 %v19203_v38, %v11384_v28  ;;  %v11385_v53 = vmul.f32 %v15580_v0, %v19197_v8 }
 0x551   : > { %v11599_v7 = vadd.f32 %v11598_v41, %v11597_v19  ;;  %v11458_v37 = vadd.f32 %v19203_v38, %v11387_v47  ;;  %v11521_v31 = vmax.f32 %v11457_v33, 0.0 }
 0x552   : > { %v11519_v60 = vmax.f32 %v11455_v54, 0.0  ;;  %v11456_v2 = vadd.f32 %v19203_v38, %v11385_v53  ;;  %v15430_v20 = vpop.f32.mrb[60].mxu1  ;;  %v20307_v54 = vld [vmem:[#allocation8_spill] sm:$0xff] }
 0x553   : > { %v15581_v6 = vadd.f32 %v15430_v20, %v20302_v43  ;;  %v11134_v34 = vpop.f32.mrb[61].mxu1  ;;  %v11601_v55 = vadd.f32 %v11600_v9, %v11599_v7  ;;  %v11522_v29 = vmax.f32 %v11458_v37, 0.0  ;;  %v11606_v62 = vsel %vm700_vm1, %v11521_v31, 0.0 }
 0x554   : > { %v11602_v50 = vsel %vm700_vm1, %v11519_v60, 0.0  ;;  %v11520_v40 = vmax.f32 %v11456_v2, 0.0  ;;  %v15431_v44 = vpop.f32.mrb[62].mxu1  ;;  %v15582_v14 = vadd.f32 %v11134_v34, %v20303_v17  ;;  %v20309_v34 = vld [vmem:[#allocation10_spill] sm:$0xff] }
 0x555   : > { %v11390_v61 = vmul.f32 %v15581_v6, %v19197_v8  ;;  %v15583_v51 = vadd.f32 %v15431_v44, %v20304_v25  ;;  %v11137_v1 = vpop.f32.mrb[63].mxu1  ;;  %v11603_v45 = vadd.f32 %v11602_v50, %v11601_v55  ;;  %v19323_v27 = vpack.c.bf16 %v11522_v29, %v11521_v31  ;;  %v20308_v31 = vld [vmem:[#allocation9_spill] sm:$0xff] }
 0x556   : > { %v11604_v39 = vsel %vm700_vm1, %v11520_v40, 0.0  ;;  %v19326_v23 = vpack.c.bf16 %v11520_v40, %v11519_v60  ;;  %v11388_v13 = vmul.f32 %v15582_v14, %v19197_v8  ;;  %v15584_v10 = vadd.f32 %v11137_v1, %v20305_v49 }
 0x557   : > { %v11461_v46 = vadd.f32 %v19203_v38, %v11390_v61  ;;  %v11391_v24 = vmul.f32 %v15583_v51, %v19197_v8  ;;  %v11605_v30 = vadd.f32 %v11604_v39, %v11603_v45  ;;  %v11608_v58 = vsel %vm700_vm1, %v11522_v29, 0.0 }
 0x558   : > { %v11459_v21 = vadd.f32 %v19203_v38, %v11388_v13  ;;  %v11389_v63 = vmul.f32 %v15584_v10, %v19197_v8  ;;  %v20310_v13 = vld [vmem:[#allocation11_spill] sm:$0xff] }
 0x559   : > { %v11462_v59 = vadd.f32 %v19203_v38, %v11391_v24  ;;  %v11607_v42 = vadd.f32 %v11606_v62, %v11605_v30  ;;  %v11525_v28 = vmax.f32 %v11461_v46, 0.0 }
 0x55a   : > { %v15434_v5 = vpop.f32.mrb[0].mxu1  ;;  %v11523_v57 = vmax.f32 %v11459_v21, 0.0  ;;  %v11460_v19 = vadd.f32 %v19203_v38, %v11389_v63  ;;  %v20311_v21 = vld [vmem:[#allocation12_spill] sm:$0xff] }
 0x55b   : > { %v11526_v22 = vmax.f32 %v11462_v59, 0.0  ;;  %v15585_v0 = vadd.f32 %v15434_v5, %v20306_v26  ;;  %v11150_v11 = vpop.f32.mrb[1].mxu1  ;;  %v11609_v33 = vadd.f32 %v11608_v58, %v11607_v42  ;;  %v11614_v14 = vsel %vm700_vm1, %v11525_v28, 0.0 }
 0x55c   : > { %v15586_v47 = vadd.f32 %v11150_v11, %v20307_v54  ;;  %v15435_v53 = vpop.f32.mrb[2].mxu1  ;;  %v11610_v41 = vsel %vm700_vm1, %v11523_v57, 0.0  ;;  %v11524_v20 = vmax.f32 %v11460_v19, 0.0  ;;  %v20313_v11 = vld [vmem:[#allocation14_spill] sm:$0xff] }
 0x55d   : > { %v19341_v7 = vpack.c.bf16 %v11526_v22, %v11525_v28  ;;  %v11394_v60 = vmul.f32 %v15585_v0, %v19197_v8  ;;  %v11153_v37 = vpop.f32.mrb[3].mxu1  ;;  %v11611_v2 = vadd.f32 %v11610_v41, %v11609_v33  ;;  %v15587_v43 = vadd.f32 %v15435_v53, %v20308_v31  ;;  %v20312_v28 = vld [vmem:[#allocation13_spill] sm:$0xff] }
 0x55e   : > { %v11392_v9 = vmul.f32 %v15586_v47, %v19197_v8  ;;  %v15588_v55 = vadd.f32 %v11153_v37, %v20309_v34  ;;  %v11612_v50 = vsel %vm700_vm1, %v11524_v20, 0.0  ;;  %v19349_v29 = vpack.c.bf16 %v11524_v20, %v11523_v57 }
 0x55f   : > { %v11465_v6 = vadd.f32 %v19203_v38, %v11394_v60  ;;  %v11395_v44 = vmul.f32 %v15587_v43, %v19197_v8  ;;  %v11613_v61 = vadd.f32 %v11612_v50, %v11611_v2  ;;  %v11616_v45 = vsel %vm700_vm1, %v11526_v22, 0.0  ;;  %v20314_v50 = vld [vmem:[#allocation15_spill] sm:$0xff] }
 0x560   : > { %v11463_v40 = vadd.f32 %v19203_v38, %v11392_v9  ;;  %v11393_v17 = vmul.f32 %v15588_v55, %v19197_v8 }
 0x561   : > { %v11466_v51 = vadd.f32 %v19203_v38, %v11395_v44  ;;  %v11615_v39 = vadd.f32 %v11614_v14, %v11613_v61  ;;  %v11529_v49 = vmax.f32 %v11465_v6, 0.0 }
 0x562   : > { %v11527_v25 = vmax.f32 %v11463_v40, 0.0  ;;  %v15438_v1 = vpop.f32.mrb[4].mxu1  ;;  %v11464_v46 = vadd.f32 %v19203_v38, %v11393_v17 }
 0x563   : > { %v15589_v24 = vadd.f32 %v15438_v1, %v20310_v13  ;;  %v11166_v30 = vpop.f32.mrb[5].mxu1  ;;  %v11530_v62 = vmax.f32 %v11466_v51, 0.0  ;;  %v11617_v42 = vadd.f32 %v11616_v45, %v11615_v39  ;;  %v11622_v20 = vsel %vm700_vm1, %v11529_v49, 0.0 }
 0x564   : > { %v11618_v10 = vsel %vm700_vm1, %v11527_v25, 0.0  ;;  %v15590_v59 = vadd.f32 %v11166_v30, %v20311_v21  ;;  %v15439_v58 = vpop.f32.mrb[6].mxu1  ;;  %v11528_v63 = vmax.f32 %v11464_v46, 0.0  ;;  %v20316_v46 = vld [vmem:[#allocation17_spill] sm:$0xff] }
 0x565   : > { %v11398_v5 = vmul.f32 %v15589_v24, %v19197_v8  ;;  %v15591_v57 = vadd.f32 %v15439_v58, %v20312_v28  ;;  %v11169_v22 = vpop.f32.mrb[7].mxu1  ;;  %v19363_v26 = vpack.c.bf16 %v11530_v62, %v11529_v49  ;;  %v11619_v19 = vadd.f32 %v11618_v10, %v11617_v42 }
 0x566   : > { %v11396_v0 = vmul.f32 %v15590_v59, %v19197_v8  ;;  %v15592_v33 = vadd.f32 %v11169_v22, %v20313_v11  ;;  %v11620_v54 = vsel %vm700_vm1, %v11528_v63, 0.0  ;;  %v19368_v47 = vpack.c.bf16 %v11528_v63, %v11527_v25  ;;  %v20315_v25 = vld [vmem:[#allocation16_spill] sm:$0xff] }
 0x567   : > { %v11469_v53 = vadd.f32 %v19203_v38, %v11398_v5  ;;  %v11399_v60 = vmul.f32 %v15591_v57, %v19197_v8  ;;  %v11621_v2 = vadd.f32 %v11620_v54, %v11619_v19  ;;  %v11624_v34 = vsel %vm700_vm1, %v11530_v62, 0.0  ;;  %v20317_v5 = vld [vmem:[#allocation18_spill] sm:$0xff] }
 0x568   : > { %v11467_v41 = vadd.f32 %v19203_v38, %v11396_v0  ;;  %v11397_v37 = vmul.f32 %v15592_v33, %v19197_v8 }
 0x569   : > { %v11470_v31 = vadd.f32 %v19203_v38, %v11399_v60  ;;  %v11623_v55 = vadd.f32 %v11622_v20, %v11621_v2  ;;  %v11533_v61 = vmax.f32 %v11469_v53, 0.0  ;;  %v20318_v20 = vld [vmem:[#allocation19_spill] sm:$0xff] }
 0x56a   : > { %v11531_v9 = vmax.f32 %v11467_v41, 0.0  ;;  %v11468_v43 = vadd.f32 %v19203_v38, %v11397_v37  ;;  %v15442_v6 = vpop.f32.mrb[8].mxu1 }
 0x56b   : > { %v15593_v40 = vadd.f32 %v15442_v6, %v20314_v50  ;;  %v11182_v44 = vpop.f32.mrb[9].mxu1  ;;  %v11534_v17 = vmax.f32 %v11470_v31, 0.0  ;;  %v19380_v45 = vadd.f32 %v11624_v34, %v11623_v55  ;;  %v11635_v42 = vsel %vm700_vm1, %v11533_v61, 0.0  ;;  %v20319_v31 = vld [vmem:[#allocation20_spill] sm:$0xff]  ;;  %v20320_v55 = vld [vmem:[#allocation21_spill] sm:$0xff] }
 0x56c   : > { %v11532_v14 = vmax.f32 %v11468_v43, 0.0  ;;  %v15594_v51 = vadd.f32 %v11182_v44, %v20315_v25  ;;  %v15443_v1 = vpop.f32.mrb[10].mxu1  ;;  %v11632_v30 = vsel %vm700_vm1, %v11531_v9, 0.0 }
 0x56d   : > { %v11402_v39 = vmul.f32 %v15593_v40, %v19197_v8  ;;  %v15595_v13 = vadd.f32 %v15443_v1, %v20316_v46  ;;  %v11185_v24 = vpop.f32.mrb[11].mxu1  ;;  %v19385_v49 = vpack.c.bf16 %v11534_v17, %v11533_v61  ;;  %v11637_v0 = vsel %vm700_vm1, %v11534_v17, 0.0  ;;  %v20321_v46 = vld [vmem:[#allocation22_spill] sm:$0xff] }
 0x56e   : > { %v11633_v10 = vsel %vm700_vm1, %v11532_v14, 0.0  ;;  %v19388_v62 = vpack.c.bf16 %v11532_v14, %v11531_v9  ;;  %v11400_v58 = vmul.f32 %v15594_v51, %v19197_v8  ;;  %v15596_v28 = vadd.f32 %v11185_v24, %v20317_v5 }
 0x56f   : > { %v11634_v21 = vadd.f32 %v11633_v10, %v11632_v30  ;;  %v11473_v59 = vadd.f32 %v19203_v38, %v11402_v39  ;;  %v11403_v63 = vmul.f32 %v15595_v13, %v19197_v8 }
 0x570   : > { %v11471_v22 = vadd.f32 %v19203_v38, %v11400_v58  ;;  %v11401_v33 = vmul.f32 %v15596_v28, %v19197_v8 }
 0x571   : > { %v11636_v57 = vadd.f32 %v11635_v42, %v11634_v21  ;;  %v11474_v11 = vadd.f32 %v19203_v38, %v11403_v63  ;;  %v11537_v54 = vmax.f32 %v11473_v59, 0.0 }
 0x572   : > { %v15446_v19 = vpop.f32.mrb[12].mxu1  ;;  %v11535_v53 = vmax.f32 %v11471_v22, 0.0  ;;  %v11472_v2 = vadd.f32 %v19203_v38, %v11401_v33  ;;  %v20322_v33 = vld [vmem:[#allocation23_spill] sm:$0xff] }
 0x573   : > { %v11638_v41 = vadd.f32 %v11637_v0, %v11636_v57  ;;  %v11198_v60 = vpop.f32.mrb[13].mxu1  ;;  %v11538_v37 = vmax.f32 %v11474_v11, 0.0  ;;  %v15597_v9 = vadd.f32 %v15446_v19, %v20318_v20  ;;  %v11643_v21 = vsel %vm700_vm1, %v11537_v54, 0.0 }
 0x574   : > { %v15598_v43 = vadd.f32 %v11198_v60, %v20319_v31  ;;  %v15447_v6 = vpop.f32.mrb[14].mxu1  ;;  %v11639_v34 = vsel %vm700_vm1, %v11535_v53, 0.0  ;;  %v11536_v17 = vmax.f32 %v11472_v2, 0.0 }
 0x575   : > { %v15599_v50 = vadd.f32 %v15447_v6, %v20320_v55  ;;  %v11201_v40 = vpop.f32.mrb[15].mxu1  ;;  %v11640_v44 = vadd.f32 %v11639_v34, %v11638_v41  ;;  %v19404_v61 = vpack.c.bf16 %v11538_v37, %v11537_v54  ;;  %v11406_v14 = vmul.f32 %v15597_v9, %v19197_v8  ;;  %v20324_v34 = vld [vmem:[#allocation25_spill] sm:$0xff] }
 0x576   : > { %v11404_v25 = vmul.f32 %v15598_v43, %v19197_v8  ;;  %v11641_v1 = vsel %vm700_vm1, %v11536_v17, 0.0  ;;  %v19410_v39 = vpack.c.bf16 %v11536_v17, %v11535_v53  ;;  %v15600_v13 = vadd.f32 %v11201_v40, %v20321_v46  ;;  %v20323_v53 = vld [vmem:[#allocation24_spill] sm:$0xff]  ;;  %v20325_v17 = vld [vmem:[#allocation26_spill] sm:$0xff] }
 0x577   : > { %v11407_v51 = vmul.f32 %v15599_v50, %v19197_v8  ;;  %v11642_v24 = vadd.f32 %v11641_v1, %v11640_v44  ;;  %v11477_v30 = vadd.f32 %v19203_v38, %v11406_v14  ;;  %v11645_v63 = vsel %vm700_vm1, %v11538_v37, 0.0 }
 0x578   : > { %v11475_v10 = vadd.f32 %v19203_v38, %v11404_v25  ;;  %v11405_v58 = vmul.f32 %v15600_v13, %v19197_v8 }
 0x579   : > { %v11478_v59 = vadd.f32 %v19203_v38, %v11407_v51  ;;  %v11644_v5 = vadd.f32 %v11643_v21, %v11642_v24  ;;  %v11541_v28 = vmax.f32 %v11477_v30, 0.0 }
 0x57a   : > { %v15450_v42 = vpop.f32.mrb[16].mxu1  ;;  %v11539_v57 = vmax.f32 %v11475_v10, 0.0  ;;  %v11476_v11 = vadd.f32 %v19203_v38, %v11405_v58 }
 0x57b   : > { %v11214_v22 = vpop.f32.mrb[17].mxu1  ;;  %v11542_v0 = vmax.f32 %v11478_v59, 0.0  ;;  %v15601_v19 = vadd.f32 %v15450_v42, %v20322_v33  ;;  %v11646_v54 = vadd.f32 %v11645_v63, %v11644_v5  ;;  %v11651_v46 = vsel %vm700_vm1, %v11541_v28, 0.0  ;;  %v20326_v59 = vld [vmem:[#allocation27_spill] sm:$0xff] }
 0x57c   : > { %v15602_v41 = vadd.f32 %v11214_v22, %v20323_v53  ;;  %v15451_v60 = vpop.f32.mrb[18].mxu1  ;;  %v11647_v2 = vsel %vm700_vm1, %v11539_v57, 0.0  ;;  %v11540_v31 = vmax.f32 %v11476_v11, 0.0  ;;  %v20327_v22 = vld [vmem:[#allocation28_spill] sm:$0xff] }
 0x57d   : > { %v11217_v20 = vpop.f32.mrb[19].mxu1  ;;  %v19423_v9 = vpack.c.bf16 %v11542_v0, %v11541_v28  ;;  %v11410_v37 = vmul.f32 %v15601_v19, %v19197_v8  ;;  %v11648_v43 = vadd.f32 %v11647_v2, %v11646_v54  ;;  %v15603_v55 = vadd.f32 %v15451_v60, %v20324_v34 }
 0x57e   : > { %v11408_v6 = vmul.f32 %v15602_v41, %v19197_v8  ;;  %v11649_v50 = vsel %vm700_vm1, %v11540_v31, 0.0  ;;  %v19429_v40 = vpack.c.bf16 %v11540_v31, %v11539_v57  ;;  %v15604_v14 = vadd.f32 %v11217_v20, %v20325_v17  ;;  %v20328_v20 = vld [vmem:[#allocation29_spill] sm:$0xff] }
 0x57f   : > { %v11481_v44 = vadd.f32 %v19203_v38, %v11410_v37  ;;  %v11650_v25 = vadd.f32 %v11649_v50, %v11648_v43  ;;  %v11411_v1 = vmul.f32 %v15603_v55, %v19197_v8  ;;  %v11653_v63 = vsel %vm700_vm1, %v11542_v0, 0.0  ;;  %v20329_v37 = vld [vmem:[#allocation30_spill] sm:$0xff] }
 0x580   : > { %v11479_v51 = vadd.f32 %v19203_v38, %v11408_v6  ;;  %v11409_v13 = vmul.f32 %v15604_v14, %v19197_v8 }
 0x581   : > { %v11652_v30 = vadd.f32 %v11651_v46, %v11650_v25  ;;  %v11482_v21 = vadd.f32 %v19203_v38, %v11411_v1  ;;  %v11545_v5 = vmax.f32 %v11481_v44, 0.0 }
 0x582   : > { %v15454_v24 = vpop.f32.mrb[20].mxu1  ;;  %v11543_v10 = vmax.f32 %v11479_v51, 0.0  ;;  %v11480_v57 = vadd.f32 %v19203_v38, %v11409_v13 }
 0x583   : > { %v15605_v58 = vadd.f32 %v15454_v24, %v20326_v59  ;;  %v11230_v42 = vpop.f32.mrb[21].mxu1  ;;  %v11654_v19 = vadd.f32 %v11653_v63, %v11652_v30  ;;  %v11546_v53 = vmax.f32 %v11482_v21, 0.0  ;;  %v11659_v51 = vsel %vm700_vm1, %v11545_v5, 0.0 }
 0x584   : > { %v15606_v11 = vadd.f32 %v11230_v42, %v20327_v22  ;;  %v15455_v33 = vpop.f32.mrb[22].mxu1  ;;  %v11655_v28 = vsel %vm700_vm1, %v11543_v10, 0.0  ;;  %v11544_v54 = vmax.f32 %v11480_v57, 0.0  ;;  %v20331_v22 = vld [vmem:[#allocation32_spill] sm:$0xff] }
 0x585   : > { %v11414_v41 = vmul.f32 %v15605_v58, %v19197_v8  ;;  %v11233_v60 = vpop.f32.mrb[23].mxu1  ;;  %v15607_v31 = vadd.f32 %v15455_v33, %v20328_v20  ;;  %v11656_v43 = vadd.f32 %v11655_v28, %v11654_v19  ;;  %v19447_v6 = vpack.c.bf16 %v11546_v53, %v11545_v5  ;;  %v20333_v20 = vld [vmem:[#allocation34_spill] sm:$0xff] }
 0x586   : > { %v11412_v2 = vmul.f32 %v15606_v11, %v19197_v8  ;;  %v15608_v0 = vadd.f32 %v11233_v60, %v20329_v37  ;;  %v11657_v55 = vsel %vm700_vm1, %v11544_v54, 0.0  ;;  %v19451_v50 = vpack.c.bf16 %v11544_v54, %v11543_v10  ;;  %v20330_v10 = vld [vmem:[#allocation31_spill] sm:$0xff] }
 0x587   : > { %v11485_v34 = vadd.f32 %v19203_v38, %v11414_v41  ;;  %v11415_v17 = vmul.f32 %v15607_v31, %v19197_v8  ;;  %v11658_v14 = vadd.f32 %v11657_v55, %v11656_v43  ;;  %v11661_v24 = vsel %vm700_vm1, %v11546_v53, 0.0  ;;  %v20332_v41 = vld [vmem:[#allocation33_spill] sm:$0xff] }
 0x588   : > { %v11483_v44 = vadd.f32 %v19203_v38, %v11412_v2  ;;  %v11413_v25 = vmul.f32 %v15608_v0, %v19197_v8 }
 0x589   : > { %v11486_v46 = vadd.f32 %v19203_v38, %v11415_v17  ;;  %v11660_v30 = vadd.f32 %v11659_v51, %v11658_v14  ;;  %v11549_v42 = vmax.f32 %v11485_v34, 0.0 }
 0x58a   : > { %v11547_v1 = vmax.f32 %v11483_v44, 0.0  ;;  %v15458_v13 = vpop.f32.mrb[24].mxu1  ;;  %v11484_v21 = vadd.f32 %v19203_v38, %v11413_v25 }
 0x58b   : > { %v15609_v59 = vadd.f32 %v15458_v13, %v20330_v10  ;;  %v11246_v58 = vpop.f32.mrb[25].mxu1  ;;  %v11550_v57 = vmax.f32 %v11486_v46, 0.0  ;;  %v11662_v5 = vadd.f32 %v11661_v24, %v11660_v30  ;;  %v11667_v25 = vsel %vm700_vm1, %v11549_v42, 0.0  ;;  %v20334_v10 = vld [vmem:[#allocation35_spill] sm:$0xff] }
 0x58c   : > { %v11663_v63 = vsel %vm700_vm1, %v11547_v1, 0.0  ;;  %v15610_v11 = vadd.f32 %v11246_v58, %v20331_v22  ;;  %v15459_v33 = vpop.f32.mrb[26].mxu1  ;;  %v11548_v19 = vmax.f32 %v11484_v21, 0.0 }
 0x58d   : > { %v11418_v28 = vmul.f32 %v15609_v59, %v19197_v8  ;;  %v15611_v60 = vadd.f32 %v15459_v33, %v20332_v41  ;;  %v11249_v53 = vpop.f32.mrb[27].mxu1  ;;  %v19465_v54 = vpack.c.bf16 %v11550_v57, %v11549_v42  ;;  %v11664_v37 = vadd.f32 %v11663_v63, %v11662_v5  ;;  %v20335_v33 = vld [vmem:[#allocation36_spill] sm:$0xff]  ;;  %v20336_v41 = vld [vmem:[#allocation37_spill] sm:$0xff] }
 0x58e   : > { %v11416_v2 = vmul.f32 %v15610_v11, %v19197_v8  ;;  %v15612_v31 = vadd.f32 %v11249_v53, %v20333_v20  ;;  %v11665_v0 = vsel %vm700_vm1, %v11548_v19, 0.0  ;;  %v19470_v43 = vpack.c.bf16 %v11548_v19, %v11547_v1 }
 0x58f   : > { %v11489_v34 = vadd.f32 %v19203_v38, %v11418_v28  ;;  %v11419_v44 = vmul.f32 %v15611_v60, %v19197_v8  ;;  %v11666_v14 = vadd.f32 %v11665_v0, %v11664_v37  ;;  %v11669_v1 = vsel %vm700_vm1, %v11550_v57, 0.0 }
 0x590   : > { %v11487_v55 = vadd.f32 %v19203_v38, %v11416_v2  ;;  %v11417_v17 = vmul.f32 %v15612_v31, %v19197_v8 }
 0x591   : > { %v11490_v46 = vadd.f32 %v19203_v38, %v11419_v44  ;;  %v11668_v30 = vadd.f32 %v11667_v25, %v11666_v14  ;;  %v11553_v21 = vmax.f32 %v11489_v34, 0.0 }
 0x592   : > { %v11551_v51 = vmax.f32 %v11487_v55, 0.0  ;;  %v11488_v13 = vadd.f32 %v19203_v38, %v11417_v17  ;;  %v15462_v24 = vpop.f32.mrb[28].mxu1  ;;  %v20337_v55 = vld [vmem:[#allocation38_spill] sm:$0xff] }
 0x593   : > { %v15613_v59 = vadd.f32 %v15462_v24, %v20334_v10  ;;  %v11262_v58 = vpop.f32.mrb[29].mxu1  ;;  %v11554_v22 = vmax.f32 %v11490_v46, 0.0  ;;  %v11670_v19 = vadd.f32 %v11669_v1, %v11668_v30  ;;  %v11675_v46 = vsel %vm700_vm1, %v11553_v21, 0.0 }
 0x594   : > { %v11671_v63 = vsel %vm700_vm1, %v11551_v51, 0.0  ;;  %v11552_v11 = vmax.f32 %v11488_v13, 0.0  ;;  %v15614_v5 = vadd.f32 %v11262_v58, %v20335_v33  ;;  %v15463_v42 = vpop.f32.mrb[30].mxu1 }
 0x595   : > { %v11422_v28 = vmul.f32 %v15613_v59, %v19197_v8  ;;  %v15615_v60 = vadd.f32 %v15463_v42, %v20336_v41  ;;  %v11265_v53 = vpop.f32.mrb[31].mxu1  ;;  %v19485_v2 = vpack.c.bf16 %v11554_v22, %v11553_v21  ;;  %v11672_v31 = vadd.f32 %v11671_v63, %v11670_v19 }
 0x596   : > { %v11673_v57 = vsel %vm700_vm1, %v11552_v11, 0.0  ;;  %v19488_v20 = vpack.c.bf16 %v11552_v11, %v11551_v51  ;;  %v11420_v0 = vmul.f32 %v15614_v5, %v19197_v8  ;;  %v15616_v44 = vadd.f32 %v11265_v53, %v20337_v55  ;;  %v20338_v11 = vld [vmem:[#allocation39_spill] sm:$0xff]  ;;  %v20339_v5 = vld [vmem:[#allocation40_spill] sm:$0xff]  ;;  %v20341_v55 = vld [vmem:[#allocation42_spill] sm:$0xff] }
 0x597   : > { %v11493_v37 = vadd.f32 %v19203_v38, %v11422_v28  ;;  %v11423_v34 = vmul.f32 %v15615_v60, %v19197_v8  ;;  %v11674_v17 = vadd.f32 %v11673_v57, %v11672_v31  ;;  %v11677_v58 = vsel %vm700_vm1, %v11554_v22, 0.0 }
 0x598   : > { %v11491_v14 = vadd.f32 %v19203_v38, %v11420_v0  ;;  %v11421_v13 = vmul.f32 %v15616_v44, %v19197_v8  ;;  %v11626_v0 = vrot.slane %v19380_v45, 4 }
 0x599   : > { %v11494_v25 = vadd.f32 %v19203_v38, %v11423_v34  ;;  %v11676_v24 = vadd.f32 %v11675_v46, %v11674_v17  ;;  %v11557_v1 = vmax.f32 %v11493_v37, 0.0  ;;  %v20340_v37 = vld [vmem:[#allocation41_spill] sm:$0xff] }
 0x59a   : > { %v15466_v51 = vpop.f32.mrb[32].mxu1  ;;  %v11555_v30 = vmax.f32 %v11491_v14, 0.0  ;;  %v11492_v63 = vadd.f32 %v19203_v38, %v11421_v13 }
 0x59b   : > { %v11558_v10 = vmax.f32 %v11494_v25, 0.0  ;;  %v11278_v59 = vpop.f32.mrb[33].mxu1  ;;  %v15617_v33 = vadd.f32 %v15466_v51, %v20338_v11  ;;  %v11678_v28 = vadd.f32 %v11677_v58, %v11676_v24 }
 0x59c   : > { %v15618_v42 = vadd.f32 %v11278_v59, %v20339_v5  ;;  %v15467_v19 = vpop.f32.mrb[34].mxu1  ;;  %v11679_v21 = vsel %vm700_vm1, %v11555_v30, 0.0  ;;  %v11556_v53 = vmax.f32 %v11492_v63, 0.0  ;;  %v11683_v59 = vsel %vm700_vm1, %v11557_v1, 0.0 }
 0x59d   : > { %v19503_v41 = vpack.c.bf16 %v11558_v10, %v11557_v1  ;;  %v11281_v60 = vpop.f32.mrb[35].mxu1  ;;  %v11426_v57 = vmul.f32 %v15617_v33, %v19197_v8  ;;  %v15619_v22 = vadd.f32 %v15467_v19, %v20340_v37  ;;  %v11680_v34 = vadd.f32 %v11679_v21, %v11678_v28 }
 0x59e   : > { %v11424_v31 = vmul.f32 %v15618_v42, %v19197_v8  ;;  %v15620_v44 = vadd.f32 %v11281_v60, %v20341_v55  ;;  %v11681_v17 = vsel %vm700_vm1, %v11556_v53, 0.0  ;;  %v19511_v14 = vpack.c.bf16 %v11556_v53, %v11555_v30 }
 0x59f   : > { %v11682_v46 = vadd.f32 %v11681_v17, %v11680_v34  ;;  %v11497_v13 = vadd.f32 %v19203_v38, %v11426_v57  ;;  %v11427_v51 = vmul.f32 %v15619_v22, %v19197_v8  ;;  %v11627_v63 = vadd.f32 %v11626_v0, %v19380_v45 }
 0x5a0   : > { %v11495_v25 = vadd.f32 %v19203_v38, %v11424_v31  ;;  %v11425_v24 = vmul.f32 %v15620_v44, %v19197_v8  ;;  %v11685_v5 = vsel %vm700_vm1, %v11558_v10, 0.0 }
 0x5a1   : > { %v11684_v11 = vadd.f32 %v11683_v59, %v11682_v46  ;;  %v11498_v33 = vadd.f32 %v19203_v38, %v11427_v51  ;;  %v11561_v19 = vmax.f32 %v11497_v13, 0.0  ;;  %v11628_v53 = vrot.slane %v11627_v63, 2 }
 0x5a2   : > { %v11559_v58 = vmax.f32 %v11495_v25, 0.0  ;;  %v11496_v30 = vadd.f32 %v19203_v38, %v11425_v24 }
 0x5a3   : > { %v11686_v28 = vadd.f32 %v11685_v5, %v11684_v11  ;;  %v11562_v21 = vmax.f32 %v11498_v33, 0.0  ;;  %v11691_v37 = vsel %vm700_vm1, %v11561_v19, 0.0  ;;  %v11629_v38 = vadd.f32 %v11628_v53, %v11627_v63  ;;  %v11776_v63 = vld [vmem:[%s20215_s10] sm:$0xff]  ;;  %v11777_v33 = vld [vmem:[%s20215_s10 + $0x8] sm:$0xff] }
 0x5a4   : > { %v11687_v42 = vsel %vm700_vm1, %v11559_v58, 0.0  ;;  %v11560_v60 = vmax.f32 %v11496_v30, 0.0  ;;  %v19548_v53 = vld [vmem:[%s20214_s9] ss:$0 sm:$0xff] }
 0x5a5   : > { %v11688_v8 = vadd.f32 %v11687_v42, %v11686_v28  ;;  %v19523_v57 = vpack.c.bf16 %v11562_v21, %v11561_v19  ;;  %v11693_v10 = vsel %vm700_vm1, %v11562_v21, 0.0  ;;  %v11630_v34 = vrot.slane %v11629_v38, 1  ;;  %v19543_v21 = vld [vmem:[%s20213_s8] ss:$0 sm:$0xff] }
 0x5a6   : > { %v11689_v1 = vsel %vm700_vm1, %v11560_v60, 0.0  ;;  %v19526_v45 = vpack.c.bf16 %v11560_v60, %v11559_v58  ;;  %v15553_v19 = vpack.c.bf16 %v11777_v33, %v11776_v63  ;;  %v12501_v63 = vlaneseq }
 0x5a7   : > { %v11690_v31 = vadd.f32 %v11689_v1, %v11688_v8  ;;  %v11631_v17 = vadd.f32 %v11630_v34, %v11629_v38 }
 0x5a9   : > { %v11692_v22 = vadd.f32 %v11691_v37, %v11690_v31  ;;  %v11702_v13 = vmul.f32 0.00390625, %v11631_v17 }
 0x5ab   : > { %v11694_v0 = vadd.f32 %v11693_v10, %v11692_v22  ;;  %v11704_v59 = vpack.c.bf16 %v11702_v13, %v11702_v13  ;;  %v11860_v22 = vld [vmem:[%s20217_s12] sm:$0x1] }
 0x5ac   : > { %v16478_v10 = vld [vmem:[%s20212_s7] sm:$0x3] }
 0x5ad   : > { %v11695_v55 = vrot.slane %v11694_v0, 4  ;;  %v11709_v30 = vunpack.c.l.b16 %v11704_v59 }
 0x5af   : > { %v11696_v44 = vadd.f32 %v11695_v55, %v11694_v0  ;;  %v14199_v0 = vld [vmem:[#allocation3] ss:$0 sm:$0xff] }
 0x5b1   : > { %v11697_v25 = vrot.slane %v11696_v44, 2 }
 0x5b3   : > { %v11698_v46 = vadd.f32 %v11697_v25, %v11696_v44 }
 0x5b5   : > { %v11699_v51 = vrot.slane %v11698_v46, 1 }
 0x5b7   : > { %v11700_v24 = vadd.f32 %v11699_v51, %v11698_v46 }
 0x5b9   : > { %v11703_v58 = vmul.f32 0.00390625, %v11700_v24 }
 0x5bb   : > { %v11705_v11 = vpack.c.bf16 %v11703_v58, %v11703_v58  ;;  %v16550_v58 = vmov 1966171168  }
 0x5bd   : > { %v11710_v5 = vunpack.c.l.b16 %v11705_v11  ;;  %v12499_v11 = vunpack.c.l.s4 %v16550_v58 }
 0x5bf   : > { %v11712_v42 = vsel %vm11711_vm4, %v11710_v5, %v11709_v30  ;;  %v12500_v5 = vunpack.c.0.s8 %v12499_v11 }
 0x5c0   : > { %v11713_v28 = vpack.c.b16 %v11712_v42, %v11712_v42  ;;  %v19681_v42 = vshrl.u32 %v12501_v63, 7 }
 0x5c2   : > { %15471 = vmatmul.mubr.msk.bf16.vlgmr.msra.gmra.mrb[128].mxu0 %vm700_vm1, %v11713_v28  ;;  %20342 = vst [vmem:[#allocation43_spill] sm:$0xff] %v19681_v42 }
 0x5c3   : > { %15554 = vmatpush3.bf16.msra.mxu0 %v15553_v19  ;;  %15478 = vmatprep.mubr.msk.f32.mxu0 %vm16548_vm3, %v16547_v18 }
 0x5c4   : > { %15481 = vmatprep.subr.mxu0 %v16547_v18 }
 0x695   : > { %v11754_v60 = vpop.f32.mrb[128].mxu0 }
 0x696   : > { %v11767_v8 = vmul.f32 %v19543_v21, %v11754_v60  ;;  %v15472_v1 = vpop.f32.mrb[129].mxu0 }
 0x697   : > { %v11757_v31 = vpop.f32.mrb[130].mxu0 }
 0x698   : > { %v11775_v37 = vadd.f32 %v19548_v53, %v11767_v8  ;;  %v15473_v38 = vpop.f32.mrb[131].mxu0 }
 0x69a   : > { %15479 = vmatmul.mubr.msk.f32.vlgmr.msra.gmra.mrb[132].mxu0 %vm11785_vm5, %v11775_v37 }
 0x69b   : > { %15483 = vmatprep.mubr.msk.f32.mxu0 %vm16548_vm3, %v16547_v18  ;;  %15482 = vmatpush3.msk.msra.mxu0 %vm11872_vm6, %v11860_v22  ;;  %v19626_v18 = vpop.permute.xlu0 %12658  ;;  %v12503_v22 = vsub.s32 %v12500_v5, %v19681_v42 }
 0x69c   : > { %16080 = vmatprep.subr.msk.bf16.mxu0 %vm797_vm0, %v16478_v10  ;;  %vm13234_vm0 = vcmask 125952  }
 0x76d   : > { %v11855_v34 = vpop.f32.mrb[132].mxu0 }
 0x76e   : > { %v11856_v55 = vadd.f32 %v14199_v0, %v11855_v34  ;;  %v15480_v44 = vpop.f32.mrb[133].mxu0  ;;  %v20220_v34 = vsub.s32 0, %v19681_v42 }
 0x770   : > { %v11859_v17 = vmax.f32 %v11856_v55, 0.0 }
 0x772   : > { %15484 = vmatmul.mubr.msk.f32.vlgmr.msra.gmra.mrb[134].mxu0 %vm11868_vm7, %v11859_v17 }
 0x773   : > { %15487 = vmatpush3.bf16.msra.mxu0 %v19191_v3  ;;  %15488 = vmatprep.mubr.msk.bf16.mxu0 %vm700_vm1, %v19224_v52  ;;  %v19628_v3 = vpop.permute.xlu1 %12662 }
 0x776   : > { %15489 = vmatmul.mubr.msk.bf16.vlgmr.msra.gmra.mrb[136].mxu0 %vm700_vm1, %v19219_v48  ;;  %v19630_v48 = vpop.permute.xlu0 %12660 }
 0x777   : > { %15492 = vmatprep.mubr.msk.bf16.mxu0 %vm700_vm1, %v19243_v36  ;;  %v19632_v52 = vpop.permute.xlu1 %12664 }
 0x77b   : > { %v19636_v36 = vpop.permute.xlu1 %12672 }
 0x77e   : > { %15493 = vmatmul.mubr.msk.bf16.gmra.mrb[140].mxu0 %vm700_vm1, %v19239_v56  ;;  %v19634_v56 = vpop.permute.xlu0 %12670 }
 0x77f   : > { %15496 = vmatprep.mubr.msk.bf16.mxu0 %vm700_vm1, %v19266_v4  ;;  %v19640_v4 = vpop.permute.xlu1 %12668 }
 0x786   : > { %15497 = vmatmul.mubr.msk.bf16.gmra.mrb[144].mxu0 %vm700_vm1, %v19261_v15  ;;  %v19638_v15 = vpop.permute.xlu0 %12666 }
 0x787   : > { %15500 = vmatprep.mubr.msk.bf16.mxu0 %vm700_vm1, %v19286_v35  ;;  %v19644_v35 = vpop.permute.xlu1 %12680 }
 0x78e   : > { %15501 = vmatmul.mubr.msk.bf16.gmra.mrb[148].mxu0 %vm700_vm1, %v19281_v12  ;;  %v19642_v12 = vpop.permute.xlu0 %12678 }
 0x78f   : > { %15504 = vmatprep.mubr.msk.bf16.mxu0 %vm700_vm1, %v19308_v16  ;;  %v19648_v16 = vpop.permute.xlu1 %12676 }
 0x796   : > { %15505 = vmatmul.mubr.msk.bf16.gmra.mrb[152].mxu0 %vm700_vm1, %v19301_v32  ;;  %v19646_v32 = vpop.permute.xlu0 %12674 }
 0x797   : > { %15508 = vmatprep.mubr.msk.bf16.mxu0 %vm700_vm1, %v19326_v23  ;;  %v19652_v23 = vpop.permute.xlu1 %12688 }
 0x79e   : > { %15509 = vmatmul.mubr.msk.bf16.gmra.mrb[156].mxu0 %vm700_vm1, %v19323_v27  ;;  %v19650_v27 = vpop.permute.xlu0 %12686 }
 0x79f   : > { %15512 = vmatprep.mubr.msk.bf16.mxu0 %vm700_vm1, %v19349_v29  ;;  %v19656_v29 = vpop.permute.xlu1 %12684 }
 0x7a6   : > { %15513 = vmatmul.mubr.msk.bf16.gmra.mrb[160].mxu0 %vm700_vm1, %v19341_v7  ;;  %v19654_v7 = vpop.permute.xlu0 %12682 }
 0x7a7   : > { %15516 = vmatprep.mubr.msk.bf16.mxu0 %vm700_vm1, %v19368_v47  ;;  %v19660_v47 = vpop.permute.xlu1 %12696 }
 0x7ae   : > { %15517 = vmatmul.mubr.msk.bf16.gmra.mrb[164].mxu0 %vm700_vm1, %v19363_v26  ;;  %v19658_v26 = vpop.permute.xlu0 %12694 }
 0x7af   : > { %15520 = vmatprep.mubr.msk.bf16.mxu0 %vm700_vm1, %v19388_v62  ;;  %v14201_v62 = vld [vmem:[%s20218_s13] ss:$0 sm:$0xff] }
 0x7b6   : > { %15521 = vmatmul.mubr.msk.bf16.gmra.mrb[168].mxu0 %vm700_vm1, %v19385_v49  ;;  %v19662_v49 = vpop.permute.xlu0 %12690 }
 0x7b7   : > { %15524 = vmatprep.mubr.msk.bf16.mxu0 %vm700_vm1, %v19410_v39  ;;  %v19667_v39 = vpop.permute.xlu1 %12692 }
 0x7be   : > { %15525 = vmatmul.mubr.msk.bf16.gmra.mrb[172].mxu0 %vm700_vm1, %v19404_v61 }
 0x7bf   : > { %15528 = vmatprep.mubr.msk.bf16.mxu0 %vm700_vm1, %v19429_v40 }
 0x7c6   : > { %15529 = vmatmul.mubr.msk.bf16.gmra.mrb[176].mxu0 %vm700_vm1, %v19423_v9 }
 0x7c7   : > { %15532 = vmatprep.mubr.msk.bf16.mxu0 %vm700_vm1, %v19451_v50  ;;  %v19669_v50 = vpop.permute.xlu0 %12702 }
 0x7ce   : > { %15533 = vmatmul.mubr.msk.bf16.gmra.mrb[180].mxu0 %vm700_vm1, %v19447_v6 }
 0x7cf   : > { %15536 = vmatprep.mubr.msk.bf16.mxu0 %vm700_vm1, %v19470_v43 }
 0x7d6   : > { %15537 = vmatmul.mubr.msk.bf16.gmra.mrb[184].mxu0 %vm700_vm1, %v19465_v54 }
 0x7d7   : > { %15540 = vmatprep.mubr.msk.bf16.mxu0 %vm700_vm1, %v19488_v20  ;;  %v19671_v20 = vpop.permute.xlu1 %12704 }
 0x7de   : > { %15541 = vmatmul.mubr.msk.bf16.gmra.mrb[188].mxu0 %vm700_vm1, %v19485_v2 }
 0x7df   : > { %15544 = vmatprep.mubr.msk.bf16.mxu0 %vm700_vm1, %v19511_v14  ;;  %v19673_v14 = vpop.permute.xlu0 %12698 }
 0x7e3   : > { %v19677_v24 = vpop.permute.xlu0 %12710 }
 0x7e6   : > { %15545 = vmatmul.mubr.msk.bf16.gmra.mrb[192].mxu0 %vm700_vm1, %v19503_v41 }
 0x7e7   : > { %15548 = vmatprep.mubr.msk.bf16.mxu0 %vm700_vm1, %v19526_v45  ;;  %v19675_v45 = vpop.permute.xlu1 %12700  ;;  %v19683_v28 = vpop.permute.xlu0 %12706 }
 0x7eb   : > { %v19679_v33 = vpop.permute.xlu1 %12712 }
 0x7ee   : > { %15549 = vmatmul.mubr.msk.bf16.gmra.mrb[196].mxu0 %vm700_vm1, %v19523_v57 }
 0x7ef   : > { %v19688_v38 = vpop.permute.xlu1 %12708 }
 0x7f3   : > { %v19710_v63 = vpop.permute.xlu1 %12720 }
 0x845   : > { %v11942_v61 = vpop.f32.mrb[134].mxu0 }
 0x846   : > { %v11943_v9 = vadd.f32 %v14201_v62, %v11942_v61  ;;  %v15485_v40 = vpop.f32.mrb[135].mxu0  ;;  %v19697_v61 = vpop.permute.xlu0 %12718 }
 0x848   : > { %v14204_v6 = vmul.f32 -1.442695, %v11943_v9 }
 0x849   : > { %v15490_v54 = vpop.f32.mrb[136].mxu0 }
 0x84a   : > { %16233 = vpow2.f32 %v14204_v6  ;;  %v12114_v43 = vpop.f32.mrb[137].mxu0  ;;  %v12371_v8 = vmul.f32 %v15490_v54, %v19543_v21 }
 0x84b   : > { %v15491_v2 = vpop.f32.mrb[138].mxu0  ;;  %v12369_v1 = vmul.f32 %v19543_v21, %v12114_v43 }
 0x84c   : > { %v12117_v41 = vpop.f32.mrb[139].mxu0  ;;  %v12372_v37 = vmul.f32 %v15491_v2, %v19543_v21  ;;  %v12435_v55 = vadd.f32 %v19548_v53, %v12371_v8 }
 0x84d   : > { %v12370_v10 = vmul.f32 %v19543_v21, %v12117_v41  ;;  %v12433_v44 = vadd.f32 %v19548_v53, %v12369_v1 }
 0x84e   : > { %v12436_v9 = vadd.f32 %v19548_v53, %v12372_v37 }
 0x851   : > { %v15494_v57 = vpop.f32.mrb[140].mxu0 }
 0x852   : > { %v12130_v25 = vpop.f32.mrb[141].mxu0  ;;  %v12375_v0 = vmul.f32 %v15494_v57, %v19543_v21 }
 0x853   : > { %v15495_v46 = vpop.f32.mrb[142].mxu0  ;;  %v12373_v17 = vmul.f32 %v19543_v21, %v12130_v25 }
 0x854   : > { %v16234_v13 = vpop.eup %16233  ;;  %v12133_v51 = vpop.f32.mrb[143].mxu0  ;;  %v12376_v40 = vmul.f32 %v15495_v46, %v19543_v21  ;;  %v12439_v58 = vadd.f32 %v19548_v53, %v12375_v0 }
 0x855   : > { %v11949_v59 = vadd.f32 1.0, %v16234_v13  ;;  %v12374_v6 = vmul.f32 %v19543_v21, %v12133_v51 }
 0x856   : > { %v12440_v1 = vadd.f32 %v19548_v53, %v12376_v40 }
 0x857   : > { %16235 = vrcp.f32 %v11949_v59  ;;  %v12434_v59 = vadd.f32 %v19548_v53, %v12370_v10 }
 0x859   : > { %v15498_v30 = vpop.f32.mrb[144].mxu0 }
 0x85a   : > { %v12146_v19 = vpop.f32.mrb[145].mxu0  ;;  %v12379_v54 = vmul.f32 %v15498_v30, %v19543_v21 }
 0x85b   : > { %v15499_v60 = vpop.f32.mrb[146].mxu0  ;;  %v12377_v41 = vmul.f32 %v19543_v21, %v12146_v19  ;;  %v12437_v19 = vadd.f32 %v19548_v53, %v12373_v17 }
 0x85c   : > { %v12149_v31 = vpop.f32.mrb[147].mxu0  ;;  %v12380_v57 = vmul.f32 %v15499_v60, %v19543_v21  ;;  %v12443_v37 = vadd.f32 %v19548_v53, %v12379_v54 }
 0x85d   : > { %v12378_v13 = vmul.f32 %v19543_v21, %v12149_v31  ;;  %v12438_v31 = vadd.f32 %v19548_v53, %v12374_v6 }
 0x85e   : > { %v12444_v17 = vadd.f32 %v19548_v53, %v12380_v57 }
 0x861   : > { %v16236_v62 = vpop.eup %16235  ;;  %v15502_v43 = vpop.f32.mrb[148].mxu0 }
 0x862   : > { %v12504_v2 = vrot.slane %v16236_v62, %v12503_v22  ;;  %v12162_v25 = vpop.f32.mrb[149].mxu0  ;;  %v12383_v11 = vmul.f32 %v15502_v43, %v19543_v21  ;;  %v12441_v62 = vadd.f32 %v19548_v53, %v12377_v41  ;;  %v12442_v43 = vadd.f32 %v19548_v53, %v12378_v13 }
 0x863   : > { %v12381_v46 = vmul.f32 %v19543_v21, %v12162_v25  ;;  %v15503_v51 = vpop.f32.mrb[150].mxu0 }
 0x864   : > { %v12505_v30 = vcombine.high %v12504_v2, %v12504_v2  ;;  %v12512_v5 = vrot.slane %v12504_v2, %v12503_v22  ;;  %v12384_v60 = vmul.f32 %v15503_v51, %v19543_v21  ;;  %v12165_v8 = vpop.f32.mrb[151].mxu0  ;;  %v19725_v2 = vpop.permute.xlu0 %12714  ;;  %v12447_v6 = vadd.f32 %v19548_v53, %v12383_v11 }
 0x865   : > { %v12382_v10 = vmul.f32 %v19543_v21, %v12165_v8  ;;  %v12445_v54 = vadd.f32 %v19548_v53, %v12381_v46  ;;  %v19743_v46 = vpop.permute.xlu1 %12716 }
 0x866   : > { %v19720_v0 = vrot.slane %v12512_v5, %v20220_v34  ;;  %v19727_v40 = vrot.slane %v12505_v30, %v12503_v22  ;;  %v12448_v25 = vadd.f32 %v19548_v53, %v12384_v60 }
 0x867   : > { %v12446_v13 = vadd.f32 %v19548_v53, %v12382_v10 }
 0x868   : > { %20343 = vst [vmem:[#allocation44_spill] sm:$0xff] %v19727_v40  ;;  %v12532_v51 = vmul.f32 %v19720_v0, %v12435_v55  ;;  %v12530_v41 = vmul.f32 %v19720_v0, %v12433_v44  ;;  %v12533_v57 = vmul.f32 %v19720_v0, %v12436_v9  ;;  %v12531_v5 = vmul.f32 %v19720_v0, %v12434_v59 }
 0x869   : > { %v12536_v22 = vmul.f32 %v19720_v0, %v12439_v58  ;;  %v12534_v30 = vmul.f32 %v19720_v0, %v12437_v19  ;;  %v12537_v11 = vmul.f32 %v19720_v0, %v12440_v1  ;;  %v19741_v8 = vpop.f32.mrb[152].mxu0  ;;  %v12535_v59 = vmul.f32 %v19720_v0, %v12438_v31  ;;  %v19762_v31 = vpop.permute.xlu0 %12726 }
 0x86a   : > { %v12852_v55 = vadd.f32 %v19628_v3, %v12532_v51  ;;  %v12850_v44 = vadd.f32 %v19626_v18, %v12530_v41  ;;  %v12853_v9 = vadd.f32 %v19632_v52, %v12533_v57  ;;  %v19751_v60 = vpop.f32.mrb[153].mxu0  ;;  %v12851_v58 = vadd.f32 %v19630_v48, %v12531_v5 }
 0x86b   : > { %v12856_v19 = vadd.f32 %v19634_v56, %v12536_v22  ;;  %v12854_v1 = vadd.f32 %v19638_v15, %v12534_v30  ;;  %v12857_v10 = vadd.f32 %v19636_v36, %v12537_v11  ;;  %v19757_v34 = vpop.f32.mrb[154].mxu0  ;;  %v12855_v18 = vadd.f32 %v19640_v4, %v12535_v59 }
 0x86c   : > { %v12916_v40 = vmax.f32 %v12852_v55, 0.0  ;;  %v12914_v3 = vmax.f32 %v12850_v44, 0.0  ;;  %v12917_v51 = vmax.f32 %v12853_v9, 0.0  ;;  %v19760_v52 = vpop.f32.mrb[155].mxu0  ;;  %v12915_v41 = vmax.f32 %v12851_v58, 0.0  ;;  %v19764_v44 = vpop.permute.xlu1 %12728 }
 0x86d   : > { %v12920_v57 = vmax.f32 %v12856_v19, 0.0  ;;  %v12918_v48 = vmax.f32 %v12854_v1, 0.0  ;;  %v12921_v5 = vmax.f32 %v12857_v10, 0.0  ;;  %v12919_v30 = vmax.f32 %v12855_v18, 0.0  ;;  %v19795_v18 = vpop.permute.xlu0 %12722 }
 0x86e   : > { %v14374_v56 = vpack.c.bf16 %v12916_v40, %v12916_v40  ;;  %v14372_v22 = vpack.c.bf16 %v12914_v3, %v12914_v3  ;;  %v14375_v15 = vpack.c.bf16 %v12917_v51, %v12917_v51  ;;  %v14373_v36 = vpack.c.bf16 %v12915_v41, %v12915_v41 }
 0x86f   : > { %v14378_v11 = vpack.c.bf16 %v12920_v57, %v12920_v57  ;;  %v14376_v42 = vpack.c.bf16 %v12918_v48, %v12918_v48  ;;  %v14379_v55 = vpack.c.bf16 %v12921_v5, %v12921_v5  ;;  %v14377_v4 = vpack.c.bf16 %v12919_v30, %v12919_v30 }
 0x870   : > { %13237 = vst.msk [vmem:[%s19766_s29 + $0x8] sm:$0xf] %vm13234_vm0, %v14374_v56  ;;  %13235 = vst.msk [vmem:[%s19766_s29] sm:$0xf] %vm13234_vm0, %v14372_v22  ;;  %v12540_v40 = vmul.f32 %v19720_v0, %v12443_v37  ;;  %v12538_v9 = vmul.f32 %v19720_v0, %v12441_v62  ;;  %v12541_v59 = vmul.f32 %v19720_v0, %v12444_v17  ;;  %v19802_v22 = vpop.permute.xlu1 %12724 }
 0x871   : > { %13238 = vst.msk [vmem:[%s19766_s29 + $0xc] sm:$0xf] %vm13234_vm0, %v14375_v15  ;;  %13236 = vst.msk [vmem:[%s19766_s29 + $0x4] sm:$0xf] %vm13234_vm0, %v14373_v36  ;;  %v12539_v58 = vmul.f32 %v19720_v0, %v12442_v43  ;;  %v12544_v19 = vmul.f32 %v19720_v0, %v12447_v6  ;;  %v12542_v1 = vmul.f32 %v19720_v0, %v12445_v54  ;;  %v15510_v10 = vpop.f32.mrb[156].mxu0 }
 0x872   : > { %13241 = vst.msk [vmem:[%s19766_s29 + $0x18] sm:$0xf] %vm13234_vm0, %v14378_v11  ;;  %13239 = vst.msk [vmem:[%s19766_s29 + $0x10] sm:$0xf] %vm13234_vm0, %v14376_v42  ;;  %v12545_v37 = vmul.f32 %v19720_v0, %v12448_v25  ;;  %v12860_v62 = vadd.f32 %v19642_v12, %v12540_v40  ;;  %v12858_v17 = vadd.f32 %v19646_v32, %v12538_v9  ;;  %v12194_v51 = vpop.f32.mrb[157].mxu0 }
 0x873   : > { %13242 = vst.msk [vmem:[%s19766_s29 + $0x1c] sm:$0xf] %vm13234_vm0, %v14379_v55  ;;  %13240 = vst.msk [vmem:[%s19766_s29 + $0x14] sm:$0xf] %vm13234_vm0, %v14377_v4  ;;  %v12861_v3 = vadd.f32 %v19644_v35, %v12541_v59  ;;  %v12543_v42 = vmul.f32 %v19720_v0, %v12446_v13  ;;  %v12859_v43 = vadd.f32 %v19648_v16, %v12539_v58  ;;  %v15511_v41 = vpop.f32.mrb[158].mxu0  ;;  %v19816_v59 = vpop.permute.xlu0 %12734 }
 0x874   : > { %v12864_v6 = vadd.f32 %v19650_v27, %v12544_v19  ;;  %v12862_v54 = vadd.f32 %v19654_v7, %v12542_v1  ;;  %v12865_v25 = vadd.f32 %v19652_v23, %v12545_v37  ;;  %v12924_v57 = vmax.f32 %v12860_v62, 0.0  ;;  %v12197_v32 = vpop.f32.mrb[159].mxu0 }
 0x875   : > { %v12922_v12 = vmax.f32 %v12858_v17, 0.0  ;;  %v12925_v48 = vmax.f32 %v12861_v3, 0.0  ;;  %v12863_v35 = vadd.f32 %v19656_v29, %v12543_v42  ;;  %v12923_v13 = vmax.f32 %v12859_v43, 0.0 }
 0x876   : > { %v12928_v5 = vmax.f32 %v12864_v6, 0.0  ;;  %v12926_v56 = vmax.f32 %v12862_v54, 0.0  ;;  %v12929_v16 = vmax.f32 %v12865_v25, 0.0  ;;  %v14382_v27 = vpack.c.bf16 %v12924_v57, %v12924_v57  ;;  %v19841_v6 = vpop.permute.xlu1 %12736 }
 0x877   : > { %v14380_v7 = vpack.c.bf16 %v12922_v12, %v12922_v12  ;;  %v14383_v23 = vpack.c.bf16 %v12925_v48, %v12925_v48  ;;  %v12927_v15 = vmax.f32 %v12863_v35, 0.0  ;;  %v14381_v30 = vpack.c.bf16 %v12923_v13, %v12923_v13 }
 0x878   : > { %v14386_v36 = vpack.c.bf16 %v12928_v5, %v12928_v5  ;;  %v14384_v29 = vpack.c.bf16 %v12926_v56, %v12926_v56  ;;  %v14387_v11 = vpack.c.bf16 %v12929_v16, %v12929_v16  ;;  %13245 = vst.msk [vmem:[%s19766_s29 + $0x28] sm:$0xf] %vm13234_vm0, %v14382_v27  ;;  %v12387_v4 = vmul.f32 %v19741_v8, %v19543_v21 }
 0x879   : > { %13243 = vst.msk [vmem:[%s19766_s29 + $0x20] sm:$0xf] %vm13234_vm0, %v14380_v7  ;;  %13246 = vst.msk [vmem:[%s19766_s29 + $0x2c] sm:$0xf] %vm13234_vm0, %v14383_v23  ;;  %v14385_v55 = vpack.c.bf16 %v12927_v15, %v12927_v15  ;;  %v12385_v40 = vmul.f32 %v19543_v21, %v19751_v60  ;;  %v12388_v9 = vmul.f32 %v19757_v34, %v19543_v21  ;;  %v15514_v34 = vpop.f32.mrb[160].mxu0  ;;  %v19855_v7 = vpop.permute.xlu0 %12730 }
 0x87a   : > { %13244 = vst.msk [vmem:[%s19766_s29 + $0x24] sm:$0xf] %vm13234_vm0, %v14381_v30  ;;  %13249 = vst.msk [vmem:[%s19766_s29 + $0x38] sm:$0xf] %vm13234_vm0, %v14386_v36  ;;  %v12386_v58 = vmul.f32 %v19543_v21, %v19760_v52  ;;  %v12391_v8 = vmul.f32 %v15510_v10, %v19543_v21  ;;  %v12389_v60 = vmul.f32 %v19543_v21, %v12194_v51  ;;  %v12210_v3 = vpop.f32.mrb[161].mxu0 }
 0x87b   : > { %13247 = vst.msk [vmem:[%s19766_s29 + $0x30] sm:$0xf] %vm13234_vm0, %v14384_v29  ;;  %13250 = vst.msk [vmem:[%s19766_s29 + $0x3c] sm:$0xf] %vm13234_vm0, %v14387_v11  ;;  %v12392_v19 = vmul.f32 %v15511_v41, %v19543_v21  ;;  %v12451_v1 = vadd.f32 %v19548_v53, %v12387_v4  ;;  %v12449_v37 = vadd.f32 %v19548_v53, %v12385_v40  ;;  %v15515_v43 = vpop.f32.mrb[162].mxu0 }
 0x87c   : > { %13248 = vst.msk [vmem:[%s19766_s29 + $0x34] sm:$0xf] %vm13234_vm0, %v14385_v55  ;;  %v12452_v62 = vadd.f32 %v19548_v53, %v12388_v9  ;;  %v12390_v17 = vmul.f32 %v19543_v21, %v12197_v32  ;;  %v12450_v52 = vadd.f32 %v19548_v53, %v12386_v58  ;;  %v12455_v10 = vadd.f32 %v19548_v53, %v12391_v8  ;;  %v12213_v12 = vpop.f32.mrb[163].mxu0 }
 0x87d   : > { %v12453_v42 = vadd.f32 %v19548_v53, %v12389_v60  ;;  %v12456_v51 = vadd.f32 %v19548_v53, %v12392_v19  ;;  %v12548_v54 = vmul.f32 %v19720_v0, %v12451_v1  ;;  %v12546_v25 = vmul.f32 %v19720_v0, %v12449_v37 }
 0x87e   : > { %v12549_v41 = vmul.f32 %v19720_v0, %v12452_v62  ;;  %v12454_v57 = vadd.f32 %v19548_v53, %v12390_v17  ;;  %v12547_v48 = vmul.f32 %v19720_v0, %v12450_v52  ;;  %v12552_v35 = vmul.f32 %v19720_v0, %v12455_v10 }
 0x87f   : > { %v12550_v32 = vmul.f32 %v19720_v0, %v12453_v42  ;;  %v12553_v13 = vmul.f32 %v19720_v0, %v12456_v51  ;;  %v12868_v5 = vadd.f32 %v19658_v26, %v12548_v54  ;;  %v12866_v56 = vadd.f32 %v19662_v49, %v12546_v25  ;;  %v19873_v51 = vpop.permute.xlu0 %12742 }
 0x880   : > { %v12869_v16 = vadd.f32 %v19660_v47, %v12549_v41  ;;  %v12551_v27 = vmul.f32 %v19720_v0, %v12454_v57  ;;  %v12867_v23 = vadd.f32 %v19667_v39, %v12547_v48  ;;  %v12872_v15 = vadd.f32 %v19669_v50, %v12552_v35  ;;  %v19862_v39 = vpop.permute.xlu1 %12732 }
 0x881   : > { %v12870_v30 = vadd.f32 %v19673_v14, %v12550_v32  ;;  %v12873_v36 = vadd.f32 %v19671_v20, %v12553_v13  ;;  %v12932_v29 = vmax.f32 %v12868_v5, 0.0  ;;  %v12930_v11 = vmax.f32 %v12866_v56, 0.0  ;;  %v15518_v9 = vpop.f32.mrb[164].mxu0 }
 0x882   : > { %v12933_v55 = vmax.f32 %v12869_v16, 0.0  ;;  %v12871_v26 = vadd.f32 %v19675_v45, %v12551_v27  ;;  %v12931_v49 = vmax.f32 %v12867_v23, 0.0  ;;  %v12936_v47 = vmax.f32 %v12872_v15, 0.0  ;;  %v12226_v20 = vpop.f32.mrb[165].mxu0 }
 0x883   : > { %v12934_v4 = vmax.f32 %v12870_v30, 0.0  ;;  %v12937_v40 = vmax.f32 %v12873_v36, 0.0  ;;  %v14390_v50 = vpack.c.bf16 %v12932_v29, %v12932_v29  ;;  %v14388_v58 = vpack.c.bf16 %v12930_v11, %v12930_v11  ;;  %v15519_v37 = vpop.f32.mrb[166].mxu0 }
 0x884   : > { %v14391_v14 = vpack.c.bf16 %v12933_v55, %v12933_v55  ;;  %v12935_v8 = vmax.f32 %v12871_v26, 0.0  ;;  %v14389_v60 = vpack.c.bf16 %v12931_v49, %v12931_v49  ;;  %v14394_v45 = vpack.c.bf16 %v12936_v47, %v12936_v47  ;;  %v12229_v42 = vpop.f32.mrb[167].mxu0  ;;  %v19897_v5 = vpop.permute.xlu1 %12744 }
 0x885   : > { %v14392_v19 = vpack.c.bf16 %v12934_v4, %v12934_v4  ;;  %v14395_v1 = vpack.c.bf16 %v12937_v40, %v12937_v40  ;;  %13253 = vst.msk [vmem:[%s19766_s29 + $0x48] sm:$0xf] %vm13234_vm0, %v14390_v50  ;;  %13251 = vst.msk [vmem:[%s19766_s29 + $0x40] sm:$0xf] %vm13234_vm0, %v14388_v58  ;;  %v12395_v17 = vmul.f32 %v15514_v34, %v19543_v21  ;;  %v19911_v40 = vpop.permute.xlu0 %12738 }
 0x886   : > { %13254 = vst.msk [vmem:[%s19766_s29 + $0x4c] sm:$0xf] %vm13234_vm0, %v14391_v14  ;;  %v14393_v62 = vpack.c.bf16 %v12935_v8, %v12935_v8  ;;  %v12393_v52 = vmul.f32 %v19543_v21, %v12210_v3  ;;  %v12396_v10 = vmul.f32 %v15515_v43, %v19543_v21  ;;  %13252 = vst.msk [vmem:[%s19766_s29 + $0x44] sm:$0xf] %vm13234_vm0, %v14389_v60 }
 0x887   : > { %13257 = vst.msk [vmem:[%s19766_s29 + $0x58] sm:$0xf] %vm13234_vm0, %v14394_v45  ;;  %13255 = vst.msk [vmem:[%s19766_s29 + $0x50] sm:$0xf] %vm13234_vm0, %v14392_v19  ;;  %v12394_v54 = vmul.f32 %v19543_v21, %v12213_v12  ;;  %v12399_v25 = vmul.f32 %v15518_v9, %v19543_v21  ;;  %v12397_v34 = vmul.f32 %v19543_v21, %v12226_v20 }
 0x888   : > { %13258 = vst.msk [vmem:[%s19766_s29 + $0x5c] sm:$0xf] %vm13234_vm0, %v14395_v1  ;;  %v12400_v3 = vmul.f32 %v15519_v37, %v19543_v21  ;;  %13256 = vst.msk [vmem:[%s19766_s29 + $0x54] sm:$0xf] %vm13234_vm0, %v14393_v62  ;;  %v12459_v43 = vadd.f32 %v19548_v53, %v12395_v17  ;;  %v12457_v41 = vadd.f32 %v19548_v53, %v12393_v52  ;;  %v19918_v1 = vpop.permute.xlu1 %12740 }
 0x889   : > { %v12460_v57 = vadd.f32 %v19548_v53, %v12396_v10  ;;  %v12398_v48 = vmul.f32 %v19543_v21, %v12229_v42  ;;  %v12458_v35 = vadd.f32 %v19548_v53, %v12394_v54  ;;  %v12463_v12 = vadd.f32 %v19548_v53, %v12399_v25  ;;  %v15522_v11 = vpop.f32.mrb[168].mxu0 }
 0x88a   : > { %v12461_v32 = vadd.f32 %v19548_v53, %v12397_v34  ;;  %v12464_v13 = vadd.f32 %v19548_v53, %v12400_v3  ;;  %v12556_v56 = vmul.f32 %v19720_v0, %v12459_v43  ;;  %v12554_v16 = vmul.f32 %v19720_v0, %v12457_v41  ;;  %v12242_v4 = vpop.f32.mrb[169].mxu0  ;;  %v19929_v34 = vpop.permute.xlu0 %12750  ;;  %v20344_v3 = vld [vmem:[#allocation43_spill] sm:$0xff]  ;;  %v20346_v41 = vld [vmem:[#allocation44_spill] sm:$0xff] }
 0x88b   : > { %v12557_v27 = vmul.f32 %v19720_v0, %v12460_v57  ;;  %v12462_v23 = vadd.f32 %v19548_v53, %v12398_v48  ;;  %v12555_v15 = vmul.f32 %v19720_v0, %v12458_v35  ;;  %v12560_v30 = vmul.f32 %v19720_v0, %v12463_v12  ;;  %v15523_v8 = vpop.f32.mrb[170].mxu0 }
 0x88c   : > { %v12558_v36 = vmul.f32 %v19720_v0, %v12461_v32  ;;  %v12561_v29 = vmul.f32 %v19720_v0, %v12464_v13  ;;  %v12876_v55 = vadd.f32 %v19677_v24, %v12556_v56  ;;  %v12874_v26 = vadd.f32 %v19683_v28, %v12554_v16  ;;  %v12245_v28 = vpop.f32.mrb[171].mxu0 }
 0x88d   : > { %v12877_v49 = vadd.f32 %v19679_v33, %v12557_v27  ;;  %v12559_v47 = vmul.f32 %v19720_v0, %v12462_v23  ;;  %v12875_v9 = vadd.f32 %v19688_v38, %v12555_v15  ;;  %v12880_v50 = vadd.f32 %v19697_v61, %v12560_v30  ;;  %v19953_v30 = vpop.permute.xlu1 %12752 }
 0x88e   : > { %v12878_v58 = vadd.f32 %v19725_v2, %v12558_v36  ;;  %v12881_v14 = vadd.f32 %v19710_v63, %v12561_v29  ;;  %v12940_v20 = vmax.f32 %v12876_v55, 0.0  ;;  %v12938_v24 = vmax.f32 %v12874_v26, 0.0 }
 0x88f   : > { %v12941_v60 = vmax.f32 %v12877_v49, 0.0  ;;  %v12879_v33 = vadd.f32 %v19743_v46, %v12559_v47  ;;  %v12939_v0 = vmax.f32 %v12875_v9, 0.0  ;;  %v12944_v45 = vmax.f32 %v12880_v50, 0.0 }
 0x890   : > { %v12942_v19 = vmax.f32 %v12878_v58, 0.0  ;;  %v12945_v38 = vmax.f32 %v12881_v14, 0.0  ;;  %v14398_v61 = vpack.c.bf16 %v12940_v20, %v12940_v20  ;;  %v14396_v2 = vpack.c.bf16 %v12938_v24, %v12938_v24  ;;  %v19967_v20 = vpop.permute.xlu0 %12746 }
 0x891   : > { %v14399_v63 = vpack.c.bf16 %v12941_v60, %v12941_v60  ;;  %v12943_v37 = vmax.f32 %v12879_v33, 0.0  ;;  %v14397_v62 = vpack.c.bf16 %v12939_v0, %v12939_v0  ;;  %v14402_v17 = vpack.c.bf16 %v12944_v45, %v12944_v45  ;;  %v15526_v35 = vpop.f32.mrb[172].mxu0 }
 0x892   : > { %v14400_v46 = vpack.c.bf16 %v12942_v19, %v12942_v19  ;;  %v14403_v52 = vpack.c.bf16 %v12945_v38, %v12945_v38  ;;  %13261 = vst.msk [vmem:[%s19766_s29 + $0x68] sm:$0xf] %vm13234_vm0, %v14398_v61  ;;  %13259 = vst.msk [vmem:[%s19766_s29 + $0x60] sm:$0xf] %vm13234_vm0, %v14396_v2  ;;  %v12403_v42 = vmul.f32 %v15522_v11, %v19543_v21  ;;  %v20345_v43 = vsub.s32 0, %v20344_v3  ;;  %v12258_v16 = vpop.f32.mrb[173].mxu0  ;;  %v19977_v2 = vpop.permute.xlu1 %12748 }
 0x893   : > { %13262 = vst.msk [vmem:[%s19766_s29 + $0x6c] sm:$0xf] %vm13234_vm0, %v14399_v63  ;;  %v14401_v10 = vpack.c.bf16 %v12943_v37, %v12943_v37  ;;  %v12401_v54 = vmul.f32 %v19543_v21, %v12242_v4  ;;  %v12404_v25 = vmul.f32 %v15523_v8, %v19543_v21  ;;  %13260 = vst.msk [vmem:[%s19766_s29 + $0x64] sm:$0xf] %vm13234_vm0, %v14397_v62  ;;  %v15527_v15 = vpop.f32.mrb[174].mxu0 }
 0x894   : > { %v19934_v57 = vrot.slane %v20346_v41, %v20345_v43  ;;  %13265 = vst.msk [vmem:[%s19766_s29 + $0x78] sm:$0xf] %vm13234_vm0, %v14402_v17  ;;  %13263 = vst.msk [vmem:[%s19766_s29 + $0x70] sm:$0xf] %vm13234_vm0, %v14400_v46  ;;  %v12402_v48 = vmul.f32 %v19543_v21, %v12245_v28  ;;  %v12467_v12 = vadd.f32 %v19548_v53, %v12403_v42  ;;  %v12261_v26 = vpop.f32.mrb[175].mxu0 }
 0x895   : > { %13266 = vst.msk [vmem:[%s19766_s29 + $0x7c] sm:$0xf] %vm13234_vm0, %v14403_v52  ;;  %13264 = vst.msk [vmem:[%s19766_s29 + $0x74] sm:$0xf] %vm13234_vm0, %v14401_v10  ;;  %v12465_v32 = vadd.f32 %v19548_v53, %v12401_v54  ;;  %v12468_v13 = vadd.f32 %v19548_v53, %v12404_v25  ;;  %v12407_v56 = vmul.f32 %v15526_v35, %v19543_v21 }
 0x896   : > { %v12466_v27 = vadd.f32 %v19548_v53, %v12402_v48  ;;  %v12405_v23 = vmul.f32 %v19543_v21, %v12258_v16  ;;  %v12564_v36 = vmul.f32 %v19934_v57, %v12467_v12  ;;  %v12408_v4 = vmul.f32 %v15527_v15, %v19543_v21  ;;  %v20003_v15 = vpop.permute.xlu1 %12760 }
 0x897   : > { %v12562_v29 = vmul.f32 %v19934_v57, %v12465_v32  ;;  %v12565_v11 = vmul.f32 %v19934_v57, %v12468_v13  ;;  %v12471_v55 = vadd.f32 %v19548_v53, %v12407_v56  ;;  %v12406_v9 = vmul.f32 %v19543_v21, %v12261_v26 }
 0x898   : > { %v12563_v49 = vmul.f32 %v19934_v57, %v12466_v27  ;;  %v12469_v47 = vadd.f32 %v19548_v53, %v12405_v23  ;;  %v12884_v50 = vadd.f32 %v19762_v31, %v12564_v36  ;;  %v12472_v33 = vadd.f32 %v19548_v53, %v12408_v4 }
 0x899   : > { %v12882_v58 = vadd.f32 %v19795_v18, %v12562_v29  ;;  %v12885_v14 = vadd.f32 %v19764_v44, %v12565_v11  ;;  %v12568_v8 = vmul.f32 %v19934_v57, %v12471_v55  ;;  %v12470_v28 = vadd.f32 %v19548_v53, %v12406_v9  ;;  %v15530_v61 = vpop.f32.mrb[176].mxu0 }
 0x89a   : > { %v12883_v24 = vadd.f32 %v19802_v22, %v12563_v49  ;;  %v12566_v60 = vmul.f32 %v19934_v57, %v12469_v47  ;;  %v12948_v0 = vmax.f32 %v12884_v50, 0.0  ;;  %v12569_v38 = vmul.f32 %v19934_v57, %v12472_v33  ;;  %v12274_v46 = vpop.f32.mrb[177].mxu0 }
 0x89b   : > { %v12946_v45 = vmax.f32 %v12882_v58, 0.0  ;;  %v12949_v19 = vmax.f32 %v12885_v14, 0.0  ;;  %v12888_v31 = vadd.f32 %v19816_v59, %v12568_v8  ;;  %v12567_v22 = vmul.f32 %v19934_v57, %v12470_v28  ;;  %v15531_v42 = vpop.f32.mrb[178].mxu0 }
 0x89c   : > { %v12947_v18 = vmax.f32 %v12883_v24, 0.0  ;;  %v12886_v44 = vadd.f32 %v19855_v7, %v12566_v60  ;;  %v14406_v63 = vpack.c.bf16 %v12948_v0, %v12948_v0  ;;  %v12889_v10 = vadd.f32 %v19841_v6, %v12569_v38  ;;  %v12277_v41 = vpop.f32.mrb[179].mxu0  ;;  %v19990_v6 = vpop.permute.xlu0 %12758 }
 0x89d   : > { %v14404_v37 = vpack.c.bf16 %v12946_v45, %v12946_v45  ;;  %v14407_v62 = vpack.c.bf16 %v12949_v19, %v12949_v19  ;;  %v12952_v17 = vmax.f32 %v12888_v31, 0.0  ;;  %v12887_v7 = vadd.f32 %v19862_v39, %v12567_v22  ;;  %v20025_v19 = vpop.permute.xlu1 %12756 }
 0x89e   : > { %v14405_v59 = vpack.c.bf16 %v12947_v18, %v12947_v18  ;;  %v12950_v52 = vmax.f32 %v12886_v44, 0.0  ;;  %13269 = vst.msk [vmem:[%s19766_s29 + $0x88] sm:$0xf] %vm13234_vm0, %v14406_v63  ;;  %v12411_v25 = vmul.f32 %v15530_v61, %v19543_v21  ;;  %v12409_v3 = vmul.f32 %v19543_v21, %v12274_v46 }
 0x89f   : > { %13267 = vst.msk [vmem:[%s19766_s29 + $0x80] sm:$0xf] %vm13234_vm0, %v14404_v37  ;;  %13270 = vst.msk [vmem:[%s19766_s29 + $0x8c] sm:$0xf] %vm13234_vm0, %v14407_v62  ;;  %v14410_v54 = vpack.c.bf16 %v12952_v17, %v12952_v17  ;;  %v12412_v43 = vmul.f32 %v15531_v42, %v19543_v21  ;;  %v12953_v48 = vmax.f32 %v12889_v10, 0.0  ;;  %v12951_v35 = vmax.f32 %v12887_v7, 0.0 }
 0x8a0   : > { %13268 = vst.msk [vmem:[%s19766_s29 + $0x84] sm:$0xf] %vm13234_vm0, %v14405_v59  ;;  %v14408_v39 = vpack.c.bf16 %v12950_v52, %v12950_v52  ;;  %v12410_v12 = vmul.f32 %v19543_v21, %v12277_v41  ;;  %v12475_v32 = vadd.f32 %v19548_v53, %v12411_v25  ;;  %v12473_v13 = vadd.f32 %v19548_v53, %v12409_v3  ;;  %v20017_v58 = vpop.permute.xlu0 %12754  ;;  %v20051_v3 = vld [vmem:[%s20213_s8] ss:$0 sm:$0xff] }
 0x8a1   : > { %13273 = vst.msk [vmem:[%s19766_s29 + $0x98] sm:$0xf] %vm13234_vm0, %v14410_v54  ;;  %v12476_v56 = vadd.f32 %v19548_v53, %v12412_v43  ;;  %v14411_v16 = vpack.c.bf16 %v12953_v48, %v12953_v48  ;;  %v14409_v27 = vpack.c.bf16 %v12951_v35, %v12951_v35  ;;  %v15534_v26 = vpop.f32.mrb[180].mxu0  ;;  %v20054_v41 = vpop.permute.xlu1 %12768 }
 0x8a2   : > { %13271 = vst.msk [vmem:[%s19766_s29 + $0x90] sm:$0xf] %vm13234_vm0, %v14408_v39  ;;  %v12474_v23 = vadd.f32 %v19548_v53, %v12410_v12  ;;  %v12572_v36 = vmul.f32 %v19934_v57, %v12475_v32  ;;  %v12570_v29 = vmul.f32 %v19934_v57, %v12473_v13  ;;  %v12415_v9 = vmul.f32 %v15534_v26, %v19543_v21  ;;  %v12290_v50 = vpop.f32.mrb[181].mxu0 }
 0x8a3   : > { %v12573_v11 = vmul.f32 %v19934_v57, %v12476_v56  ;;  %13274 = vst.msk [vmem:[%s19766_s29 + $0x9c] sm:$0xf] %vm13234_vm0, %v14411_v16  ;;  %13272 = vst.msk [vmem:[%s19766_s29 + $0x94] sm:$0xf] %vm13234_vm0, %v14409_v27  ;;  %v12413_v8 = vmul.f32 %v19543_v21, %v12290_v50  ;;  %v15535_v24 = vpop.f32.mrb[182].mxu0 }
 0x8a4   : > { %v12571_v55 = vmul.f32 %v19934_v57, %v12474_v23  ;;  %v12892_v49 = vadd.f32 %v19873_v51, %v12572_v36  ;;  %v12890_v47 = vadd.f32 %v19911_v40, %v12570_v29  ;;  %v12479_v51 = vadd.f32 %v19548_v53, %v12415_v9  ;;  %v12293_v40 = vpop.f32.mrb[183].mxu0  ;;  %v20038_v17 = vpop.permute.xlu0 %12766 }
 0x8a5   : > { %v12893_v4 = vadd.f32 %v19897_v5, %v12573_v11  ;;  %v12477_v0 = vadd.f32 %v19548_v53, %v12413_v8  ;;  %v12416_v45 = vmul.f32 %v15535_v24, %v19543_v21  ;;  %v12765_v9 = vpop.permute.xlu1 %12764 }
 0x8a6   : > { %v12891_v14 = vadd.f32 %v19918_v1, %v12571_v55  ;;  %v12956_v60 = vmax.f32 %v12892_v49, 0.0  ;;  %v12954_v33 = vmax.f32 %v12890_v47, 0.0  ;;  %v12414_v1 = vmul.f32 %v19543_v21, %v12293_v40 }
 0x8a7   : > { %v12957_v28 = vmax.f32 %v12893_v4, 0.0  ;;  %v12576_v38 = vmul.f32 %v19934_v57, %v12479_v51  ;;  %v12574_v61 = vmul.f32 %v19934_v57, %v12477_v0  ;;  %v12480_v63 = vadd.f32 %v19548_v53, %v12416_v45 }
 0x8a8   : > { %v12955_v5 = vmax.f32 %v12891_v14, 0.0  ;;  %v14414_v31 = vpack.c.bf16 %v12956_v60, %v12956_v60  ;;  %v14412_v18 = vpack.c.bf16 %v12954_v33, %v12954_v33  ;;  %v12478_v37 = vadd.f32 %v19548_v53, %v12414_v1  ;;  %v12763_v23 = vpop.permute.xlu0 %12762 }
 0x8a9   : > { %v14415_v44 = vpack.c.bf16 %v12957_v28, %v12957_v28  ;;  %v12896_v62 = vadd.f32 %v19929_v34, %v12576_v38  ;;  %v12894_v46 = vadd.f32 %v19967_v20, %v12574_v61  ;;  %v12577_v59 = vmul.f32 %v19934_v57, %v12480_v63  ;;  %v15538_v10 = vpop.f32.mrb[184].mxu0 }
 0x8aa   : > { %v14413_v22 = vpack.c.bf16 %v12955_v5, %v12955_v5  ;;  %13277 = vst.msk [vmem:[%s19766_s29 + $0xa8] sm:$0xf] %vm13234_vm0, %v14414_v31  ;;  %13275 = vst.msk [vmem:[%s19766_s29 + $0xa0] sm:$0xf] %vm13234_vm0, %v14412_v18  ;;  %v12575_v52 = vmul.f32 %v19934_v57, %v12478_v37  ;;  %v12419_v7 = vmul.f32 %v15538_v10, %v19543_v21  ;;  %v12306_v42 = vpop.f32.mrb[185].mxu0  ;;  %v12777_v37 = vpop.permute.xlu1 %12776 }
 0x8ab   : > { %13278 = vst.msk [vmem:[%s19766_s29 + $0xac] sm:$0xf] %vm13234_vm0, %v14415_v44  ;;  %v12960_v53 = vmax.f32 %v12896_v62, 0.0  ;;  %v12958_v54 = vmax.f32 %v12894_v46, 0.0  ;;  %v12897_v25 = vadd.f32 %v19953_v30, %v12577_v59  ;;  %v12417_v20 = vmul.f32 %v20051_v3, %v12306_v42  ;;  %v15539_v43 = vpop.f32.mrb[186].mxu0 }
 0x8ac   : > { %13276 = vst.msk [vmem:[%s19766_s29 + $0xa4] sm:$0xf] %vm13234_vm0, %v14413_v22  ;;  %v12895_v34 = vadd.f32 %v19977_v2, %v12575_v52  ;;  %v20059_v21 = vld [vmem:[%s20214_s9] ss:$0 sm:$0xff]  ;;  %v12420_v2 = vmul.f32 %v20051_v3, %v15539_v43  ;;  %v12309_v48 = vpop.f32.mrb[187].mxu0 }
 0x8ad   : > { %v14418_v39 = vpack.c.bf16 %v12960_v53, %v12960_v53  ;;  %v12483_v30 = vadd.f32 %v20059_v21, %v12419_v7  ;;  %v14416_v35 = vpack.c.bf16 %v12958_v54, %v12958_v54  ;;  %v12961_v12 = vmax.f32 %v12897_v25, 0.0 }
 0x8ae   : > { %v12959_v32 = vmax.f32 %v12895_v34, 0.0  ;;  %v12481_v13 = vadd.f32 %v20059_v21, %v12417_v20  ;;  %v12484_v16 = vadd.f32 %v20059_v21, %v12420_v2  ;;  %v12418_v27 = vmul.f32 %v20051_v3, %v12309_v48 }
 0x8af   : > { %13281 = vst.msk [vmem:[%s19766_s29 + $0xb8] sm:$0xf] %vm13234_vm0, %v14418_v39  ;;  %v12580_v56 = vmul.f32 %v19934_v57, %v12483_v30  ;;  %13279 = vst.msk [vmem:[%s19766_s29 + $0xb0] sm:$0xf] %vm13234_vm0, %v14416_v35  ;;  %v14419_v36 = vpack.c.bf16 %v12961_v12, %v12961_v12 }
 0x8b0   : > { %v14417_v29 = vpack.c.bf16 %v12959_v32, %v12959_v32  ;;  %v12578_v11 = vmul.f32 %v19934_v57, %v12481_v13  ;;  %v12581_v26 = vmul.f32 %v19934_v57, %v12484_v16  ;;  %v12482_v49 = vadd.f32 %v20059_v21, %v12418_v27  ;;  %v12773_v16 = vpop.permute.xlu1 %12772 }
 0x8b1   : > { %v12900_v55 = vadd.f32 %v19990_v6, %v12580_v56  ;;  %13282 = vst.msk [vmem:[%s19766_s29 + $0xbc] sm:$0xf] %vm13234_vm0, %v14419_v36  ;;  %v15542_v4 = vpop.f32.mrb[188].mxu0 }
 0x8b2   : > { %13280 = vst.msk [vmem:[%s19766_s29 + $0xb4] sm:$0xf] %vm13234_vm0, %v14417_v29  ;;  %v12898_v47 = vadd.f32 %v20017_v58, %v12578_v11  ;;  %v12901_v14 = vadd.f32 %v20003_v15, %v12581_v26  ;;  %v12579_v8 = vmul.f32 %v19934_v57, %v12482_v49  ;;  %v12423_v6 = vmul.f32 %v20051_v3, %v15542_v4  ;;  %v12322_v24 = vpop.f32.mrb[189].mxu0  ;;  %v12775_v15 = vpop.permute.xlu0 %12774 }
 0x8b3   : > { %v12964_v50 = vmax.f32 %v12900_v55, 0.0  ;;  %v12421_v33 = vmul.f32 %v20051_v3, %v12322_v24  ;;  %v15543_v28 = vpop.f32.mrb[190].mxu0 }
 0x8b4   : > { %v12962_v60 = vmax.f32 %v12898_v47, 0.0  ;;  %v12965_v40 = vmax.f32 %v12901_v14, 0.0  ;;  %v12899_v58 = vadd.f32 %v20025_v19, %v12579_v8  ;;  %v12487_v5 = vadd.f32 %v20059_v21, %v12423_v6  ;;  %v12325_v0 = vpop.f32.mrb[191].mxu0 }
 0x8b5   : > { %v14422_v51 = vpack.c.bf16 %v12964_v50, %v12964_v50  ;;  %v12485_v1 = vadd.f32 %v20059_v21, %v12421_v33  ;;  %v12424_v31 = vmul.f32 %v20051_v3, %v15543_v28  ;;  %v12422_v18 = vmul.f32 %v20051_v3, %v12325_v0 }
 0x8b6   : > { %v14420_v45 = vpack.c.bf16 %v12962_v60, %v12962_v60  ;;  %v14423_v44 = vpack.c.bf16 %v12965_v40, %v12965_v40  ;;  %v12963_v38 = vmax.f32 %v12899_v58, 0.0  ;;  %v12584_v22 = vmul.f32 %v19934_v57, %v12487_v5  ;;  %v12771_v25 = vpop.permute.xlu0 %12770 }
 0x8b7   : > { %13285 = vst.msk [vmem:[%s19766_s29 + $0xc8] sm:$0xf] %vm13234_vm0, %v14422_v51  ;;  %v12582_v19 = vmul.f32 %v19934_v57, %v12485_v1  ;;  %v12488_v61 = vadd.f32 %v20059_v21, %v12424_v31  ;;  %v12486_v63 = vadd.f32 %v20059_v21, %v12422_v18  ;;  %v12781_v51 = vpop.permute.xlu1 %12780 }
 0x8b8   : > { %13283 = vst.msk [vmem:[%s19766_s29 + $0xc0] sm:$0xf] %vm13234_vm0, %v14420_v45  ;;  %13286 = vst.msk [vmem:[%s19766_s29 + $0xcc] sm:$0xf] %vm13234_vm0, %v14423_v44  ;;  %v14421_v62 = vpack.c.bf16 %v12963_v38, %v12963_v38  ;;  %v12904_v46 = vadd.f32 %v20038_v17, %v12584_v22 }
 0x8b9   : > { %v12902_v59 = vadd.f32 %v12763_v23, %v12582_v19  ;;  %v12585_v52 = vmul.f32 %v19934_v57, %v12488_v61  ;;  %v12583_v10 = vmul.f32 %v19934_v57, %v12486_v63  ;;  %v15546_v53 = vpop.f32.mrb[192].mxu0 }
 0x8ba   : > { %13284 = vst.msk [vmem:[%s19766_s29 + $0xc4] sm:$0xf] %vm13234_vm0, %v14421_v62  ;;  %v12968_v7 = vmax.f32 %v12904_v46, 0.0  ;;  %v12427_v42 = vmul.f32 %v20051_v3, %v15546_v53  ;;  %v12338_v54 = vpop.f32.mrb[193].mxu0  ;;  %v12779_v47 = vpop.permute.xlu0 %12778 }
 0x8bb   : > { %v12966_v34 = vmax.f32 %v12902_v59, 0.0  ;;  %v12905_v20 = vadd.f32 %v20054_v41, %v12585_v52  ;;  %v12903_v43 = vadd.f32 %v12765_v9, %v12583_v10  ;;  %v12425_v17 = vmul.f32 %v20051_v3, %v12338_v54  ;;  %v15547_v39 = vpop.f32.mrb[194].mxu0  ;;  %v12785_v10 = vpop.permute.xlu1 %12784 }
 0x8bc   : > { %v14426_v30 = vpack.c.bf16 %v12968_v7, %v12968_v7  ;;  %v12491_v2 = vadd.f32 %v20059_v21, %v12427_v42  ;;  %v12428_v48 = vmul.f32 %v20051_v3, %v15547_v39  ;;  %v12341_v35 = vpop.f32.mrb[195].mxu0 }
 0x8bd   : > { %v14424_v12 = vpack.c.bf16 %v12966_v34, %v12966_v34  ;;  %v12969_v32 = vmax.f32 %v12905_v20, 0.0  ;;  %v12967_v13 = vmax.f32 %v12903_v43, 0.0  ;;  %v12489_v56 = vadd.f32 %v20059_v21, %v12425_v17 }
 0x8be   : > { %13289 = vst.msk [vmem:[%s19766_s29 + $0xd8] sm:$0xf] %vm13234_vm0, %v14426_v30  ;;  %v12588_v41 = vmul.f32 %v19934_v57, %v12491_v2  ;;  %v12492_v27 = vadd.f32 %v20059_v21, %v12428_v48  ;;  %v12426_v23 = vmul.f32 %v20051_v3, %v12341_v35  ;;  %v12783_v19 = vpop.permute.xlu0 %12782 }
 0x8bf   : > { %13287 = vst.msk [vmem:[%s19766_s29 + $0xd0] sm:$0xf] %vm13234_vm0, %v14424_v12  ;;  %v14427_v36 = vpack.c.bf16 %v12969_v32, %v12969_v32  ;;  %v14425_v29 = vpack.c.bf16 %v12967_v13, %v12967_v13  ;;  %v12586_v11 = vmul.f32 %v19934_v57, %v12489_v56 }
 0x8c0   : > { %v12908_v55 = vadd.f32 %v12775_v15, %v12588_v41  ;;  %v12589_v26 = vmul.f32 %v19934_v57, %v12492_v27  ;;  %v12490_v49 = vadd.f32 %v20059_v21, %v12426_v23 }
 0x8c1   : > { %13290 = vst.msk [vmem:[%s19766_s29 + $0xdc] sm:$0xf] %vm13234_vm0, %v14427_v36  ;;  %13288 = vst.msk [vmem:[%s19766_s29 + $0xd4] sm:$0xf] %vm13234_vm0, %v14425_v29  ;;  %v12906_v4 = vadd.f32 %v12771_v25, %v12586_v11  ;;  %v15550_v9 = vpop.f32.mrb[196].mxu0 }
 0x8c2   : > { %v12972_v50 = vmax.f32 %v12908_v55, 0.0  ;;  %v12909_v14 = vadd.f32 %v12777_v37, %v12589_v26  ;;  %v12587_v8 = vmul.f32 %v19934_v57, %v12490_v49  ;;  %v12431_v6 = vmul.f32 %v20051_v3, %v15550_v9  ;;  %v12354_v24 = vpop.f32.mrb[197].mxu0 }
 0x8c3   : > { %v12970_v60 = vmax.f32 %v12906_v4, 0.0  ;;  %v12429_v33 = vmul.f32 %v20051_v3, %v12354_v24  ;;  %v15551_v28 = vpop.f32.mrb[198].mxu0 }
 0x8c4   : > { %v14430_v40 = vpack.c.bf16 %v12972_v50, %v12972_v50  ;;  %v12973_v58 = vmax.f32 %v12909_v14, 0.0  ;;  %v12907_v5 = vadd.f32 %v12773_v16, %v12587_v8  ;;  %v12495_v0 = vadd.f32 %v20059_v21, %v12431_v6  ;;  %v12357_v15 = vpop.f32.mrb[199].mxu0 }
 0x8c5   : > { %v14428_v45 = vpack.c.bf16 %v12970_v60, %v12970_v60  ;;  %v12493_v1 = vadd.f32 %v20059_v21, %v12429_v33  ;;  %v12432_v31 = vmul.f32 %v20051_v3, %v15551_v28  ;;  %v12430_v18 = vmul.f32 %v20051_v3, %v12357_v15 }
 0x8c6   : > { %13293 = vst.msk [vmem:[%s19766_s29 + $0xe8] sm:$0xf] %vm13234_vm0, %v14430_v40  ;;  %v14431_v44 = vpack.c.bf16 %v12973_v58, %v12973_v58  ;;  %v12971_v38 = vmax.f32 %v12907_v5, 0.0  ;;  %v12592_v22 = vmul.f32 %v19934_v57, %v12495_v0 }
 0x8c7   : > { %13291 = vst.msk [vmem:[%s19766_s29 + $0xe0] sm:$0xf] %vm13234_vm0, %v14428_v45  ;;  %v12590_v61 = vmul.f32 %v19934_v57, %v12493_v1  ;;  %v12496_v63 = vadd.f32 %v20059_v21, %v12432_v31  ;;  %v12494_v37 = vadd.f32 %v20059_v21, %v12430_v18 }
 0x8c8   : > { %13294 = vst.msk [vmem:[%s19766_s29 + $0xec] sm:$0xf] %vm13234_vm0, %v14431_v44  ;;  %v14429_v3 = vpack.c.bf16 %v12971_v38, %v12971_v38  ;;  %v12912_v62 = vadd.f32 %v12783_v19, %v12592_v22 }
 0x8c9   : > { %v12910_v46 = vadd.f32 %v12779_v47, %v12590_v61  ;;  %v12593_v59 = vmul.f32 %v19934_v57, %v12496_v63  ;;  %v12591_v52 = vmul.f32 %v19934_v57, %v12494_v37 }
 0x8ca   : > { %13292 = vst.msk [vmem:[%s19766_s29 + $0xe4] sm:$0xf] %vm13234_vm0, %v14429_v3  ;;  %v12976_v53 = vmax.f32 %v12912_v62, 0.0 }
 0x8cb   : > { %v12974_v7 = vmax.f32 %v12910_v46, 0.0  ;;  %v12913_v42 = vadd.f32 %v12785_v10, %v12593_v59  ;;  %v12911_v21 = vadd.f32 %v12781_v51, %v12591_v52 }
 0x8cc   : > { %v14434_v54 = vpack.c.bf16 %v12976_v53, %v12976_v53 }
 0x8cd   : > { %v14432_v25 = vpack.c.bf16 %v12974_v7, %v12974_v7  ;;  %v12977_v34 = vmax.f32 %v12913_v42, 0.0  ;;  %v12975_v20 = vmax.f32 %v12911_v21, 0.0 }
 0x8ce   : > { %13297 = vst.msk [vmem:[%s19766_s29 + $0xf8] sm:$0xf] %vm13234_vm0, %v14434_v54 }
 0x8cf   : > { %13295 = vst.msk [vmem:[%s19766_s29 + $0xf0] sm:$0xf] %vm13234_vm0, %v14432_v25  ;;  %v14435_v57 = vpack.c.bf16 %v12977_v34, %v12977_v34  ;;  %v14433_v43 = vpack.c.bf16 %v12975_v20, %v12975_v20 }
 0x8d1   : > { %13298 = vst.msk [vmem:[%s19766_s29 + $0xfc] sm:$0xf] %vm13234_vm0, %v14435_v57  ;;  %13296 = vst.msk [vmem:[%s19766_s29 + $0xf4] sm:$0xf] %vm13234_vm0, %v14433_v43 }
 0x8d2   : > { %16494 = shalt.err (!%p16491_p3)
}
 0x8d3   : > { %s16495_s19 = scalar_lea.hbm %s20152_s22, 4096  ;;  %s16499_s27 = scalar_lea.hbm %s20219_s14, 8192 }
 0x8d4   : > { %p16496_p4 = scmp.ne.s32.totalorder %s20152_s22, %s16495_s19  ;;  %p16500_p9 = scmp.lt.u32.totalorder %s20152_s22, %s20219_s14 }
 0x8d5   : > { %p16501_p10 = scmp.lt.u32.totalorder %s16499_s27, %s16495_s19  ;;  %p16503_p12 = scmp.lt.u32.totalorder %s16495_s19, %s20152_s22 }
 0x8d6   : > { %p16497_p7 = pnand %p16496_p4, %p16670_p5 }
 0x8d7   : > { %p16502_p11 = por %p16501_p10, %p16500_p9 }
 0x8d8   : > { %p16498_p8 = pneg %p16497_p7 }
 0x8d9   : > { %p16504_p13 = por %p16503_p12, %p16502_p11 }
 0x8db   : > { %p16505_p0 = pnand %p16504_p13, %p16498_p8 }
 0x8dd   : > { %16508 = shalt.err (!%p16505_p0)
}
 0x8de   : > { %s16552_s26 = smov 64   ;;  %s16553_s21 = smov 4  }
 0x8df   : > { %16081 = dma.vmem_to_hbm [thread:$0]  (%p16670_p5), %s20154_s28, 4096, %s20152_s22, %s20164_s11, %s16552_s26, %s16552_s26, %s16553_s21  }
 0x8e0 PF: > { %p16087_p1 = scmp.ge.s32.totalorder %s16543_s18, 2  ;;  %s13329_s0 = sand.u32 1, %s16531_s15  }
 0x8e1   : > { %s13330_s1 = scalar_lea.sflag [#allocation5], %s13329_s0 }
 0x8e2   : > { %p16084_p2 = pnand %p16087_p1, %p16674_p6 }
 0x8e4   : > { %16526 = dma.done.wait (!%p16084_p2), %s13330_s1, 4096  }
 0x8e5   : > { %16528 = vsyncadd (!%p16084_p2), %s13330_s1, 4294963200  ;;  %p26_p3 = scmp.ge.s32.totalorder %s16657_s20, 4   ;;  %s20347_s15 = smov %s16535_s16 }
 0x8e6   : > { %s20348_s16 = smov %s16539_s17  ;;  %s20349_s17 = smov %s16668_s23 }
 0x8e7   : > { %s20350_s18 = smov %s16657_s20  ;;  %28 = sbr.rel (!%p26_p3) target bundleno = 6 (0x6), region = 122 }
 0x8ee   :  { %13335 = vsyncpa [#allocation5], 1 }
 0x8ef   :  { %13337 = vsyncpa [#allocation5 + $0x1], 1 }

</bundles_post_ra>
